<compile_context>
chip_gen: v7x
topology: tpu7x:2x2x1
jax: 0.10.0
libtpu: 0.0.40
codegen_flags: <defaults>
</compile_context>

<pallas_src>
import jax
import jax.numpy as jnp
from jax.experimental import pallas as pl
from jax.experimental.pallas import tpu as pltpu


# ---------------------------------------------------------------------------
# Tile / VMEM budgeting (generation-aware)
# ---------------------------------------------------------------------------

def _vmem_capacity_bytes():
    try:
        return int(pltpu.get_tpu_info().vmem_capacity_bytes)
    except Exception:
        # Conservative: v7x per-TensorCore VMEM (the smallest across generations).
        return 64 * 1024 * 1024


def _pick_row_tile(h, w, c_in, c_out, n, itemsize_x=4, itemsize_out=4):
    """Pick R = number of input rows per grid step.

    Legality: H % R == 0 and (R == H or (R % 8 == 0 and (R*W) % 128 == 0)), so
    both the (C_in, R*W) input block and the (C_out, 2R, 2W) output block satisfy
    the (8, 128) BlockSpec constraint (or take the full extent).
    VMEM: double-buffered input + output tiles + resident weight/bias must fit a
    generation-aware budget. Megacore: prefer >= 2 parallel blocks in total so
    both v7x TensorCores get work.

    Returns (R, vmem_limit_bytes).
    """
    c4 = 4 * c_out
    cap = _vmem_capacity_bytes()

    resident = 2 * (c4 * c_in + c4) * 4           # packed weight + bias (x2 buffers)
    slack = 4 * 1024 * 1024                       # compiler scratch headroom
    budget = int(min(cap * 0.6, 48 * 1024 * 1024)) - resident - slack
    budget = max(budget, 1 * 1024 * 1024)

    # Bytes per input row, double-buffered: x row (C_in*W) + 2 output rows (C_out*2W each).
    per_row = 2 * (c_in * w * itemsize_x + c_out * 4 * w * itemsize_out)

    def legal(d):
        return d == h or (d % 8 == 0 and (d * w) % 128 == 0)

    cands = [d for d in range(h, 0, -1) if h % d == 0 and legal(d)]
    fitting = [d for d in cands if d * per_row <= budget] or [cands[-1]]
    r = fitting[0]                                # largest legal tile that fits
    if n * (h // r) < 2:                          # give the 2nd TensorCore work (v7x)
        multi = [d for d in fitting if h // d >= 2]
        if multi:
            r = multi[0]

    needed = r * per_row + resident + slack
    vmem_limit = int(min(cap, max(needed + 16 * 1024 * 1024, 64 * 1024 * 1024)))
    return r, vmem_limit


# ---------------------------------------------------------------------------
# Parameter packing (tiny, one-time)
# ---------------------------------------------------------------------------

def _pack_params(weight, bias):
    c_in, c_out = weight.shape[0], weight.shape[1]
    c4 = 4 * c_out
    # weight[ci, co, di, dj] -> (di, dj, co, ci) -> (4*C_out, C_in)
    w_pack = jnp.transpose(weight, (2, 3, 1, 0)).reshape(c4, c_in).astype(jnp.float32)
    # bias replicated per (di, dj) group, matching the weight packing order.
    b_col = jnp.tile(bias, 4).reshape(c4, 1).astype(jnp.float32)
    return w_pack, b_col


# ---------------------------------------------------------------------------
# Fused kernel: matmul + (di, dj) spatial interleave, output written once
# ---------------------------------------------------------------------------

def _fused_kernel(x_ref, w_ref, b_ref, o_ref):
    # x_ref: (C_in, R*W)      -- R input rows, flattened, lane-dense
    # w_ref: (4*C_out, C_in)  -- packed (di, dj, co) x ci, resident in VMEM
    # b_ref: (4*C_out, 1)
    # o_ref: (C_out, 2R, 2W)  -- final NCHW output tile
    c_out, r2, w2 = o_ref.shape
    r, w = r2 // 2, w2 // 2

    y = jnp.dot(w_ref[...], x_ref[...], preferred_element_type=jnp.float32)
    y = y + b_ref[...]                        # (4*C_out, R*W)
    y = y.reshape(2, 2, c_out, r, w)          # (di, dj, co, r, w)
    # dj -> lanes: (di, co, r, 2W). XLU/relayout work; MXU/DMA are the budget here.
    z = jnp.stack([y[:, 0], y[:, 1]], axis=-1).reshape(2, c_out, r, 2 * w)
    # di -> sublanes (row interleave): (co, 2R, 2W)
    o = jnp.stack([z[0], z[1]], axis=2).reshape(c_out, 2 * r, 2 * w)
    o_ref[...] = o.astype(o_ref.dtype)


def _fused_call(x, weight, bias):
    N, C_in, H, W = x.shape
    C_out = weight.shape[1]
    C4 = 4 * C_out
    HW = H * W

    w_pack, b_col = _pack_params(weight, bias)
    x3 = x.reshape(N, C_in, HW)               # free (row-major) -- no transpose pass

    R, vmem_limit = _pick_row_tile(H, W, C_in, C_out, N,
                                   itemsize_x=jnp.dtype(x.dtype).itemsize)
    chunk = R * W                              # R contiguous input rows
    grid = (N, H // R)

    cost = pl.CostEstimate(
        flops=2 * N * HW * C_in * C4,
        transcendentals=0,
        bytes_accessed=(x3.size * jnp.dtype(x3.dtype).itemsize
                        + w_pack.size * 4 + b_col.size * 4
                        + N * C_out * 4 * HW * 4),
    )

    return pl.pallas_call(
        _fused_kernel,
        out_shape=jax.ShapeDtypeStruct((N, C_out, 2 * H, 2 * W), jnp.float32),
        grid_spec=pltpu.PrefetchScalarGridSpec(
            num_scalar_prefetch=0,
            grid=grid,
            in_specs=[
                # streamed activation tile: R rows, flattened -> lane-dense
                pl.BlockSpec((None, C_in, chunk), lambda n, s: (n, 0, s)),
                # packed weight: constant index_map -> resident in VMEM
                pl.BlockSpec((C4, C_in), lambda n, s: (0, 0)),
                # bias column: resident in VMEM
                pl.BlockSpec((C4, 1), lambda n, s: (0, 0)),
            ],
            # final upsampled tile: 2R output rows x full 2W, written exactly once
            out_specs=pl.BlockSpec((None, C_out, 2 * R, 2 * W),
                                   lambda n, s: (n, 0, s, 0)),
        ),
        compiler_params=pltpu.CompilerParams(
            dimension_semantics=("parallel", "parallel"),
            vmem_limit_bytes=vmem_limit,
        ),
        cost_estimate=cost,
    )(x3, w_pack, b_col)


# ---------------------------------------------------------------------------
# Fallback: previous known-good two-pass implementation (kernel + XLA interleave)
# ---------------------------------------------------------------------------

def _unfused_kernel(x_ref, w_ref, b_ref, o_ref):
    o_ref[...] = (
        jnp.dot(w_ref[...], x_ref[...], preferred_element_type=jnp.float32)
        + b_ref[...]
    ).astype(o_ref.dtype)


def _unfused_call(x, weight, bias):
    N, C_in, H, W = x.shape
    C_out = weight.shape[1]
    C4 = 4 * C_out
    HW = H * W

    w_pack, b_col = _pack_params(weight, bias)
    x3 = x.reshape(N, C_in, HW)

    R, vmem_limit = _pick_row_tile(H, W, C_in, C_out, N,
                                   itemsize_x=jnp.dtype(x.dtype).itemsize)
    chunk = R * W
    grid = (N, HW // chunk)

    out4 = pl.pallas_call(
        _unfused_kernel,
        out_shape=jax.ShapeDtypeStruct((N, C4, HW), jnp.float32),
        grid_spec=pltpu.PrefetchScalarGridSpec(
            num_scalar_prefetch=0,
            grid=grid,
            in_specs=[
                pl.BlockSpec((None, C_in, chunk), lambda n, s: (n, 0, s)),
                pl.BlockSpec((C4, C_in), lambda n, s: (0, 0)),
                pl.BlockSpec((C4, 1), lambda n, s: (0, 0)),
            ],
            out_specs=pl.BlockSpec((None, C4, chunk), lambda n, s: (n, 0, s)),
        ),
        compiler_params=pltpu.CompilerParams(
            dimension_semantics=("parallel", "parallel"),
            vmem_limit_bytes=vmem_limit,
        ),
    )(x3, w_pack, b_col)

    y = out4.reshape(N, 2, 2, C_out, H, W)      # (n, di, dj, co, i, j)
    y = jnp.transpose(y, (0, 3, 4, 1, 5, 2))    # (n, co, i, di, j, dj)
    return y.reshape(N, C_out, 2 * H, 2 * W)


# ---------------------------------------------------------------------------
# Public entry point
# ---------------------------------------------------------------------------

def conv_transpose2d_k2s2(x, weight, bias):
    """Forward of `up`: ConvTranspose2d(in_chan, out_chan, kernel_size=2, stride=2).

    x: (N, C_in, H, W) f32; weight: (C_in, C_out, 2, 2); bias: (C_out,).
    Primary path fuses the (di, dj) spatial interleave into the kernel so the
    upsampled output hits HBM exactly once.  If the in-kernel lane/sublane
    interleave (stack+reshape) fails to lower on the running Mosaic version,
    fall back to the numerically identical two-pass implementation.
    """
    try:
        return _fused_call(x, weight, bias)
    except Exception:   # Mosaic lowering fallback -- keep the op running everywhere.
        return _unfused_call(x, weight, bias)


if __name__ == "__main__":
    key = jax.random.PRNGKey(0)
    k1, k2, k3 = jax.random.split(key, 3)

    N, C_in, C_out, H, W = 2, 8, 4, 16, 16

    x = jax.random.normal(k1, (N, C_in, H, W), dtype=jnp.float32)
    # PyTorch ConvTranspose2d weight shape: (in_chan, out_chan, kH, kW)
    weight = 0.1 * jax.random.normal(k2, (C_in, C_out, 2, 2), dtype=jnp.float32)
    bias = 0.1 * jax.random.normal(k3, (C_out,), dtype=jnp.float32)

    out = conv_transpose2d_k2s2(x, weight, bias)
    out = jax.block_until_ready(out)

    # Reference: out[n, co, 2i+di, 2j+dj] = sum_ci x[n,ci,i,j]*W[ci,co,di,dj] + b[co]
    ref = jnp.einsum(
        "ncij,cokl->noikjl", x, weight, precision=jax.lax.Precision.HIGHEST
    )
    ref = ref.reshape(N, C_out, 2 * H, 2 * W) + bias[None, :, None, None]

    assert out.shape == (N, C_out, 2 * H, 2 * W)
    assert jnp.allclose(out, ref, atol=1e-4, rtol=1e-5)

    print("KERNEL_OK")
</pallas_src>

<mosaic_0001>
module attributes {stable_mosaic.version = 11 : i64} {
  func.func @_fused_kernel(%arg0: i32, %arg1: i32, %arg2: memref<1x8x256xf32, #tpu.memory_space<vmem>>, %arg3: memref<16x8xf32, #tpu.memory_space<vmem>>, %arg4: memref<16x1xf32, #tpu.memory_space<vmem>>, %arg5: memref<1x4x32x32xf32, #tpu.memory_space<vmem>>) attributes {dimension_semantics = [#tpu.dimension_semantics<parallel>, #tpu.dimension_semantics<parallel>], iteration_bounds = array<i64: 2, 1>, scalar_prefetch = 0 : i64, scratch_operands = 0 : i64, tpu.core_type = #tpu.core_type<tc>, window_params = [{transform_indices = @transform_0, window_bounds = array<i64: 1, 8, 256>}, {pipeline_mode = #tpu.pipeline_mode<synchronous>, transform_indices = @transform_1, window_bounds = array<i64: 16, 8>}, {pipeline_mode = #tpu.pipeline_mode<synchronous>, transform_indices = @transform_2, window_bounds = array<i64: 16, 1>}, {transform_indices = @transform_3, window_bounds = array<i64: 1, 4, 32, 32>}]} {
    %c0 = arith.constant 0 : index
    %c0_0 = arith.constant 0 : index
    %0 = vector.load %arg3[%c0, %c0_0] : memref<16x8xf32, #tpu.memory_space<vmem>>, vector<16x8xf32>
    %c0_1 = arith.constant 0 : index
    %c0_2 = arith.constant 0 : index
    %c0_3 = arith.constant 0 : index
    %1 = vector.load %arg2[%c0_1, %c0_2, %c0_3] : memref<1x8x256xf32, #tpu.memory_space<vmem>>, vector<1x8x256xf32>
    %2 = vector.shape_cast %1 : vector<1x8x256xf32> to vector<8x256xf32>
    %cst = arith.constant dense<0.000000e+00> : vector<16x256xf32>
    %3 = tpu.matmul %0, %2, %cst {dimension_numbers = #tpu.dot_dimension_numbers<[1], [0], [0], [1], [0, 0, 1, 1], [], []>} : vector<16x8xf32>, vector<8x256xf32>, vector<16x256xf32> -> vector<16x256xf32>
    %c0_4 = arith.constant 0 : index
    %c0_5 = arith.constant 0 : index
    %4 = vector.load %arg4[%c0_4, %c0_5] : memref<16x1xf32, #tpu.memory_space<vmem>>, vector<16x1xf32>
    %5 = vector.broadcast %4 : vector<16x1xf32> to vector<16x256xf32>
    %6 = arith.addf %3, %5 : vector<16x256xf32>
    %7 = vector.shape_cast %6 : vector<16x256xf32> to vector<2x2x4x16x16xf32>
    %8 = vector.extract_strided_slice %7 {offsets = [0, 0, 0, 0, 0], sizes = [2, 1, 4, 16, 16], strides = [1, 1, 1, 1, 1]} : vector<2x2x4x16x16xf32> to vector<2x1x4x16x16xf32>
    %9 = vector.shape_cast %8 : vector<2x1x4x16x16xf32> to vector<2x4x16x16xf32>
    %10 = vector.extract_strided_slice %7 {offsets = [0, 1, 0, 0, 0], sizes = [2, 1, 4, 16, 16], strides = [1, 1, 1, 1, 1]} : vector<2x2x4x16x16xf32> to vector<2x1x4x16x16xf32>
    %11 = vector.shape_cast %10 : vector<2x1x4x16x16xf32> to vector<2x4x16x16xf32>
    %12 = vector.shape_cast %9 : vector<2x4x16x16xf32> to vector<2x4x16x16x1xf32>
    %13 = vector.shape_cast %11 : vector<2x4x16x16xf32> to vector<2x4x16x16x1xf32>
    %14 = tpu.concatenate %12, %13 in 4 : vector<2x4x16x16x1xf32>, vector<2x4x16x16x1xf32> -> vector<2x4x16x16x2xf32>
    %15 = vector.shape_cast %14 : vector<2x4x16x16x2xf32> to vector<2x4x16x32xf32>
    %16 = vector.extract_strided_slice %15 {offsets = [0, 0, 0, 0], sizes = [1, 4, 16, 32], strides = [1, 1, 1, 1]} : vector<2x4x16x32xf32> to vector<1x4x16x32xf32>
    %17 = vector.shape_cast %16 : vector<1x4x16x32xf32> to vector<4x16x32xf32>
    %18 = vector.extract_strided_slice %15 {offsets = [1, 0, 0, 0], sizes = [1, 4, 16, 32], strides = [1, 1, 1, 1]} : vector<2x4x16x32xf32> to vector<1x4x16x32xf32>
    %19 = vector.shape_cast %18 : vector<1x4x16x32xf32> to vector<4x16x32xf32>
    %20 = vector.shape_cast %17 : vector<4x16x32xf32> to vector<4x16x1x32xf32>
    %21 = vector.shape_cast %19 : vector<4x16x32xf32> to vector<4x16x1x32xf32>
    %22 = tpu.concatenate %20, %21 in 2 : vector<4x16x1x32xf32>, vector<4x16x1x32xf32> -> vector<4x16x2x32xf32>
    %23 = vector.shape_cast %22 : vector<4x16x2x32xf32> to vector<4x32x32xf32>
    %c0_6 = arith.constant 0 : index
    %c0_7 = arith.constant 0 : index
    %c0_8 = arith.constant 0 : index
    %c0_9 = arith.constant 0 : index
    %24 = vector.load %arg5[%c0_6, %c0_7, %c0_8, %c0_9] : memref<1x4x32x32xf32, #tpu.memory_space<vmem>>, vector<1x4x32x32xf32>
    %25 = vector.shape_cast %24 : vector<1x4x32x32xf32> to vector<4x32x32xf32>
    %26 = vector.shape_cast %23 : vector<4x32x32xf32> to vector<1x4x32x32xf32>
    tpu.vector_store %arg5[%c0_6, %c0_7, %c0_8, %c0_9], %26 {strides = array<i32>} : memref<1x4x32x32xf32, #tpu.memory_space<vmem>>, vector<1x4x32x32xf32>,
    return
  }
  func.func @transform_0(%arg0: i32, %arg1: i32) -> (i32, i32, i32) {
    %c0_i32 = arith.constant 0 : i32
    %c0_i32_0 = arith.constant 0 : i32
    return %arg0, %c0_i32, %arg1 : i32, i32, i32
  }
  func.func @transform_1(%arg0: i32, %arg1: i32) -> (i32, i32) {
    %c0_i32 = arith.constant 0 : i32
    %c0_i32_0 = arith.constant 0 : i32
    %c0_i32_1 = arith.constant 0 : i32
    return %c0_i32, %c0_i32_0 : i32, i32
  }
  func.func @transform_2(%arg0: i32, %arg1: i32) -> (i32, i32) {
    %c0_i32 = arith.constant 0 : i32
    %c0_i32_0 = arith.constant 0 : i32
    %c0_i32_1 = arith.constant 0 : i32
    return %c0_i32, %c0_i32_0 : i32, i32
  }
  func.func @transform_3(%arg0: i32, %arg1: i32) -> (i32, i32, i32, i32) {
    %c0_i32 = arith.constant 0 : i32
    %c0_i32_0 = arith.constant 0 : i32
    %c0_i32_1 = arith.constant 0 : i32
    return %arg0, %c0_i32, %arg1, %c0_i32_0 : i32, i32, i32, i32
  }
}

module attributes {stable_mosaic.version = 11 : i64} {
  func.func @_unfused_kernel(%arg0: i32, %arg1: i32, %arg2: memref<1x8x256xf32, #tpu.memory_space<vmem>>, %arg3: memref<16x8xf32, #tpu.memory_space<vmem>>, %arg4: memref<16x1xf32, #tpu.memory_space<vmem>>, %arg5: memref<1x16x256xf32, #tpu.memory_space<vmem>>) attributes {dimension_semantics = [#tpu.dimension_semantics<parallel>, #tpu.dimension_semantics<parallel>], iteration_bounds = array<i64: 2, 1>, scalar_prefetch = 0 : i64, scratch_operands = 0 : i64, tpu.core_type = #tpu.core_type<tc>, window_params = [{transform_indices = @transform_0, window_bounds = array<i64: 1, 8, 256>}, {pipeline_mode = #tpu.pipeline_mode<synchronous>, transform_indices = @transform_1, window_bounds = array<i64: 16, 8>}, {pipeline_mode = #tpu.pipeline_mode<synchronous>, transform_indices = @transform_2, window_bounds = array<i64: 16, 1>}, {transform_indices = @transform_3, window_bounds = array<i64: 1, 16, 256>}]} {
    %c0 = arith.constant 0 : index
    %c0_0 = arith.constant 0 : index
    %0 = vector.load %arg3[%c0, %c0_0] : memref<16x8xf32, #tpu.memory_space<vmem>>, vector<16x8xf32>
    %c0_1 = arith.constant 0 : index
    %c0_2 = arith.constant 0 : index
    %c0_3 = arith.constant 0 : index
    %1 = vector.load %arg2[%c0_1, %c0_2, %c0_3] : memref<1x8x256xf32, #tpu.memory_space<vmem>>, vector<1x8x256xf32>
    %2 = vector.shape_cast %1 : vector<1x8x256xf32> to vector<8x256xf32>
    %cst = arith.constant dense<0.000000e+00> : vector<16x256xf32>
    %3 = tpu.matmul %0, %2, %cst {dimension_numbers = #tpu.dot_dimension_numbers<[1], [0], [0], [1], [0, 0, 1, 1], [], []>} : vector<16x8xf32>, vector<8x256xf32>, vector<16x256xf32> -> vector<16x256xf32>
    %c0_4 = arith.constant 0 : index
    %c0_5 = arith.constant 0 : index
    %4 = vector.load %arg4[%c0_4, %c0_5] : memref<16x1xf32, #tpu.memory_space<vmem>>, vector<16x1xf32>
    %5 = vector.broadcast %4 : vector<16x1xf32> to vector<16x256xf32>
    %6 = arith.addf %3, %5 : vector<16x256xf32>
    %c0_6 = arith.constant 0 : index
    %c0_7 = arith.constant 0 : index
    %c0_8 = arith.constant 0 : index
    %7 = vector.load %arg5[%c0_6, %c0_7, %c0_8] : memref<1x16x256xf32, #tpu.memory_space<vmem>>, vector<1x16x256xf32>
    %8 = vector.shape_cast %7 : vector<1x16x256xf32> to vector<16x256xf32>
    %9 = vector.shape_cast %6 : vector<16x256xf32> to vector<1x16x256xf32>
    tpu.vector_store %arg5[%c0_6, %c0_7, %c0_8], %9 {strides = array<i32>} : memref<1x16x256xf32, #tpu.memory_space<vmem>>, vector<1x16x256xf32>,
    return
  }
  func.func @transform_0(%arg0: i32, %arg1: i32) -> (i32, i32, i32) {
    %c0_i32 = arith.constant 0 : i32
    %c0_i32_0 = arith.constant 0 : i32
    return %arg0, %c0_i32, %arg1 : i32, i32, i32
  }
  func.func @transform_1(%arg0: i32, %arg1: i32) -> (i32, i32) {
    %c0_i32 = arith.constant 0 : i32
    %c0_i32_0 = arith.constant 0 : i32
    %c0_i32_1 = arith.constant 0 : i32
    return %c0_i32, %c0_i32_0 : i32, i32
  }
  func.func @transform_2(%arg0: i32, %arg1: i32) -> (i32, i32) {
    %c0_i32 = arith.constant 0 : i32
    %c0_i32_0 = arith.constant 0 : i32
    %c0_i32_1 = arith.constant 0 : i32
    return %c0_i32, %c0_i32_0 : i32, i32
  }
  func.func @transform_3(%arg0: i32, %arg1: i32) -> (i32, i32, i32) {
    %c0_i32 = arith.constant 0 : i32
    %c0_i32_0 = arith.constant 0 : i32
    return %arg0, %c0_i32, %arg1 : i32, i32, i32
  }
}

</mosaic_0001>

<bundles_post_ra>
// kernel: tpu_custom_call.1
= control target key start
LH: loop header
LB: loop body
LE: loop exit
PB: predicated region body
PF: predicated region fallthrough
CT: control target
= control target key end

     0   :  { %8 = vsyncpa [#allocation3], 0  ;;  %s18290_s0 = inlined_call_operand.hbm [shape: f32[2,8,256], index: 0, kind: input, shape index: {}]   ;;  %s18291_s1 = inlined_call_operand.hbm [shape: f32[16,8], index: 1, kind: input, shape index: {}]   ;;  %s18292_s2 = inlined_call_operand.hbm [shape: f32[16,1], index: 2, kind: input, shape index: {}]   ;;  %s18293_s3 = inlined_call_operand.hbm [shape: f32[2,4,32,32], index: 3, kind: output, shape index: {}]  }
   0x1   :  { %10 = vsyncpa [#allocation3 + $0x1], 0 }
   0x2   :  { %11 = vsyncpa [#allocation6], 0 }
   0x3   :  { %12 = vsyncpa [#allocation4], 0 }
   0x4   :  { %14 = vsyncpa [#allocation4 + $0x1], 0  ;;  %s11712_s12 = smov 0   ;;  %s11714_s13 = smov 0  }
   0x5   :  { %s11716_s14 = smov 0   ;;  %s11718_s15 = smov 0  }
   0x6   :  { %s11720_s16 = smov 0   ;;  %s11722_s17 = smov 0  }
   0x7 LB: > { %s11347_s18 = sadd.s32 4294967295, %s11657_s17   ;;  %s11348_s19 = sadd.s32 4294967294, %s11657_s17   ;;  %s11657_s17 = sphi %s11722_s17, %s20_s17   ;;  %s11653_s16 = sphi %s11720_s16, %s20140_s16   ;;  %s11649_s15 = sphi %s11718_s15, %s20139_s15   ;;  %s11645_s14 = sphi %s11716_s14, %s20138_s14   ;;  %s11641_s13 = sphi %s11714_s13, %s20137_s13   ;;  %s11637_s12 = sphi %s11712_s12, %s20136_s12  }
   0x8   : > { %p54_p0 = scmp.ne.s32.totalorder %s11641_s13, %s11637_s12  ;;  %p11746_p1 = scmp.eq.s32.totalorder %s11347_s18, 0 }
   0x9   : > { %p11750_p2 = scmp.eq.s32.totalorder %s11347_s18, 1  ;;  %p128_p3 = scmp.eq.s32.totalorder %s11348_s19, 1 }
   0xa   : > { %s18727_s20 = scalar_select %p11746_p1, 1, 0 }
   0xb   : > { %p11756_p4 = por %p11746_p1, %p54_p0  ;;  %p11349_p5 = scmp.ge.s32.totalorder %s11657_s17, 1 }
   0xc   : > { %p11761_p6 = por %p128_p3, %p54_p0  ;;  %p135_p7 = scmp.lt.s32.totalorder %s11657_s17, 3 }
   0xd   : > { %s18729_s22 = scalar_select %p11756_p4, 1, 0 }
   0xe   : > { %s18730_s23 = scalar_select %p11761_p6, 1, 0 }
   0xf   : > { %p11766_p8 = pnand %p11349_p5, %p135_p7  ;;  %s11659_s25 = smov [#allocation5]  }
  0x10   : > { %s147_s26 = sshll.u32 %s11659_s25, 4  ;;  %s11660_s28 = smov [#allocation7]   ;;  %s11770_s26 = int_to_ptr.vmem [resolvable:$true] %s147_s26 }
  0x11   : > { %p11384_p9 = pneg %p11766_p8  ;;  %s160_s29 = sshll.u32 %s11660_s28, 4  ;;  %s11781_s29 = int_to_ptr.vmem [resolvable:$true] %s160_s29 }
  0x12   : > { %s11485_s5 = scalar_lea.hbm %s18291_s1, 256 }
  0x13   : > { %p11777_p11 = pnand %p11384_p9, %p11746_p1  ;;  %p11486_p12 = scmp.ne.s32.totalorder %s18291_s1, %s11485_s5 }
  0x14   : > { %p11492_p5 = scmp.lt.u32.totalorder %s11485_s5, %s18291_s1 }
  0x15   : > { %p11487_p13 = pneg %p11777_p11 }
  0x17   : > { %p11488_p0 = pnand %p11487_p13, %p11486_p12 }
  0x19   : > { %p11489_p3 = pneg %p11488_p0 }
  0x1b   : > { %p11494_p7 = pnand %p11492_p5, %p11489_p3 }
  0x1d   : > { %11497 = shalt.err (!%p11494_p7)
}
  0x1e   : > { %s11498_s10 = scalar_lea.vmem %s11770_s26, 256  ;;  %p11506_p1 = scmp.lt.s32.totalorder %s11770_s26, %s11770_s26 }
  0x1f   : > { %p11499_p9 = scmp.ne.s32.totalorder %s11770_s26, %s11498_s10  ;;  %p11507_p12 = scmp.lt.s32.totalorder %s11498_s10, %s11498_s10 }
  0x21   : > { %p11501_p10 = pnand %p11499_p9, %p11487_p13  ;;  %p11508_p0 = por %p11507_p12, %p11506_p1 }
  0x23   : > { %p11502_p6 = pneg %p11501_p10 }
  0x25   : > { %p11509_p4 = pnand %p11508_p0, %p11502_p6 }
  0x27   : > { %11512 = shalt.err (!%p11509_p4)
}
  0x28   : > { %s11661_s11 = smov 128   ;;  %s11662_s18 = smov 8  }
  0x29   : > { %11387 = dma.hbm_to_vmem [thread:$0]  (!%p11777_p11), %s18291_s1, 256, %s11770_s26, [#allocation6], %s11661_s11, %s11661_s11, %s11662_s18  }
  0x2a   : > { %s11513_s4 = scalar_lea.hbm %s18292_s2, 256 }
  0x2b   : > { %p11514_p1 = scmp.ne.s32.totalorder %s18292_s2, %s11513_s4  ;;  %p11520_p10 = scmp.lt.u32.totalorder %s11513_s4, %s18292_s2 }
  0x2d   : > { %p11516_p4 = pnand %p11514_p1, %p11487_p13 }
  0x2f   : > { %p11517_p6 = pneg %p11516_p4 }
  0x31   : > { %p11522_p3 = pnand %p11520_p10, %p11517_p6 }
  0x33   : > { %11525 = shalt.err (!%p11522_p3)
}
  0x34   : > { %s11526_s26 = scalar_lea.vmem %s11781_s29, 256  ;;  %p11534_p12 = scmp.lt.s32.totalorder %s11781_s29, %s11781_s29 }
  0x35   : > { %p11527_p5 = scmp.ne.s32.totalorder %s11781_s29, %s11526_s26  ;;  %p11535_p0 = scmp.lt.s32.totalorder %s11526_s26, %s11526_s26 }
  0x37   : > { %p11529_p7 = pnand %p11527_p5, %p11487_p13  ;;  %p11536_p1 = por %p11535_p0, %p11534_p12 }
  0x39   : > { %p11530_p9 = pneg %p11529_p7 }
  0x3b   : > { %p11537_p4 = pnand %p11536_p1, %p11530_p9 }
  0x3d   : > { %11540 = shalt.err (!%p11537_p4)
}
  0x3e   : > { %11390 = dma.hbm_to_vmem [thread:$0]  (!%p11777_p11), %s18292_s2, 256, %s11781_s29, [#allocation6], %s11661_s11, %s11661_s11, %s11662_s18  }
  0x3f   : > { %s32_s19 = sadd.s32 1, %s11653_s16  ;;  %s41_s25 = sadd.s32 1, %s11645_s14 }
  0x40   : > { %p34_p13 = scmp.ge.s32.totalorder %s32_s19, 2  ;;  %p48_p6 = scmp.ne.s32.totalorder %s11645_s14, %s11641_s13 }
  0x41   : > { %p49_p10 = scmp.eq.s32.totalorder %s11657_s17, 0  ;;  %p11401_p3 = scmp.lt.s32.totalorder %s11657_s17, 2 }
  0x42   : > { %s20142_s19 = smov (%p34_p13, %s32_s19), 0  ;;  %p11845_p7 = por %p11750_p2, %p48_p6 }
  0x43   : > { %p50_p5 = por %p49_p10, %p48_p6  ;;  %s36_s28 = ssub.s32 %s11653_s16, %s20142_s19 }
  0x44   : > { %s18733_s27 = scalar_select %p11845_p7, 1, 0 }
  0x45   : > { %s174_s30 = sand.u32 1, %s11645_s14   ;;  %p39_p9 = scmp.eq.s32.totalorder %s36_s28, 0 }
  0x46   : > { %s11353_s29 = sshll.u32 %s174_s30, 4  ;;  %s11368_s11 = sshll.u32 %s11653_s16, 8 }
  0x47   : > { %s11854_s18 = scalar_select %p39_p9, %s11645_s14, %s41_s25  }
  0x48   : > { %s11859_s6 = scalar_lea.hbm %s18290_s0, %s11368_s11  ;;  %s178_s21 = scalar_lea.vmem [#allocation2], %s11353_s29 }
  0x49   : > { %s188_s7 = sshll.u32 %s178_s21, 4  ;;  %p11863_p2 = pnand %p11401_p3, %p50_p5  ;;  %s11867_s7 = int_to_ptr.vmem [resolvable:$true] %s188_s7 }
  0x4a   : > { %s175_s26 = scalar_lea.sflag [#allocation3], %s174_s30  ;;  %s11541_s9 = scalar_lea.hbm %s11859_s6, 256 }
  0x4b   : > { %p11542_p11 = scmp.ne.s32.totalorder %s11859_s6, %s11541_s9  ;;  %p11543_p12 = pneg %p11863_p2 }
  0x4c   : > { %s11546_s28 = scalar_lea.hbm %s18290_s0, 512  ;;  %p11547_p4 = scmp.lt.u32.totalorder %s11859_s6, %s18290_s0 }
  0x4d   : > { %p11544_p0 = pnand %p11543_p12, %p11542_p11  ;;  %p11548_p13 = scmp.lt.u32.totalorder %s11546_s28, %s11541_s9 }
  0x4e   : > { %p11550_p10 = scmp.lt.u32.totalorder %s11541_s9, %s11859_s6 }
  0x4f   : > { %p11545_p1 = pneg %p11544_p0  ;;  %p11549_p6 = por %p11548_p13, %p11547_p4 }
  0x51   : > { %p11551_p3 = por %p11550_p10, %p11549_p6 }
  0x53   : > { %p11552_p5 = pnand %p11551_p3, %p11545_p1 }
  0x55   : > { %11555 = shalt.err (!%p11552_p5)
}
  0x56   : > { %s11556_s30 = scalar_lea.vmem %s11867_s7, 256  ;;  %s11663_s4 = smov [#allocation2]  }
  0x57   : > { %p11557_p9 = scmp.ne.s32.totalorder %s11867_s7, %s11556_s30  ;;  %s11561_s5 = sshll.u32 %s11663_s4, 4  ;;  %s11562_s5 = int_to_ptr.vmem [resolvable:$false] %s11561_s5 }
  0x58   : > { %s11563_s21 = scalar_lea.vmem %s11562_s5, 512  ;;  %p11564_p7 = scmp.lt.s32.totalorder %s11867_s7, %s11562_s5 }
  0x59   : > { %p11559_p11 = pnand %p11557_p9, %p11543_p12  ;;  %p11565_p4 = scmp.lt.s32.totalorder %s11563_s21, %s11556_s30 }
  0x5b   : > { %p11560_p0 = pneg %p11559_p11  ;;  %p11566_p13 = por %p11565_p4, %p11564_p7 }
  0x5d   : > { %p11567_p6 = pnand %p11566_p13, %p11560_p0 }
  0x5f   : > { %11570 = shalt.err (!%p11567_p6)
}
  0x60   : > { %11394 = dma.hbm_to_vmem [thread:$0]  (!%p11863_p2), %s11859_s6, 256, %s11867_s7, %s175_s26  }
  0x61   : > { %197 = sbr.rel (%p11766_p8) target bundleno = 2257 (0x8d1), region = 32 }
  0x68   : > { %s11897_s9 = sand.u32 1, %s11641_s13   ;;  %p18735_p7 = scmp.ne.s32.totalorder %s18729_s22, 0 }
  0x69   : > { %s11357_s10 = sshll.u32 %s11897_s9, 4  ;;  %s200_s25 = scalar_lea.sflag [#allocation3], %s11897_s9 }
  0x6a   : > { %s203_s28 = scalar_lea.vmem [#allocation2], %s11357_s10 }
  0x6b   : > { %11624 = dma.done.wait (%p18735_p7), %s200_s25, 256  }
  0x6c   : > { %11626 = vsyncadd (%p18735_p7), %s200_s25, 4294967040  ;;  %p18736_p12 = scmp.ne.s32.totalorder %s18727_s20, 0 }
  0x6e   : > { %11628 = dma.done.wait (%p18736_p12), [#allocation6], 512  }
  0x6f   : > { %11630 = vsyncadd (%p18736_p12), [#allocation6], 4294966784  ;;  %v11664_v0 = vmov 0.0   ;;  %v11665_v1 = vmov 0   ;;  %v239_v2 = vld [vmem:[%s203_s28 + $0x8] sm:$0xff]  ;;  %v238_v3 = vld [vmem:[%s203_s28] sm:$0xff]  ;;  %v429_v20 = vlaneseq }
  0x70   : > { %323 = vmatprep.mubr.f32.mxu0 %v11664_v0  ;;  %329 = vmatprep.mubr.f32.mxu1 %v11664_v0  ;;  %v236_v4 = vld [vmem:[#allocation5] sm:$0xff]  ;;  %vm252_vm0 = vcmask 64512   ;;  %v237_v5 = vld [vmem:[#allocation5 + $0x8] sm:$0xff]  ;;  %v240_v6 = vld [vmem:[#allocation7] sm:$0xff]  ;;  %s11666_s20 = smov 96   ;;  %s11667_s22 = smov 112  }
  0x71   : > { %11484 = vset.pattern.permute.xlu0 %v11665_v1  ;;  %259 = vmatprep.subr.mxu0 %v239_v2  ;;  %v241_v7 = vld [vmem:[#allocation7 + $0x8] sm:$0xff]  ;;  %s11668_s24 = smov 80   ;;  %s11669_s6 = smov 64   ;;  %v11673_v18 = vmov 1983009808   ;;  %v11942_v22 = vshrl.u32 %v429_v20, 7 }
  0x72   : > { %11370 = vmatprep.subr.mxu1 %v239_v2  ;;  %260 = vmatpush1.msra.mxu0 %v238_v3  ;;  %s11670_s7 = smov 48   ;;  %s11671_s8 = smov 32   ;;  %v427_v19 = vunpack.c.l.s4 %v11673_v18  ;;  %v11674_v46 = vmov 1934713408   ;;  %vm3784_vm1 = vcmask 7168   ;;  %vm9353_vm2 = vcmask 15360  }
  0x73   : > { %11371 = vmatpush1.msra.mxu1 %v238_v3  ;;  %11361 = vmatmul.mubr.msk.f32.vlgmr.msra.gmra.mrb[0].mxu0 %vm252_vm0, %v236_v4  ;;  %s11672_s26 = smov 16   ;;  %18737 = vst [vmem:[#allocation12_spill] sm:$0xff] %v11942_v22  ;;  %v491_v47 = vunpack.c.l.s4 %v11674_v46  ;;  %s11675_s29 = smov 2   ;;  %vm9370_vm3 = vcmask 31744   ;;  %vm9387_vm4 = vcmask 48128   ;;  %vm9420_vm5 = vcmask 80896  }
  0x74   : > { %11362 = vmatmul.mubr.msk.f32.vlgmr.msra.gmra.mrb[0].mxu1 %vm252_vm0, %v237_v5  ;;  %244 = vperm.xlu0 %11484, %v240_v6   ;;  %v428_v21 = vunpack.c.0.s8 %v427_v19  ;;  %s11676_s11 = smov 4   ;;  %s11677_s30 = smov 6   ;;  %vm9437_vm6 = vcmask 97280   ;;  %vm9454_vm7 = vcmask 113664   ;;  %vm9471_vm8 = vcmask 130048  }
  0x75   : > { %v492_v56 = vunpack.c.0.s8 %v491_v47  ;;  %s11678_s4 = smov 8   ;;  %s11679_s5 = smov 10   ;;  %vm9488_vm9 = vcmask 146432   ;;  %vm9505_vm10 = vcmask 162816   ;;  %vm9522_vm11 = vcmask 179200  }
  0x76   : > { %v11945_v25 = vsub.s32 %v428_v21, %v11942_v22  ;;  %s11680_s21 = smov 12   ;;  %s11681_s10 = smov 14   ;;  %vm9539_vm12 = vcmask 195584   ;;  %vm9556_vm13 = vcmask 211968   ;;  %vm9573_vm14 = vcmask 228352  }
  0x77   : > { %v11964_v63 = vsub.s32 %v492_v56, %v11942_v22  ;;  %s11682_s25 = smov 18   ;;  %s11683_s28 = smov 20   ;;  %vm9590_vm15 = vcmask 244736  }
  0x78   : > { %249 = vperm.xlu0 %11484, %v241_v7   ;;  %18738 = vst [vmem:[#allocation13_spill] sm:$0xff] %v11945_v25  ;;  %p20133_p2 = scmp.ne.s32.totalorder %s18733_s27, 0 }
  0xf3   : > { %v245_v8 = vpop.permute.xlu0 %244 }
  0xf7   : > { %v250_v14 = vpop.permute.xlu0 %249 }
 0x146   : > { %v325_v9 = vpop.f32.mrb[0].mxu0 }
 0x147   : > { %v331_v10 = vpop.f32.mrb[0].mxu1  ;;  %v326_v11 = vadd.f32 %v325_v9, %v245_v8  ;;  %v327_v12 = vpop.f32.mrb[1].mxu0 }
 0x148   : > { %v333_v13 = vpop.f32.mrb[1].mxu1  ;;  %v11911_v15 = vadd.f32 %v331_v10, %v250_v14  ;;  %v11919_v16 = vadd.f32 %v327_v12, %v245_v8 }
 0x149   : > { %344 = vrot.lane.b32.xlu0 %v326_v11, %s11666_s20  ;;  %338 = vrot.lane.b32.xlu1 %v326_v11, %s11667_s22  ;;  %v11926_v17 = vadd.f32 %v333_v13, %v250_v14 }
 0x14d   : > { %350 = vrot.lane.b32.xlu0 %v326_v11, %s11668_s24  ;;  %340 = vrot.lane.b32.xlu1 %v11911_v15, %s11667_s22 }
 0x151   : > { %356 = vrot.lane.b32.xlu0 %v326_v11, %s11669_s6  ;;  %346 = vrot.lane.b32.xlu1 %v11911_v15, %s11666_s20 }
 0x155   : > { %362 = vrot.lane.b32.xlu0 %v326_v11, %s11670_s7  ;;  %352 = vrot.lane.b32.xlu1 %v11911_v15, %s11668_s24 }
 0x159   : > { %368 = vrot.lane.b32.xlu0 %v326_v11, %s11671_s8  ;;  %358 = vrot.lane.b32.xlu1 %v11911_v15, %s11669_s6 }
 0x15d   : > { %374 = vrot.lane.b32.xlu0 %v326_v11, %s11672_s26  ;;  %364 = vrot.lane.b32.xlu1 %v11911_v15, %s11670_s7 }
 0x161   : > { %382 = vrot.lane.b32.xlu0 %v11919_v16, %s11667_s22  ;;  %370 = vrot.lane.b32.xlu1 %v11911_v15, %s11671_s8 }
 0x165   : > { %388 = vrot.lane.b32.xlu0 %v11919_v16, %s11666_s20  ;;  %376 = vrot.lane.b32.xlu1 %v11911_v15, %s11672_s26 }
 0x169   : > { %394 = vrot.lane.b32.xlu0 %v11919_v16, %s11668_s24  ;;  %384 = vrot.lane.b32.xlu1 %v11926_v17, %s11667_s22  ;;  %s11685_s22 = smov 24  }
 0x16d   : > { %400 = vrot.lane.b32.xlu0 %v11919_v16, %s11669_s6  ;;  %390 = vrot.lane.b32.xlu1 %v11926_v17, %s11666_s20  ;;  %s11684_s20 = smov 22  }
 0x171   : > { %406 = vrot.lane.b32.xlu0 %v11919_v16, %s11670_s7  ;;  %396 = vrot.lane.b32.xlu1 %v11926_v17, %s11668_s24  ;;  %s11686_s24 = smov 26  }
 0x175   : > { %412 = vrot.lane.b32.xlu0 %v11919_v16, %s11671_s8  ;;  %402 = vrot.lane.b32.xlu1 %v11926_v17, %s11669_s6  ;;  %s11687_s6 = smov 28  }
 0x179   : > { %418 = vrot.lane.b32.xlu0 %v11919_v16, %s11672_s26  ;;  %408 = vrot.lane.b32.xlu1 %v11926_v17, %s11670_s7  ;;  %s11688_s7 = smov 30  }
 0x17d   : > { %414 = vrot.lane.b32.xlu1 %v11926_v17, %s11671_s8  ;;  %s11360_s8 = sshll.u32 %s11897_s9, 7 }
 0x181   : > { %420 = vrot.lane.b32.xlu1 %v11926_v17, %s11672_s26 }
 0x1bb   : > { %v345_v23 = vpop.permute.xlu0 %344  ;;  %v339_v24 = vpop.permute.xlu1 %338 }
 0x1bc   : > { %v424_v26 = vcombine.low %v326_v11, %v345_v23  ;;  %v425_v27 = vcombine.high %v326_v11, %v345_v23 }
 0x1be   : > { %v432_v32 = vrot.slane %v424_v26, %v11945_v25  ;;  %v439_v33 = vrot.slane %v425_v27, %v11945_v25 }
 0x1bf   : > { %v351_v28 = vpop.permute.xlu0 %350  ;;  %v341_v29 = vpop.permute.xlu1 %340 }
 0x1c0   : > { %v440_v30 = vcombine.low %v339_v24, %v351_v28  ;;  %v441_v31 = vcombine.high %v339_v24, %v351_v28  ;;  %v11987_v28 = vsub.s32 0, %v11942_v22 }
 0x1c2   : > { %v448_v34 = vrot.slane %v440_v30, %v11945_v25  ;;  %v455_v35 = vrot.slane %v441_v31, %v11945_v25  ;;  %18739 = vst [vmem:[#allocation14_spill] sm:$0xff] %v11987_v28 }
 0x1c3   : > { %v357_v36 = vpop.permute.xlu0 %356  ;;  %v347_v37 = vpop.permute.xlu1 %346 }
 0x1c4   : > { %v489_v38 = vcombine.high %v432_v32, %v448_v34  ;;  %v505_v39 = vcombine.high %v439_v33, %v455_v35  ;;  %v696_v40 = vcombine.low %v11911_v15, %v347_v37  ;;  %v697_v41 = vcombine.high %v11911_v15, %v347_v37 }
 0x1c5   : > { %v488_v0 = vcombine.low %v432_v32, %v448_v34  ;;  %v504_v5 = vcombine.low %v439_v33, %v455_v35 }
 0x1c6   : > { %v704_v48 = vrot.slane %v696_v40, %v11945_v25  ;;  %v11955_v49 = vrot.slane %v697_v41, %v11945_v25  ;;  %v503_v13 = vrot.slane %v489_v38, %v11964_v63  ;;  %v519_v23 = vrot.slane %v505_v39, %v11964_v63 }
 0x1c7   : > { %v363_v42 = vpop.permute.xlu0 %362  ;;  %v353_v43 = vpop.permute.xlu1 %352  ;;  %v11971_v12 = vrot.slane %v488_v0, %v11964_v63  ;;  %v11983_v21 = vrot.slane %v504_v5, %v11964_v63 }
 0x1c8   : > { %v712_v44 = vcombine.low %v341_v29, %v353_v43  ;;  %v713_v45 = vcombine.high %v341_v29, %v353_v43 }
 0x1ca   : > { %v720_v50 = vrot.slane %v712_v44, %v11945_v25  ;;  %v11959_v51 = vrot.slane %v713_v45, %v11945_v25 }
 0x1cb   : > { %v369_v52 = vpop.permute.xlu0 %368  ;;  %v359_v53 = vpop.permute.xlu1 %358 }
 0x1cc   : > { %v761_v54 = vcombine.high %v704_v48, %v720_v50  ;;  %v777_v55 = vcombine.high %v11955_v49, %v11959_v51  ;;  %v456_v57 = vcombine.low %v357_v36, %v369_v52  ;;  %v457_v58 = vcombine.high %v357_v36, %v369_v52 }
 0x1cd   : > { %v760_v14 = vcombine.low %v704_v48, %v720_v50  ;;  %v12006_v36 = vsub.s32 1, %v11942_v22  ;;  %v776_v38 = vcombine.low %v11955_v49, %v11959_v51 }
 0x1ce   : > { %v464_v1 = vrot.slane %v456_v57, %v11945_v25  ;;  %v471_v2 = vrot.slane %v457_v58, %v11945_v25  ;;  %v775_v41 = vrot.slane %v761_v54, %v11964_v63  ;;  %v12025_v54 = vsub.s32 2, %v11942_v22 }
 0x1cf   : > { %v375_v59 = vpop.permute.xlu0 %374  ;;  %v365_v60 = vpop.permute.xlu1 %364  ;;  %v12009_v37 = vrot.slane %v760_v14, %v11964_v63 }
 0x1d0   : > { %v472_v61 = vcombine.low %v363_v42, %v375_v59  ;;  %v473_v62 = vcombine.high %v363_v42, %v375_v59 }
 0x1d2   : > { %v480_v3 = vrot.slane %v472_v61, %v11945_v25  ;;  %v487_v4 = vrot.slane %v473_v62, %v11945_v25 }
 0x1d3   : > { %v383_v6 = vpop.permute.xlu0 %382  ;;  %v371_v7 = vpop.permute.xlu1 %370 }
 0x1d4   : > { %v520_v8 = vcombine.low %v464_v1, %v480_v3  ;;  %v521_v9 = vcombine.high %v464_v1, %v480_v3  ;;  %v536_v10 = vcombine.low %v471_v2, %v487_v4  ;;  %v537_v11 = vcombine.high %v471_v2, %v487_v4 }
 0x1d5   : > { %v728_v24 = vcombine.low %v359_v53, %v371_v7  ;;  %v729_v32 = vcombine.high %v359_v53, %v371_v7 }
 0x1d6   : > { %v11975_v15 = vrot.slane %v520_v8, %v11964_v63  ;;  %v535_v18 = vrot.slane %v521_v9, %v11964_v63  ;;  %v11979_v19 = vrot.slane %v536_v10, %v11964_v63  ;;  %v551_v20 = vrot.slane %v537_v11, %v11964_v63 }
 0x1d7   : > { %v389_v26 = vpop.permute.xlu0 %388  ;;  %v377_v27 = vpop.permute.xlu1 %376  ;;  %v736_v47 = vrot.slane %v728_v24, %v11945_v25  ;;  %v743_v48 = vrot.slane %v729_v32, %v11945_v25  ;;  %v12048_v8 = vrot.slane %v776_v38, %v11964_v63  ;;  %v791_v9 = vrot.slane %v777_v55, %v11964_v63 }
 0x1d8   : > { %v11991_v29 = vcombine.low %v11971_v12, %v11975_v15  ;;  %v11993_v30 = vcombine.low %v503_v13, %v535_v18  ;;  %v11995_v31 = vcombine.high %v503_v13, %v535_v18  ;;  %v11999_v33 = vcombine.high %v11983_v21, %v11979_v19 }
 0x1d9   : > { %v12001_v34 = vcombine.low %v519_v23, %v551_v20  ;;  %v12003_v35 = vcombine.high %v519_v23, %v551_v20  ;;  %v744_v39 = vcombine.low %v365_v60, %v377_v27  ;;  %v745_v40 = vcombine.high %v365_v60, %v377_v27  ;;  %18742 = vst [vmem:[#allocation17_spill] sm:$0xff] %v12048_v8 }
 0x1da   : > { %v560_v42 = vcombine.low %v11919_v16, %v389_v26  ;;  %v561_v43 = vcombine.high %v11919_v16, %v389_v26  ;;  %v971_v46 = vrot.slane %v11991_v29, %v11987_v28  ;;  %v982_v16 = vrot.slane %v11991_v29, %v12006_v36 }
 0x1db   : > { %18740 = vst [vmem:[#allocation15_spill] sm:$0xff] %v12003_v35  ;;  %v395_v44 = vpop.permute.xlu0 %394  ;;  %v385_v45 = vpop.permute.xlu1 %384  ;;  %v752_v50 = vrot.slane %v744_v39, %v11945_v25  ;;  %v759_v52 = vrot.slane %v745_v40, %v11945_v25  ;;  %v12067_v20 = vsub.s32 3, %v11942_v22  ;;  %v993_v26 = vrot.slane %v11991_v29, %v12025_v54 }
 0x1dc   : > { %v576_v53 = vcombine.low %v383_v6, %v395_v44  ;;  %v577_v56 = vcombine.high %v383_v6, %v395_v44  ;;  %977 = vbcast.lane.b32.xlu1 %v971_v46, 264  ;;  %973 = vbcast.lane.b32.xlu0 %v971_v46, 256  ;;  %v12028_v61 = vrot.slane %v560_v42, %v11945_v25 }
 0x1dd   : > { %v792_v57 = vcombine.low %v736_v47, %v752_v50  ;;  %v793_v58 = vcombine.high %v736_v47, %v752_v50  ;;  %v808_v59 = vcombine.low %v743_v48, %v759_v52  ;;  %v809_v60 = vcombine.high %v743_v48, %v759_v52 }
 0x1de   : > { %v12031_v62 = vrot.slane %v561_v43, %v11945_v25  ;;  %v12034_v0 = vrot.slane %v576_v53, %v11945_v25  ;;  %v12037_v1 = vrot.slane %v577_v56, %v11945_v25  ;;  %v1004_v40 = vrot.slane %v11991_v29, %v12067_v20 }
 0x1df   : > { %v401_v2 = vpop.permute.xlu0 %400  ;;  %v391_v3 = vpop.permute.xlu1 %390  ;;  %v12040_v4 = vrot.slane %v792_v57, %v11964_v63  ;;  %v807_v5 = vrot.slane %v793_v58, %v11964_v63  ;;  %v12044_v6 = vrot.slane %v808_v59, %v11964_v63  ;;  %v823_v7 = vrot.slane %v809_v60, %v11964_v63 }
 0x1e0   : > { %v625_v10 = vcombine.high %v12028_v61, %v12034_v0  ;;  %v641_v11 = vcombine.high %v12031_v62, %v12037_v1  ;;  %988 = vbcast.lane.b32.xlu1 %v982_v16, 264  ;;  %984 = vbcast.lane.b32.xlu0 %v982_v16, 256  ;;  %v832_v27 = vcombine.low %v11926_v17, %v391_v3  ;;  %v12105_v57 = vsub.s32 5, %v11942_v22 }
 0x1e1   : > { %18741 = vst [vmem:[#allocation16_spill] sm:$0xff] %v12044_v6  ;;  %v12060_v13 = vcombine.high %v12009_v37, %v12040_v4  ;;  %v12062_v14 = vcombine.low %v775_v41, %v807_v5  ;;  %v12064_v18 = vcombine.high %v775_v41, %v807_v5  ;;  %v12071_v49 = vcombine.high %v12048_v8, %v12044_v6 }
 0x1e2   : > { %v12073_v51 = vcombine.low %v791_v9, %v823_v7  ;;  %v12075_v55 = vcombine.high %v791_v9, %v823_v7  ;;  %v833_v32 = vcombine.high %v11926_v17, %v391_v3  ;;  %v12084_v41 = vsub.s32 4, %v11942_v22 }
 0x1e3   : > { %18743 = vst [vmem:[#allocation18_spill] sm:$0xff] %v12071_v49  ;;  %v407_v23 = vpop.permute.xlu0 %406  ;;  %v397_v24 = vpop.permute.xlu1 %396  ;;  %v12087_v42 = vrot.slane %v832_v27, %v11945_v25  ;;  %v640_v7 = vcombine.low %v12031_v62, %v12037_v1 }
 0x1e4   : > { %18744 = vst [vmem:[#allocation19_spill] sm:$0xff] %v12073_v51  ;;  %18745 = vst [vmem:[#allocation20_spill] sm:$0xff] %v12075_v55  ;;  %v848_v38 = vcombine.low %v385_v45, %v397_v24  ;;  %v849_v39 = vcombine.high %v385_v45, %v397_v24  ;;  %999 = vbcast.lane.b32.xlu1 %v993_v26, 264  ;;  %995 = vbcast.lane.b32.xlu0 %v993_v26, 256 }
 0x1e5   : > { %v12090_v43 = vrot.slane %v833_v32, %v11945_v25  ;;  %v1015_v16 = vrot.slane %v11991_v29, %v12084_v41  ;;  %v1026_v24 = vrot.slane %v11991_v29, %v12105_v57  ;;  %v12131_v1 = vrot.slane %v640_v7, %v11964_v63 }
 0x1e6   : > { %v12093_v44 = vrot.slane %v848_v38, %v11945_v25  ;;  %v12096_v17 = vrot.slane %v849_v39, %v11945_v25  ;;  %v639_v38 = vrot.slane %v625_v10, %v11964_v63 }
 0x1e7   : > { %v413_v45 = vpop.permute.xlu0 %412  ;;  %v403_v46 = vpop.permute.xlu1 %402 }
 0x1e8   : > { %v897_v47 = vcombine.high %v12087_v42, %v12093_v44  ;;  %v913_v48 = vcombine.high %v12090_v43, %v12096_v17  ;;  %1010 = vbcast.lane.b32.xlu1 %v1004_v40, 264  ;;  %v592_v50 = vcombine.low %v401_v2, %v413_v45  ;;  %v593_v52 = vcombine.high %v401_v2, %v413_v45 }
 0x1e9   : > { %1006 = vbcast.lane.b32.xlu0 %v1004_v40, 256  ;;  %v655_v45 = vrot.slane %v641_v11, %v11964_v63 }
 0x1ea   : > { %v12108_v60 = vrot.slane %v592_v50, %v11945_v25  ;;  %v607_v3 = vrot.slane %v593_v52, %v11945_v25 }
 0x1eb   : > { %v419_v53 = vpop.permute.xlu0 %418  ;;  %v409_v56 = vpop.permute.xlu1 %408 }
 0x1ec   : > { %v608_v58 = vcombine.low %v407_v23, %v419_v53  ;;  %v609_v59 = vcombine.high %v407_v23, %v419_v53  ;;  %1021 = vbcast.lane.b32.xlu1 %v1015_v16, 264  ;;  %v12120_v23 = vsub.s32 6, %v11942_v22  ;;  %v12137_v53 = vsub.s32 7, %v11942_v22 }
 0x1ed   : > { %1017 = vbcast.lane.b32.xlu0 %v1015_v16, 256 }
 0x1ee   : > { %v12112_v5 = vrot.slane %v608_v58, %v11945_v25  ;;  %v623_v2 = vrot.slane %v609_v59, %v11945_v25  ;;  %v1037_v52 = vrot.slane %v11991_v29, %v12120_v23 }
 0x1ef   : > { %v415_v9 = vpop.permute.xlu1 %414 }
 0x1f0   : > { %v657_v26 = vcombine.high %v12108_v60, %v12112_v5  ;;  %v672_v27 = vcombine.low %v607_v3, %v623_v2  ;;  %v673_v32 = vcombine.high %v607_v3, %v623_v2  ;;  %1032 = vbcast.lane.b32.xlu1 %v1026_v24, 264  ;;  %v864_v58 = vcombine.low %v403_v46, %v415_v9 }
 0x1f1   : > { %1028 = vbcast.lane.b32.xlu0 %v1026_v24, 256  ;;  %v865_v59 = vcombine.high %v403_v46, %v415_v9  ;;  %v1048_v46 = vrot.slane %v11991_v29, %v12137_v53  ;;  %v911_v29 = vrot.slane %v897_v47, %v11964_v63  ;;  %v927_v47 = vrot.slane %v913_v48, %v11964_v63 }
 0x1f2   : > { %v671_v39 = vrot.slane %v657_v26, %v11964_v63  ;;  %v12127_v40 = vrot.slane %v672_v27, %v11964_v63  ;;  %v687_v62 = vrot.slane %v673_v32, %v11964_v63  ;;  %v553_v26 = vcombine.high %v11971_v12, %v11975_v15 }
 0x1f3   : > { %v421_v50 = vpop.permute.xlu1 %420  ;;  %v896_v27 = vcombine.low %v12087_v42, %v12093_v44  ;;  %v872_v9 = vrot.slane %v864_v58, %v11945_v25  ;;  %v879_v32 = vrot.slane %v865_v59, %v11945_v25 }
 0x1f4   : > { %v12139_v10 = vcombine.low %v639_v38, %v671_v39  ;;  %v12141_v16 = vcombine.high %v639_v38, %v671_v39  ;;  %v12145_v3 = vcombine.high %v12131_v1, %v12127_v40  ;;  %v12147_v2 = vcombine.low %v655_v45, %v687_v62  ;;  %1043 = vbcast.lane.b32.xlu1 %v1037_v52, 264 }
 0x1f5   : > { %v12149_v11 = vcombine.high %v655_v45, %v687_v62  ;;  %v880_v7 = vcombine.low %v409_v56, %v421_v50  ;;  %v881_v24 = vcombine.high %v409_v56, %v421_v50  ;;  %1039 = vbcast.lane.b32.xlu0 %v1037_v52, 256  ;;  %v912_v56 = vcombine.low %v12090_v43, %v12096_v17 }
 0x1f6   : > { %v12164_v42 = vrot.slane %v896_v27, %v11964_v63  ;;  %v1147_v44 = vrot.slane %v553_v26, %v11987_v28  ;;  %v1158_v43 = vrot.slane %v553_v26, %v12006_v36  ;;  %v1169_v17 = vrot.slane %v553_v26, %v12025_v54 }
 0x1f7   : > { %18746 = vst [vmem:[#allocation21_spill] sm:$0xff] %v12149_v11  ;;  %v888_v38 = vrot.slane %v880_v7, %v11945_v25  ;;  %v895_v39 = vrot.slane %v881_v24, %v11945_v25  ;;  %v12177_v7 = vrot.slane %v912_v56, %v11964_v63  ;;  %v1180_v48 = vrot.slane %v553_v26, %v12067_v20 }
 0x1f8   : > { %1054 = vbcast.lane.b32.xlu1 %v1048_v46, 264  ;;  %v1202_v56 = vrot.slane %v553_v26, %v12105_v57 }
 0x1f9   : > { %v928_v62 = vcombine.low %v872_v9, %v888_v38  ;;  %v929_v12 = vcombine.high %v872_v9, %v888_v38  ;;  %v944_v15 = vcombine.low %v879_v32, %v895_v39  ;;  %v945_v45 = vcombine.high %v879_v32, %v895_v39  ;;  %1050 = vbcast.lane.b32.xlu0 %v1048_v46, 256 }
 0x1fa   : > { %18748 = vst [vmem:[#allocation23_spill] sm:$0xff] %v12177_v7  ;;  %v1191_v39 = vrot.slane %v553_v26, %v12084_v41 }
 0x1fb   : > { %v12169_v50 = vrot.slane %v928_v62, %v11964_v63  ;;  %v943_v52 = vrot.slane %v929_v12, %v11964_v63  ;;  %v12173_v58 = vrot.slane %v944_v15, %v11964_v63  ;;  %v959_v59 = vrot.slane %v945_v45, %v11964_v63 }
 0x1fc   : > { %1153 = vbcast.lane.b32.xlu1 %v1147_v44, 264  ;;  %v1213_v62 = vrot.slane %v553_v26, %v12120_v23  ;;  %v1224_v12 = vrot.slane %v553_v26, %v12137_v53  ;;  %v1323_v15 = vrot.slane %v11993_v30, %v11987_v28  ;;  %v1334_v45 = vrot.slane %v11993_v30, %v12006_v36 }
 0x1fd   : > { %18747 = vst [vmem:[#allocation22_spill] sm:$0xff] %v12173_v58  ;;  %v12185_v24 = vcombine.high %v12164_v42, %v12169_v50  ;;  %v12187_v27 = vcombine.low %v911_v29, %v943_v52  ;;  %v12189_v46 = vcombine.high %v911_v29, %v943_v52  ;;  %1149 = vbcast.lane.b32.xlu0 %v1147_v44, 256 }
 0x1fe   : > { %v12193_v9 = vcombine.high %v12177_v7, %v12173_v58  ;;  %v12195_v32 = vcombine.low %v927_v47, %v959_v59  ;;  %v12197_v38 = vcombine.high %v927_v47, %v959_v59  ;;  %v1345_v29 = vrot.slane %v11993_v30, %v12025_v54 }
 0x1ff   : > { %v1356_v26 = vrot.slane %v11993_v30, %v12067_v20  ;;  %v1367_v44 = vrot.slane %v11993_v30, %v12084_v41  ;;  %v1378_v52 = vrot.slane %v11993_v30, %v12105_v57  ;;  %v1389_v59 = vrot.slane %v11993_v30, %v12120_v23 }
 0x200   : > { %18749 = vst [vmem:[#allocation24_spill] sm:$0xff] %v12193_v9  ;;  %18750 = vst [vmem:[#allocation25_spill] sm:$0xff] %v12195_v32  ;;  %1164 = vbcast.lane.b32.xlu1 %v1158_v43, 264  ;;  %v1400_v47 = vrot.slane %v11993_v30, %v12137_v53  ;;  %v1532_v30 = vrot.slane %v11995_v31, %v12067_v20 }
 0x201   : > { %18751 = vst [vmem:[#allocation26_spill] sm:$0xff] %v12197_v38  ;;  %1160 = vbcast.lane.b32.xlu0 %v1158_v43, 256  ;;  %v1499_v43 = vrot.slane %v11995_v31, %v11987_v28  ;;  %v656_v38 = vcombine.low %v12108_v60, %v12112_v5 }
 0x203   : > { %v664_v51 = vrot.slane %v656_v38, %v11964_v63 }
 0x204   : > { %1175 = vbcast.lane.b32.xlu1 %v1169_v17, 264 }
 0x205   : > { %1171 = vbcast.lane.b32.xlu0 %v1169_v17, 256  ;;  %v1510_v17 = vrot.slane %v11995_v31, %v12006_v36 }
 0x208   : > { %1186 = vbcast.lane.b32.xlu1 %v1180_v48, 264 }
 0x209   : > { %1182 = vbcast.lane.b32.xlu0 %v1180_v48, 256  ;;  %v1521_v48 = vrot.slane %v11995_v31, %v12025_v54 }
 0x20c   : > { %1197 = vbcast.lane.b32.xlu1 %v1191_v39, 264 }
 0x20d   : > { %1193 = vbcast.lane.b32.xlu0 %v1191_v39, 256  ;;  %v1543_v39 = vrot.slane %v11995_v31, %v12084_v41 }
 0x210   : > { %1208 = vbcast.lane.b32.xlu1 %v1202_v56, 264 }
 0x211   : > { %1204 = vbcast.lane.b32.xlu0 %v1202_v56, 256 }
 0x214   : > { %1219 = vbcast.lane.b32.xlu1 %v1213_v62, 264 }
 0x215   : > { %1215 = vbcast.lane.b32.xlu0 %v1213_v62, 256 }
 0x218   : > { %1230 = vbcast.lane.b32.xlu1 %v1224_v12, 264 }
 0x219   : > { %1226 = vbcast.lane.b32.xlu0 %v1224_v12, 256  ;;  %v1554_v12 = vrot.slane %v11995_v31, %v12105_v57 }
 0x21c   : > { %1329 = vbcast.lane.b32.xlu1 %v1323_v15, 264 }
 0x21d   : > { %1325 = vbcast.lane.b32.xlu0 %v1323_v15, 256 }
 0x220   : > { %1340 = vbcast.lane.b32.xlu1 %v1334_v45, 264 }
 0x221   : > { %1336 = vbcast.lane.b32.xlu0 %v1334_v45, 256  ;;  %v1565_v45 = vrot.slane %v11995_v31, %v12120_v23 }
 0x224   : > { %1351 = vbcast.lane.b32.xlu1 %v1345_v29, 264 }
 0x225   : > { %1347 = vbcast.lane.b32.xlu0 %v1345_v29, 256 }
 0x228   : > { %1362 = vbcast.lane.b32.xlu1 %v1356_v26, 264 }
 0x229   : > { %1358 = vbcast.lane.b32.xlu0 %v1356_v26, 256  ;;  %v824_v26 = vcombine.low %v12009_v37, %v12040_v4 }
 0x22b   : > { %v1686_v37 = vrot.slane %v824_v26, %v12006_v36  ;;  %v1730_v55 = vrot.slane %v824_v26, %v12105_v57  ;;  %v1752_v58 = vrot.slane %v824_v26, %v12137_v53 }
 0x22c   : > { %1373 = vbcast.lane.b32.xlu1 %v1367_v44, 264 }
 0x22d   : > { %1369 = vbcast.lane.b32.xlu0 %v1367_v44, 256 }
 0x230   : > { %1384 = vbcast.lane.b32.xlu1 %v1378_v52, 264 }
 0x231   : > { %1380 = vbcast.lane.b32.xlu0 %v1378_v52, 256  ;;  %v1576_v52 = vrot.slane %v11995_v31, %v12137_v53 }
 0x234   : > { %1395 = vbcast.lane.b32.xlu1 %v1389_v59, 264 }
 0x235   : > { %1391 = vbcast.lane.b32.xlu0 %v1389_v59, 256 }
 0x238   : > { %1406 = vbcast.lane.b32.xlu1 %v1400_v47, 264 }
 0x239   : > { %1402 = vbcast.lane.b32.xlu0 %v1400_v47, 256 }
 0x23c   : > { %1505 = vbcast.lane.b32.xlu1 %v1499_v43, 264 }
 0x23d   : > { %1501 = vbcast.lane.b32.xlu0 %v1499_v43, 256  ;;  %v1675_v43 = vrot.slane %v824_v26, %v11987_v28 }
 0x240   : > { %1516 = vbcast.lane.b32.xlu1 %v1510_v17, 264 }
 0x241   : > { %1512 = vbcast.lane.b32.xlu0 %v1510_v17, 256 }
 0x244   : > { %1527 = vbcast.lane.b32.xlu1 %v1521_v48, 264 }
 0x245   : > { %1523 = vbcast.lane.b32.xlu0 %v1521_v48, 256 }
 0x248   : > { %1538 = vbcast.lane.b32.xlu1 %v1532_v30, 264 }
 0x249   : > { %1534 = vbcast.lane.b32.xlu0 %v1532_v30, 256  ;;  %v1697_v30 = vrot.slane %v824_v26, %v12025_v54 }
 0x24c   : > { %1549 = vbcast.lane.b32.xlu1 %v1543_v39, 264 }
 0x24d   : > { %1545 = vbcast.lane.b32.xlu0 %v1543_v39, 256 }
 0x24e   : > { %v12232_v56 = vpop.permute.xlu0 %973  ;;  %v12234_v62 = vpop.permute.xlu1 %977 }
 0x250   : > { %1560 = vbcast.lane.b32.xlu1 %v1554_v12, 264 }
 0x251   : > { %1556 = vbcast.lane.b32.xlu0 %v1554_v12, 256 }
 0x252   : > { %v12238_v15 = vpop.permute.xlu1 %988  ;;  %v12242_v29 = vpop.permute.xlu0 %984 }
 0x254   : > { %1571 = vbcast.lane.b32.xlu1 %v1565_v45, 264 }
 0x255   : > { %1567 = vbcast.lane.b32.xlu0 %v1565_v45, 256  ;;  %v1708_v45 = vrot.slane %v824_v26, %v12067_v20 }
 0x256   : > { %v12246_v44 = vpop.permute.xlu1 %999  ;;  %v12250_v59 = vpop.permute.xlu0 %995 }
 0x258   : > { %1582 = vbcast.lane.b32.xlu1 %v1576_v52, 264 }
 0x259   : > { %1578 = vbcast.lane.b32.xlu0 %v1576_v52, 256 }
 0x25a   : > { %v12252_v47 = vpop.permute.xlu1 %1010 }
 0x25b   : > { %v12255_v17 = vpop.permute.xlu0 %1006 }
 0x25c   : > { %1681 = vbcast.lane.b32.xlu1 %v1675_v43, 264 }
 0x25d   : > { %1677 = vbcast.lane.b32.xlu0 %v1675_v43, 256 }
 0x25e   : > { %v12257_v48 = vpop.permute.xlu1 %1021 }
 0x25f   : > { %v12260_v4 = vpop.permute.xlu0 %1017 }
 0x260   : > { %1692 = vbcast.lane.b32.xlu1 %v1686_v37, 264 }
 0x261   : > { %1688 = vbcast.lane.b32.xlu0 %v1686_v37, 256  ;;  %v1719_v37 = vrot.slane %v824_v26, %v12084_v41 }
 0x262   : > { %v12262_v31 = vpop.permute.xlu1 %1032 }
 0x263   : > { %v12265_v39 = vpop.permute.xlu0 %1028 }
 0x264   : > { %1703 = vbcast.lane.b32.xlu1 %v1697_v30, 264 }
 0x265   : > { %1699 = vbcast.lane.b32.xlu0 %v1697_v30, 256 }
 0x266   : > { %v12267_v12 = vpop.permute.xlu1 %1043 }
 0x267   : > { %v12270_v52 = vpop.permute.xlu0 %1039 }
 0x268   : > { %1714 = vbcast.lane.b32.xlu1 %v1708_v45, 264 }
 0x269   : > { %1710 = vbcast.lane.b32.xlu0 %v1708_v45, 256  ;;  %v624_v45 = vcombine.low %v12028_v61, %v12034_v0 }
 0x26a   : > { %v12272_v43 = vpop.permute.xlu1 %1054 }
 0x26b   : > { %v12275_v22 = vpop.permute.xlu0 %1050  ;;  %v632_v60 = vrot.slane %v624_v45, %v11964_v63 }
 0x26c   : > { %1725 = vbcast.lane.b32.xlu1 %v1719_v37, 264 }
 0x26d   : > { %1721 = vbcast.lane.b32.xlu0 %v1719_v37, 256  ;;  %v1741_v37 = vrot.slane %v824_v26, %v12120_v23  ;;  %v688_v5 = vcombine.low %v632_v60, %v664_v51 }
 0x26e   : > { %v12279_v30 = vpop.permute.xlu1 %1153 }
 0x26f   : > { %18752 = vst [vmem:[#allocation27_spill] sm:$0xff] %v12279_v30  ;;  %v12282_v32 = vpop.permute.xlu0 %1149 }
 0x270   : > { %18753 = vst [vmem:[#allocation28_spill] sm:$0xff] %v12282_v32  ;;  %1736 = vbcast.lane.b32.xlu1 %v1730_v55, 264 }
 0x271   : > { %1732 = vbcast.lane.b32.xlu0 %v1730_v55, 256  ;;  %v1059_v55 = vrot.slane %v688_v5, %v11987_v28 }
 0x272   : > { %v12287_v9 = vpop.permute.xlu1 %1164 }
 0x273   : > { %18754 = vst [vmem:[#allocation29_spill] sm:$0xff] %v12287_v9  ;;  %v12290_v49 = vpop.permute.xlu0 %1160 }
 0x274   : > { %18755 = vst [vmem:[#allocation30_spill] sm:$0xff] %v12290_v49  ;;  %1747 = vbcast.lane.b32.xlu1 %v1741_v37, 264 }
 0x275   : > { %1743 = vbcast.lane.b32.xlu0 %v1741_v37, 256  ;;  %v1070_v37 = vrot.slane %v688_v5, %v12006_v36 }
 0x276   : > { %v12293_v7 = vpop.permute.xlu1 %1175 }
 0x277   : > { %18756 = vst [vmem:[#allocation31_spill] sm:$0xff] %v12293_v7  ;;  %v12296_v61 = vpop.permute.xlu0 %1171 }
 0x278   : > { %18757 = vst [vmem:[#allocation32_spill] sm:$0xff] %v12296_v61  ;;  %1758 = vbcast.lane.b32.xlu1 %v1752_v58, 264 }
 0x279   : > { %1754 = vbcast.lane.b32.xlu0 %v1752_v58, 256  ;;  %v1081_v58 = vrot.slane %v688_v5, %v12025_v54 }
 0x27a   : > { %v12298_v0 = vpop.permute.xlu1 %1186 }
 0x27b   : > { %18758 = vst [vmem:[#allocation33_spill] sm:$0xff] %v12298_v0  ;;  %v12301_v38 = vpop.permute.xlu0 %1182 }
 0x27c   : > { %18759 = vst [vmem:[#allocation34_spill] sm:$0xff] %v12301_v38  ;;  %1065 = vbcast.lane.b32.xlu1 %v1059_v55, 264 }
 0x27d   : > { %1061 = vbcast.lane.b32.xlu0 %v1059_v55, 256  ;;  %v1092_v55 = vrot.slane %v688_v5, %v12067_v20 }
 0x27e   : > { %v12303_v45 = vpop.permute.xlu1 %1197 }
 0x27f   : > { %18760 = vst [vmem:[#allocation35_spill] sm:$0xff] %v12303_v45  ;;  %v12306_v8 = vpop.permute.xlu0 %1193 }
 0x280   : > { %18761 = vst [vmem:[#allocation36_spill] sm:$0xff] %v12306_v8  ;;  %1076 = vbcast.lane.b32.xlu1 %v1070_v37, 264 }
 0x281   : > { %1072 = vbcast.lane.b32.xlu0 %v1070_v37, 256  ;;  %v1103_v37 = vrot.slane %v688_v5, %v12084_v41 }
 0x282   : > { %v12308_v26 = vpop.permute.xlu1 %1208 }
 0x283   : > { %18762 = vst [vmem:[#allocation37_spill] sm:$0xff] %v12308_v26  ;;  %v12311_v6 = vpop.permute.xlu0 %1204 }
 0x284   : > { %18763 = vst [vmem:[#allocation38_spill] sm:$0xff] %v12311_v6  ;;  %1087 = vbcast.lane.b32.xlu1 %v1081_v58, 264 }
 0x285   : > { %1083 = vbcast.lane.b32.xlu0 %v1081_v58, 256  ;;  %v1114_v58 = vrot.slane %v688_v5, %v12105_v57 }
 0x286   : > { %v12313_v11 = vpop.permute.xlu1 %1219 }
 0x287   : > { %18764 = vst [vmem:[#allocation39_spill] sm:$0xff] %v12313_v11  ;;  %v12316_v38 = vpop.permute.xlu0 %1215 }
 0x288   : > { %18765 = vst [vmem:[#allocation40_spill] sm:$0xff] %v12316_v38  ;;  %1098 = vbcast.lane.b32.xlu1 %v1092_v55, 264 }
 0x289   : > { %1094 = vbcast.lane.b32.xlu0 %v1092_v55, 256  ;;  %v1125_v55 = vrot.slane %v688_v5, %v12120_v23 }
 0x28a   : > { %v12318_v45 = vpop.permute.xlu1 %1230 }
 0x28b   : > { %18766 = vst [vmem:[#allocation41_spill] sm:$0xff] %v12318_v45  ;;  %v12321_v8 = vpop.permute.xlu0 %1226  ;;  %v689_v45 = vcombine.high %v632_v60, %v664_v51 }
 0x28c   : > { %18767 = vst [vmem:[#allocation42_spill] sm:$0xff] %v12321_v8  ;;  %1109 = vbcast.lane.b32.xlu1 %v1103_v37, 264 }
 0x28d   : > { %1105 = vbcast.lane.b32.xlu0 %v1103_v37, 256  ;;  %v1136_v37 = vrot.slane %v688_v5, %v12137_v53  ;;  %v1246_v51 = vrot.slane %v689_v45, %v12006_v36 }
 0x28e   : > { %v12323_v26 = vpop.permute.xlu1 %1329 }
 0x28f   : > { %18768 = vst [vmem:[#allocation43_spill] sm:$0xff] %v12323_v26  ;;  %v12326_v6 = vpop.permute.xlu0 %1325 }
 0x290   : > { %18769 = vst [vmem:[#allocation44_spill] sm:$0xff] %v12326_v6  ;;  %1120 = vbcast.lane.b32.xlu1 %v1114_v58, 264 }
 0x291   : > { %1116 = vbcast.lane.b32.xlu0 %v1114_v58, 256  ;;  %v1235_v58 = vrot.slane %v689_v45, %v11987_v28 }
 0x292   : > { %v12328_v11 = vpop.permute.xlu1 %1340 }
 0x293   : > { %18770 = vst [vmem:[#allocation45_spill] sm:$0xff] %v12328_v11  ;;  %v12331_v38 = vpop.permute.xlu0 %1336 }
 0x294   : > { %18771 = vst [vmem:[#allocation46_spill] sm:$0xff] %v12331_v38  ;;  %1131 = vbcast.lane.b32.xlu1 %v1125_v55, 264 }
 0x295   : > { %1127 = vbcast.lane.b32.xlu0 %v1125_v55, 256  ;;  %v1257_v55 = vrot.slane %v689_v45, %v12025_v54 }
 0x296   : > { %v12333_v8 = vpop.permute.xlu1 %1351 }
 0x297   : > { %18772 = vst [vmem:[#allocation47_spill] sm:$0xff] %v12333_v8  ;;  %v12336_v26 = vpop.permute.xlu0 %1347 }
 0x298   : > { %18773 = vst [vmem:[#allocation48_spill] sm:$0xff] %v12336_v26  ;;  %1142 = vbcast.lane.b32.xlu1 %v1136_v37, 264 }
 0x299   : > { %1138 = vbcast.lane.b32.xlu0 %v1136_v37, 256 }
 0x29a   : > { %v12338_v6 = vpop.permute.xlu1 %1362 }
 0x29b   : > { %18774 = vst [vmem:[#allocation49_spill] sm:$0xff] %v12338_v6  ;;  %v12341_v11 = vpop.permute.xlu0 %1358 }
 0x29c   : > { %18775 = vst [vmem:[#allocation50_spill] sm:$0xff] %v12341_v11  ;;  %1241 = vbcast.lane.b32.xlu1 %v1235_v58, 264 }
 0x29d   : > { %1237 = vbcast.lane.b32.xlu0 %v1235_v58, 256  ;;  %v1268_v58 = vrot.slane %v689_v45, %v12067_v20 }
 0x29e   : > { %v12343_v38 = vpop.permute.xlu1 %1373 }
 0x29f   : > { %18776 = vst [vmem:[#allocation51_spill] sm:$0xff] %v12343_v38  ;;  %v12346_v60 = vpop.permute.xlu0 %1369 }
 0x2a0   : > { %18777 = vst [vmem:[#allocation52_spill] sm:$0xff] %v12346_v60  ;;  %1252 = vbcast.lane.b32.xlu1 %v1246_v51, 264 }
 0x2a1   : > { %1248 = vbcast.lane.b32.xlu0 %v1246_v51, 256  ;;  %v1279_v51 = vrot.slane %v689_v45, %v12084_v41 }
 0x2a2   : > { %v12348_v5 = vpop.permute.xlu1 %1384 }
 0x2a3   : > { %18778 = vst [vmem:[#allocation53_spill] sm:$0xff] %v12348_v5  ;;  %v12351_v37 = vpop.permute.xlu0 %1380 }
 0x2a4   : > { %18779 = vst [vmem:[#allocation54_spill] sm:$0xff] %v12351_v37  ;;  %1263 = vbcast.lane.b32.xlu1 %v1257_v55, 264 }
 0x2a5   : > { %1259 = vbcast.lane.b32.xlu0 %v1257_v55, 256  ;;  %v1290_v55 = vrot.slane %v689_v45, %v12105_v57 }
 0x2a6   : > { %v12353_v6 = vpop.permute.xlu1 %1395 }
 0x2a7   : > { %18780 = vst [vmem:[#allocation55_spill] sm:$0xff] %v12353_v6  ;;  %v12356_v11 = vpop.permute.xlu0 %1391 }
 0x2a8   : > { %18781 = vst [vmem:[#allocation56_spill] sm:$0xff] %v12356_v11  ;;  %1274 = vbcast.lane.b32.xlu1 %v1268_v58, 264 }
 0x2a9   : > { %1270 = vbcast.lane.b32.xlu0 %v1268_v58, 256  ;;  %v1301_v58 = vrot.slane %v689_v45, %v12120_v23 }
 0x2aa   : > { %v12358_v38 = vpop.permute.xlu1 %1406 }
 0x2ab   : > { %18782 = vst [vmem:[#allocation57_spill] sm:$0xff] %v12358_v38  ;;  %v12361_v60 = vpop.permute.xlu0 %1402 }
 0x2ac   : > { %18783 = vst [vmem:[#allocation58_spill] sm:$0xff] %v12361_v60  ;;  %1285 = vbcast.lane.b32.xlu1 %v1279_v51, 264 }
 0x2ad   : > { %1281 = vbcast.lane.b32.xlu0 %v1279_v51, 256  ;;  %v1312_v51 = vrot.slane %v689_v45, %v12137_v53 }
 0x2ae   : > { %v12363_v5 = vpop.permute.xlu1 %1505 }
 0x2af   : > { %18784 = vst [vmem:[#allocation59_spill] sm:$0xff] %v12363_v5  ;;  %v12366_v37 = vpop.permute.xlu0 %1501 }
 0x2b0   : > { %18785 = vst [vmem:[#allocation60_spill] sm:$0xff] %v12366_v37  ;;  %1296 = vbcast.lane.b32.xlu1 %v1290_v55, 264 }
 0x2b1   : > { %1292 = vbcast.lane.b32.xlu0 %v1290_v55, 256  ;;  %v1411_v55 = vrot.slane %v12139_v10, %v11987_v28 }
 0x2b2   : > { %v12368_v6 = vpop.permute.xlu1 %1516 }
 0x2b3   : > { %18786 = vst [vmem:[#allocation61_spill] sm:$0xff] %v12368_v6  ;;  %v12371_v11 = vpop.permute.xlu0 %1512 }
 0x2b4   : > { %18787 = vst [vmem:[#allocation62_spill] sm:$0xff] %v12371_v11  ;;  %1307 = vbcast.lane.b32.xlu1 %v1301_v58, 264 }
 0x2b5   : > { %1303 = vbcast.lane.b32.xlu0 %v1301_v58, 256  ;;  %v1422_v58 = vrot.slane %v12139_v10, %v12006_v36 }
 0x2b6   : > { %v12373_v38 = vpop.permute.xlu1 %1527 }
 0x2b7   : > { %18788 = vst [vmem:[#allocation63_spill] sm:$0xff] %v12373_v38  ;;  %v12376_v60 = vpop.permute.xlu0 %1523 }
 0x2b8   : > { %18789 = vst [vmem:[#allocation64_spill] sm:$0xff] %v12376_v60  ;;  %1318 = vbcast.lane.b32.xlu1 %v1312_v51, 264 }
 0x2b9   : > { %1314 = vbcast.lane.b32.xlu0 %v1312_v51, 256  ;;  %v1433_v51 = vrot.slane %v12139_v10, %v12025_v54 }
 0x2ba   : > { %v12378_v5 = vpop.permute.xlu1 %1538 }
 0x2bb   : > { %18790 = vst [vmem:[#allocation65_spill] sm:$0xff] %v12378_v5  ;;  %v12382_v6 = vpop.permute.xlu0 %1534 }
 0x2bc   : > { %18791 = vst [vmem:[#allocation66_spill] sm:$0xff] %v12382_v6  ;;  %1417 = vbcast.lane.b32.xlu1 %v1411_v55, 264 }
 0x2bd   : > { %1413 = vbcast.lane.b32.xlu0 %v1411_v55, 256  ;;  %v1444_v55 = vrot.slane %v12139_v10, %v12067_v20 }
 0x2be   : > { %v12384_v11 = vpop.permute.xlu1 %1549 }
 0x2bf   : > { %18792 = vst [vmem:[#allocation67_spill] sm:$0xff] %v12384_v11  ;;  %v12388_v37 = vpop.permute.xlu0 %1545 }
 0x2c0   : > { %18793 = vst [vmem:[#allocation68_spill] sm:$0xff] %v12388_v37  ;;  %1428 = vbcast.lane.b32.xlu1 %v1422_v58, 264 }
 0x2c1   : > { %1424 = vbcast.lane.b32.xlu0 %v1422_v58, 256  ;;  %v1455_v58 = vrot.slane %v12139_v10, %v12084_v41 }
 0x2c2   : > { %v12390_v45 = vpop.permute.xlu1 %1560 }
 0x2c3   : > { %18794 = vst [vmem:[#allocation69_spill] sm:$0xff] %v12390_v45  ;;  %v12394_v5 = vpop.permute.xlu0 %1556 }
 0x2c4   : > { %18795 = vst [vmem:[#allocation70_spill] sm:$0xff] %v12394_v5  ;;  %1439 = vbcast.lane.b32.xlu1 %v1433_v51, 264 }
 0x2c5   : > { %1435 = vbcast.lane.b32.xlu0 %v1433_v51, 256  ;;  %v1466_v51 = vrot.slane %v12139_v10, %v12105_v57 }
 0x2c6   : > { %v12396_v6 = vpop.permute.xlu1 %1571 }
 0x2c7   : > { %18796 = vst [vmem:[#allocation71_spill] sm:$0xff] %v12396_v6  ;;  %v12400_v11 = vpop.permute.xlu0 %1567 }
 0x2c8   : > { %18797 = vst [vmem:[#allocation72_spill] sm:$0xff] %v12400_v11  ;;  %1450 = vbcast.lane.b32.xlu1 %v1444_v55, 264 }
 0x2c9   : > { %1446 = vbcast.lane.b32.xlu0 %v1444_v55, 256  ;;  %v1477_v55 = vrot.slane %v12139_v10, %v12120_v23 }
 0x2ca   : > { %v12402_v37 = vpop.permute.xlu1 %1582 }
 0x2cb   : > { %18798 = vst [vmem:[#allocation73_spill] sm:$0xff] %v12402_v37  ;;  %v12406_v45 = vpop.permute.xlu0 %1578 }
 0x2cc   : > { %18799 = vst [vmem:[#allocation74_spill] sm:$0xff] %v12406_v45  ;;  %1461 = vbcast.lane.b32.xlu1 %v1455_v58, 264 }
 0x2cd   : > { %1457 = vbcast.lane.b32.xlu0 %v1455_v58, 256  ;;  %v1488_v58 = vrot.slane %v12139_v10, %v12137_v53 }
 0x2ce   : > { %v12408_v5 = vpop.permute.xlu1 %1681 }
 0x2cf   : > { %18800 = vst [vmem:[#allocation75_spill] sm:$0xff] %v12408_v5  ;;  %v12412_v6 = vpop.permute.xlu0 %1677 }
 0x2d0   : > { %18801 = vst [vmem:[#allocation76_spill] sm:$0xff] %v12412_v6  ;;  %1472 = vbcast.lane.b32.xlu1 %v1466_v51, 264 }
 0x2d1   : > { %1468 = vbcast.lane.b32.xlu0 %v1466_v51, 256  ;;  %v1587_v51 = vrot.slane %v12141_v16, %v11987_v28 }
 0x2d2   : > { %v12414_v11 = vpop.permute.xlu1 %1692 }
 0x2d3   : > { %18802 = vst [vmem:[#allocation77_spill] sm:$0xff] %v12414_v11  ;;  %v12418_v37 = vpop.permute.xlu0 %1688 }
 0x2d4   : > { %18803 = vst [vmem:[#allocation78_spill] sm:$0xff] %v12418_v37  ;;  %1483 = vbcast.lane.b32.xlu1 %v1477_v55, 264 }
 0x2d5   : > { %1479 = vbcast.lane.b32.xlu0 %v1477_v55, 256  ;;  %v1598_v55 = vrot.slane %v12141_v16, %v12006_v36 }
 0x2d6   : > { %v12420_v45 = vpop.permute.xlu1 %1703 }
 0x2d7   : > { %18804 = vst [vmem:[#allocation79_spill] sm:$0xff] %v12420_v45  ;;  %v12424_v5 = vpop.permute.xlu0 %1699 }
 0x2d8   : > { %18805 = vst [vmem:[#allocation80_spill] sm:$0xff] %v12424_v5  ;;  %1494 = vbcast.lane.b32.xlu1 %v1488_v58, 264  ;;  %v1664_v5 = vrot.slane %v12141_v16, %v12137_v53 }
 0x2d9   : > { %1490 = vbcast.lane.b32.xlu0 %v1488_v58, 256  ;;  %v1609_v58 = vrot.slane %v12141_v16, %v12025_v54 }
 0x2da   : > { %v12426_v6 = vpop.permute.xlu1 %1714 }
 0x2db   : > { %18806 = vst [vmem:[#allocation81_spill] sm:$0xff] %v12426_v6  ;;  %v12430_v11 = vpop.permute.xlu0 %1710 }
 0x2dc   : > { %18807 = vst [vmem:[#allocation82_spill] sm:$0xff] %v12430_v11  ;;  %1593 = vbcast.lane.b32.xlu1 %v1587_v51, 264 }
 0x2dd   : > { %1589 = vbcast.lane.b32.xlu0 %v1587_v51, 256  ;;  %v1620_v51 = vrot.slane %v12141_v16, %v12067_v20 }
 0x2de   : > { %v12432_v37 = vpop.permute.xlu1 %1725 }
 0x2df   : > { %18808 = vst [vmem:[#allocation83_spill] sm:$0xff] %v12432_v37  ;;  %v12436_v45 = vpop.permute.xlu0 %1721 }
 0x2e0   : > { %18809 = vst [vmem:[#allocation84_spill] sm:$0xff] %v12436_v45  ;;  %1604 = vbcast.lane.b32.xlu1 %v1598_v55, 264 }
 0x2e1   : > { %1600 = vbcast.lane.b32.xlu0 %v1598_v55, 256  ;;  %v1631_v55 = vrot.slane %v12141_v16, %v12084_v41 }
 0x2e2   : > { %v12438_v10 = vpop.permute.xlu1 %1736 }
 0x2e3   : > { %18810 = vst [vmem:[#allocation85_spill] sm:$0xff] %v12438_v10  ;;  %v12442_v6 = vpop.permute.xlu0 %1732 }
 0x2e4   : > { %18811 = vst [vmem:[#allocation86_spill] sm:$0xff] %v12442_v6  ;;  %1615 = vbcast.lane.b32.xlu1 %v1609_v58, 264 }
 0x2e5   : > { %1611 = vbcast.lane.b32.xlu0 %v1609_v58, 256  ;;  %v1642_v58 = vrot.slane %v12141_v16, %v12105_v57 }
 0x2e6   : > { %v12444_v11 = vpop.permute.xlu1 %1747 }
 0x2e7   : > { %18812 = vst [vmem:[#allocation87_spill] sm:$0xff] %v12444_v11  ;;  %v12448_v37 = vpop.permute.xlu0 %1743 }
 0x2e8   : > { %18813 = vst [vmem:[#allocation88_spill] sm:$0xff] %v12448_v37  ;;  %1626 = vbcast.lane.b32.xlu1 %v1620_v51, 264 }
 0x2e9   : > { %1622 = vbcast.lane.b32.xlu0 %v1620_v51, 256  ;;  %v1653_v51 = vrot.slane %v12141_v16, %v12120_v23 }
 0x2ea   : > { %v12450_v45 = vpop.permute.xlu1 %1758 }
 0x2eb   : > { %18814 = vst [vmem:[#allocation89_spill] sm:$0xff] %v12450_v45  ;;  %v12454_v10 = vpop.permute.xlu0 %1754 }
 0x2ec   : > { %18815 = vst [vmem:[#allocation90_spill] sm:$0xff] %v12454_v10  ;;  %1637 = vbcast.lane.b32.xlu1 %v1631_v55, 264 }
 0x2ed   : > { %1633 = vbcast.lane.b32.xlu0 %v1631_v55, 256  ;;  %v960_v55 = vcombine.low %v12164_v42, %v12169_v50 }
 0x2ee   : > { %v12456_v6 = vpop.permute.xlu1 %1065 }
 0x2ef   : > { %v12460_v11 = vpop.permute.xlu0 %1061  ;;  %v1763_v38 = vrot.slane %v960_v55, %v11987_v28  ;;  %v1774_v42 = vrot.slane %v960_v55, %v12006_v36 }
 0x2f0   : > { %1648 = vbcast.lane.b32.xlu1 %v1642_v58, 264 }
 0x2f1   : > { %1644 = vbcast.lane.b32.xlu0 %v1642_v58, 256 }
 0x2f2   : > { %v12462_v37 = vpop.permute.xlu1 %1076 }
 0x2f3   : > { %v12466_v45 = vpop.permute.xlu0 %1072 }
 0x2f4   : > { %1659 = vbcast.lane.b32.xlu1 %v1653_v51, 264 }
 0x2f5   : > { %1655 = vbcast.lane.b32.xlu0 %v1653_v51, 256 }
 0x2f6   : > { %v12470_v10 = vpop.permute.xlu1 %1087 }
 0x2f7   : > { %v12474_v60 = vpop.permute.xlu0 %1083 }
 0x2f8   : > { %1670 = vbcast.lane.b32.xlu1 %v1664_v5, 264 }
 0x2f9   : > { %1666 = vbcast.lane.b32.xlu0 %v1664_v5, 256  ;;  %v1785_v5 = vrot.slane %v960_v55, %v12025_v54 }
 0x2fa   : > { %v12476_v58 = vpop.permute.xlu1 %1098 }
 0x2fb   : > { %v12479_v26 = vpop.permute.xlu0 %1094 }
 0x2fc   : > { %1769 = vbcast.lane.b32.xlu1 %v1763_v38, 264 }
 0x2fd   : > { %1765 = vbcast.lane.b32.xlu0 %v1763_v38, 256  ;;  %v1796_v38 = vrot.slane %v960_v55, %v12067_v20 }
 0x2fe   : > { %v12481_v51 = vpop.permute.xlu1 %1109 }
 0x2ff   : > { %v12484_v50 = vpop.permute.xlu0 %1105 }
 0x300   : > { %1780 = vbcast.lane.b32.xlu1 %v1774_v42, 264 }
 0x301   : > { %1776 = vbcast.lane.b32.xlu0 %v1774_v42, 256  ;;  %v1807_v42 = vrot.slane %v960_v55, %v12084_v41 }
 0x302   : > { %v12486_v16 = vpop.permute.xlu1 %1120 }
 0x303   : > { %v12489_v8 = vpop.permute.xlu0 %1116 }
 0x304   : > { %18816 = vst [vmem:[#allocation91_spill] sm:$0xff] %v12489_v8  ;;  %1791 = vbcast.lane.b32.xlu1 %v1785_v5, 264 }
 0x305   : > { %1787 = vbcast.lane.b32.xlu0 %v1785_v5, 256  ;;  %v1818_v5 = vrot.slane %v960_v55, %v12105_v57 }
 0x306   : > { %v12491_v49 = vpop.permute.xlu1 %1131 }
 0x307   : > { %v12494_v0 = vpop.permute.xlu0 %1127 }
 0x308   : > { %1802 = vbcast.lane.b32.xlu1 %v1796_v38, 264 }
 0x309   : > { %1798 = vbcast.lane.b32.xlu0 %v1796_v38, 256  ;;  %v1829_v38 = vrot.slane %v960_v55, %v12120_v23 }
 0x30a   : > { %v12496_v9 = vpop.permute.xlu1 %1142 }
 0x30b   : > { %v12499_v35 = vpop.permute.xlu0 %1138 }
 0x30c   : > { %18817 = vst [vmem:[#allocation92_spill] sm:$0xff] %v12499_v35  ;;  %1813 = vbcast.lane.b32.xlu1 %v1807_v42, 264 }
 0x30d   : > { %1809 = vbcast.lane.b32.xlu0 %v1807_v42, 256  ;;  %v1840_v42 = vrot.slane %v960_v55, %v12137_v53 }
 0x30e   : > { %v12501_v61 = vpop.permute.xlu1 %1241 }
 0x30f   : > { %18818 = vst [vmem:[#allocation93_spill] sm:$0xff] %v12501_v61  ;;  %v12504_v32 = vpop.permute.xlu0 %1237 }
 0x310   : > { %18819 = vst [vmem:[#allocation94_spill] sm:$0xff] %v12504_v32  ;;  %1824 = vbcast.lane.b32.xlu1 %v1818_v5, 264 }
 0x311   : > { %1820 = vbcast.lane.b32.xlu0 %v1818_v5, 256  ;;  %v1851_v5 = vrot.slane %v12060_v13, %v11987_v28 }
 0x312   : > { %v12506_v7 = vpop.permute.xlu1 %1252 }
 0x313   : > { %18820 = vst [vmem:[#allocation95_spill] sm:$0xff] %v12506_v7  ;;  %v12509_v30 = vpop.permute.xlu0 %1248 }
 0x314   : > { %18821 = vst [vmem:[#allocation96_spill] sm:$0xff] %v12509_v30  ;;  %1835 = vbcast.lane.b32.xlu1 %v1829_v38, 264 }
 0x315   : > { %1831 = vbcast.lane.b32.xlu0 %v1829_v38, 256  ;;  %v1862_v38 = vrot.slane %v12060_v13, %v12006_v36 }
 0x316   : > { %v12511_v8 = vpop.permute.xlu1 %1263 }
 0x317   : > { %v12514_v35 = vpop.permute.xlu0 %1259 }
 0x318   : > { %1846 = vbcast.lane.b32.xlu1 %v1840_v42, 264 }
 0x319   : > { %1842 = vbcast.lane.b32.xlu0 %v1840_v42, 256  ;;  %v1873_v42 = vrot.slane %v12060_v13, %v12025_v54 }
 0x31a   : > { %v12516_v61 = vpop.permute.xlu1 %1274 }
 0x31b   : > { %18822 = vst [vmem:[#allocation97_spill] sm:$0xff] %v12516_v61  ;;  %v12520_v7 = vpop.permute.xlu0 %1270 }
 0x31c   : > { %18823 = vst [vmem:[#allocation98_spill] sm:$0xff] %v12520_v7  ;;  %1857 = vbcast.lane.b32.xlu1 %v1851_v5, 264 }
 0x31d   : > { %1853 = vbcast.lane.b32.xlu0 %v1851_v5, 256  ;;  %v1884_v5 = vrot.slane %v12060_v13, %v12067_v20 }
 0x31e   : > { %v12522_v30 = vpop.permute.xlu1 %1285 }
 0x31f   : > { %18824 = vst [vmem:[#allocation99_spill] sm:$0xff] %v12522_v30  ;;  %v12526_v32 = vpop.permute.xlu0 %1281 }
 0x320   : > { %18825 = vst [vmem:[#allocation100_spill] sm:$0xff] %v12526_v32  ;;  %1868 = vbcast.lane.b32.xlu1 %v1862_v38, 264 }
 0x321   : > { %1864 = vbcast.lane.b32.xlu0 %v1862_v38, 256  ;;  %v1895_v38 = vrot.slane %v12060_v13, %v12084_v41 }
 0x322   : > { %v12528_v55 = vpop.permute.xlu1 %1296 }
 0x323   : > { %18826 = vst [vmem:[#allocation101_spill] sm:$0xff] %v12528_v55  ;;  %v12532_v61 = vpop.permute.xlu0 %1292 }
 0x324   : > { %18827 = vst [vmem:[#allocation102_spill] sm:$0xff] %v12532_v61  ;;  %1879 = vbcast.lane.b32.xlu1 %v1873_v42, 264 }
 0x325   : > { %1875 = vbcast.lane.b32.xlu0 %v1873_v42, 256  ;;  %v1906_v42 = vrot.slane %v12060_v13, %v12105_v57 }
 0x326   : > { %v12534_v7 = vpop.permute.xlu1 %1307 }
 0x327   : > { %18828 = vst [vmem:[#allocation103_spill] sm:$0xff] %v12534_v7  ;;  %v12538_v30 = vpop.permute.xlu0 %1303 }
 0x328   : > { %18829 = vst [vmem:[#allocation104_spill] sm:$0xff] %v12538_v30  ;;  %1890 = vbcast.lane.b32.xlu1 %v1884_v5, 264 }
 0x329   : > { %1886 = vbcast.lane.b32.xlu0 %v1884_v5, 256  ;;  %v1917_v5 = vrot.slane %v12060_v13, %v12120_v23 }
 0x32a   : > { %v12540_v32 = vpop.permute.xlu1 %1318 }
 0x32b   : > { %18830 = vst [vmem:[#allocation105_spill] sm:$0xff] %v12540_v32  ;;  %v12544_v55 = vpop.permute.xlu0 %1314 }
 0x32c   : > { %18831 = vst [vmem:[#allocation106_spill] sm:$0xff] %v12544_v55  ;;  %1901 = vbcast.lane.b32.xlu1 %v1895_v38, 264 }
 0x32d   : > { %1897 = vbcast.lane.b32.xlu0 %v1895_v38, 256  ;;  %v1928_v38 = vrot.slane %v12060_v13, %v12137_v53 }
 0x32e   : > { %v12546_v61 = vpop.permute.xlu1 %1417 }
 0x32f   : > { %18832 = vst [vmem:[#allocation107_spill] sm:$0xff] %v12546_v61  ;;  %v12550_v7 = vpop.permute.xlu0 %1413 }
 0x330   : > { %18833 = vst [vmem:[#allocation108_spill] sm:$0xff] %v12550_v7  ;;  %1912 = vbcast.lane.b32.xlu1 %v1906_v42, 264 }
 0x331   : > { %1908 = vbcast.lane.b32.xlu0 %v1906_v42, 256  ;;  %v1939_v42 = vrot.slane %v12185_v24, %v11987_v28 }
 0x332   : > { %v12552_v30 = vpop.permute.xlu1 %1428 }
 0x333   : > { %18834 = vst [vmem:[#allocation109_spill] sm:$0xff] %v12552_v30  ;;  %v12556_v32 = vpop.permute.xlu0 %1424 }
 0x334   : > { %18835 = vst [vmem:[#allocation110_spill] sm:$0xff] %v12556_v32  ;;  %1923 = vbcast.lane.b32.xlu1 %v1917_v5, 264 }
 0x335   : > { %1919 = vbcast.lane.b32.xlu0 %v1917_v5, 256  ;;  %v1950_v5 = vrot.slane %v12185_v24, %v12006_v36 }
 0x336   : > { %v12558_v55 = vpop.permute.xlu1 %1439 }
 0x337   : > { %18836 = vst [vmem:[#allocation111_spill] sm:$0xff] %v12558_v55  ;;  %v12562_v61 = vpop.permute.xlu0 %1435 }
 0x338   : > { %1934 = vbcast.lane.b32.xlu1 %v1928_v38, 264 }
 0x339   : > { %1930 = vbcast.lane.b32.xlu0 %v1928_v38, 256  ;;  %v1961_v38 = vrot.slane %v12185_v24, %v12025_v54 }
 0x33a   : > { %v12564_v7 = vpop.permute.xlu1 %1450 }
 0x33b   : > { %18837 = vst [vmem:[#allocation112_spill] sm:$0xff] %v12564_v7  ;;  %v12568_v30 = vpop.permute.xlu0 %1446 }
 0x33c   : > { %18838 = vst [vmem:[#allocation113_spill] sm:$0xff] %v12568_v30  ;;  %1945 = vbcast.lane.b32.xlu1 %v1939_v42, 264 }
 0x33d   : > { %1941 = vbcast.lane.b32.xlu0 %v1939_v42, 256  ;;  %v1972_v42 = vrot.slane %v12185_v24, %v12067_v20 }
 0x33e   : > { %v12570_v32 = vpop.permute.xlu1 %1461 }
 0x33f   : > { %18839 = vst [vmem:[#allocation114_spill] sm:$0xff] %v12570_v32  ;;  %v12574_v55 = vpop.permute.xlu0 %1457 }
 0x340   : > { %18840 = vst [vmem:[#allocation115_spill] sm:$0xff] %v12574_v55  ;;  %1956 = vbcast.lane.b32.xlu1 %v1950_v5, 264 }
 0x341   : > { %1952 = vbcast.lane.b32.xlu0 %v1950_v5, 256  ;;  %v1983_v5 = vrot.slane %v12185_v24, %v12084_v41 }
 0x342   : > { %v12576_v13 = vpop.permute.xlu1 %1472 }
 0x343   : > { %18841 = vst [vmem:[#allocation116_spill] sm:$0xff] %v12576_v13  ;;  %v12580_v7 = vpop.permute.xlu0 %1468 }
 0x344   : > { %18842 = vst [vmem:[#allocation117_spill] sm:$0xff] %v12580_v7  ;;  %1967 = vbcast.lane.b32.xlu1 %v1961_v38, 264 }
 0x345   : > { %1963 = vbcast.lane.b32.xlu0 %v1961_v38, 256  ;;  %v1994_v38 = vrot.slane %v12185_v24, %v12105_v57 }
 0x346   : > { %v12582_v30 = vpop.permute.xlu1 %1483 }
 0x347   : > { %18843 = vst [vmem:[#allocation118_spill] sm:$0xff] %v12582_v30  ;;  %v12586_v32 = vpop.permute.xlu0 %1479 }
 0x348   : > { %18844 = vst [vmem:[#allocation119_spill] sm:$0xff] %v12586_v32  ;;  %1978 = vbcast.lane.b32.xlu1 %v1972_v42, 264 }
 0x349   : > { %1974 = vbcast.lane.b32.xlu0 %v1972_v42, 256  ;;  %v2005_v42 = vrot.slane %v12185_v24, %v12120_v23 }
 0x34a   : > { %v12588_v55 = vpop.permute.xlu1 %1494 }
 0x34b   : > { %18845 = vst [vmem:[#allocation120_spill] sm:$0xff] %v12588_v55  ;;  %v12592_v13 = vpop.permute.xlu0 %1490 }
 0x34c   : > { %18846 = vst [vmem:[#allocation121_spill] sm:$0xff] %v12592_v13  ;;  %1989 = vbcast.lane.b32.xlu1 %v1983_v5, 264 }
 0x34d   : > { %1985 = vbcast.lane.b32.xlu0 %v1983_v5, 256  ;;  %v2016_v5 = vrot.slane %v12185_v24, %v12137_v53 }
 0x34e   : > { %v12594_v7 = vpop.permute.xlu1 %1593 }
 0x34f   : > { %18847 = vst [vmem:[#allocation122_spill] sm:$0xff] %v12594_v7  ;;  %v12598_v30 = vpop.permute.xlu0 %1589 }
 0x350   : > { %18848 = vst [vmem:[#allocation123_spill] sm:$0xff] %v12598_v30  ;;  %2000 = vbcast.lane.b32.xlu1 %v1994_v38, 264 }
 0x351   : > { %1996 = vbcast.lane.b32.xlu0 %v1994_v38, 256  ;;  %v2027_v38 = vrot.slane %v12062_v14, %v11987_v28 }
 0x352   : > { %v12600_v32 = vpop.permute.xlu1 %1604 }
 0x353   : > { %18849 = vst [vmem:[#allocation124_spill] sm:$0xff] %v12600_v32  ;;  %v12604_v55 = vpop.permute.xlu0 %1600 }
 0x354   : > { %18850 = vst [vmem:[#allocation125_spill] sm:$0xff] %v12604_v55  ;;  %2011 = vbcast.lane.b32.xlu1 %v2005_v42, 264 }
 0x355   : > { %2007 = vbcast.lane.b32.xlu0 %v2005_v42, 256  ;;  %v2038_v42 = vrot.slane %v12062_v14, %v12006_v36 }
 0x356   : > { %v12606_v13 = vpop.permute.xlu1 %1615 }
 0x357   : > { %18851 = vst [vmem:[#allocation126_spill] sm:$0xff] %v12606_v13  ;;  %v12610_v7 = vpop.permute.xlu0 %1611 }
 0x358   : > { %2022 = vbcast.lane.b32.xlu1 %v2016_v5, 264 }
 0x359   : > { %2018 = vbcast.lane.b32.xlu0 %v2016_v5, 256  ;;  %v2049_v5 = vrot.slane %v12062_v14, %v12025_v54 }
 0x35a   : > { %v12612_v30 = vpop.permute.xlu1 %1626 }
 0x35b   : > { %18852 = vst [vmem:[#allocation127_spill] sm:$0xff] %v12612_v30  ;;  %v12616_v32 = vpop.permute.xlu0 %1622 }
 0x35c   : > { %18853 = vst [vmem:[#allocation128_spill] sm:$0xff] %v12616_v32  ;;  %2033 = vbcast.lane.b32.xlu1 %v2027_v38, 264 }
 0x35d   : > { %2029 = vbcast.lane.b32.xlu0 %v2027_v38, 256  ;;  %v2060_v38 = vrot.slane %v12062_v14, %v12067_v20 }
 0x35e   : > { %v12618_v55 = vpop.permute.xlu1 %1637 }
 0x35f   : > { %18854 = vst [vmem:[#allocation129_spill] sm:$0xff] %v12618_v55  ;;  %v12622_v13 = vpop.permute.xlu0 %1633 }
 0x360   : > { %18855 = vst [vmem:[#allocation130_spill] sm:$0xff] %v12622_v13  ;;  %2044 = vbcast.lane.b32.xlu1 %v2038_v42, 264 }
 0x361   : > { %2040 = vbcast.lane.b32.xlu0 %v2038_v42, 256  ;;  %v2071_v42 = vrot.slane %v12062_v14, %v12084_v41 }
 0x362   : > { %v12624_v24 = vpop.permute.xlu1 %1648 }
 0x363   : > { %18856 = vst [vmem:[#allocation131_spill] sm:$0xff] %v12624_v24  ;;  %v12628_v30 = vpop.permute.xlu0 %1644 }
 0x364   : > { %18857 = vst [vmem:[#allocation132_spill] sm:$0xff] %v12628_v30  ;;  %2055 = vbcast.lane.b32.xlu1 %v2049_v5, 264 }
 0x365   : > { %2051 = vbcast.lane.b32.xlu0 %v2049_v5, 256  ;;  %v2082_v5 = vrot.slane %v12062_v14, %v12105_v57 }
 0x366   : > { %v12630_v32 = vpop.permute.xlu1 %1659 }
 0x367   : > { %18858 = vst [vmem:[#allocation133_spill] sm:$0xff] %v12630_v32  ;;  %v12634_v55 = vpop.permute.xlu0 %1655 }
 0x368   : > { %18859 = vst [vmem:[#allocation134_spill] sm:$0xff] %v12634_v55  ;;  %2066 = vbcast.lane.b32.xlu1 %v2060_v38, 264 }
 0x369   : > { %2062 = vbcast.lane.b32.xlu0 %v2060_v38, 256  ;;  %v2093_v38 = vrot.slane %v12062_v14, %v12120_v23 }
 0x36a   : > { %v12636_v13 = vpop.permute.xlu1 %1670 }
 0x36b   : > { %18860 = vst [vmem:[#allocation135_spill] sm:$0xff] %v12636_v13  ;;  %v12640_v24 = vpop.permute.xlu0 %1666 }
 0x36c   : > { %18861 = vst [vmem:[#allocation136_spill] sm:$0xff] %v12640_v24  ;;  %2077 = vbcast.lane.b32.xlu1 %v2071_v42, 264 }
 0x36d   : > { %2073 = vbcast.lane.b32.xlu0 %v2071_v42, 256  ;;  %v2104_v42 = vrot.slane %v12062_v14, %v12137_v53 }
 0x36e   : > { %v12642_v30 = vpop.permute.xlu1 %1769 }
 0x36f   : > { %18862 = vst [vmem:[#allocation137_spill] sm:$0xff] %v12642_v30  ;;  %v12646_v32 = vpop.permute.xlu0 %1765 }
 0x370   : > { %18863 = vst [vmem:[#allocation138_spill] sm:$0xff] %v12646_v32  ;;  %2088 = vbcast.lane.b32.xlu1 %v2082_v5, 264 }
 0x371   : > { %2084 = vbcast.lane.b32.xlu0 %v2082_v5, 256  ;;  %v2115_v5 = vrot.slane %v12187_v27, %v11987_v28 }
 0x372   : > { %v12648_v55 = vpop.permute.xlu1 %1780 }
 0x373   : > { %18864 = vst [vmem:[#allocation139_spill] sm:$0xff] %v12648_v55  ;;  %v12652_v13 = vpop.permute.xlu0 %1776 }
 0x374   : > { %18865 = vst [vmem:[#allocation140_spill] sm:$0xff] %v12652_v13  ;;  %2099 = vbcast.lane.b32.xlu1 %v2093_v38, 264 }
 0x375   : > { %2095 = vbcast.lane.b32.xlu0 %v2093_v38, 256  ;;  %v2126_v38 = vrot.slane %v12187_v27, %v12006_v36 }
 0x376   : > { %v12654_v24 = vpop.permute.xlu1 %1791 }
 0x377   : > { %18866 = vst [vmem:[#allocation141_spill] sm:$0xff] %v12654_v24  ;;  %v12658_v30 = vpop.permute.xlu0 %1787 }
 0x378   : > { %2110 = vbcast.lane.b32.xlu1 %v2104_v42, 264 }
 0x379   : > { %2106 = vbcast.lane.b32.xlu0 %v2104_v42, 256  ;;  %v2137_v42 = vrot.slane %v12187_v27, %v12025_v54 }
 0x37a   : > { %v12660_v32 = vpop.permute.xlu1 %1802 }
 0x37b   : > { %18867 = vst [vmem:[#allocation142_spill] sm:$0xff] %v12660_v32  ;;  %v12664_v55 = vpop.permute.xlu0 %1798 }
 0x37c   : > { %18868 = vst [vmem:[#allocation143_spill] sm:$0xff] %v12664_v55  ;;  %2121 = vbcast.lane.b32.xlu1 %v2115_v5, 264 }
 0x37d   : > { %2117 = vbcast.lane.b32.xlu0 %v2115_v5, 256  ;;  %v2148_v5 = vrot.slane %v12187_v27, %v12067_v20 }
 0x37e   : > { %v12666_v13 = vpop.permute.xlu1 %1813 }
 0x37f   : > { %18869 = vst [vmem:[#allocation144_spill] sm:$0xff] %v12666_v13  ;;  %v12670_v24 = vpop.permute.xlu0 %1809 }
 0x380   : > { %18870 = vst [vmem:[#allocation145_spill] sm:$0xff] %v12670_v24  ;;  %2132 = vbcast.lane.b32.xlu1 %v2126_v38, 264 }
 0x381   : > { %2128 = vbcast.lane.b32.xlu0 %v2126_v38, 256  ;;  %v2159_v38 = vrot.slane %v12187_v27, %v12084_v41 }
 0x382   : > { %v12672_v14 = vpop.permute.xlu1 %1824 }
 0x383   : > { %18871 = vst [vmem:[#allocation146_spill] sm:$0xff] %v12672_v14  ;;  %v12676_v32 = vpop.permute.xlu0 %1820 }
 0x384   : > { %18872 = vst [vmem:[#allocation147_spill] sm:$0xff] %v12676_v32  ;;  %2143 = vbcast.lane.b32.xlu1 %v2137_v42, 264 }
 0x385   : > { %2139 = vbcast.lane.b32.xlu0 %v2137_v42, 256  ;;  %v2170_v42 = vrot.slane %v12187_v27, %v12105_v57 }
 0x386   : > { %v12678_v55 = vpop.permute.xlu1 %1835 }
 0x387   : > { %18873 = vst [vmem:[#allocation148_spill] sm:$0xff] %v12678_v55  ;;  %v12682_v13 = vpop.permute.xlu0 %1831 }
 0x388   : > { %18874 = vst [vmem:[#allocation149_spill] sm:$0xff] %v12682_v13  ;;  %2154 = vbcast.lane.b32.xlu1 %v2148_v5, 264 }
 0x389   : > { %2150 = vbcast.lane.b32.xlu0 %v2148_v5, 256  ;;  %v2181_v5 = vrot.slane %v12187_v27, %v12120_v23 }
 0x38a   : > { %v12684_v24 = vpop.permute.xlu1 %1846 }
 0x38b   : > { %18875 = vst [vmem:[#allocation150_spill] sm:$0xff] %v12684_v24  ;;  %v12688_v14 = vpop.permute.xlu0 %1842 }
 0x38c   : > { %18876 = vst [vmem:[#allocation151_spill] sm:$0xff] %v12688_v14  ;;  %2165 = vbcast.lane.b32.xlu1 %v2159_v38, 264 }
 0x38d   : > { %2161 = vbcast.lane.b32.xlu0 %v2159_v38, 256  ;;  %v2192_v38 = vrot.slane %v12187_v27, %v12137_v53 }
 0x38e   : > { %v12690_v32 = vpop.permute.xlu1 %1857 }
 0x38f   : > { %18877 = vst [vmem:[#allocation152_spill] sm:$0xff] %v12690_v32  ;;  %v12694_v55 = vpop.permute.xlu0 %1853 }
 0x390   : > { %18878 = vst [vmem:[#allocation153_spill] sm:$0xff] %v12694_v55  ;;  %2176 = vbcast.lane.b32.xlu1 %v2170_v42, 264 }
 0x391   : > { %2172 = vbcast.lane.b32.xlu0 %v2170_v42, 256  ;;  %v2203_v42 = vrot.slane %v12064_v18, %v11987_v28 }
 0x392   : > { %v12696_v13 = vpop.permute.xlu1 %1868 }
 0x393   : > { %18879 = vst [vmem:[#allocation154_spill] sm:$0xff] %v12696_v13  ;;  %v12700_v24 = vpop.permute.xlu0 %1864 }
 0x394   : > { %18880 = vst [vmem:[#allocation155_spill] sm:$0xff] %v12700_v24  ;;  %2187 = vbcast.lane.b32.xlu1 %v2181_v5, 264 }
 0x395   : > { %2183 = vbcast.lane.b32.xlu0 %v2181_v5, 256  ;;  %v2214_v5 = vrot.slane %v12064_v18, %v12006_v36 }
 0x396   : > { %v12702_v14 = vpop.permute.xlu1 %1879 }
 0x397   : > { %18881 = vst [vmem:[#allocation156_spill] sm:$0xff] %v12702_v14  ;;  %v12706_v32 = vpop.permute.xlu0 %1875 }
 0x398   : > { %2198 = vbcast.lane.b32.xlu1 %v2192_v38, 264 }
 0x399   : > { %2194 = vbcast.lane.b32.xlu0 %v2192_v38, 256  ;;  %v2225_v38 = vrot.slane %v12064_v18, %v12025_v54 }
 0x39a   : > { %v12708_v55 = vpop.permute.xlu1 %1890 }
 0x39b   : > { %18882 = vst [vmem:[#allocation157_spill] sm:$0xff] %v12708_v55  ;;  %v12712_v13 = vpop.permute.xlu0 %1886 }
 0x39c   : > { %18883 = vst [vmem:[#allocation158_spill] sm:$0xff] %v12712_v13  ;;  %2209 = vbcast.lane.b32.xlu1 %v2203_v42, 264 }
 0x39d   : > { %2205 = vbcast.lane.b32.xlu0 %v2203_v42, 256  ;;  %v2236_v42 = vrot.slane %v12064_v18, %v12067_v20 }
 0x39e   : > { %v12714_v24 = vpop.permute.xlu1 %1901 }
 0x39f   : > { %18884 = vst [vmem:[#allocation159_spill] sm:$0xff] %v12714_v24  ;;  %v12718_v14 = vpop.permute.xlu0 %1897 }
 0x3a0   : > { %18885 = vst [vmem:[#allocation160_spill] sm:$0xff] %v12718_v14  ;;  %2220 = vbcast.lane.b32.xlu1 %v2214_v5, 264 }
 0x3a1   : > { %2216 = vbcast.lane.b32.xlu0 %v2214_v5, 256  ;;  %v2247_v5 = vrot.slane %v12064_v18, %v12084_v41 }
 0x3a2   : > { %v12720_v27 = vpop.permute.xlu1 %1912 }
 0x3a3   : > { %18886 = vst [vmem:[#allocation161_spill] sm:$0xff] %v12720_v27  ;;  %v12724_v55 = vpop.permute.xlu0 %1908 }
 0x3a4   : > { %18887 = vst [vmem:[#allocation162_spill] sm:$0xff] %v12724_v55  ;;  %2231 = vbcast.lane.b32.xlu1 %v2225_v38, 264 }
 0x3a5   : > { %2227 = vbcast.lane.b32.xlu0 %v2225_v38, 256  ;;  %v2258_v38 = vrot.slane %v12064_v18, %v12105_v57 }
 0x3a6   : > { %v12726_v13 = vpop.permute.xlu1 %1923 }
 0x3a7   : > { %18888 = vst [vmem:[#allocation163_spill] sm:$0xff] %v12726_v13  ;;  %v12730_v24 = vpop.permute.xlu0 %1919 }
 0x3a8   : > { %18889 = vst [vmem:[#allocation164_spill] sm:$0xff] %v12730_v24  ;;  %2242 = vbcast.lane.b32.xlu1 %v2236_v42, 264 }
 0x3a9   : > { %2238 = vbcast.lane.b32.xlu0 %v2236_v42, 256  ;;  %v2269_v42 = vrot.slane %v12064_v18, %v12120_v23 }
 0x3aa   : > { %v12732_v14 = vpop.permute.xlu1 %1934 }
 0x3ab   : > { %18890 = vst [vmem:[#allocation165_spill] sm:$0xff] %v12732_v14  ;;  %v12736_v27 = vpop.permute.xlu0 %1930 }
 0x3ac   : > { %18891 = vst [vmem:[#allocation166_spill] sm:$0xff] %v12736_v27  ;;  %2253 = vbcast.lane.b32.xlu1 %v2247_v5, 264 }
 0x3ad   : > { %2249 = vbcast.lane.b32.xlu0 %v2247_v5, 256  ;;  %v2280_v5 = vrot.slane %v12064_v18, %v12137_v53 }
 0x3ae   : > { %v12738_v55 = vpop.permute.xlu1 %1945 }
 0x3af   : > { %18892 = vst [vmem:[#allocation167_spill] sm:$0xff] %v12738_v55  ;;  %v12742_v13 = vpop.permute.xlu0 %1941 }
 0x3b0   : > { %18893 = vst [vmem:[#allocation168_spill] sm:$0xff] %v12742_v13  ;;  %2264 = vbcast.lane.b32.xlu1 %v2258_v38, 264 }
 0x3b1   : > { %2260 = vbcast.lane.b32.xlu0 %v2258_v38, 256  ;;  %v2291_v38 = vrot.slane %v12189_v46, %v11987_v28 }
 0x3b2   : > { %v12744_v24 = vpop.permute.xlu1 %1956 }
 0x3b3   : > { %18894 = vst [vmem:[#allocation169_spill] sm:$0xff] %v12744_v24  ;;  %v12748_v14 = vpop.permute.xlu0 %1952 }
 0x3b4   : > { %18895 = vst [vmem:[#allocation170_spill] sm:$0xff] %v12748_v14  ;;  %2275 = vbcast.lane.b32.xlu1 %v2269_v42, 264 }
 0x3b5   : > { %2271 = vbcast.lane.b32.xlu0 %v2269_v42, 256  ;;  %v2302_v42 = vrot.slane %v12189_v46, %v12006_v36 }
 0x3b6   : > { %v12750_v27 = vpop.permute.xlu1 %1967 }
 0x3b7   : > { %18896 = vst [vmem:[#allocation171_spill] sm:$0xff] %v12750_v27  ;;  %v12754_v55 = vpop.permute.xlu0 %1963 }
 0x3b8   : > { %18897 = vst [vmem:[#allocation172_spill] sm:$0xff] %v12754_v55  ;;  %2286 = vbcast.lane.b32.xlu1 %v2280_v5, 264 }
 0x3b9   : > { %2282 = vbcast.lane.b32.xlu0 %v2280_v5, 256  ;;  %v2313_v5 = vrot.slane %v12189_v46, %v12025_v54 }
 0x3ba   : > { %v12756_v13 = vpop.permute.xlu1 %1978 }
 0x3bb   : > { %18898 = vst [vmem:[#allocation173_spill] sm:$0xff] %v12756_v13  ;;  %v12760_v24 = vpop.permute.xlu0 %1974 }
 0x3bc   : > { %18899 = vst [vmem:[#allocation174_spill] sm:$0xff] %v12760_v24  ;;  %2297 = vbcast.lane.b32.xlu1 %v2291_v38, 264 }
 0x3bd   : > { %2293 = vbcast.lane.b32.xlu0 %v2291_v38, 256  ;;  %v2324_v38 = vrot.slane %v12189_v46, %v12067_v20 }
 0x3be   : > { %v12762_v14 = vpop.permute.xlu1 %1989 }
 0x3bf   : > { %18900 = vst [vmem:[#allocation175_spill] sm:$0xff] %v12762_v14  ;;  %v12766_v27 = vpop.permute.xlu0 %1985 }
 0x3c0   : > { %18901 = vst [vmem:[#allocation176_spill] sm:$0xff] %v12766_v27  ;;  %2308 = vbcast.lane.b32.xlu1 %v2302_v42, 264 }
 0x3c1   : > { %2304 = vbcast.lane.b32.xlu0 %v2302_v42, 256  ;;  %v2335_v42 = vrot.slane %v12189_v46, %v12084_v41 }
 0x3c2   : > { %v12768_v18 = vpop.permute.xlu1 %2000 }
 0x3c3   : > { %18902 = vst [vmem:[#allocation177_spill] sm:$0xff] %v12768_v18  ;;  %v12772_v13 = vpop.permute.xlu0 %1996 }
 0x3c4   : > { %18903 = vst [vmem:[#allocation178_spill] sm:$0xff] %v12772_v13  ;;  %2319 = vbcast.lane.b32.xlu1 %v2313_v5, 264 }
 0x3c5   : > { %2315 = vbcast.lane.b32.xlu0 %v2313_v5, 256  ;;  %v2346_v5 = vrot.slane %v12189_v46, %v12105_v57 }
 0x3c6   : > { %v12774_v24 = vpop.permute.xlu1 %2011 }
 0x3c7   : > { %18904 = vst [vmem:[#allocation179_spill] sm:$0xff] %v12774_v24  ;;  %v12778_v14 = vpop.permute.xlu0 %2007 }
 0x3c8   : > { %18905 = vst [vmem:[#allocation180_spill] sm:$0xff] %v12778_v14  ;;  %2330 = vbcast.lane.b32.xlu1 %v2324_v38, 264 }
 0x3c9   : > { %2326 = vbcast.lane.b32.xlu0 %v2324_v38, 256  ;;  %v2357_v38 = vrot.slane %v12189_v46, %v12120_v23 }
 0x3ca   : > { %v12780_v27 = vpop.permute.xlu1 %2022 }
 0x3cb   : > { %18906 = vst [vmem:[#allocation181_spill] sm:$0xff] %v12780_v27  ;;  %v12784_v18 = vpop.permute.xlu0 %2018 }
 0x3cc   : > { %18907 = vst [vmem:[#allocation182_spill] sm:$0xff] %v12784_v18  ;;  %2341 = vbcast.lane.b32.xlu1 %v2335_v42, 264  ;;  %v2368_v18 = vrot.slane %v12189_v46, %v12137_v53 }
 0x3cd   : > { %2337 = vbcast.lane.b32.xlu0 %v2335_v42, 256  ;;  %v556_v42 = vcombine.low %v11983_v21, %v11979_v19 }
 0x3ce   : > { %v12786_v13 = vpop.permute.xlu1 %2033 }
 0x3cf   : > { %18908 = vst [vmem:[#allocation183_spill] sm:$0xff] %v12786_v13  ;;  %v12790_v24 = vpop.permute.xlu0 %2029  ;;  %v2390_v19 = vrot.slane %v556_v42, %v12006_v36 }
 0x3d0   : > { %18909 = vst [vmem:[#allocation184_spill] sm:$0xff] %v12790_v24  ;;  %2352 = vbcast.lane.b32.xlu1 %v2346_v5, 264 }
 0x3d1   : > { %2348 = vbcast.lane.b32.xlu0 %v2346_v5, 256 }
 0x3d2   : > { %v12792_v14 = vpop.permute.xlu1 %2044 }
 0x3d3   : > { %18910 = vst [vmem:[#allocation185_spill] sm:$0xff] %v12792_v14  ;;  %v12796_v27 = vpop.permute.xlu0 %2040  ;;  %v2379_v14 = vrot.slane %v556_v42, %v11987_v28 }
 0x3d4   : > { %18911 = vst [vmem:[#allocation186_spill] sm:$0xff] %v12796_v27  ;;  %2363 = vbcast.lane.b32.xlu1 %v2357_v38, 264 }
 0x3d5   : > { %2359 = vbcast.lane.b32.xlu0 %v2357_v38, 256 }
 0x3d6   : > { %v12800_v13 = vpop.permute.xlu1 %2055 }
 0x3d7   : > { %18912 = vst [vmem:[#allocation187_spill] sm:$0xff] %v12800_v13  ;;  %v12804_v24 = vpop.permute.xlu0 %2051 }
 0x3d8   : > { %18913 = vst [vmem:[#allocation188_spill] sm:$0xff] %v12804_v24  ;;  %2374 = vbcast.lane.b32.xlu1 %v2368_v18, 264 }
 0x3d9   : > { %2370 = vbcast.lane.b32.xlu0 %v2368_v18, 256  ;;  %v2401_v18 = vrot.slane %v556_v42, %v12025_v54 }
 0x3da   : > { %v12806_v5 = vpop.permute.xlu1 %2066 }
 0x3db   : > { %18914 = vst [vmem:[#allocation189_spill] sm:$0xff] %v12806_v5  ;;  %v12809_v55 = vpop.permute.xlu0 %2062 }
 0x3dc   : > { %18915 = vst [vmem:[#allocation190_spill] sm:$0xff] %v12809_v55  ;;  %2385 = vbcast.lane.b32.xlu1 %v2379_v14, 264 }
 0x3dd   : > { %2381 = vbcast.lane.b32.xlu0 %v2379_v14, 256  ;;  %v2412_v14 = vrot.slane %v556_v42, %v12067_v20 }
 0x3de   : > { %v12811_v38 = vpop.permute.xlu1 %2077 }
 0x3df   : > { %18916 = vst [vmem:[#allocation191_spill] sm:$0xff] %v12811_v38  ;;  %v12814_v21 = vpop.permute.xlu0 %2073 }
 0x3e0   : > { %18917 = vst [vmem:[#allocation192_spill] sm:$0xff] %v12814_v21  ;;  %2396 = vbcast.lane.b32.xlu1 %v2390_v19, 264 }
 0x3e1   : > { %2392 = vbcast.lane.b32.xlu0 %v2390_v19, 256  ;;  %v2423_v19 = vrot.slane %v556_v42, %v12084_v41 }
 0x3e2   : > { %v12816_v46 = vpop.permute.xlu1 %2088 }
 0x3e3   : > { %18918 = vst [vmem:[#allocation193_spill] sm:$0xff] %v12816_v46  ;;  %v12819_v27 = vpop.permute.xlu0 %2084 }
 0x3e4   : > { %18919 = vst [vmem:[#allocation194_spill] sm:$0xff] %v12819_v27  ;;  %2407 = vbcast.lane.b32.xlu1 %v2401_v18, 264 }
 0x3e5   : > { %2403 = vbcast.lane.b32.xlu0 %v2401_v18, 256  ;;  %v2434_v18 = vrot.slane %v556_v42, %v12105_v57 }
 0x3e6   : > { %v12821_v5 = vpop.permute.xlu1 %2099 }
 0x3e7   : > { %18920 = vst [vmem:[#allocation195_spill] sm:$0xff] %v12821_v5  ;;  %v12824_v55 = vpop.permute.xlu0 %2095 }
 0x3e8   : > { %18921 = vst [vmem:[#allocation196_spill] sm:$0xff] %v12824_v55  ;;  %2418 = vbcast.lane.b32.xlu1 %v2412_v14, 264 }
 0x3e9   : > { %2414 = vbcast.lane.b32.xlu0 %v2412_v14, 256  ;;  %v2445_v14 = vrot.slane %v556_v42, %v12120_v23 }
 0x3ea   : > { %v12826_v38 = vpop.permute.xlu1 %2110 }
 0x3eb   : > { %18922 = vst [vmem:[#allocation197_spill] sm:$0xff] %v12826_v38  ;;  %v12829_v21 = vpop.permute.xlu0 %2106 }
 0x3ec   : > { %18923 = vst [vmem:[#allocation198_spill] sm:$0xff] %v12829_v21  ;;  %2429 = vbcast.lane.b32.xlu1 %v2423_v19, 264  ;;  %v692_v21 = vcombine.low %v12131_v1, %v12127_v40 }
 0x3ed   : > { %2425 = vbcast.lane.b32.xlu0 %v2423_v19, 256 }
 0x3ee   : > { %v12831_v46 = vpop.permute.xlu1 %2121  ;;  %v2478_v40 = vrot.slane %v692_v21, %v12006_v36 }
 0x3ef   : > { %18924 = vst [vmem:[#allocation199_spill] sm:$0xff] %v12831_v46  ;;  %v12834_v27 = vpop.permute.xlu0 %2117  ;;  %v2456_v46 = vrot.slane %v556_v42, %v12137_v53 }
 0x3f0   : > { %18925 = vst [vmem:[#allocation200_spill] sm:$0xff] %v12834_v27  ;;  %2440 = vbcast.lane.b32.xlu1 %v2434_v18, 264 }
 0x3f1   : > { %2436 = vbcast.lane.b32.xlu0 %v2434_v18, 256 }
 0x3f2   : > { %v12836_v5 = vpop.permute.xlu1 %2132 }
 0x3f3   : > { %18926 = vst [vmem:[#allocation201_spill] sm:$0xff] %v12836_v5  ;;  %v12839_v55 = vpop.permute.xlu0 %2128  ;;  %v2467_v5 = vrot.slane %v692_v21, %v11987_v28 }
 0x3f4   : > { %18927 = vst [vmem:[#allocation202_spill] sm:$0xff] %v12839_v55  ;;  %2451 = vbcast.lane.b32.xlu1 %v2445_v14, 264 }
 0x3f5   : > { %2447 = vbcast.lane.b32.xlu0 %v2445_v14, 256 }
 0x3f6   : > { %v12843_v19 = vpop.permute.xlu1 %2143 }
 0x3f7   : > { %18928 = vst [vmem:[#allocation203_spill] sm:$0xff] %v12843_v19  ;;  %v12846_v38 = vpop.permute.xlu0 %2139 }
 0x3f8   : > { %18929 = vst [vmem:[#allocation204_spill] sm:$0xff] %v12846_v38  ;;  %2462 = vbcast.lane.b32.xlu1 %v2456_v46, 264 }
 0x3f9   : > { %2458 = vbcast.lane.b32.xlu0 %v2456_v46, 256  ;;  %v2489_v46 = vrot.slane %v692_v21, %v12025_v54 }
 0x3fa   : > { %v12848_v18 = vpop.permute.xlu1 %2154 }
 0x3fb   : > { %18930 = vst [vmem:[#allocation205_spill] sm:$0xff] %v12848_v18  ;;  %v12851_v27 = vpop.permute.xlu0 %2150 }
 0x3fc   : > { %18931 = vst [vmem:[#allocation206_spill] sm:$0xff] %v12851_v27  ;;  %2473 = vbcast.lane.b32.xlu1 %v2467_v5, 264 }
 0x3fd   : > { %2469 = vbcast.lane.b32.xlu0 %v2467_v5, 256  ;;  %v2500_v5 = vrot.slane %v692_v21, %v12067_v20 }
 0x3fe   : > { %v12853_v14 = vpop.permute.xlu1 %2165 }
 0x3ff   : > { %18932 = vst [vmem:[#allocation207_spill] sm:$0xff] %v12853_v14  ;;  %v12856_v1 = vpop.permute.xlu0 %2161 }
 0x400   : > { %18933 = vst [vmem:[#allocation208_spill] sm:$0xff] %v12856_v1  ;;  %2484 = vbcast.lane.b32.xlu1 %v2478_v40, 264 }
 0x401   : > { %2480 = vbcast.lane.b32.xlu0 %v2478_v40, 256  ;;  %v2511_v40 = vrot.slane %v692_v21, %v12084_v41 }
 0x402   : > { %v12858_v42 = vpop.permute.xlu1 %2176 }
 0x403   : > { %18934 = vst [vmem:[#allocation209_spill] sm:$0xff] %v12858_v42  ;;  %v12861_v55 = vpop.permute.xlu0 %2172 }
 0x404   : > { %18935 = vst [vmem:[#allocation210_spill] sm:$0xff] %v12861_v55  ;;  %2495 = vbcast.lane.b32.xlu1 %v2489_v46, 264 }
 0x405   : > { %2491 = vbcast.lane.b32.xlu0 %v2489_v46, 256  ;;  %v2522_v46 = vrot.slane %v692_v21, %v12105_v57 }
 0x406   : > { %v12863_v18 = vpop.permute.xlu1 %2187 }
 0x407   : > { %18936 = vst [vmem:[#allocation211_spill] sm:$0xff] %v12863_v18  ;;  %v12866_v27 = vpop.permute.xlu0 %2183 }
 0x408   : > { %18937 = vst [vmem:[#allocation212_spill] sm:$0xff] %v12866_v27  ;;  %2506 = vbcast.lane.b32.xlu1 %v2500_v5, 264 }
 0x409   : > { %2502 = vbcast.lane.b32.xlu0 %v2500_v5, 256  ;;  %v2533_v5 = vrot.slane %v692_v21, %v12120_v23 }
 0x40a   : > { %v12868_v14 = vpop.permute.xlu1 %2198 }
 0x40b   : > { %18938 = vst [vmem:[#allocation213_spill] sm:$0xff] %v12868_v14  ;;  %v12871_v1 = vpop.permute.xlu0 %2194 }
 0x40c   : > { %18939 = vst [vmem:[#allocation214_spill] sm:$0xff] %v12871_v1  ;;  %2517 = vbcast.lane.b32.xlu1 %v2511_v40, 264 }
 0x40d   : > { %2513 = vbcast.lane.b32.xlu0 %v2511_v40, 256  ;;  %v2544_v40 = vrot.slane %v692_v21, %v12137_v53 }
 0x40e   : > { %v12873_v42 = vpop.permute.xlu1 %2209 }
 0x40f   : > { %18940 = vst [vmem:[#allocation215_spill] sm:$0xff] %v12873_v42  ;;  %v12876_v55 = vpop.permute.xlu0 %2205 }
 0x410   : > { %18941 = vst [vmem:[#allocation216_spill] sm:$0xff] %v12876_v55  ;;  %2528 = vbcast.lane.b32.xlu1 %v2522_v46, 264 }
 0x411   : > { %2524 = vbcast.lane.b32.xlu0 %v2522_v46, 256  ;;  %v2555_v46 = vrot.slane %v11999_v33, %v11987_v28 }
 0x412   : > { %v12878_v18 = vpop.permute.xlu1 %2220 }
 0x413   : > { %18942 = vst [vmem:[#allocation217_spill] sm:$0xff] %v12878_v18  ;;  %v12881_v27 = vpop.permute.xlu0 %2216 }
 0x414   : > { %18943 = vst [vmem:[#allocation218_spill] sm:$0xff] %v12881_v27  ;;  %2539 = vbcast.lane.b32.xlu1 %v2533_v5, 264 }
 0x415   : > { %2535 = vbcast.lane.b32.xlu0 %v2533_v5, 256  ;;  %v2566_v5 = vrot.slane %v11999_v33, %v12006_v36 }
 0x416   : > { %v12883_v14 = vpop.permute.xlu1 %2231 }
 0x417   : > { %18944 = vst [vmem:[#allocation219_spill] sm:$0xff] %v12883_v14  ;;  %v12886_v1 = vpop.permute.xlu0 %2227 }
 0x418   : > { %18945 = vst [vmem:[#allocation220_spill] sm:$0xff] %v12886_v1  ;;  %2550 = vbcast.lane.b32.xlu1 %v2544_v40, 264 }
 0x419   : > { %2546 = vbcast.lane.b32.xlu0 %v2544_v40, 256  ;;  %v2577_v40 = vrot.slane %v11999_v33, %v12025_v54 }
 0x41a   : > { %v12888_v42 = vpop.permute.xlu1 %2242 }
 0x41b   : > { %18946 = vst [vmem:[#allocation221_spill] sm:$0xff] %v12888_v42  ;;  %v12892_v18 = vpop.permute.xlu0 %2238 }
 0x41c   : > { %18947 = vst [vmem:[#allocation222_spill] sm:$0xff] %v12892_v18  ;;  %2561 = vbcast.lane.b32.xlu1 %v2555_v46, 264 }
 0x41d   : > { %2557 = vbcast.lane.b32.xlu0 %v2555_v46, 256  ;;  %v2588_v46 = vrot.slane %v11999_v33, %v12067_v20 }
 0x41e   : > { %v12894_v27 = vpop.permute.xlu1 %2253 }
 0x41f   : > { %18948 = vst [vmem:[#allocation223_spill] sm:$0xff] %v12894_v27  ;;  %v12898_v55 = vpop.permute.xlu0 %2249 }
 0x420   : > { %18949 = vst [vmem:[#allocation224_spill] sm:$0xff] %v12898_v55  ;;  %2572 = vbcast.lane.b32.xlu1 %v2566_v5, 264 }
 0x421   : > { %2568 = vbcast.lane.b32.xlu0 %v2566_v5, 256  ;;  %v2599_v5 = vrot.slane %v11999_v33, %v12084_v41 }
 0x422   : > { %v12900_v21 = vpop.permute.xlu1 %2264 }
 0x423   : > { %18950 = vst [vmem:[#allocation225_spill] sm:$0xff] %v12900_v21  ;;  %v12904_v42 = vpop.permute.xlu0 %2260 }
 0x424   : > { %18951 = vst [vmem:[#allocation226_spill] sm:$0xff] %v12904_v42  ;;  %2583 = vbcast.lane.b32.xlu1 %v2577_v40, 264 }
 0x425   : > { %2579 = vbcast.lane.b32.xlu0 %v2577_v40, 256  ;;  %v2610_v40 = vrot.slane %v11999_v33, %v12105_v57 }
 0x426   : > { %v12906_v18 = vpop.permute.xlu1 %2275 }
 0x427   : > { %18952 = vst [vmem:[#allocation227_spill] sm:$0xff] %v12906_v18  ;;  %v12910_v27 = vpop.permute.xlu0 %2271 }
 0x428   : > { %18953 = vst [vmem:[#allocation228_spill] sm:$0xff] %v12910_v27  ;;  %2594 = vbcast.lane.b32.xlu1 %v2588_v46, 264 }
 0x429   : > { %2590 = vbcast.lane.b32.xlu0 %v2588_v46, 256  ;;  %v2621_v46 = vrot.slane %v11999_v33, %v12120_v23 }
 0x42a   : > { %v12912_v55 = vpop.permute.xlu1 %2286 }
 0x42b   : > { %18954 = vst [vmem:[#allocation229_spill] sm:$0xff] %v12912_v55  ;;  %v12916_v21 = vpop.permute.xlu0 %2282 }
 0x42c   : > { %18955 = vst [vmem:[#allocation230_spill] sm:$0xff] %v12916_v21  ;;  %2605 = vbcast.lane.b32.xlu1 %v2599_v5, 264 }
 0x42d   : > { %2601 = vbcast.lane.b32.xlu0 %v2599_v5, 256  ;;  %v2632_v5 = vrot.slane %v11999_v33, %v12137_v53 }
 0x42e   : > { %v12918_v42 = vpop.permute.xlu1 %2297 }
 0x42f   : > { %18956 = vst [vmem:[#allocation231_spill] sm:$0xff] %v12918_v42  ;;  %v12922_v18 = vpop.permute.xlu0 %2293 }
 0x430   : > { %18957 = vst [vmem:[#allocation232_spill] sm:$0xff] %v12922_v18  ;;  %2616 = vbcast.lane.b32.xlu1 %v2610_v40, 264 }
 0x431   : > { %2612 = vbcast.lane.b32.xlu0 %v2610_v40, 256  ;;  %v2643_v40 = vrot.slane %v12145_v3, %v11987_v28 }
 0x432   : > { %v12924_v27 = vpop.permute.xlu1 %2308 }
 0x433   : > { %18958 = vst [vmem:[#allocation233_spill] sm:$0xff] %v12924_v27  ;;  %v12928_v55 = vpop.permute.xlu0 %2304 }
 0x434   : > { %18959 = vst [vmem:[#allocation234_spill] sm:$0xff] %v12928_v55  ;;  %2627 = vbcast.lane.b32.xlu1 %v2621_v46, 264 }
 0x435   : > { %2623 = vbcast.lane.b32.xlu0 %v2621_v46, 256  ;;  %v2654_v46 = vrot.slane %v12145_v3, %v12006_v36 }
 0x436   : > { %v12930_v21 = vpop.permute.xlu1 %2319 }
 0x437   : > { %18960 = vst [vmem:[#allocation235_spill] sm:$0xff] %v12930_v21  ;;  %v12934_v42 = vpop.permute.xlu0 %2315 }
 0x438   : > { %18961 = vst [vmem:[#allocation236_spill] sm:$0xff] %v12934_v42  ;;  %2638 = vbcast.lane.b32.xlu1 %v2632_v5, 264 }
 0x439   : > { %2634 = vbcast.lane.b32.xlu0 %v2632_v5, 256  ;;  %v2665_v5 = vrot.slane %v12145_v3, %v12025_v54 }
 0x43a   : > { %v12936_v18 = vpop.permute.xlu1 %2330 }
 0x43b   : > { %18962 = vst [vmem:[#allocation237_spill] sm:$0xff] %v12936_v18  ;;  %v12940_v27 = vpop.permute.xlu0 %2326 }
 0x43c   : > { %18963 = vst [vmem:[#allocation238_spill] sm:$0xff] %v12940_v27  ;;  %2649 = vbcast.lane.b32.xlu1 %v2643_v40, 264 }
 0x43d   : > { %2645 = vbcast.lane.b32.xlu0 %v2643_v40, 256  ;;  %v2676_v40 = vrot.slane %v12145_v3, %v12067_v20 }
 0x43e   : > { %v12942_v55 = vpop.permute.xlu1 %2341 }
 0x43f   : > { %18964 = vst [vmem:[#allocation239_spill] sm:$0xff] %v12942_v55  ;;  %v12946_v21 = vpop.permute.xlu0 %2337 }
 0x440   : > { %18965 = vst [vmem:[#allocation240_spill] sm:$0xff] %v12946_v21  ;;  %2660 = vbcast.lane.b32.xlu1 %v2654_v46, 264 }
 0x441   : > { %2656 = vbcast.lane.b32.xlu0 %v2654_v46, 256  ;;  %v2687_v46 = vrot.slane %v12145_v3, %v12084_v41 }
 0x442   : > { %v12948_v33 = vpop.permute.xlu1 %2352 }
 0x443   : > { %18966 = vst [vmem:[#allocation241_spill] sm:$0xff] %v12948_v33  ;;  %v12952_v18 = vpop.permute.xlu0 %2348 }
 0x444   : > { %18967 = vst [vmem:[#allocation242_spill] sm:$0xff] %v12952_v18  ;;  %2671 = vbcast.lane.b32.xlu1 %v2665_v5, 264 }
 0x445   : > { %2667 = vbcast.lane.b32.xlu0 %v2665_v5, 256  ;;  %v2698_v5 = vrot.slane %v12145_v3, %v12105_v57 }
 0x446   : > { %v12954_v27 = vpop.permute.xlu1 %2363 }
 0x447   : > { %18968 = vst [vmem:[#allocation243_spill] sm:$0xff] %v12954_v27  ;;  %v12958_v55 = vpop.permute.xlu0 %2359 }
 0x448   : > { %18969 = vst [vmem:[#allocation244_spill] sm:$0xff] %v12958_v55  ;;  %2682 = vbcast.lane.b32.xlu1 %v2676_v40, 264 }
 0x449   : > { %2678 = vbcast.lane.b32.xlu0 %v2676_v40, 256  ;;  %v2709_v40 = vrot.slane %v12145_v3, %v12120_v23 }
 0x44a   : > { %v12960_v21 = vpop.permute.xlu1 %2374 }
 0x44b   : > { %18970 = vst [vmem:[#allocation245_spill] sm:$0xff] %v12960_v21  ;;  %v12964_v33 = vpop.permute.xlu0 %2370 }
 0x44c   : > { %18971 = vst [vmem:[#allocation246_spill] sm:$0xff] %v12964_v33  ;;  %2693 = vbcast.lane.b32.xlu1 %v2687_v46, 264  ;;  %v2720_v33 = vrot.slane %v12145_v3, %v12137_v53  ;;  %v2731_v3 = vrot.slane %v12001_v34, %v11987_v28 }
 0x44d   : > { %2689 = vbcast.lane.b32.xlu0 %v2687_v46, 256 }
 0x44e   : > { %v2386_v18 = vpop.permute.xlu1 %2385 }
 0x44f   : > { %v2382_v27 = vpop.permute.xlu0 %2381  ;;  %v3786_v46 = vsel %vm3784_vm1, %v12234_v62, %v2386_v18 }
 0x450   : > { %2704 = vbcast.lane.b32.xlu1 %v2698_v5, 264 }
 0x451   : > { %2700 = vbcast.lane.b32.xlu0 %v2698_v5, 256  ;;  %v3785_v5 = vsel %vm3784_vm1, %v12232_v56, %v2382_v27 }
 0x452   : > { %v2397_v42 = vpop.permute.xlu1 %2396 }
 0x453   : > { %v2393_v55 = vpop.permute.xlu0 %2392  ;;  %v3788_v62 = vsel %vm3784_vm1, %v12238_v15, %v2397_v42  ;;  %v2742_v15 = vrot.slane %v12001_v34, %v12006_v36 }
 0x454   : > { %2715 = vbcast.lane.b32.xlu1 %v2709_v40, 264 }
 0x455   : > { %2711 = vbcast.lane.b32.xlu0 %v2709_v40, 256 }
 0x456   : > { %v2408_v21 = vpop.permute.xlu1 %2407 }
 0x457   : > { %v2404_v1 = vpop.permute.xlu0 %2403  ;;  %v3790_v14 = vsel %vm3784_vm1, %v12246_v44, %v2408_v21 }
 0x458   : > { %v3789_v38 = vsel %vm3784_vm1, %v12250_v59, %v2404_v1  ;;  %v4314_v19 = vcombine.high %v3786_v46, %v3790_v14  ;;  %2726 = vbcast.lane.b32.xlu1 %v2720_v33, 264  ;;  %v4313_v24 = vcombine.low %v3786_v46, %v3790_v14  ;;  %v3787_v59 = vsel %vm3784_vm1, %v12242_v29, %v2393_v55 }
 0x459   : > { %v4042_v40 = vcombine.high %v3785_v5, %v3789_v38  ;;  %2722 = vbcast.lane.b32.xlu0 %v2720_v33, 256  ;;  %v4041_v18 = vcombine.low %v3785_v5, %v3789_v38 }
 0x45a   : > { %v2419_v13 = vpop.permute.xlu1 %2418  ;;  %v12993_v38 = vrot.slane %v4313_v24, %v11945_v25 }
 0x45b   : > { %v2415_v44 = vpop.permute.xlu0 %2414  ;;  %v3792_v56 = vsel %vm3784_vm1, %v12252_v47, %v2419_v13  ;;  %v12996_v47 = vrot.slane %v4314_v19, %v11945_v25  ;;  %v13005_v13 = vrot.slane %v4041_v18, %v11945_v25  ;;  %v13008_v42 = vrot.slane %v4042_v40, %v11945_v25 }
 0x45c   : > { %v3791_v27 = vsel %vm3784_vm1, %v12255_v17, %v2415_v44  ;;  %v4329_v1 = vcombine.low %v3788_v62, %v3792_v56  ;;  %v4330_v14 = vcombine.high %v3788_v62, %v3792_v56  ;;  %2737 = vbcast.lane.b32.xlu1 %v2731_v3, 264  ;;  %18972 = vst [vmem:[#allocation247_spill] sm:$0xff] %v12993_v38 }
 0x45d   : > { %v4057_v21 = vcombine.low %v3787_v59, %v3791_v27  ;;  %v4058_v33 = vcombine.high %v3787_v59, %v3791_v27  ;;  %2733 = vbcast.lane.b32.xlu0 %v2731_v3, 256  ;;  %v2753_v59 = vrot.slane %v12001_v34, %v12025_v54 }
 0x45e   : > { %v12999_v29 = vrot.slane %v4329_v1, %v11945_v25  ;;  %v13002_v17 = vrot.slane %v4330_v14, %v11945_v25  ;;  %v2430_v55 = vpop.permute.xlu1 %2429  ;;  %v2764_v14 = vrot.slane %v12001_v34, %v12067_v20 }
 0x45f   : > { %v13011_v46 = vrot.slane %v4057_v21, %v11945_v25  ;;  %v13014_v24 = vrot.slane %v4058_v33, %v11945_v25  ;;  %v2426_v19 = vpop.permute.xlu0 %2425  ;;  %v3794_v21 = vsel %vm3784_vm1, %v12257_v48, %v2430_v55  ;;  %v2786_v48 = vrot.slane %v12001_v34, %v12105_v57 }
 0x460   : > { %18973 = vst [vmem:[#allocation248_spill] sm:$0xff] %v12999_v29  ;;  %v4378_v5 = vcombine.high %v12993_v38, %v12999_v29  ;;  %2748 = vbcast.lane.b32.xlu1 %v2742_v15, 264  ;;  %v2775_v29 = vrot.slane %v12001_v34, %v12084_v41 }
 0x461   : > { %v4106_v40 = vcombine.high %v13005_v13, %v13011_v46  ;;  %2744 = vbcast.lane.b32.xlu0 %v2742_v15, 256  ;;  %v3793_v15 = vsel %vm3784_vm1, %v12260_v4, %v2426_v19  ;;  %v2797_v19 = vrot.slane %v12001_v34, %v12120_v23 }
 0x462   : > { %v2441_v56 = vpop.permute.xlu1 %2440 }
 0x463   : > { %v2437_v27 = vpop.permute.xlu0 %2436 }
 0x464   : > { %2759 = vbcast.lane.b32.xlu1 %v2753_v59, 264 }
 0x465   : > { %2755 = vbcast.lane.b32.xlu0 %v2753_v59, 256 }
 0x466   : > { %v2452_v1 = vpop.permute.xlu1 %2451 }
 0x467   : > { %v2448_v33 = vpop.permute.xlu0 %2447  ;;  %v3798_v62 = vsel %vm3784_vm1, %v12267_v12, %v2452_v1  ;;  %v3796_v12 = vsel %vm3784_vm1, %v12262_v31, %v2441_v56  ;;  %v4105_v31 = vcombine.low %v13005_v13, %v13011_v46 }
 0x468   : > { %v3797_v44 = vsel %vm3784_vm1, %v12270_v52, %v2448_v33  ;;  %v4346_v18 = vcombine.high %v3794_v21, %v3798_v62  ;;  %2770 = vbcast.lane.b32.xlu1 %v2764_v14, 264  ;;  %v4345_v3 = vcombine.low %v3794_v21, %v3798_v62  ;;  %v3795_v62 = vsel %vm3784_vm1, %v12265_v39, %v2437_v27 }
 0x469   : > { %v4074_v59 = vcombine.high %v3793_v15, %v3797_v44  ;;  %2766 = vbcast.lane.b32.xlu0 %v2764_v14, 256  ;;  %v4073_v55 = vcombine.low %v3793_v15, %v3797_v44 }
 0x46a   : > { %v2463_v38 = vpop.permute.xlu1 %2462  ;;  %v4360_v39 = vrot.slane %v4346_v18, %v11945_v25 }
 0x46b   : > { %v2459_v4 = vpop.permute.xlu0 %2458  ;;  %v3800_v52 = vsel %vm3784_vm1, %v12272_v43, %v2463_v38  ;;  %v2808_v43 = vrot.slane %v12001_v34, %v12137_v53  ;;  %v13059_v38 = vrot.slane %v4345_v3, %v11945_v25  ;;  %v4081_v15 = vrot.slane %v4073_v55, %v11945_v25 }
 0x46c   : > { %v3799_v1 = vsel %vm3784_vm1, %v12275_v22, %v2459_v4  ;;  %v4361_v14 = vcombine.low %v3796_v12, %v3800_v52  ;;  %v4362_v21 = vcombine.high %v3796_v12, %v3800_v52  ;;  %2781 = vbcast.lane.b32.xlu1 %v2775_v29, 264  ;;  %v4088_v13 = vrot.slane %v4074_v59, %v11945_v25 }
 0x46d   : > { %v4089_v44 = vcombine.low %v3795_v62, %v3799_v1  ;;  %v4090_v56 = vcombine.high %v3795_v62, %v3799_v1  ;;  %2777 = vbcast.lane.b32.xlu0 %v2775_v29, 256  ;;  %18974 = vst [vmem:[#allocation249_spill] sm:$0xff] %v13059_v38  ;;  %v13071_v3 = vrot.slane %v4378_v5, %v11964_v63 }
 0x46e   : > { %v13063_v27 = vrot.slane %v4361_v14, %v11945_v25  ;;  %v4376_v22 = vrot.slane %v4362_v21, %v11945_v25  ;;  %v2474_v33 = vpop.permute.xlu1 %2473  ;;  %v13076_v59 = vrot.slane %v4105_v31, %v11964_v63  ;;  %v13079_v14 = vrot.slane %v4106_v40, %v11964_v63 }
 0x46f   : > { %v4097_v29 = vrot.slane %v4089_v44, %v11945_v25  ;;  %v4104_v46 = vrot.slane %v4090_v56, %v11945_v25  ;;  %v2470_v34 = vpop.permute.xlu0 %2469  ;;  %18976 = vst [vmem:[#allocation251_spill] sm:$0xff] %v13071_v3  ;;  %v18978_v5 = vcombine.low %v12996_v47, %v13002_v17 }
 0x470   : > { %18975 = vst [vmem:[#allocation250_spill] sm:$0xff] %v13063_v27  ;;  %v4410_v18 = vcombine.high %v13059_v38, %v13063_v27  ;;  %v4425_v12 = vcombine.low %v4360_v39, %v4376_v22  ;;  %v4426_v4 = vcombine.high %v4360_v39, %v4376_v22  ;;  %2792 = vbcast.lane.b32.xlu1 %v2786_v48, 264  ;;  %18977 = vst [vmem:[#allocation252_spill] sm:$0xff] %v13076_v59 }
 0x471   : > { %v4137_v52 = vcombine.low %v4081_v15, %v4097_v29  ;;  %v4138_v62 = vcombine.high %v4081_v15, %v4097_v29  ;;  %v4153_v1 = vcombine.low %v4088_v13, %v4104_v46  ;;  %v4154_v55 = vcombine.high %v4088_v13, %v4104_v46  ;;  %2788 = vbcast.lane.b32.xlu0 %v2786_v48, 256 }
 0x472   : > { %v13085_v21 = vrot.slane %v18978_v5, %v11964_v63  ;;  %v13088_v44 = vrot.slane %v4410_v18, %v11964_v63  ;;  %v2485_v56 = vpop.permute.xlu1 %2484  ;;  %v18984_v15 = vcombine.low %v13008_v42, %v13014_v24  ;;  %v18986_v29 = vcombine.high %v13008_v42, %v13014_v24 }
 0x473   : > { %v13091_v39 = vrot.slane %v4137_v52, %v11964_v63  ;;  %v13094_v48 = vrot.slane %v4138_v62, %v11964_v63  ;;  %v13097_v31 = vrot.slane %v4153_v1, %v11964_v63  ;;  %v13100_v40 = vrot.slane %v4154_v55, %v11964_v63  ;;  %v2481_v22 = vpop.permute.xlu0 %2480 }
 0x474   : > { %18979 = vst [vmem:[#allocation253_spill] sm:$0xff] %v13085_v21  ;;  %18980 = vst [vmem:[#allocation254_spill] sm:$0xff] %v13088_v44  ;;  %v13106_v13 = vrot.slane %v18984_v15, %v11964_v63  ;;  %v13112_v46 = vrot.slane %v18986_v29, %v11964_v63  ;;  %v18988_v18 = vcombine.high %v12996_v47, %v13002_v17  ;;  %2803 = vbcast.lane.b32.xlu1 %v2797_v19, 264 }
 0x475   : > { %18981 = vst [vmem:[#allocation255_spill] sm:$0xff] %v13091_v39  ;;  %18982 = vst [vmem:[#allocation256_spill] sm:$0xff] %v13097_v31  ;;  %v13121_v62 = vrot.slane %v4425_v12, %v11964_v63  ;;  %v13124_v1 = vrot.slane %v4426_v4, %v11964_v63  ;;  %2799 = vbcast.lane.b32.xlu0 %v2797_v19, 256  ;;  %v3802_v5 = vsel %vm3784_vm1, %v12456_v6, %v2474_v33 }
 0x476   : > { %18983 = vst [vmem:[#allocation257_spill] sm:$0xff] %v13100_v40  ;;  %18985 = vst [vmem:[#allocation258_spill] sm:$0xff] %v13106_v13  ;;  %v13118_v52 = vrot.slane %v18988_v18, %v11964_v63  ;;  %v2496_v47 = vpop.permute.xlu1 %2495  ;;  %v3801_v12 = vsel %vm3784_vm1, %v12460_v11, %v2470_v34  ;;  %v2819_v11 = vrot.slane %v12147_v2, %v11987_v28 }
 0x477   : > { %18987 = vst [vmem:[#allocation259_spill] sm:$0xff] %v13112_v46  ;;  %18990 = vst [vmem:[#allocation261_spill] sm:$0xff] %v13121_v62  ;;  %v2492_v15 = vpop.permute.xlu0 %2491  ;;  %v3806_v29 = vsel %vm3784_vm1, %v12470_v10, %v2496_v47  ;;  %v3804_v34 = vsel %vm3784_vm1, %v12462_v37, %v2485_v56  ;;  %v3803_v10 = vsel %vm3784_vm1, %v12466_v45, %v2481_v22 }
 0x478   : > { %18989 = vst [vmem:[#allocation260_spill] sm:$0xff] %v13118_v52  ;;  %18991 = vst [vmem:[#allocation262_spill] sm:$0xff] %v13124_v1  ;;  %v3805_v4 = vsel %vm3784_vm1, %v12474_v60, %v2492_v15  ;;  %v4450_v19 = vcombine.high %v3802_v5, %v3806_v29  ;;  %2814 = vbcast.lane.b32.xlu1 %v2808_v43, 264  ;;  %v4449_v42 = vcombine.low %v3802_v5, %v3806_v29 }
 0x479   : > { %v4178_v33 = vcombine.high %v3801_v12, %v3805_v4  ;;  %2810 = vbcast.lane.b32.xlu0 %v2808_v43, 256  ;;  %v4177_v15 = vcombine.low %v3801_v12, %v3805_v4  ;;  %v2830_v37 = vrot.slane %v12147_v2, %v12006_v36  ;;  %v2863_v1 = vrot.slane %v12147_v2, %v12084_v41 }
 0x47a   : > { %v2507_v18 = vpop.permute.xlu1 %2506  ;;  %v13173_v56 = vrot.slane %v4449_v42, %v11945_v25 }
 0x47b   : > { %v2503_v6 = vpop.permute.xlu0 %2502  ;;  %v3808_v43 = vsel %vm3784_vm1, %v12476_v58, %v2507_v18  ;;  %v13176_v58 = vrot.slane %v4450_v19, %v11945_v25  ;;  %v13185_v12 = vrot.slane %v4177_v15, %v11945_v25  ;;  %v13188_v4 = vrot.slane %v4178_v33, %v11945_v25 }
 0x47c   : > { %v3807_v5 = vsel %vm3784_vm1, %v12479_v26, %v2503_v6  ;;  %v4465_v29 = vcombine.low %v3804_v34, %v3808_v43  ;;  %v4466_v47 = vcombine.high %v3804_v34, %v3808_v43  ;;  %2825 = vbcast.lane.b32.xlu1 %v2819_v11, 264  ;;  %18992 = vst [vmem:[#allocation263_spill] sm:$0xff] %v13173_v56 }
 0x47d   : > { %v4193_v17 = vcombine.low %v3803_v10, %v3807_v5  ;;  %v4194_v24 = vcombine.high %v3803_v10, %v3807_v5  ;;  %2821 = vbcast.lane.b32.xlu0 %v2819_v11, 256  ;;  %v2841_v34 = vrot.slane %v12147_v2, %v12025_v54  ;;  %v2852_v5 = vrot.slane %v12147_v2, %v12067_v20 }
 0x47e   : > { %v13179_v45 = vrot.slane %v4465_v29, %v11945_v25  ;;  %v13182_v26 = vrot.slane %v4466_v47, %v11945_v25  ;;  %v2518_v22 = vpop.permute.xlu1 %2517 }
 0x47f   : > { %v13191_v18 = vrot.slane %v4193_v17, %v11945_v25  ;;  %v13194_v42 = vrot.slane %v4194_v24, %v11945_v25  ;;  %v2514_v19 = vpop.permute.xlu0 %2513  ;;  %v3810_v29 = vsel %vm3784_vm1, %v12481_v51, %v2518_v22  ;;  %v2874_v51 = vrot.slane %v12147_v2, %v12105_v57 }
 0x480   : > { %18993 = vst [vmem:[#allocation264_spill] sm:$0xff] %v13179_v45  ;;  %v4514_v6 = vcombine.high %v13173_v56, %v13179_v45  ;;  %2836 = vbcast.lane.b32.xlu1 %v2830_v37, 264 }
 0x481   : > { %v4242_v33 = vcombine.high %v13185_v12, %v13191_v18  ;;  %2832 = vbcast.lane.b32.xlu0 %v2830_v37, 256  ;;  %v3809_v37 = vsel %vm3784_vm1, %v12484_v50, %v2514_v19  ;;  %v18994_v19 = vld [vmem:[#allocation91_spill] sm:$0xff] }
 0x482   : > { %v2529_v11 = vpop.permute.xlu1 %2528 }
 0x483   : > { %v2525_v15 = vpop.permute.xlu0 %2524 }
 0x484   : > { %2847 = vbcast.lane.b32.xlu1 %v2841_v34, 264 }
 0x485   : > { %2843 = vbcast.lane.b32.xlu0 %v2841_v34, 256 }
 0x486   : > { %v2540_v43 = vpop.permute.xlu1 %2539 }
 0x487   : > { %v2536_v60 = vpop.permute.xlu0 %2535  ;;  %v3814_v55 = vsel %vm3784_vm1, %v12491_v49, %v2540_v43  ;;  %v3812_v49 = vsel %vm3784_vm1, %v12486_v16, %v2529_v11  ;;  %v18995_v43 = vld [vmem:[#allocation92_spill] sm:$0xff]  ;;  %v4241_v16 = vcombine.low %v13185_v12, %v13191_v18 }
 0x488   : > { %v3813_v47 = vsel %vm3784_vm1, %v12494_v0, %v2536_v60  ;;  %v4482_v24 = vcombine.high %v3810_v29, %v3814_v55  ;;  %2858 = vbcast.lane.b32.xlu1 %v2852_v5, 264  ;;  %v4481_v17 = vcombine.low %v3810_v29, %v3814_v55  ;;  %v2885_v60 = vrot.slane %v12147_v2, %v12120_v23 }
 0x489   : > { %v4210_v34 = vcombine.high %v3809_v37, %v3813_v47  ;;  %2854 = vbcast.lane.b32.xlu0 %v2852_v5, 256  ;;  %v4209_v22 = vcombine.low %v3809_v37, %v3813_v47  ;;  %v3811_v55 = vsel %vm3784_vm1, %v18994_v19, %v2525_v15 }
 0x48a   : > { %v2551_v10 = vpop.permute.xlu1 %2550  ;;  %v4496_v15 = vrot.slane %v4482_v24, %v11945_v25 }
 0x48b   : > { %v2547_v50 = vpop.permute.xlu0 %2546  ;;  %v3816_v0 = vsel %vm3784_vm1, %v12496_v9, %v2551_v10  ;;  %v2896_v9 = vrot.slane %v12147_v2, %v12137_v53  ;;  %v13239_v10 = vrot.slane %v4481_v17, %v11945_v25  ;;  %v4224_v12 = vrot.slane %v4210_v34, %v11945_v25 }
 0x48c   : > { %v3815_v5 = vsel %vm3784_vm1, %v18995_v43, %v2547_v50  ;;  %v4497_v29 = vcombine.low %v3812_v49, %v3816_v0  ;;  %v4498_v52 = vcombine.high %v3812_v49, %v3816_v0  ;;  %2869 = vbcast.lane.b32.xlu1 %v2863_v1, 264  ;;  %v4217_v0 = vrot.slane %v4209_v22, %v11945_v25 }
 0x48d   : > { %v4225_v47 = vcombine.low %v3811_v55, %v3815_v5  ;;  %v4226_v11 = vcombine.high %v3811_v55, %v3815_v5  ;;  %2865 = vbcast.lane.b32.xlu0 %v2863_v1, 256  ;;  %18996 = vst [vmem:[#allocation91_spill] sm:$0xff] %v13239_v10  ;;  %v13251_v17 = vrot.slane %v4514_v6, %v11964_v63 }
 0x48e   : > { %v13243_v37 = vrot.slane %v4497_v29, %v11945_v25  ;;  %v4512_v49 = vrot.slane %v4498_v52, %v11945_v25  ;;  %v2562_v50 = vpop.permute.xlu1 %2561  ;;  %v13256_v34 = vrot.slane %v4241_v16, %v11964_v63  ;;  %v13259_v29 = vrot.slane %v4242_v33, %v11964_v63 }
 0x48f   : > { %v4233_v1 = vrot.slane %v4225_v47, %v11945_v25  ;;  %v4240_v18 = vrot.slane %v4226_v11, %v11945_v25  ;;  %v2558_v2 = vpop.permute.xlu0 %2557  ;;  %18998 = vst [vmem:[#allocation265_spill] sm:$0xff] %v13251_v17  ;;  %v19001_v6 = vcombine.low %v13176_v58, %v13182_v26 }
 0x490   : > { %18997 = vst [vmem:[#allocation92_spill] sm:$0xff] %v13243_v37  ;;  %v4546_v24 = vcombine.high %v13239_v10, %v13243_v37  ;;  %v4561_v19 = vcombine.low %v4496_v15, %v4512_v49  ;;  %v4562_v55 = vcombine.high %v4496_v15, %v4512_v49  ;;  %2880 = vbcast.lane.b32.xlu1 %v2874_v51, 264  ;;  %18999 = vst [vmem:[#allocation266_spill] sm:$0xff] %v13256_v34 }
 0x491   : > { %v4273_v52 = vcombine.low %v4217_v0, %v4233_v1  ;;  %v4274_v43 = vcombine.high %v4217_v0, %v4233_v1  ;;  %v4289_v5 = vcombine.low %v4224_v12, %v4240_v18  ;;  %v4290_v22 = vcombine.high %v4224_v12, %v4240_v18  ;;  %2876 = vbcast.lane.b32.xlu0 %v2874_v51, 256 }
 0x492   : > { %19000 = vst [vmem:[#allocation267_spill] sm:$0xff] %v13259_v29  ;;  %v13265_v47 = vrot.slane %v19001_v6, %v11964_v63  ;;  %v13268_v11 = vrot.slane %v4546_v24, %v11964_v63  ;;  %v2573_v15 = vpop.permute.xlu1 %2572  ;;  %v19008_v12 = vcombine.low %v13188_v4, %v13194_v42  ;;  %v19010_v18 = vcombine.high %v13188_v4, %v13194_v42  ;;  %v19017_v6 = vld [vmem:[#allocation31_spill] sm:$0xff] }
 0x493   : > { %v13271_v49 = vrot.slane %v4273_v52, %v11964_v63  ;;  %v13274_v51 = vrot.slane %v4274_v43, %v11964_v63  ;;  %v13277_v16 = vrot.slane %v4289_v5, %v11964_v63  ;;  %v13280_v33 = vrot.slane %v4290_v22, %v11964_v63  ;;  %v2569_v0 = vpop.permute.xlu0 %2568 }
 0x494   : > { %19002 = vst [vmem:[#allocation268_spill] sm:$0xff] %v13265_v47  ;;  %19003 = vst [vmem:[#allocation269_spill] sm:$0xff] %v13268_v11  ;;  %v13286_v1 = vrot.slane %v19008_v12, %v11964_v63  ;;  %v13292_v24 = vrot.slane %v19010_v18, %v11964_v63  ;;  %v19012_v52 = vcombine.high %v13176_v58, %v13182_v26  ;;  %2891 = vbcast.lane.b32.xlu1 %v2885_v60, 264  ;;  %v19016_v12 = vld [vmem:[#allocation27_spill] sm:$0xff] }
 0x495   : > { %19004 = vst [vmem:[#allocation270_spill] sm:$0xff] %v13271_v49  ;;  %19005 = vst [vmem:[#allocation271_spill] sm:$0xff] %v13274_v51  ;;  %v13301_v5 = vrot.slane %v4561_v19, %v11964_v63  ;;  %v13304_v22 = vrot.slane %v4562_v55, %v11964_v63  ;;  %2887 = vbcast.lane.b32.xlu0 %v2885_v60, 256  ;;  %v3818_v18 = vsel %vm3784_vm1, %v19016_v12, %v2562_v50  ;;  %v19018_v19 = vld [vmem:[#allocation28_spill] sm:$0xff] }
 0x496   : > { %19006 = vst [vmem:[#allocation272_spill] sm:$0xff] %v13277_v16  ;;  %19007 = vst [vmem:[#allocation273_spill] sm:$0xff] %v13280_v33  ;;  %v13298_v43 = vrot.slane %v19012_v52, %v11964_v63  ;;  %v2584_v58 = vpop.permute.xlu1 %2583  ;;  %v3817_v62 = vsel %vm3784_vm1, %v19018_v19, %v2558_v2  ;;  %v19019_v55 = vld [vmem:[#allocation32_spill] sm:$0xff]  ;;  %v19020_v2 = vld [vmem:[#allocation15_spill] sm:$0xff] }
 0x497   : > { %19009 = vst [vmem:[#allocation274_spill] sm:$0xff] %v13286_v1  ;;  %19011 = vst [vmem:[#allocation275_spill] sm:$0xff] %v13292_v24  ;;  %v2580_v52 = vpop.permute.xlu0 %2579  ;;  %v3822_v42 = vsel %vm3784_vm1, %v19017_v6, %v2584_v58  ;;  %v2907_v19 = vrot.slane %v19020_v2, %v11987_v28  ;;  %v19023_v6 = vld [vmem:[#allocation30_spill] sm:$0xff]  ;;  %v19069_v24 = vld [vmem:[#allocation17_spill] sm:$0xff] }
 0x498   : > { %19013 = vst [vmem:[#allocation276_spill] sm:$0xff] %v13298_v43  ;;  %19014 = vst [vmem:[#allocation277_spill] sm:$0xff] %v13301_v5  ;;  %v3821_v21 = vsel %vm3784_vm1, %v19019_v55, %v2580_v52  ;;  %v4858_v60 = vcombine.high %v3818_v18, %v3822_v42  ;;  %2902 = vbcast.lane.b32.xlu1 %v2896_v9, 264  ;;  %v4857_v26 = vcombine.low %v3818_v18, %v3822_v42  ;;  %v19021_v52 = vld [vmem:[#allocation29_spill] sm:$0xff]  ;;  %v19024_v58 = vld [vmem:[#allocation34_spill] sm:$0xff] }
 0x499   : > { %19015 = vst [vmem:[#allocation278_spill] sm:$0xff] %v13304_v22  ;;  %v4586_v12 = vcombine.high %v3817_v62, %v3821_v21  ;;  %2898 = vbcast.lane.b32.xlu0 %v2896_v9, 256  ;;  %v3820_v11 = vsel %vm3784_vm1, %v19021_v52, %v2573_v15  ;;  %v4585_v50 = vcombine.low %v3817_v62, %v3821_v21  ;;  %v19022_v9 = vld [vmem:[#allocation33_spill] sm:$0xff]  ;;  %v19030_v22 = vld [vmem:[#allocation40_spill] sm:$0xff] }
 0x49a   : > { %v2595_v4 = vpop.permute.xlu1 %2594  ;;  %v3819_v5 = vsel %vm3784_vm1, %v19023_v6, %v2569_v0  ;;  %v2918_v15 = vrot.slane %v19020_v2, %v12006_v36  ;;  %v13353_v21 = vrot.slane %v4857_v26, %v11945_v25  ;;  %v13356_v62 = vrot.slane %v4858_v60, %v11945_v25 }
 0x49b   : > { %v2591_v17 = vpop.permute.xlu0 %2590  ;;  %v3824_v44 = vsel %vm3784_vm1, %v19022_v9, %v2595_v4 }
 0x49c   : > { %v3823_v42 = vsel %vm3784_vm1, %v19024_v58, %v2591_v17  ;;  %v4873_v18 = vcombine.low %v3820_v11, %v3824_v44  ;;  %v4874_v47 = vcombine.high %v3820_v11, %v3824_v44  ;;  %2913 = vbcast.lane.b32.xlu1 %v2907_v19, 264  ;;  %19025 = vst [vmem:[#allocation27_spill] sm:$0xff] %v13353_v21 }
 0x49d   : > { %v4601_v3 = vcombine.low %v3819_v5, %v3823_v42  ;;  %v4602_v56 = vcombine.high %v3819_v5, %v3823_v42  ;;  %2909 = vbcast.lane.b32.xlu0 %v2907_v19, 256  ;;  %v13365_v11 = vrot.slane %v4585_v50, %v11945_v25  ;;  %v13368_v5 = vrot.slane %v4586_v12, %v11945_v25 }
 0x49e   : > { %v13359_v0 = vrot.slane %v4873_v18, %v11945_v25  ;;  %v13362_v17 = vrot.slane %v4874_v47, %v11945_v25  ;;  %v2606_v44 = vpop.permute.xlu1 %2605  ;;  %v2929_v19 = vrot.slane %v19020_v2, %v12025_v54  ;;  %v2940_v42 = vrot.slane %v19020_v2, %v12067_v20  ;;  %v19027_v18 = vld [vmem:[#allocation35_spill] sm:$0xff] }
 0x49f   : > { %v13371_v4 = vrot.slane %v4601_v3, %v11945_v25  ;;  %v13374_v26 = vrot.slane %v4602_v56, %v11945_v25  ;;  %v2602_v60 = vpop.permute.xlu0 %2601  ;;  %v3826_v55 = vsel %vm3784_vm1, %v19027_v18, %v2606_v44  ;;  %v19028_v3 = vld [vmem:[#allocation39_spill] sm:$0xff]  ;;  %v19029_v56 = vld [vmem:[#allocation36_spill] sm:$0xff]  ;;  %v2962_v44 = vrot.slane %v19020_v2, %v12105_v57  ;;  %v19031_v18 = vld [vmem:[#allocation37_spill] sm:$0xff] }
 0x4a0   : > { %19026 = vst [vmem:[#allocation31_spill] sm:$0xff] %v13359_v0  ;;  %v4922_v6 = vcombine.high %v13353_v21, %v13359_v0  ;;  %2924 = vbcast.lane.b32.xlu1 %v2918_v15, 264  ;;  %v2951_v21 = vrot.slane %v19020_v2, %v12084_v41 }
 0x4a1   : > { %v4650_v12 = vcombine.high %v13365_v11, %v13371_v4  ;;  %2920 = vbcast.lane.b32.xlu0 %v2918_v15, 256  ;;  %v3825_v15 = vsel %vm3784_vm1, %v19029_v56, %v2602_v60  ;;  %v19032_v56 = vld [vmem:[#allocation41_spill] sm:$0xff] }
 0x4a2   : > { %v2617_v58 = vpop.permute.xlu1 %2616 }
 0x4a3   : > { %v2613_v52 = vpop.permute.xlu0 %2612 }
 0x4a4   : > { %2935 = vbcast.lane.b32.xlu1 %v2929_v19, 264 }
 0x4a5   : > { %2931 = vbcast.lane.b32.xlu0 %v2929_v19, 256 }
 0x4a6   : > { %v2628_v9 = vpop.permute.xlu1 %2627 }
 0x4a7   : > { %v2624_v50 = vpop.permute.xlu0 %2623  ;;  %v3830_v47 = vsel %vm3784_vm1, %v19028_v3, %v2628_v9  ;;  %v3828_v3 = vsel %vm3784_vm1, %v19031_v18, %v2617_v58  ;;  %v4649_v58 = vcombine.low %v13365_v11, %v13371_v4 }
 0x4a8   : > { %v3829_v43 = vsel %vm3784_vm1, %v19030_v22, %v2624_v50  ;;  %v4890_v45 = vcombine.high %v3826_v55, %v3830_v47  ;;  %2946 = vbcast.lane.b32.xlu1 %v2940_v42, 264  ;;  %v4889_v10 = vcombine.low %v3826_v55, %v3830_v47  ;;  %v2973_v50 = vrot.slane %v19020_v2, %v12120_v23  ;;  %v19034_v47 = vld [vmem:[#allocation42_spill] sm:$0xff] }
 0x4a9   : > { %v4618_v19 = vcombine.high %v3825_v15, %v3829_v43  ;;  %2942 = vbcast.lane.b32.xlu0 %v2940_v42, 256  ;;  %v4617_v9 = vcombine.low %v3825_v15, %v3829_v43  ;;  %v19033_v42 = vld [vmem:[#allocation38_spill] sm:$0xff] }
 0x4aa   : > { %v2639_v37 = vpop.permute.xlu1 %2638  ;;  %v3827_v55 = vsel %vm3784_vm1, %v19033_v42, %v2613_v52  ;;  %v13419_v18 = vrot.slane %v4889_v10, %v11945_v25  ;;  %v4904_v52 = vrot.slane %v4890_v45, %v11945_v25  ;;  %v13431_v10 = vrot.slane %v4922_v6, %v11964_v63 }
 0x4ab   : > { %v2635_v60 = vpop.permute.xlu0 %2634  ;;  %v3832_v22 = vsel %vm3784_vm1, %v19032_v56, %v2639_v37  ;;  %v2984_v37 = vrot.slane %v19020_v2, %v12137_v53  ;;  %v4632_v11 = vrot.slane %v4618_v19, %v11945_v25  ;;  %v13436_v19 = vrot.slane %v4649_v58, %v11964_v63 }
 0x4ac   : > { %v3831_v0 = vsel %vm3784_vm1, %v19034_v47, %v2635_v60  ;;  %v4905_v38 = vcombine.low %v3828_v3, %v3832_v22  ;;  %v4906_v27 = vcombine.high %v3828_v3, %v3832_v22  ;;  %2957 = vbcast.lane.b32.xlu1 %v2951_v21, 264  ;;  %19035 = vst [vmem:[#allocation28_spill] sm:$0xff] %v13419_v18  ;;  %19037 = vst [vmem:[#allocation15_spill] sm:$0xff] %v13431_v10 }
 0x4ad   : > { %v4633_v43 = vcombine.low %v3827_v55, %v3831_v0  ;;  %v4634_v15 = vcombine.high %v3827_v55, %v3831_v0  ;;  %2953 = vbcast.lane.b32.xlu0 %v2951_v21, 256  ;;  %v4625_v22 = vrot.slane %v4617_v9, %v11945_v25  ;;  %19038 = vst [vmem:[#allocation29_spill] sm:$0xff] %v13436_v19 }
 0x4ae   : > { %v13423_v56 = vrot.slane %v4905_v38, %v11945_v25  ;;  %v4920_v3 = vrot.slane %v4906_v27, %v11945_v25  ;;  %v2650_v60 = vpop.permute.xlu1 %2649  ;;  %v13439_v47 = vrot.slane %v4650_v12, %v11964_v63  ;;  %v19040_v6 = vcombine.low %v13356_v62, %v13362_v17 }
 0x4af   : > { %v4641_v21 = vrot.slane %v4633_v43, %v11945_v25  ;;  %v4648_v0 = vrot.slane %v4634_v15, %v11945_v25  ;;  %v2646_v2 = vpop.permute.xlu0 %2645 }
 0x4b0   : > { %19036 = vst [vmem:[#allocation32_spill] sm:$0xff] %v13423_v56  ;;  %v4954_v45 = vcombine.high %v13419_v18, %v13423_v56  ;;  %v4969_v38 = vcombine.low %v4904_v52, %v4920_v3  ;;  %v4970_v4 = vcombine.high %v4904_v52, %v4920_v3  ;;  %2968 = vbcast.lane.b32.xlu1 %v2962_v44, 264  ;;  %19039 = vst [vmem:[#allocation33_spill] sm:$0xff] %v13439_v47 }
 0x4b1   : > { %v4681_v27 = vcombine.low %v4625_v22, %v4641_v21  ;;  %v4682_v42 = vcombine.high %v4625_v22, %v4641_v21  ;;  %v4697_v55 = vcombine.low %v4632_v11, %v4648_v0  ;;  %v4698_v9 = vcombine.high %v4632_v11, %v4648_v0  ;;  %2964 = vbcast.lane.b32.xlu0 %v2962_v44, 256 }
 0x4b2   : > { %v13445_v43 = vrot.slane %v19040_v6, %v11964_v63  ;;  %v13448_v15 = vrot.slane %v4954_v45, %v11964_v63  ;;  %v2661_v52 = vpop.permute.xlu1 %2660  ;;  %v19047_v11 = vcombine.low %v13368_v5, %v13374_v26  ;;  %v19049_v0 = vcombine.high %v13368_v5, %v13374_v26 }
 0x4b3   : > { %v13451_v3 = vrot.slane %v4681_v27, %v11964_v63  ;;  %v13454_v44 = vrot.slane %v4682_v42, %v11964_v63  ;;  %v13457_v58 = vrot.slane %v4697_v55, %v11964_v63  ;;  %v13460_v12 = vrot.slane %v4698_v9, %v11964_v63  ;;  %v2657_v22 = vpop.permute.xlu0 %2656 }
 0x4b4   : > { %19041 = vst [vmem:[#allocation30_spill] sm:$0xff] %v13445_v43  ;;  %19042 = vst [vmem:[#allocation34_spill] sm:$0xff] %v13448_v15  ;;  %v13466_v21 = vrot.slane %v19047_v11, %v11964_v63  ;;  %v13472_v45 = vrot.slane %v19049_v0, %v11964_v63  ;;  %v19051_v27 = vcombine.high %v13356_v62, %v13362_v17  ;;  %2979 = vbcast.lane.b32.xlu1 %v2973_v50, 264  ;;  %v19055_v11 = vld [vmem:[#allocation93_spill] sm:$0xff] }
 0x4b5   : > { %19043 = vst [vmem:[#allocation35_spill] sm:$0xff] %v13451_v3  ;;  %19044 = vst [vmem:[#allocation39_spill] sm:$0xff] %v13454_v44  ;;  %v13481_v55 = vrot.slane %v4969_v38, %v11964_v63  ;;  %v13484_v9 = vrot.slane %v4970_v4, %v11964_v63  ;;  %2975 = vbcast.lane.b32.xlu0 %v2973_v50, 256  ;;  %v3834_v0 = vsel %vm3784_vm1, %v19055_v11, %v2650_v60  ;;  %v19056_v38 = vld [vmem:[#allocation94_spill] sm:$0xff] }
 0x4b6   : > { %19045 = vst [vmem:[#allocation36_spill] sm:$0xff] %v13457_v58  ;;  %19046 = vst [vmem:[#allocation40_spill] sm:$0xff] %v13460_v12  ;;  %v13478_v42 = vrot.slane %v19051_v27, %v11964_v63  ;;  %v2672_v62 = vpop.permute.xlu1 %2671  ;;  %v3833_v6 = vsel %vm3784_vm1, %v19056_v38, %v2646_v2  ;;  %v19057_v2 = vld [vmem:[#allocation21_spill] sm:$0xff] }
 0x4b7   : > { %19048 = vst [vmem:[#allocation37_spill] sm:$0xff] %v13466_v21  ;;  %19050 = vst [vmem:[#allocation41_spill] sm:$0xff] %v13472_v45  ;;  %v2668_v27 = vpop.permute.xlu0 %2667  ;;  %v3838_v5 = vsel %vm3784_vm1, %v12511_v8, %v2672_v62  ;;  %v2995_v38 = vrot.slane %v19057_v2, %v11987_v28  ;;  %v19060_v8 = vld [vmem:[#allocation96_spill] sm:$0xff]  ;;  %v19061_v62 = vld [vmem:[#allocation98_spill] sm:$0xff] }
 0x4b8   : > { %19052 = vst [vmem:[#allocation38_spill] sm:$0xff] %v13478_v42  ;;  %19053 = vst [vmem:[#allocation42_spill] sm:$0xff] %v13481_v55  ;;  %v3837_v4 = vsel %vm3784_vm1, %v12514_v35, %v2668_v27  ;;  %v4994_v50 = vcombine.high %v3834_v0, %v3838_v5  ;;  %2990 = vbcast.lane.b32.xlu1 %v2984_v37, 264  ;;  %v4993_v17 = vcombine.low %v3834_v0, %v3838_v5  ;;  %v19058_v27 = vld [vmem:[#allocation95_spill] sm:$0xff] }
 0x4b9   : > { %19054 = vst [vmem:[#allocation279_spill] sm:$0xff] %v13484_v9  ;;  %v4722_v11 = vcombine.high %v3833_v6, %v3837_v4  ;;  %2986 = vbcast.lane.b32.xlu0 %v2984_v37, 256  ;;  %v3836_v15 = vsel %vm3784_vm1, %v19058_v27, %v2661_v52  ;;  %v4721_v60 = vcombine.low %v3833_v6, %v3837_v4  ;;  %v19059_v37 = vld [vmem:[#allocation97_spill] sm:$0xff]  ;;  %v19067_v9 = vld [vmem:[#allocation104_spill] sm:$0xff] }
 0x4ba   : > { %v2683_v26 = vpop.permute.xlu1 %2682  ;;  %v3835_v55 = vsel %vm3784_vm1, %v19060_v8, %v2657_v22  ;;  %v3006_v52 = vrot.slane %v19057_v2, %v12006_v36  ;;  %v13533_v6 = vrot.slane %v4993_v17, %v11945_v25 }
 0x4bb   : > { %v2679_v10 = vpop.permute.xlu0 %2678  ;;  %v3840_v18 = vsel %vm3784_vm1, %v19059_v37, %v2683_v26  ;;  %v13536_v26 = vrot.slane %v4994_v50, %v11945_v25 }
 0x4bc   : > { %v3839_v5 = vsel %vm3784_vm1, %v19061_v62, %v2679_v10  ;;  %v5009_v0 = vcombine.low %v3836_v15, %v3840_v18  ;;  %v5010_v43 = vcombine.high %v3836_v15, %v3840_v18  ;;  %3001 = vbcast.lane.b32.xlu1 %v2995_v38, 264  ;;  %19062 = vst [vmem:[#allocation93_spill] sm:$0xff] %v13533_v6 }
 0x4bd   : > { %v4737_v56 = vcombine.low %v3835_v55, %v3839_v5  ;;  %v4738_v33 = vcombine.high %v3835_v55, %v3839_v5  ;;  %2997 = vbcast.lane.b32.xlu0 %v2995_v38, 256  ;;  %v13545_v15 = vrot.slane %v4721_v60, %v11945_v25  ;;  %v13548_v55 = vrot.slane %v4722_v11, %v11945_v25 }
 0x4be   : > { %v13539_v22 = vrot.slane %v5009_v0, %v11945_v25  ;;  %v13542_v10 = vrot.slane %v5010_v43, %v11945_v25  ;;  %v2694_v18 = vpop.permute.xlu1 %2693  ;;  %v3017_v38 = vrot.slane %v19057_v2, %v12025_v54  ;;  %v3028_v5 = vrot.slane %v19057_v2, %v12067_v20  ;;  %v19064_v0 = vld [vmem:[#allocation99_spill] sm:$0xff] }
 0x4bf   : > { %v13551_v4 = vrot.slane %v4737_v56, %v11945_v25  ;;  %v13554_v17 = vrot.slane %v4738_v33, %v11945_v25  ;;  %v2690_v50 = vpop.permute.xlu0 %2689  ;;  %v3842_v35 = vsel %vm3784_vm1, %v19064_v0, %v2694_v18  ;;  %v19065_v56 = vld [vmem:[#allocation103_spill] sm:$0xff]  ;;  %v19066_v33 = vld [vmem:[#allocation100_spill] sm:$0xff]  ;;  %v3039_v0 = vrot.slane %v19057_v2, %v12084_v41 }
 0x4c0   : > { %19063 = vst [vmem:[#allocation94_spill] sm:$0xff] %v13539_v22  ;;  %v5058_v8 = vcombine.high %v13533_v6, %v13539_v22  ;;  %3012 = vbcast.lane.b32.xlu1 %v3006_v52, 264  ;;  %v19068_v22 = vld [vmem:[#allocation16_spill] sm:$0xff] }
 0x4c1   : > { %v4786_v11 = vcombine.high %v13545_v15, %v13551_v4  ;;  %3008 = vbcast.lane.b32.xlu0 %v3006_v52, 256  ;;  %v3841_v52 = vsel %vm3784_vm1, %v19066_v33, %v2690_v50  ;;  %v13582_v12 = vcombine.low %v19069_v24, %v19068_v22  ;;  %v19070_v50 = vld [vmem:[#allocation101_spill] sm:$0xff]  ;;  %v3061_v24 = vrot.slane %v19057_v2, %v12120_v23  ;;  %v19072_v22 = vld [vmem:[#allocation102_spill] sm:$0xff] }
 0x4c2   : > { %v2705_v62 = vpop.permute.xlu1 %2704 }
 0x4c3   : > { %v2701_v27 = vpop.permute.xlu0 %2700  ;;  %v3844_v33 = vsel %vm3784_vm1, %v19070_v50, %v2705_v62  ;;  %v4785_v62 = vcombine.low %v13545_v15, %v13551_v4 }
 0x4c4   : > { %3023 = vbcast.lane.b32.xlu1 %v3017_v38, 264 }
 0x4c5   : > { %3019 = vbcast.lane.b32.xlu0 %v3017_v38, 256 }
 0x4c6   : > { %v2716_v37 = vpop.permute.xlu1 %2715 }
 0x4c7   : > { %v2712_v60 = vpop.permute.xlu0 %2711  ;;  %v3846_v43 = vsel %vm3784_vm1, %v19065_v56, %v2716_v37  ;;  %v3050_v56 = vrot.slane %v19057_v2, %v12105_v57  ;;  %v19071_v37 = vld [vmem:[#allocation105_spill] sm:$0xff] }
 0x4c8   : > { %v3845_v42 = vsel %vm3784_vm1, %v19067_v9, %v2712_v60  ;;  %v5026_v6 = vcombine.high %v3842_v35, %v3846_v43  ;;  %3034 = vbcast.lane.b32.xlu1 %v3028_v5, 264  ;;  %v5025_v45 = vcombine.low %v3842_v35, %v3846_v43  ;;  %v3843_v35 = vsel %vm3784_vm1, %v19072_v22, %v2701_v27  ;;  %v19073_v43 = vld [vmem:[#allocation106_spill] sm:$0xff] }
 0x4c9   : > { %v4754_v38 = vcombine.high %v3841_v52, %v3845_v42  ;;  %3030 = vbcast.lane.b32.xlu0 %v3028_v5, 256  ;;  %v4753_v9 = vcombine.low %v3841_v52, %v3845_v42 }
 0x4ca   : > { %v2727_v18 = vpop.permute.xlu1 %2726  ;;  %v13603_v50 = vrot.slane %v5025_v45, %v11945_v25  ;;  %v5040_v27 = vrot.slane %v5026_v6, %v11945_v25  ;;  %v13615_v45 = vrot.slane %v5058_v8, %v11964_v63  ;;  %v19079_v8 = vcombine.low %v13536_v26, %v13542_v10 }
 0x4cb   : > { %v2723_v60 = vpop.permute.xlu0 %2722  ;;  %v3848_v5 = vsel %vm3784_vm1, %v19071_v37, %v2727_v18  ;;  %v3072_v18 = vrot.slane %v19057_v2, %v12137_v53  ;;  %v4768_v15 = vrot.slane %v4754_v38, %v11945_v25  ;;  %v13620_v38 = vrot.slane %v4785_v62, %v11964_v63 }
 0x4cc   : > { %v3847_v40 = vsel %vm3784_vm1, %v19073_v43, %v2723_v60  ;;  %v5041_v46 = vcombine.low %v3844_v33, %v3848_v5  ;;  %v5042_v16 = vcombine.high %v3844_v33, %v3848_v5  ;;  %3045 = vbcast.lane.b32.xlu1 %v3039_v0, 264  ;;  %19074 = vst [vmem:[#allocation21_spill] sm:$0xff] %v13603_v50  ;;  %19076 = vst [vmem:[#allocation97_spill] sm:$0xff] %v13615_v45 }
 0x4cd   : > { %v4769_v42 = vcombine.low %v3843_v35, %v3847_v40  ;;  %v4770_v52 = vcombine.high %v3843_v35, %v3847_v40  ;;  %3041 = vbcast.lane.b32.xlu0 %v3039_v0, 256  ;;  %v4761_v5 = vrot.slane %v4753_v9, %v11945_v25  ;;  %19077 = vst [vmem:[#allocation96_spill] sm:$0xff] %v13620_v38 }
 0x4ce   : > { %v13607_v37 = vrot.slane %v5041_v46, %v11945_v25  ;;  %v5056_v33 = vrot.slane %v5042_v16, %v11945_v25  ;;  %v2738_v60 = vpop.permute.xlu1 %2737  ;;  %v13623_v43 = vrot.slane %v4786_v11, %v11964_v63 }
 0x4cf   : > { %v4777_v40 = vrot.slane %v4769_v42, %v11945_v25  ;;  %v4784_v4 = vrot.slane %v4770_v52, %v11945_v25  ;;  %v2734_v2 = vpop.permute.xlu0 %2733  ;;  %v13629_v42 = vrot.slane %v19079_v8, %v11964_v63  ;;  %v19095_v8 = vld [vmem:[#allocation47_spill] sm:$0xff] }
 0x4d0   : > { %19075 = vst [vmem:[#allocation95_spill] sm:$0xff] %v13607_v37  ;;  %v5090_v6 = vcombine.high %v13603_v50, %v13607_v37  ;;  %v5105_v46 = vcombine.low %v5040_v27, %v5056_v33  ;;  %v5106_v0 = vcombine.high %v5040_v27, %v5056_v33  ;;  %3056 = vbcast.lane.b32.xlu1 %v3050_v56, 264  ;;  %19078 = vst [vmem:[#allocation98_spill] sm:$0xff] %v13623_v43 }
 0x4d1   : > { %v4817_v16 = vcombine.low %v4761_v5, %v4777_v40  ;;  %v4818_v22 = vcombine.high %v4761_v5, %v4777_v40  ;;  %v4833_v35 = vcombine.low %v4768_v15, %v4784_v4  ;;  %v4834_v9 = vcombine.high %v4768_v15, %v4784_v4  ;;  %3052 = vbcast.lane.b32.xlu0 %v3050_v56, 256 }
 0x4d2   : > { %19080 = vst [vmem:[#allocation99_spill] sm:$0xff] %v13629_v42  ;;  %v13632_v52 = vrot.slane %v5090_v6, %v11964_v63  ;;  %v2749_v27 = vpop.permute.xlu1 %2748  ;;  %v19086_v15 = vcombine.low %v13548_v55, %v13554_v17  ;;  %v19088_v4 = vcombine.high %v13548_v55, %v13554_v17 }
 0x4d3   : > { %v13635_v33 = vrot.slane %v4817_v16, %v11964_v63  ;;  %v13638_v56 = vrot.slane %v4818_v22, %v11964_v63  ;;  %v13641_v62 = vrot.slane %v4833_v35, %v11964_v63  ;;  %v13644_v11 = vrot.slane %v4834_v9, %v11964_v63  ;;  %v2745_v5 = vpop.permute.xlu0 %2744 }
 0x4d4   : > { %19081 = vst [vmem:[#allocation103_spill] sm:$0xff] %v13632_v52  ;;  %v13650_v40 = vrot.slane %v19086_v15, %v11964_v63  ;;  %v13656_v6 = vrot.slane %v19088_v4, %v11964_v63  ;;  %v19090_v16 = vcombine.high %v13536_v26, %v13542_v10  ;;  %v13665_v35 = vrot.slane %v5105_v46, %v11964_v63  ;;  %v19094_v15 = vld [vmem:[#allocation43_spill] sm:$0xff]  ;;  %v19096_v46 = vld [vmem:[#allocation44_spill] sm:$0xff] }
 0x4d5   : > { %19082 = vst [vmem:[#allocation100_spill] sm:$0xff] %v13635_v33  ;;  %19083 = vst [vmem:[#allocation104_spill] sm:$0xff] %v13638_v56  ;;  %3067 = vbcast.lane.b32.xlu1 %v3061_v24, 264  ;;  %v13668_v9 = vrot.slane %v5106_v0, %v11964_v63  ;;  %3063 = vbcast.lane.b32.xlu0 %v3061_v24, 256  ;;  %v3850_v4 = vsel %vm3784_vm1, %v19094_v15, %v2738_v60  ;;  %v19097_v0 = vld [vmem:[#allocation48_spill] sm:$0xff] }
 0x4d6   : > { %19084 = vst [vmem:[#allocation16_spill] sm:$0xff] %v13641_v62  ;;  %19085 = vst [vmem:[#allocation17_spill] sm:$0xff] %v13644_v11  ;;  %v13662_v22 = vrot.slane %v19090_v16, %v11964_v63  ;;  %v2760_v26 = vpop.permute.xlu1 %2759  ;;  %v3849_v50 = vsel %vm3784_vm1, %v19096_v46, %v2734_v2  ;;  %v3083_v2 = vrot.slane %v13582_v12, %v11987_v28  ;;  %v19109_v62 = vld [vmem:[#allocation23_spill] sm:$0xff] }
 0x4d7   : > { %19087 = vst [vmem:[#allocation101_spill] sm:$0xff] %v13650_v40  ;;  %19089 = vst [vmem:[#allocation105_spill] sm:$0xff] %v13656_v6  ;;  %v2756_v16 = vpop.permute.xlu0 %2755  ;;  %v3854_v17 = vsel %vm3784_vm1, %v19095_v8, %v2760_v26  ;;  %v19100_v8 = vld [vmem:[#allocation46_spill] sm:$0xff] }
 0x4d8   : > { %19091 = vst [vmem:[#allocation102_spill] sm:$0xff] %v13662_v22  ;;  %19092 = vst [vmem:[#allocation106_spill] sm:$0xff] %v13665_v35  ;;  %v3853_v37 = vsel %vm3784_vm1, %v19097_v0, %v2756_v16  ;;  %v5402_v24 = vcombine.high %v3850_v4, %v3854_v17  ;;  %v5401_v10 = vcombine.low %v3850_v4, %v3854_v17  ;;  %v19098_v0 = vld [vmem:[#allocation45_spill] sm:$0xff]  ;;  %v19101_v26 = vld [vmem:[#allocation50_spill] sm:$0xff] }
 0x4d9   : > { %19093 = vst [vmem:[#allocation280_spill] sm:$0xff] %v13668_v9  ;;  %3078 = vbcast.lane.b32.xlu1 %v3072_v18, 264  ;;  %v5130_v15 = vcombine.high %v3849_v50, %v3853_v37  ;;  %3074 = vbcast.lane.b32.xlu0 %v3072_v18, 256  ;;  %v3852_v16 = vsel %vm3784_vm1, %v19098_v0, %v2749_v27  ;;  %v19099_v18 = vld [vmem:[#allocation49_spill] sm:$0xff]  ;;  %v19107_v9 = vld [vmem:[#allocation56_spill] sm:$0xff] }
 0x4da   : > { %v2771_v55 = vpop.permute.xlu1 %2770  ;;  %v5129_v60 = vcombine.low %v3849_v50, %v3853_v37  ;;  %v3851_v35 = vsel %vm3784_vm1, %v19100_v8, %v2745_v5  ;;  %v3094_v27 = vrot.slane %v13582_v12, %v12006_v36  ;;  %v13717_v50 = vrot.slane %v5401_v10, %v11945_v25 }
 0x4db   : > { %v2767_v52 = vpop.permute.xlu0 %2766  ;;  %v3856_v45 = vsel %vm3784_vm1, %v19099_v18, %v2771_v55  ;;  %v13720_v37 = vrot.slane %v5402_v24, %v11945_v25  ;;  %v3105_v0 = vrot.slane %v13582_v12, %v12025_v54 }
 0x4dc   : > { %v3855_v17 = vsel %vm3784_vm1, %v19101_v26, %v2767_v52  ;;  %v5417_v4 = vcombine.low %v3852_v16, %v3856_v45  ;;  %v5418_v42 = vcombine.high %v3852_v16, %v3856_v45  ;;  %19102 = vst [vmem:[#allocation43_spill] sm:$0xff] %v13717_v50  ;;  %v13729_v55 = vrot.slane %v5129_v60, %v11945_v25 }
 0x4dd   : > { %3089 = vbcast.lane.b32.xlu1 %v3083_v2, 264  ;;  %v5145_v11 = vcombine.low %v3851_v35, %v3855_v17  ;;  %v5146_v6 = vcombine.high %v3851_v35, %v3855_v17  ;;  %3085 = vbcast.lane.b32.xlu0 %v3083_v2, 256  ;;  %v13732_v35 = vrot.slane %v5130_v15, %v11945_v25 }
 0x4de   : > { %v13723_v5 = vrot.slane %v5417_v4, %v11945_v25  ;;  %v13726_v52 = vrot.slane %v5418_v42, %v11945_v25  ;;  %v2782_v45 = vpop.permute.xlu1 %2781  ;;  %v3116_v17 = vrot.slane %v13582_v12, %v12067_v20  ;;  %v19104_v4 = vld [vmem:[#allocation51_spill] sm:$0xff] }
 0x4df   : > { %v13735_v8 = vrot.slane %v5145_v11, %v11945_v25  ;;  %v13738_v10 = vrot.slane %v5146_v6, %v11945_v25  ;;  %v2778_v24 = vpop.permute.xlu0 %2777  ;;  %v3858_v46 = vsel %vm3784_vm1, %v19104_v4, %v2782_v45  ;;  %v19105_v11 = vld [vmem:[#allocation55_spill] sm:$0xff]  ;;  %v19106_v6 = vld [vmem:[#allocation52_spill] sm:$0xff]  ;;  %v3127_v4 = vrot.slane %v13582_v12, %v12084_v41 }
 0x4e0   : > { %19103 = vst [vmem:[#allocation47_spill] sm:$0xff] %v13723_v5  ;;  %v5466_v26 = vcombine.high %v13717_v50, %v13723_v5  ;;  %v19108_v5 = vld [vmem:[#allocation22_spill] sm:$0xff] }
 0x4e1   : > { %3100 = vbcast.lane.b32.xlu1 %v3094_v27, 264  ;;  %v5194_v15 = vcombine.high %v13729_v55, %v13735_v8  ;;  %3096 = vbcast.lane.b32.xlu0 %v3094_v27, 256  ;;  %v3857_v27 = vsel %vm3784_vm1, %v19106_v6, %v2778_v24  ;;  %v13766_v40 = vcombine.low %v19109_v62, %v19108_v5  ;;  %v19110_v24 = vld [vmem:[#allocation53_spill] sm:$0xff]  ;;  %v19112_v5 = vld [vmem:[#allocation54_spill] sm:$0xff] }
 0x4e2   : > { %v2793_v2 = vpop.permute.xlu1 %2792  ;;  %v3149_v62 = vrot.slane %v13582_v12, %v12120_v23 }
 0x4e3   : > { %v2789_v16 = vpop.permute.xlu0 %2788  ;;  %v3860_v6 = vsel %vm3784_vm1, %v19110_v24, %v2793_v2  ;;  %v5193_v2 = vcombine.low %v13729_v55, %v13735_v8 }
 0x4e5   : > { %3111 = vbcast.lane.b32.xlu1 %v3105_v0, 264  ;;  %3107 = vbcast.lane.b32.xlu0 %v3105_v0, 256 }
 0x4e6   : > { %v2804_v18 = vpop.permute.xlu1 %2803 }
 0x4e7   : > { %v2800_v60 = vpop.permute.xlu0 %2799  ;;  %v3862_v42 = vsel %vm3784_vm1, %v19105_v11, %v2804_v18  ;;  %v3138_v11 = vrot.slane %v13582_v12, %v12105_v57  ;;  %v19111_v18 = vld [vmem:[#allocation57_spill] sm:$0xff] }
 0x4e8   : > { %v3861_v22 = vsel %vm3784_vm1, %v19107_v9, %v2800_v60  ;;  %v5434_v50 = vcombine.high %v3858_v46, %v3862_v42  ;;  %v5433_v1 = vcombine.low %v3858_v46, %v3862_v42  ;;  %v3859_v46 = vsel %vm3784_vm1, %v19112_v5, %v2789_v16  ;;  %v19113_v42 = vld [vmem:[#allocation58_spill] sm:$0xff] }
 0x4e9   : > { %3122 = vbcast.lane.b32.xlu1 %v3116_v17, 264  ;;  %v5162_v0 = vcombine.high %v3857_v27, %v3861_v22  ;;  %3118 = vbcast.lane.b32.xlu0 %v3116_v17, 256  ;;  %v5161_v9 = vcombine.low %v3857_v27, %v3861_v22 }
 0x4ea   : > { %v2815_v45 = vpop.permute.xlu1 %2814  ;;  %v13787_v24 = vrot.slane %v5433_v1, %v11945_v25  ;;  %v5448_v16 = vrot.slane %v5434_v50, %v11945_v25  ;;  %v13799_v1 = vrot.slane %v5466_v26, %v11964_v63  ;;  %v19119_v26 = vcombine.low %v13720_v37, %v13726_v52 }
 0x4eb   : > { %v2811_v60 = vpop.permute.xlu0 %2810  ;;  %v3864_v17 = vsel %vm3784_vm1, %v19111_v18, %v2815_v45  ;;  %v3160_v45 = vrot.slane %v13582_v12, %v12137_v53  ;;  %v5176_v55 = vrot.slane %v5162_v0, %v11945_v25  ;;  %v13804_v0 = vrot.slane %v5193_v2, %v11964_v63 }
 0x4ec   : > { %v3863_v58 = vsel %vm3784_vm1, %v19113_v42, %v2811_v60  ;;  %v5449_v21 = vcombine.low %v3860_v6, %v3864_v17  ;;  %v5450_v31 = vcombine.high %v3860_v6, %v3864_v17  ;;  %19114 = vst [vmem:[#allocation44_spill] sm:$0xff] %v13787_v24  ;;  %v5169_v17 = vrot.slane %v5161_v9, %v11945_v25 }
 0x4ed   : > { %3133 = vbcast.lane.b32.xlu1 %v3127_v4, 264  ;;  %v5177_v22 = vcombine.low %v3859_v46, %v3863_v58  ;;  %v5178_v27 = vcombine.high %v3859_v46, %v3863_v58  ;;  %3129 = vbcast.lane.b32.xlu0 %v3127_v4, 256  ;;  %19116 = vst [vmem:[#allocation45_spill] sm:$0xff] %v13799_v1  ;;  %19117 = vst [vmem:[#allocation49_spill] sm:$0xff] %v13804_v0 }
 0x4ee   : > { %v13791_v18 = vrot.slane %v5449_v21, %v11945_v25  ;;  %v5464_v6 = vrot.slane %v5450_v31, %v11945_v25  ;;  %v2826_v60 = vpop.permute.xlu1 %2825  ;;  %v13807_v42 = vrot.slane %v5194_v15, %v11964_v63 }
 0x4ef   : > { %v5185_v58 = vrot.slane %v5177_v22, %v11945_v25  ;;  %v5192_v8 = vrot.slane %v5178_v27, %v11945_v25  ;;  %v2822_v12 = vpop.permute.xlu0 %2821  ;;  %v13813_v22 = vrot.slane %v19119_v26, %v11964_v63 }
 0x4f0   : > { %19115 = vst [vmem:[#allocation48_spill] sm:$0xff] %v13791_v18  ;;  %v5498_v50 = vcombine.high %v13787_v24, %v13791_v18  ;;  %v5513_v21 = vcombine.low %v5448_v16, %v5464_v6  ;;  %v5514_v4 = vcombine.high %v5448_v16, %v5464_v6  ;;  %19118 = vst [vmem:[#allocation46_spill] sm:$0xff] %v13807_v42 }
 0x4f1   : > { %3144 = vbcast.lane.b32.xlu1 %v3138_v11, 264  ;;  %v5225_v31 = vcombine.low %v5169_v17, %v5185_v58  ;;  %v5226_v5 = vcombine.high %v5169_v17, %v5185_v58  ;;  %v5241_v46 = vcombine.low %v5176_v55, %v5192_v8  ;;  %v5242_v9 = vcombine.high %v5176_v55, %v5192_v8 }
 0x4f2   : > { %3140 = vbcast.lane.b32.xlu0 %v3138_v11, 256  ;;  %19120 = vst [vmem:[#allocation50_spill] sm:$0xff] %v13813_v22  ;;  %v13816_v27 = vrot.slane %v5498_v50, %v11964_v63  ;;  %v2837_v16 = vpop.permute.xlu1 %2836  ;;  %v19126_v55 = vcombine.low %v13732_v35, %v13738_v10  ;;  %v19128_v8 = vcombine.high %v13732_v35, %v13738_v10  ;;  %v19135_v35 = vld [vmem:[#allocation111_spill] sm:$0xff] }
 0x4f3   : > { %v13819_v6 = vrot.slane %v5225_v31, %v11964_v63  ;;  %v13822_v11 = vrot.slane %v5226_v5, %v11964_v63  ;;  %v13825_v2 = vrot.slane %v5241_v46, %v11964_v63  ;;  %v13828_v15 = vrot.slane %v5242_v9, %v11964_v63  ;;  %v2833_v17 = vpop.permute.xlu0 %2832 }
 0x4f4   : > { %19121 = vst [vmem:[#allocation51_spill] sm:$0xff] %v13816_v27  ;;  %v13834_v58 = vrot.slane %v19126_v55, %v11964_v63  ;;  %v13840_v50 = vrot.slane %v19128_v8, %v11964_v63  ;;  %v19130_v31 = vcombine.high %v13720_v37, %v13726_v52  ;;  %v13849_v46 = vrot.slane %v5513_v21, %v11964_v63  ;;  %v19134_v55 = vld [vmem:[#allocation107_spill] sm:$0xff]  ;;  %v19136_v21 = vld [vmem:[#allocation108_spill] sm:$0xff] }
 0x4f5   : > { %19122 = vst [vmem:[#allocation55_spill] sm:$0xff] %v13819_v6  ;;  %19123 = vst [vmem:[#allocation52_spill] sm:$0xff] %v13822_v11  ;;  %3155 = vbcast.lane.b32.xlu1 %v3149_v62, 264  ;;  %v13852_v9 = vrot.slane %v5514_v4, %v11964_v63  ;;  %v3866_v8 = vsel %vm3784_vm1, %v19134_v55, %v2826_v60  ;;  %v3865_v24 = vsel %vm3784_vm1, %v19136_v21, %v2822_v12  ;;  %v19137_v21 = vld [vmem:[#allocation109_spill] sm:$0xff] }
 0x4f6   : > { %19124 = vst [vmem:[#allocation56_spill] sm:$0xff] %v13825_v2  ;;  %19125 = vst [vmem:[#allocation22_spill] sm:$0xff] %v13828_v15  ;;  %v13846_v5 = vrot.slane %v19130_v31, %v11964_v63  ;;  %3151 = vbcast.lane.b32.xlu0 %v3149_v62, 256  ;;  %v2848_v37 = vpop.permute.xlu1 %2847  ;;  %v3171_v12 = vrot.slane %v13766_v40, %v11987_v28  ;;  %v3215_v2 = vrot.slane %v13766_v40, %v12084_v41 }
 0x4f7   : > { %19127 = vst [vmem:[#allocation23_spill] sm:$0xff] %v13834_v58  ;;  %19129 = vst [vmem:[#allocation53_spill] sm:$0xff] %v13840_v50  ;;  %v2844_v31 = vpop.permute.xlu0 %2843  ;;  %v3870_v10 = vsel %vm3784_vm1, %v19135_v35, %v2848_v37  ;;  %v19139_v35 = vld [vmem:[#allocation110_spill] sm:$0xff]  ;;  %v19140_v37 = vld [vmem:[#allocation113_spill] sm:$0xff] }
 0x4f8   : > { %19131 = vst [vmem:[#allocation57_spill] sm:$0xff] %v13846_v5  ;;  %19132 = vst [vmem:[#allocation54_spill] sm:$0xff] %v13849_v46  ;;  %v3869_v4 = vsel %vm3784_vm1, %v12562_v61, %v2844_v31  ;;  %v5538_v62 = vcombine.high %v3866_v8, %v3870_v10  ;;  %v5537_v52 = vcombine.low %v3866_v8, %v3870_v10 }
 0x4f9   : > { %19133 = vst [vmem:[#allocation58_spill] sm:$0xff] %v13852_v9  ;;  %3166 = vbcast.lane.b32.xlu1 %v3160_v45, 264  ;;  %v5266_v55 = vcombine.high %v3865_v24, %v3869_v4  ;;  %v3868_v31 = vsel %vm3784_vm1, %v19137_v21, %v2837_v16  ;;  %v5265_v60 = vcombine.low %v3865_v24, %v3869_v4  ;;  %v19146_v9 = vld [vmem:[#allocation119_spill] sm:$0xff] }
 0x4fa   : > { %3162 = vbcast.lane.b32.xlu0 %v3160_v45, 256  ;;  %v2859_v26 = vpop.permute.xlu1 %2858  ;;  %v19138_v45 = vld [vmem:[#allocation112_spill] sm:$0xff]  ;;  %v3867_v46 = vsel %vm3784_vm1, %v19139_v35, %v2833_v17  ;;  %v3182_v16 = vrot.slane %v13766_v40, %v12006_v36  ;;  %v13901_v24 = vrot.slane %v5537_v52, %v11945_v25  ;;  %v3193_v21 = vrot.slane %v13766_v40, %v12025_v54 }
 0x4fb   : > { %v2855_v27 = vpop.permute.xlu0 %2854  ;;  %v3872_v1 = vsel %vm3784_vm1, %v19138_v45, %v2859_v26  ;;  %v13904_v26 = vrot.slane %v5538_v62, %v11945_v25  ;;  %v13913_v4 = vrot.slane %v5265_v60, %v11945_v25 }
 0x4fc   : > { %v3871_v10 = vsel %vm3784_vm1, %v19140_v37, %v2855_v27  ;;  %v5553_v8 = vcombine.low %v3868_v31, %v3872_v1  ;;  %v5554_v22 = vcombine.high %v3868_v31, %v3872_v1  ;;  %19141 = vst [vmem:[#allocation107_spill] sm:$0xff] %v13901_v24 }
 0x4fd   : > { %3177 = vbcast.lane.b32.xlu1 %v3171_v12, 264  ;;  %v5281_v18 = vcombine.low %v3867_v46, %v3871_v10  ;;  %v5282_v15 = vcombine.high %v3867_v46, %v3871_v10  ;;  %v13916_v46 = vrot.slane %v5266_v55, %v11945_v25  ;;  %v3204_v10 = vrot.slane %v13766_v40, %v12067_v20 }
 0x4fe   : > { %3173 = vbcast.lane.b32.xlu0 %v3171_v12, 256  ;;  %v13907_v17 = vrot.slane %v5553_v8, %v11945_v25  ;;  %v13910_v27 = vrot.slane %v5554_v22, %v11945_v25  ;;  %v2870_v1 = vpop.permute.xlu1 %2869  ;;  %v19143_v8 = vld [vmem:[#allocation114_spill] sm:$0xff] }
 0x4ff   : > { %v13919_v35 = vrot.slane %v5281_v18, %v11945_v25  ;;  %v13922_v52 = vrot.slane %v5282_v15, %v11945_v25  ;;  %v2866_v62 = vpop.permute.xlu0 %2865  ;;  %v3874_v61 = vsel %vm3784_vm1, %v19143_v8, %v2870_v1  ;;  %v19144_v18 = vld [vmem:[#allocation118_spill] sm:$0xff]  ;;  %v19145_v15 = vld [vmem:[#allocation115_spill] sm:$0xff]  ;;  %v3226_v1 = vrot.slane %v13766_v40, %v12105_v57  ;;  %v19147_v8 = vld [vmem:[#allocation116_spill] sm:$0xff] }
 0x500   : > { %19142 = vst [vmem:[#allocation111_spill] sm:$0xff] %v13907_v17  ;;  %v5602_v37 = vcombine.high %v13901_v24, %v13907_v17 }
 0x501   : > { %3188 = vbcast.lane.b32.xlu1 %v3182_v16, 264  ;;  %v5330_v55 = vcombine.high %v13913_v4, %v13919_v35 }
 0x502   : > { %3184 = vbcast.lane.b32.xlu0 %v3182_v16, 256  ;;  %v2881_v12 = vpop.permute.xlu1 %2880  ;;  %v3873_v16 = vsel %vm3784_vm1, %v19145_v15, %v2866_v62  ;;  %v19148_v15 = vld [vmem:[#allocation120_spill] sm:$0xff] }
 0x503   : > { %v2877_v31 = vpop.permute.xlu0 %2876 }
 0x505   : > { %3199 = vbcast.lane.b32.xlu1 %v3193_v21, 264 }
 0x506   : > { %3195 = vbcast.lane.b32.xlu0 %v3193_v21, 256  ;;  %v2892_v45 = vpop.permute.xlu1 %2891 }
 0x507   : > { %v2888_v60 = vpop.permute.xlu0 %2887  ;;  %v3878_v22 = vsel %vm3784_vm1, %v19144_v18, %v2892_v45  ;;  %v3876_v18 = vsel %vm3784_vm1, %v19147_v8, %v2881_v12  ;;  %v5329_v12 = vcombine.low %v13913_v4, %v13919_v35 }
 0x508   : > { %v3877_v5 = vsel %vm3784_vm1, %v19146_v9, %v2888_v60  ;;  %v5570_v24 = vcombine.high %v3874_v61, %v3878_v22  ;;  %v5569_v17 = vcombine.low %v3874_v61, %v3878_v22  ;;  %v3237_v60 = vrot.slane %v13766_v40, %v12120_v23  ;;  %v19150_v22 = vld [vmem:[#allocation121_spill] sm:$0xff] }
 0x509   : > { %3210 = vbcast.lane.b32.xlu1 %v3204_v10, 264  ;;  %v5298_v21 = vcombine.high %v3873_v16, %v3877_v5  ;;  %v5297_v45 = vcombine.low %v3873_v16, %v3877_v5 }
 0x50a   : > { %3206 = vbcast.lane.b32.xlu0 %v3204_v10, 256  ;;  %v2903_v50 = vpop.permute.xlu1 %2902  ;;  %v19149_v10 = vld [vmem:[#allocation117_spill] sm:$0xff]  ;;  %v13967_v8 = vrot.slane %v5569_v17, %v11945_v25  ;;  %v13979_v17 = vrot.slane %v5602_v37, %v11964_v63  ;;  %v19155_v37 = vcombine.low %v13904_v26, %v13910_v27 }
 0x50b   : > { %v2899_v62 = vpop.permute.xlu0 %2898  ;;  %v3880_v9 = vsel %vm3784_vm1, %v19148_v15, %v2903_v50  ;;  %v3875_v61 = vsel %vm3784_vm1, %v19149_v10, %v2877_v31  ;;  %v3248_v50 = vrot.slane %v13766_v40, %v12137_v53  ;;  %v5584_v31 = vrot.slane %v5570_v24, %v11945_v25 }
 0x50c   : > { %v3879_v58 = vsel %vm3784_vm1, %v19150_v22, %v2899_v62  ;;  %v5585_v13 = vcombine.low %v3876_v18, %v3880_v9  ;;  %v5586_v56 = vcombine.high %v3876_v18, %v3880_v9  ;;  %19151 = vst [vmem:[#allocation108_spill] sm:$0xff] %v13967_v8  ;;  %v5305_v9 = vrot.slane %v5297_v45, %v11945_v25 }
 0x50d   : > { %3221 = vbcast.lane.b32.xlu1 %v3215_v2, 264  ;;  %v5313_v5 = vcombine.low %v3875_v61, %v3879_v58  ;;  %v5314_v16 = vcombine.high %v3875_v61, %v3879_v58  ;;  %v5312_v4 = vrot.slane %v5298_v21, %v11945_v25  ;;  %19153 = vst [vmem:[#allocation112_spill] sm:$0xff] %v13979_v17 }
 0x50e   : > { %3217 = vbcast.lane.b32.xlu0 %v3215_v2, 256  ;;  %v13971_v15 = vrot.slane %v5585_v13, %v11945_v25  ;;  %v5600_v18 = vrot.slane %v5586_v56, %v11945_v25  ;;  %v2914_v62 = vpop.permute.xlu1 %2913  ;;  %v13984_v21 = vrot.slane %v5329_v12, %v11964_v63  ;;  %v13987_v22 = vrot.slane %v5330_v55, %v11964_v63 }
 0x50f   : > { %v5321_v2 = vrot.slane %v5313_v5, %v11945_v25  ;;  %v5328_v58 = vrot.slane %v5314_v16, %v11945_v25  ;;  %v2910_v40 = vpop.permute.xlu0 %2909  ;;  %v13993_v5 = vrot.slane %v19155_v37, %v11964_v63  ;;  %v19170_v37 = vld [vmem:[#allocation63_spill] sm:$0xff] }
 0x510   : > { %19152 = vst [vmem:[#allocation109_spill] sm:$0xff] %v13971_v15  ;;  %v5634_v24 = vcombine.high %v13967_v8, %v13971_v15  ;;  %v5649_v13 = vcombine.low %v5584_v31, %v5600_v18  ;;  %v5650_v35 = vcombine.high %v5584_v31, %v5600_v18  ;;  %19154 = vst [vmem:[#allocation110_spill] sm:$0xff] %v13987_v22 }
 0x511   : > { %3232 = vbcast.lane.b32.xlu1 %v3226_v1, 264  ;;  %v5361_v56 = vcombine.low %v5305_v9, %v5321_v2  ;;  %v5362_v10 = vcombine.high %v5305_v9, %v5321_v2  ;;  %v5377_v61 = vcombine.low %v5312_v4, %v5328_v58  ;;  %v5378_v45 = vcombine.high %v5312_v4, %v5328_v58 }
 0x512   : > { %3228 = vbcast.lane.b32.xlu0 %v3226_v1, 256  ;;  %19156 = vst [vmem:[#allocation113_spill] sm:$0xff] %v13993_v5  ;;  %v13996_v16 = vrot.slane %v5634_v24, %v11964_v63  ;;  %v2925_v31 = vpop.permute.xlu1 %2924  ;;  %v19161_v4 = vcombine.low %v13916_v46, %v13922_v52  ;;  %v19163_v58 = vcombine.high %v13916_v46, %v13922_v52 }
 0x513   : > { %v13999_v18 = vrot.slane %v5361_v56, %v11964_v63  ;;  %v14002_v1 = vrot.slane %v5362_v10, %v11964_v63  ;;  %v14005_v12 = vrot.slane %v5377_v61, %v11964_v63  ;;  %v14008_v55 = vrot.slane %v5378_v45, %v11964_v63  ;;  %v2921_v9 = vpop.permute.xlu0 %2920 }
 0x514   : > { %19157 = vst [vmem:[#allocation114_spill] sm:$0xff] %v13996_v16  ;;  %v14014_v2 = vrot.slane %v19161_v4, %v11964_v63  ;;  %v14020_v24 = vrot.slane %v19163_v58, %v11964_v63  ;;  %v19165_v56 = vcombine.high %v13904_v26, %v13910_v27  ;;  %v14029_v61 = vrot.slane %v5649_v13, %v11964_v63  ;;  %v19169_v4 = vld [vmem:[#allocation59_spill] sm:$0xff]  ;;  %v19171_v13 = vld [vmem:[#allocation60_spill] sm:$0xff] }
 0x515   : > { %19158 = vst [vmem:[#allocation118_spill] sm:$0xff] %v14002_v1  ;;  %19159 = vst [vmem:[#allocation115_spill] sm:$0xff] %v14005_v12  ;;  %3243 = vbcast.lane.b32.xlu1 %v3237_v60, 264  ;;  %v14032_v45 = vrot.slane %v5650_v35, %v11964_v63  ;;  %v3882_v58 = vsel %vm3784_vm1, %v19169_v4, %v2914_v62  ;;  %v3881_v8 = vsel %vm3784_vm1, %v19171_v13, %v2910_v40  ;;  %v19172_v35 = vld [vmem:[#allocation64_spill] sm:$0xff]  ;;  %v19173_v40 = vld [vmem:[#allocation18_spill] sm:$0xff] }
 0x516   : > { %19160 = vst [vmem:[#allocation119_spill] sm:$0xff] %v14008_v55  ;;  %19162 = vst [vmem:[#allocation116_spill] sm:$0xff] %v14014_v2  ;;  %v14026_v10 = vrot.slane %v19165_v56, %v11964_v63  ;;  %3239 = vbcast.lane.b32.xlu0 %v3237_v60, 256  ;;  %v2936_v26 = vpop.permute.xlu1 %2935  ;;  %v3259_v13 = vrot.slane %v19173_v40, %v11987_v28  ;;  %v3303_v1 = vrot.slane %v19173_v40, %v12084_v41 }
 0x517   : > { %19164 = vst [vmem:[#allocation120_spill] sm:$0xff] %v14020_v24  ;;  %19167 = vst [vmem:[#allocation121_spill] sm:$0xff] %v14029_v61  ;;  %v2932_v56 = vpop.permute.xlu0 %2931  ;;  %v3886_v52 = vsel %vm3784_vm1, %v19170_v37, %v2936_v26  ;;  %v19176_v37 = vld [vmem:[#allocation62_spill] sm:$0xff] }
 0x518   : > { %19166 = vst [vmem:[#allocation117_spill] sm:$0xff] %v14026_v10  ;;  %19168 = vst [vmem:[#allocation281_spill] sm:$0xff] %v14032_v45  ;;  %v3885_v15 = vsel %vm3784_vm1, %v19172_v35, %v2932_v56  ;;  %v5946_v60 = vcombine.high %v3882_v58, %v3886_v52  ;;  %v5945_v27 = vcombine.low %v3882_v58, %v3886_v52  ;;  %v19174_v56 = vld [vmem:[#allocation61_spill] sm:$0xff]  ;;  %v19177_v26 = vld [vmem:[#allocation66_spill] sm:$0xff] }
 0x519   : > { %3254 = vbcast.lane.b32.xlu1 %v3248_v50, 264  ;;  %v5674_v4 = vcombine.high %v3881_v8, %v3885_v15  ;;  %v3884_v16 = vsel %vm3784_vm1, %v19174_v56, %v2925_v31  ;;  %v5673_v62 = vcombine.low %v3881_v8, %v3885_v15  ;;  %v3883_v61 = vsel %vm3784_vm1, %v19176_v37, %v2921_v9  ;;  %v19183_v45 = vld [vmem:[#allocation72_spill] sm:$0xff] }
 0x51a   : > { %3250 = vbcast.lane.b32.xlu0 %v3248_v50, 256  ;;  %v2947_v46 = vpop.permute.xlu1 %2946  ;;  %v19175_v50 = vld [vmem:[#allocation65_spill] sm:$0xff]  ;;  %v3270_v31 = vrot.slane %v19173_v40, %v12006_v36  ;;  %v14081_v8 = vrot.slane %v5945_v27, %v11945_v25  ;;  %v14084_v15 = vrot.slane %v5946_v60, %v11945_v25 }
 0x51b   : > { %v2943_v17 = vpop.permute.xlu0 %2942  ;;  %v3888_v55 = vsel %vm3784_vm1, %v19175_v50, %v2947_v46 }
 0x51c   : > { %v3887_v52 = vsel %vm3784_vm1, %v19177_v26, %v2943_v17  ;;  %v5961_v58 = vcombine.low %v3884_v16, %v3888_v55  ;;  %v5962_v5 = vcombine.high %v3884_v16, %v3888_v55  ;;  %19178 = vst [vmem:[#allocation59_spill] sm:$0xff] %v14081_v8  ;;  %v14093_v55 = vrot.slane %v5673_v62, %v11945_v25 }
 0x51d   : > { %3265 = vbcast.lane.b32.xlu1 %v3259_v13, 264  ;;  %v5689_v24 = vcombine.low %v3883_v61, %v3887_v52  ;;  %v5690_v12 = vcombine.high %v3883_v61, %v3887_v52  ;;  %v14096_v61 = vrot.slane %v5674_v4, %v11945_v25  ;;  %v3292_v52 = vrot.slane %v19173_v40, %v12067_v20 }
 0x51e   : > { %3261 = vbcast.lane.b32.xlu0 %v3259_v13, 256  ;;  %v14087_v9 = vrot.slane %v5961_v58, %v11945_v25  ;;  %v14090_v17 = vrot.slane %v5962_v5, %v11945_v25  ;;  %v2958_v16 = vpop.permute.xlu1 %2957  ;;  %v3281_v13 = vrot.slane %v19173_v40, %v12025_v54  ;;  %v19180_v58 = vld [vmem:[#allocation67_spill] sm:$0xff] }
 0x51f   : > { %v14099_v46 = vrot.slane %v5689_v24, %v11945_v25  ;;  %v14102_v27 = vrot.slane %v5690_v12, %v11945_v25  ;;  %v2954_v60 = vpop.permute.xlu0 %2953  ;;  %v3890_v35 = vsel %vm3784_vm1, %v19180_v58, %v2958_v16  ;;  %v19181_v24 = vld [vmem:[#allocation71_spill] sm:$0xff]  ;;  %v19182_v12 = vld [vmem:[#allocation68_spill] sm:$0xff]  ;;  %v3314_v16 = vrot.slane %v19173_v40, %v12105_v57  ;;  %v19184_v58 = vld [vmem:[#allocation69_spill] sm:$0xff] }
 0x520   : > { %19179 = vst [vmem:[#allocation63_spill] sm:$0xff] %v14087_v9  ;;  %v6010_v37 = vcombine.high %v14081_v8, %v14087_v9 }
 0x521   : > { %3276 = vbcast.lane.b32.xlu1 %v3270_v31, 264  ;;  %v5738_v4 = vcombine.high %v14093_v55, %v14099_v46 }
 0x522   : > { %3272 = vbcast.lane.b32.xlu0 %v3270_v31, 256  ;;  %v2969_v26 = vpop.permute.xlu1 %2968  ;;  %v3889_v31 = vsel %vm3784_vm1, %v19182_v12, %v2954_v60  ;;  %v19185_v12 = vld [vmem:[#allocation73_spill] sm:$0xff] }
 0x523   : > { %v2965_v56 = vpop.permute.xlu0 %2964 }
 0x525   : > { %3287 = vbcast.lane.b32.xlu1 %v3281_v13, 264 }
 0x526   : > { %3283 = vbcast.lane.b32.xlu0 %v3281_v13, 256  ;;  %v2980_v50 = vpop.permute.xlu1 %2979 }
 0x527   : > { %v2976_v62 = vpop.permute.xlu0 %2975  ;;  %v3894_v5 = vsel %vm3784_vm1, %v19181_v24, %v2980_v50  ;;  %v3892_v24 = vsel %vm3784_vm1, %v19184_v58, %v2969_v26  ;;  %v5737_v26 = vcombine.low %v14093_v55, %v14099_v46 }
 0x528   : > { %v3893_v10 = vsel %vm3784_vm1, %v19183_v45, %v2976_v62  ;;  %v5978_v8 = vcombine.high %v3890_v35, %v3894_v5  ;;  %v5977_v9 = vcombine.low %v3890_v35, %v3894_v5  ;;  %v3325_v62 = vrot.slane %v19173_v40, %v12120_v23  ;;  %v19187_v5 = vld [vmem:[#allocation74_spill] sm:$0xff] }
 0x529   : > { %3298 = vbcast.lane.b32.xlu1 %v3292_v52, 264  ;;  %v5706_v13 = vcombine.high %v3889_v31, %v3893_v10  ;;  %v5705_v50 = vcombine.low %v3889_v31, %v3893_v10 }
 0x52a   : > { %3294 = vbcast.lane.b32.xlu0 %v3292_v52, 256  ;;  %v2991_v2 = vpop.permute.xlu1 %2990  ;;  %v19186_v52 = vld [vmem:[#allocation70_spill] sm:$0xff]  ;;  %v14147_v58 = vrot.slane %v5977_v9, %v11945_v25  ;;  %v14159_v9 = vrot.slane %v6010_v37, %v11964_v63  ;;  %v19193_v37 = vcombine.low %v14084_v15, %v14090_v17 }
 0x52b   : > { %v2987_v60 = vpop.permute.xlu0 %2986  ;;  %v3896_v45 = vsel %vm3784_vm1, %v19185_v12, %v2991_v2  ;;  %v3891_v35 = vsel %vm3784_vm1, %v19186_v52, %v2965_v56  ;;  %v3336_v2 = vrot.slane %v19173_v40, %v12137_v53  ;;  %v5992_v56 = vrot.slane %v5978_v8, %v11945_v25 }
 0x52c   : > { %v3895_v22 = vsel %vm3784_vm1, %v19187_v5, %v2987_v60  ;;  %v5993_v43 = vcombine.low %v3892_v24, %v3896_v45  ;;  %v5994_v51 = vcombine.high %v3892_v24, %v3896_v45  ;;  %19188 = vst [vmem:[#allocation60_spill] sm:$0xff] %v14147_v58  ;;  %v5713_v45 = vrot.slane %v5705_v50, %v11945_v25 }
 0x52d   : > { %3309 = vbcast.lane.b32.xlu1 %v3303_v1, 264  ;;  %v5721_v10 = vcombine.low %v3891_v35, %v3895_v22  ;;  %v5722_v31 = vcombine.high %v3891_v35, %v3895_v22  ;;  %v5720_v55 = vrot.slane %v5706_v13, %v11945_v25  ;;  %19190 = vst [vmem:[#allocation18_spill] sm:$0xff] %v14159_v9 }
 0x52e   : > { %3305 = vbcast.lane.b32.xlu0 %v3303_v1, 256  ;;  %v14151_v12 = vrot.slane %v5993_v43, %v11945_v25  ;;  %v6008_v24 = vrot.slane %v5994_v51, %v11945_v25  ;;  %v3002_v60 = vpop.permute.xlu1 %3001  ;;  %v14164_v13 = vrot.slane %v5737_v26, %v11964_v63  ;;  %v14167_v5 = vrot.slane %v5738_v4, %v11964_v63 }
 0x52f   : > { %v5729_v22 = vrot.slane %v5721_v10, %v11945_v25  ;;  %v5736_v1 = vrot.slane %v5722_v31, %v11945_v25  ;;  %v2998_v40 = vpop.permute.xlu0 %2997  ;;  %v14173_v10 = vrot.slane %v19193_v37, %v11964_v63 }
 0x530   : > { %19189 = vst [vmem:[#allocation64_spill] sm:$0xff] %v14151_v12  ;;  %v6042_v8 = vcombine.high %v14147_v58, %v14151_v12  ;;  %v6057_v43 = vcombine.low %v5992_v56, %v6008_v24  ;;  %v6058_v46 = vcombine.high %v5992_v56, %v6008_v24  ;;  %19191 = vst [vmem:[#allocation61_spill] sm:$0xff] %v14164_v13 }
 0x531   : > { %3320 = vbcast.lane.b32.xlu1 %v3314_v16, 264  ;;  %v5769_v51 = vcombine.low %v5713_v45, %v5729_v22  ;;  %v5770_v52 = vcombine.high %v5713_v45, %v5729_v22  ;;  %v5785_v35 = vcombine.low %v5720_v55, %v5736_v1  ;;  %v5786_v50 = vcombine.high %v5720_v55, %v5736_v1 }
 0x532   : > { %3316 = vbcast.lane.b32.xlu0 %v3314_v16, 256  ;;  %19192 = vst [vmem:[#allocation65_spill] sm:$0xff] %v14167_v5  ;;  %19194 = vst [vmem:[#allocation62_spill] sm:$0xff] %v14173_v10  ;;  %v14176_v31 = vrot.slane %v6042_v8, %v11964_v63  ;;  %v3013_v56 = vpop.permute.xlu1 %3012  ;;  %v19200_v55 = vcombine.low %v14096_v61, %v14102_v27  ;;  %v19202_v1 = vcombine.high %v14096_v61, %v14102_v27  ;;  %v19209_v61 = vld [vmem:[#allocation126_spill] sm:$0xff] }
 0x533   : > { %v14179_v24 = vrot.slane %v5769_v51, %v11964_v63  ;;  %v14182_v16 = vrot.slane %v5770_v52, %v11964_v63  ;;  %v14185_v26 = vrot.slane %v5785_v35, %v11964_v63  ;;  %v14188_v4 = vrot.slane %v5786_v50, %v11964_v63  ;;  %v3009_v45 = vpop.permute.xlu0 %3008 }
 0x534   : > { %19195 = vst [vmem:[#allocation66_spill] sm:$0xff] %v14176_v31  ;;  %v14194_v22 = vrot.slane %v19200_v55, %v11964_v63  ;;  %v14200_v8 = vrot.slane %v19202_v1, %v11964_v63  ;;  %v19204_v51 = vcombine.high %v14084_v15, %v14090_v17  ;;  %v14209_v35 = vrot.slane %v6057_v43, %v11964_v63  ;;  %v19208_v55 = vld [vmem:[#allocation122_spill] sm:$0xff]  ;;  %v19210_v43 = vld [vmem:[#allocation123_spill] sm:$0xff] }
 0x535   : > { %19196 = vst [vmem:[#allocation67_spill] sm:$0xff] %v14179_v24  ;;  %19197 = vst [vmem:[#allocation71_spill] sm:$0xff] %v14182_v16  ;;  %3331 = vbcast.lane.b32.xlu1 %v3325_v62, 264  ;;  %v14212_v50 = vrot.slane %v6058_v46, %v11964_v63  ;;  %v3898_v1 = vsel %vm3784_vm1, %v19208_v55, %v3002_v60  ;;  %v3897_v58 = vsel %vm3784_vm1, %v19210_v43, %v2998_v40  ;;  %v19211_v40 = vld [vmem:[#allocation24_spill] sm:$0xff] }
 0x536   : > { %19198 = vst [vmem:[#allocation68_spill] sm:$0xff] %v14185_v26  ;;  %19199 = vst [vmem:[#allocation72_spill] sm:$0xff] %v14188_v4  ;;  %v14206_v52 = vrot.slane %v19204_v51, %v11964_v63  ;;  %3327 = vbcast.lane.b32.xlu0 %v3325_v62, 256  ;;  %v3024_v15 = vpop.permute.xlu1 %3023  ;;  %v3347_v43 = vrot.slane %v19211_v40, %v11987_v28 }
 0x537   : > { %19201 = vst [vmem:[#allocation69_spill] sm:$0xff] %v14194_v22  ;;  %19203 = vst [vmem:[#allocation73_spill] sm:$0xff] %v14200_v8  ;;  %v3020_v51 = vpop.permute.xlu0 %3019  ;;  %v3902_v27 = vsel %vm3784_vm1, %v19209_v61, %v3024_v15  ;;  %v19214_v61 = vld [vmem:[#allocation125_spill] sm:$0xff]  ;;  %v19215_v15 = vld [vmem:[#allocation128_spill] sm:$0xff]  ;;  %v3391_v22 = vrot.slane %v19211_v40, %v12084_v41 }
 0x538   : > { %19205 = vst [vmem:[#allocation70_spill] sm:$0xff] %v14206_v52  ;;  %19206 = vst [vmem:[#allocation74_spill] sm:$0xff] %v14209_v35  ;;  %v3901_v46 = vsel %vm3784_vm1, %v12610_v7, %v3020_v51  ;;  %v6082_v62 = vcombine.high %v3898_v1, %v3902_v27  ;;  %v6081_v17 = vcombine.low %v3898_v1, %v3902_v27  ;;  %v19212_v51 = vld [vmem:[#allocation124_spill] sm:$0xff] }
 0x539   : > { %19207 = vst [vmem:[#allocation282_spill] sm:$0xff] %v14212_v50  ;;  %3342 = vbcast.lane.b32.xlu1 %v3336_v2, 264  ;;  %v5810_v55 = vcombine.high %v3897_v58, %v3901_v46  ;;  %v3900_v31 = vsel %vm3784_vm1, %v19212_v51, %v3013_v56  ;;  %v5809_v60 = vcombine.low %v3897_v58, %v3901_v46  ;;  %v19221_v50 = vld [vmem:[#allocation134_spill] sm:$0xff] }
 0x53a   : > { %3338 = vbcast.lane.b32.xlu0 %v3336_v2, 256  ;;  %v3035_v37 = vpop.permute.xlu1 %3034  ;;  %v19213_v2 = vld [vmem:[#allocation127_spill] sm:$0xff]  ;;  %v3899_v35 = vsel %vm3784_vm1, %v19214_v61, %v3009_v45  ;;  %v3358_v56 = vrot.slane %v19211_v40, %v12006_v36  ;;  %v14261_v58 = vrot.slane %v6081_v17, %v11945_v25 }
 0x53b   : > { %v3031_v9 = vpop.permute.xlu0 %3030  ;;  %v3904_v12 = vsel %vm3784_vm1, %v19213_v2, %v3035_v37  ;;  %v14264_v37 = vrot.slane %v6082_v62, %v11945_v25 }
 0x53c   : > { %v3903_v27 = vsel %vm3784_vm1, %v19215_v15, %v3031_v9  ;;  %v6097_v1 = vcombine.low %v3900_v31, %v3904_v12  ;;  %v6098_v10 = vcombine.high %v3900_v31, %v3904_v12  ;;  %19216 = vst [vmem:[#allocation122_spill] sm:$0xff] %v14261_v58  ;;  %v14273_v31 = vrot.slane %v5809_v60, %v11945_v25 }
 0x53d   : > { %3353 = vbcast.lane.b32.xlu1 %v3347_v43, 264  ;;  %v5825_v4 = vcombine.low %v3899_v35, %v3903_v27  ;;  %v5826_v8 = vcombine.high %v3899_v35, %v3903_v27  ;;  %v14276_v35 = vrot.slane %v5810_v55, %v11945_v25  ;;  %v3380_v27 = vrot.slane %v19211_v40, %v12067_v20 }
 0x53e   : > { %3349 = vbcast.lane.b32.xlu0 %v3347_v43, 256  ;;  %v14267_v45 = vrot.slane %v6097_v1, %v11945_v25  ;;  %v14270_v9 = vrot.slane %v6098_v10, %v11945_v25  ;;  %v3046_v12 = vpop.permute.xlu1 %3045  ;;  %v3369_v43 = vrot.slane %v19211_v40, %v12025_v54  ;;  %v19218_v1 = vld [vmem:[#allocation129_spill] sm:$0xff] }
 0x53f   : > { %v14279_v46 = vrot.slane %v5825_v4, %v11945_v25  ;;  %v14282_v17 = vrot.slane %v5826_v8, %v11945_v25  ;;  %v3042_v62 = vpop.permute.xlu0 %3041  ;;  %v3906_v7 = vsel %vm3784_vm1, %v19218_v1, %v3046_v12  ;;  %v19219_v4 = vld [vmem:[#allocation133_spill] sm:$0xff]  ;;  %v19220_v8 = vld [vmem:[#allocation130_spill] sm:$0xff]  ;;  %v3402_v12 = vrot.slane %v19211_v40, %v12105_v57  ;;  %v19222_v1 = vld [vmem:[#allocation131_spill] sm:$0xff] }
 0x540   : > { %19217 = vst [vmem:[#allocation126_spill] sm:$0xff] %v14267_v45  ;;  %v6146_v61 = vcombine.high %v14261_v58, %v14267_v45 }
 0x541   : > { %3364 = vbcast.lane.b32.xlu1 %v3358_v56, 264  ;;  %v5874_v55 = vcombine.high %v14273_v31, %v14279_v46 }
 0x542   : > { %3360 = vbcast.lane.b32.xlu0 %v3358_v56, 256  ;;  %v3057_v15 = vpop.permute.xlu1 %3056  ;;  %v3905_v56 = vsel %vm3784_vm1, %v19220_v8, %v3042_v62  ;;  %v19223_v8 = vld [vmem:[#allocation135_spill] sm:$0xff] }
 0x543   : > { %v3053_v51 = vpop.permute.xlu0 %3052 }
 0x545   : > { %3375 = vbcast.lane.b32.xlu1 %v3369_v43, 264 }
 0x546   : > { %3371 = vbcast.lane.b32.xlu0 %v3369_v43, 256 }
 0x547   : > { %v3068_v2 = vpop.permute.xlu1 %3067  ;;  %v3064_v60 = vpop.permute.xlu0 %3063 }
 0x548   : > { %v3910_v10 = vsel %vm3784_vm1, %v19219_v4, %v3068_v2  ;;  %v3909_v52 = vsel %vm3784_vm1, %v19221_v50, %v3064_v60  ;;  %v3908_v4 = vsel %vm3784_vm1, %v19222_v1, %v3057_v15  ;;  %v3413_v60 = vrot.slane %v19211_v40, %v12120_v23 }
 0x549   : > { %v6114_v58 = vcombine.high %v3906_v7, %v3910_v10  ;;  %3386 = vbcast.lane.b32.xlu1 %v3380_v27, 264  ;;  %v5842_v43 = vcombine.high %v3905_v56, %v3909_v52  ;;  %v6113_v45 = vcombine.low %v3906_v7, %v3910_v10  ;;  %v5841_v2 = vcombine.low %v3905_v56, %v3909_v52  ;;  %v19225_v10 = vld [vmem:[#allocation136_spill] sm:$0xff] }
 0x54a   : > { %3382 = vbcast.lane.b32.xlu0 %v3380_v27, 256  ;;  %v19224_v27 = vld [vmem:[#allocation132_spill] sm:$0xff]  ;;  %v5873_v15 = vcombine.low %v14273_v31, %v14279_v46 }
 0x54b   : > { %v3079_v26 = vpop.permute.xlu1 %3078  ;;  %v3075_v62 = vpop.permute.xlu0 %3074  ;;  %v3907_v7 = vsel %vm3784_vm1, %v19224_v27, %v3053_v51  ;;  %v14327_v1 = vrot.slane %v6113_v45, %v11945_v25  ;;  %v6128_v51 = vrot.slane %v6114_v58, %v11945_v25  ;;  %v5856_v31 = vrot.slane %v5842_v43, %v11945_v25 }
 0x54c   : > { %v3912_v50 = vsel %vm3784_vm1, %v19223_v8, %v3079_v26  ;;  %v3911_v29 = vsel %vm3784_vm1, %v19225_v10, %v3075_v62  ;;  %v3424_v26 = vrot.slane %v19211_v40, %v12137_v53  ;;  %v14339_v45 = vrot.slane %v6146_v61, %v11964_v63 }
 0x54d   : > { %v6129_v16 = vcombine.low %v3908_v4, %v3912_v50  ;;  %v6130_v5 = vcombine.high %v3908_v4, %v3912_v50  ;;  %3397 = vbcast.lane.b32.xlu1 %v3391_v22, 264  ;;  %v5857_v52 = vcombine.low %v3907_v7, %v3911_v29  ;;  %v5858_v56 = vcombine.high %v3907_v7, %v3911_v29 }
 0x54e   : > { %3393 = vbcast.lane.b32.xlu0 %v3391_v22, 256  ;;  %19226 = vst [vmem:[#allocation123_spill] sm:$0xff] %v14327_v1  ;;  %v5849_v50 = vrot.slane %v5841_v2, %v11945_v25  ;;  %19228 = vst [vmem:[#allocation124_spill] sm:$0xff] %v14339_v45  ;;  %v14344_v43 = vrot.slane %v5873_v15, %v11964_v63  ;;  %v14347_v10 = vrot.slane %v5874_v55, %v11964_v63 }
 0x54f   : > { %v14331_v8 = vrot.slane %v6129_v16, %v11945_v25  ;;  %v6144_v4 = vrot.slane %v6130_v5, %v11945_v25  ;;  %v3090_v62 = vpop.permute.xlu1 %3089  ;;  %v5865_v29 = vrot.slane %v5857_v52, %v11945_v25  ;;  %v5872_v22 = vrot.slane %v5858_v56, %v11945_v25  ;;  %v3086_v40 = vpop.permute.xlu0 %3085 }
 0x550   : > { %19229 = vst [vmem:[#allocation127_spill] sm:$0xff] %v14344_v43  ;;  %19230 = vst [vmem:[#allocation125_spill] sm:$0xff] %v14347_v10  ;;  %v19231_v61 = vcombine.low %v14264_v37, %v14270_v9 }
 0x551   : > { %19227 = vst [vmem:[#allocation24_spill] sm:$0xff] %v14331_v8  ;;  %v6178_v58 = vcombine.high %v14327_v1, %v14331_v8  ;;  %v6193_v16 = vcombine.low %v6128_v51, %v6144_v4  ;;  %v6194_v46 = vcombine.high %v6128_v51, %v6144_v4  ;;  %3408 = vbcast.lane.b32.xlu1 %v3402_v12, 264 }
 0x552   : > { %v5905_v5 = vcombine.low %v5849_v50, %v5865_v29  ;;  %v5906_v27 = vcombine.high %v5849_v50, %v5865_v29  ;;  %v5921_v7 = vcombine.low %v5856_v31, %v5872_v22  ;;  %v5922_v2 = vcombine.high %v5856_v31, %v5872_v22  ;;  %3404 = vbcast.lane.b32.xlu0 %v3402_v12, 256 }
 0x553   : > { %v14353_v52 = vrot.slane %v19231_v61, %v11964_v63  ;;  %v14356_v56 = vrot.slane %v6178_v58, %v11964_v63  ;;  %v3101_v51 = vpop.permute.xlu1 %3100  ;;  %v3097_v50 = vpop.permute.xlu0 %3096  ;;  %v19238_v31 = vcombine.low %v14276_v35, %v14282_v17  ;;  %v19240_v22 = vcombine.high %v14276_v35, %v14282_v17  ;;  %v19247_v61 = vld [vmem:[#allocation79_spill] sm:$0xff] }
 0x554   : > { %v14359_v4 = vrot.slane %v5905_v5, %v11964_v63  ;;  %v14362_v12 = vrot.slane %v5906_v27, %v11964_v63  ;;  %v14365_v15 = vrot.slane %v5921_v7, %v11964_v63  ;;  %v14368_v55 = vrot.slane %v5922_v2, %v11964_v63 }
 0x555   : > { %19232 = vst [vmem:[#allocation128_spill] sm:$0xff] %v14353_v52  ;;  %19233 = vst [vmem:[#allocation129_spill] sm:$0xff] %v14356_v56  ;;  %v14374_v29 = vrot.slane %v19238_v31, %v11964_v63  ;;  %v14380_v58 = vrot.slane %v19240_v22, %v11964_v63  ;;  %v19242_v5 = vcombine.high %v14264_v37, %v14270_v9  ;;  %3419 = vbcast.lane.b32.xlu1 %v3413_v60, 264  ;;  %v19246_v31 = vld [vmem:[#allocation75_spill] sm:$0xff] }
 0x556   : > { %19234 = vst [vmem:[#allocation133_spill] sm:$0xff] %v14359_v4  ;;  %19235 = vst [vmem:[#allocation130_spill] sm:$0xff] %v14362_v12  ;;  %v14389_v7 = vrot.slane %v6193_v16, %v11964_v63  ;;  %v14392_v2 = vrot.slane %v6194_v46, %v11964_v63  ;;  %3415 = vbcast.lane.b32.xlu0 %v3413_v60, 256  ;;  %v3914_v22 = vsel %vm3784_vm1, %v19246_v31, %v3090_v62  ;;  %v19248_v16 = vld [vmem:[#allocation76_spill] sm:$0xff] }
 0x557   : > { %19236 = vst [vmem:[#allocation134_spill] sm:$0xff] %v14365_v15  ;;  %19237 = vst [vmem:[#allocation131_spill] sm:$0xff] %v14368_v55  ;;  %v14386_v27 = vrot.slane %v19242_v5, %v11964_v63  ;;  %v3112_v37 = vpop.permute.xlu1 %3111  ;;  %v3108_v5 = vpop.permute.xlu0 %3107  ;;  %v3913_v1 = vsel %vm3784_vm1, %v19248_v16, %v3086_v40  ;;  %v19249_v46 = vld [vmem:[#allocation80_spill] sm:$0xff]  ;;  %v19250_v40 = vld [vmem:[#allocation19_spill] sm:$0xff] }
 0x558   : > { %19239 = vst [vmem:[#allocation135_spill] sm:$0xff] %v14374_v29  ;;  %19241 = vst [vmem:[#allocation132_spill] sm:$0xff] %v14380_v58  ;;  %v3918_v17 = vsel %vm3784_vm1, %v19247_v61, %v3112_v37  ;;  %v3917_v8 = vsel %vm3784_vm1, %v19249_v46, %v3108_v5  ;;  %v3435_v16 = vrot.slane %v19250_v40, %v11987_v28  ;;  %v19251_v5 = vld [vmem:[#allocation77_spill] sm:$0xff]  ;;  %v19253_v61 = vld [vmem:[#allocation78_spill] sm:$0xff] }
 0x559   : > { %19243 = vst [vmem:[#allocation136_spill] sm:$0xff] %v14386_v27  ;;  %19244 = vst [vmem:[#allocation283_spill] sm:$0xff] %v14389_v7  ;;  %v6490_v60 = vcombine.high %v3914_v22, %v3918_v17  ;;  %3430 = vbcast.lane.b32.xlu1 %v3424_v26, 264  ;;  %v6218_v31 = vcombine.high %v3913_v1, %v3917_v8  ;;  %v6489_v9 = vcombine.low %v3914_v22, %v3918_v17  ;;  %v19254_v37 = vld [vmem:[#allocation82_spill] sm:$0xff] }
 0x55a   : > { %19245 = vst [vmem:[#allocation284_spill] sm:$0xff] %v14392_v2  ;;  %3426 = vbcast.lane.b32.xlu0 %v3424_v26, 256  ;;  %v3916_v56 = vsel %vm3784_vm1, %v19251_v5, %v3101_v51  ;;  %v6217_v62 = vcombine.low %v3913_v1, %v3917_v8  ;;  %v19252_v26 = vld [vmem:[#allocation81_spill] sm:$0xff]  ;;  %v3915_v7 = vsel %vm3784_vm1, %v19253_v61, %v3097_v50  ;;  %v19260_v2 = vld [vmem:[#allocation88_spill] sm:$0xff] }
 0x55b   : > { %v3123_v35 = vpop.permute.xlu1 %3122  ;;  %v3119_v45 = vpop.permute.xlu0 %3118  ;;  %v3446_v51 = vrot.slane %v19250_v40, %v12006_v36  ;;  %v14441_v1 = vrot.slane %v6489_v9, %v11945_v25  ;;  %v14444_v8 = vrot.slane %v6490_v60, %v11945_v25  ;;  %v3479_v12 = vrot.slane %v19250_v40, %v12084_v41 }
 0x55c   : > { %v3920_v55 = vsel %vm3784_vm1, %v19252_v26, %v3123_v35  ;;  %v3919_v17 = vsel %vm3784_vm1, %v19254_v37, %v3119_v45 }
 0x55d   : > { %v6505_v22 = vcombine.low %v3916_v56, %v3920_v55  ;;  %v6506_v52 = vcombine.high %v3916_v56, %v3920_v55  ;;  %3441 = vbcast.lane.b32.xlu1 %v3435_v16, 264  ;;  %v6233_v58 = vcombine.low %v3915_v7, %v3919_v17  ;;  %v6234_v15 = vcombine.high %v3915_v7, %v3919_v17 }
 0x55e   : > { %3437 = vbcast.lane.b32.xlu0 %v3435_v16, 256  ;;  %19255 = vst [vmem:[#allocation75_spill] sm:$0xff] %v14441_v1  ;;  %v14453_v55 = vrot.slane %v6217_v62, %v11945_v25  ;;  %v14456_v7 = vrot.slane %v6218_v31, %v11945_v25  ;;  %v3457_v16 = vrot.slane %v19250_v40, %v12025_v54 }
 0x55f   : > { %v14447_v50 = vrot.slane %v6505_v22, %v11945_v25  ;;  %v14450_v45 = vrot.slane %v6506_v52, %v11945_v25  ;;  %v3134_v56 = vpop.permute.xlu1 %3133  ;;  %v14459_v35 = vrot.slane %v6233_v58, %v11945_v25  ;;  %v14462_v9 = vrot.slane %v6234_v15, %v11945_v25  ;;  %v3130_v60 = vpop.permute.xlu0 %3129  ;;  %v19257_v22 = vld [vmem:[#allocation83_spill] sm:$0xff]  ;;  %v19259_v15 = vld [vmem:[#allocation84_spill] sm:$0xff] }
 0x560   : > { %v3468_v17 = vrot.slane %v19250_v40, %v12067_v20  ;;  %v3922_v46 = vsel %vm3784_vm1, %v19257_v22, %v3134_v56  ;;  %v19258_v58 = vld [vmem:[#allocation87_spill] sm:$0xff]  ;;  %v3490_v56 = vrot.slane %v19250_v40, %v12105_v57  ;;  %v19261_v22 = vld [vmem:[#allocation85_spill] sm:$0xff] }
 0x561   : > { %19256 = vst [vmem:[#allocation79_spill] sm:$0xff] %v14447_v50  ;;  %v6554_v61 = vcombine.high %v14441_v1, %v14447_v50  ;;  %3452 = vbcast.lane.b32.xlu1 %v3446_v51, 264  ;;  %v6282_v31 = vcombine.high %v14453_v55, %v14459_v35 }
 0x562   : > { %3448 = vbcast.lane.b32.xlu0 %v3446_v51, 256  ;;  %v3921_v51 = vsel %vm3784_vm1, %v19259_v15, %v3130_v60  ;;  %v19262_v15 = vld [vmem:[#allocation89_spill] sm:$0xff] }
 0x563   : > { %v3145_v37 = vpop.permute.xlu1 %3144 }
 0x564   : > { %v3141_v5 = vpop.permute.xlu0 %3140 }
 0x565   : > { %3463 = vbcast.lane.b32.xlu1 %v3457_v16, 264 }
 0x566   : > { %3459 = vbcast.lane.b32.xlu0 %v3457_v16, 256 }
 0x567   : > { %v3156_v26 = vpop.permute.xlu1 %3155 }
 0x568   : > { %v3152_v62 = vpop.permute.xlu0 %3151  ;;  %v3926_v52 = vsel %vm3784_vm1, %v19258_v58, %v3156_v26  ;;  %v3924_v58 = vsel %vm3784_vm1, %v19261_v22, %v3145_v37  ;;  %v6281_v37 = vcombine.low %v14453_v55, %v14459_v35 }
 0x569   : > { %v3925_v27 = vsel %vm3784_vm1, %v19260_v2, %v3152_v62  ;;  %v6522_v1 = vcombine.high %v3922_v46, %v3926_v52  ;;  %3474 = vbcast.lane.b32.xlu1 %v3468_v17, 264  ;;  %v6521_v50 = vcombine.low %v3922_v46, %v3926_v52  ;;  %v3501_v62 = vrot.slane %v19250_v40, %v12120_v23  ;;  %v19264_v52 = vld [vmem:[#allocation90_spill] sm:$0xff] }
 0x56a   : > { %v6250_v16 = vcombine.high %v3921_v51, %v3925_v27  ;;  %3470 = vbcast.lane.b32.xlu0 %v3468_v17, 256  ;;  %v6249_v26 = vcombine.low %v3921_v51, %v3925_v27  ;;  %v19263_v17 = vld [vmem:[#allocation86_spill] sm:$0xff] }
 0x56b   : > { %v3167_v29 = vpop.permute.xlu1 %3166  ;;  %v3923_v46 = vsel %vm3784_vm1, %v19263_v17, %v3141_v5  ;;  %v14507_v22 = vrot.slane %v6521_v50, %v11945_v25  ;;  %v6536_v5 = vrot.slane %v6522_v1, %v11945_v25  ;;  %v14519_v50 = vrot.slane %v6554_v61, %v11964_v63 }
 0x56c   : > { %v3163_v60 = vpop.permute.xlu0 %3162  ;;  %v3928_v2 = vsel %vm3784_vm1, %v19262_v15, %v3167_v29  ;;  %v3512_v29 = vrot.slane %v19250_v40, %v12137_v53  ;;  %v6264_v55 = vrot.slane %v6250_v16, %v11945_v25  ;;  %v14524_v16 = vrot.slane %v6281_v37, %v11964_v63 }
 0x56d   : > { %v3927_v10 = vsel %vm3784_vm1, %v19264_v52, %v3163_v60  ;;  %v6537_v11 = vcombine.low %v3924_v58, %v3928_v2  ;;  %v6538_v42 = vcombine.high %v3924_v58, %v3928_v2  ;;  %3485 = vbcast.lane.b32.xlu1 %v3479_v12, 264  ;;  %19265 = vst [vmem:[#allocation76_spill] sm:$0xff] %v14507_v22  ;;  %19267 = vst [vmem:[#allocation19_spill] sm:$0xff] %v14519_v50 }
 0x56e   : > { %v6265_v27 = vcombine.low %v3923_v46, %v3927_v10  ;;  %v6266_v51 = vcombine.high %v3923_v46, %v3927_v10  ;;  %3481 = vbcast.lane.b32.xlu0 %v3479_v12, 256  ;;  %v6257_v2 = vrot.slane %v6249_v26, %v11945_v25  ;;  %19268 = vst [vmem:[#allocation77_spill] sm:$0xff] %v14524_v16 }
 0x56f   : > { %v14511_v15 = vrot.slane %v6537_v11, %v11945_v25  ;;  %v6552_v58 = vrot.slane %v6538_v42, %v11945_v25  ;;  %v3178_v60 = vpop.permute.xlu1 %3177  ;;  %v14527_v52 = vrot.slane %v6282_v31, %v11964_v63  ;;  %v19270_v61 = vcombine.low %v14444_v8, %v14450_v45 }
 0x570   : > { %v6273_v10 = vrot.slane %v6265_v27, %v11945_v25  ;;  %v6280_v12 = vrot.slane %v6266_v51, %v11945_v25  ;;  %v3174_v40 = vpop.permute.xlu0 %3173 }
 0x571   : > { %19266 = vst [vmem:[#allocation80_spill] sm:$0xff] %v14511_v15  ;;  %v6586_v1 = vcombine.high %v14507_v22, %v14511_v15  ;;  %v6601_v11 = vcombine.low %v6536_v5, %v6552_v58  ;;  %v6602_v35 = vcombine.high %v6536_v5, %v6552_v58  ;;  %3496 = vbcast.lane.b32.xlu1 %v3490_v56, 264  ;;  %19269 = vst [vmem:[#allocation81_spill] sm:$0xff] %v14527_v52 }
 0x572   : > { %v6313_v42 = vcombine.low %v6257_v2, %v6273_v10  ;;  %v6314_v17 = vcombine.high %v6257_v2, %v6273_v10  ;;  %v6329_v46 = vcombine.low %v6264_v55, %v6280_v12  ;;  %v6330_v26 = vcombine.high %v6264_v55, %v6280_v12  ;;  %3492 = vbcast.lane.b32.xlu0 %v3490_v56, 256 }
 0x573   : > { %v14533_v27 = vrot.slane %v19270_v61, %v11964_v63  ;;  %v14536_v51 = vrot.slane %v6586_v1, %v11964_v63  ;;  %v3189_v5 = vpop.permute.xlu1 %3188  ;;  %v19277_v55 = vcombine.low %v14456_v7, %v14462_v9  ;;  %v19279_v12 = vcombine.high %v14456_v7, %v14462_v9  ;;  %v19286_v7 = vld [vmem:[#allocation141_spill] sm:$0xff] }
 0x574   : > { %v14539_v58 = vrot.slane %v6313_v42, %v11964_v63  ;;  %v14542_v56 = vrot.slane %v6314_v17, %v11964_v63  ;;  %v14545_v37 = vrot.slane %v6329_v46, %v11964_v63  ;;  %v14548_v31 = vrot.slane %v6330_v26, %v11964_v63  ;;  %v3185_v2 = vpop.permute.xlu0 %3184 }
 0x575   : > { %19271 = vst [vmem:[#allocation78_spill] sm:$0xff] %v14533_v27  ;;  %19272 = vst [vmem:[#allocation82_spill] sm:$0xff] %v14536_v51  ;;  %v14554_v10 = vrot.slane %v19277_v55, %v11964_v63  ;;  %v14560_v1 = vrot.slane %v19279_v12, %v11964_v63  ;;  %v19281_v42 = vcombine.high %v14444_v8, %v14450_v45  ;;  %3507 = vbcast.lane.b32.xlu1 %v3501_v62, 264  ;;  %v19285_v55 = vld [vmem:[#allocation137_spill] sm:$0xff] }
 0x576   : > { %19273 = vst [vmem:[#allocation83_spill] sm:$0xff] %v14539_v58  ;;  %19274 = vst [vmem:[#allocation87_spill] sm:$0xff] %v14542_v56  ;;  %v14569_v46 = vrot.slane %v6601_v11, %v11964_v63  ;;  %v14572_v26 = vrot.slane %v6602_v35, %v11964_v63  ;;  %3503 = vbcast.lane.b32.xlu0 %v3501_v62, 256  ;;  %v3930_v12 = vsel %vm3784_vm1, %v19285_v55, %v3178_v60  ;;  %v19287_v11 = vld [vmem:[#allocation138_spill] sm:$0xff] }
 0x577   : > { %19275 = vst [vmem:[#allocation84_spill] sm:$0xff] %v14545_v37  ;;  %19276 = vst [vmem:[#allocation88_spill] sm:$0xff] %v14548_v31  ;;  %v14566_v17 = vrot.slane %v19281_v42, %v11964_v63  ;;  %v3200_v8 = vpop.permute.xlu1 %3199  ;;  %v3929_v22 = vsel %vm3784_vm1, %v19287_v11, %v3174_v40  ;;  %v19288_v40 = vld [vmem:[#allocation25_spill] sm:$0xff] }
 0x578   : > { %19278 = vst [vmem:[#allocation85_spill] sm:$0xff] %v14554_v10  ;;  %19280 = vst [vmem:[#allocation89_spill] sm:$0xff] %v14560_v1  ;;  %v3196_v42 = vpop.permute.xlu0 %3195  ;;  %v3934_v9 = vsel %vm3784_vm1, %v19286_v7, %v3200_v8  ;;  %v3523_v11 = vrot.slane %v19288_v40, %v11987_v28  ;;  %v19291_v7 = vld [vmem:[#allocation140_spill] sm:$0xff]  ;;  %v19292_v8 = vld [vmem:[#allocation143_spill] sm:$0xff]  ;;  %v3567_v10 = vrot.slane %v19288_v40, %v12084_v41 }
 0x579   : > { %19282 = vst [vmem:[#allocation86_spill] sm:$0xff] %v14566_v17  ;;  %19283 = vst [vmem:[#allocation90_spill] sm:$0xff] %v14569_v46  ;;  %v3933_v35 = vsel %vm3784_vm1, %v12658_v30, %v3196_v42  ;;  %v6626_v62 = vcombine.high %v3930_v12, %v3934_v9  ;;  %3518 = vbcast.lane.b32.xlu1 %v3512_v29, 264  ;;  %v6625_v45 = vcombine.low %v3930_v12, %v3934_v9  ;;  %v19289_v42 = vld [vmem:[#allocation139_spill] sm:$0xff] }
 0x57a   : > { %19284 = vst [vmem:[#allocation285_spill] sm:$0xff] %v14572_v26  ;;  %v6354_v55 = vcombine.high %v3929_v22, %v3933_v35  ;;  %3514 = vbcast.lane.b32.xlu0 %v3512_v29, 256  ;;  %v3932_v51 = vsel %vm3784_vm1, %v19289_v42, %v3189_v5  ;;  %v6353_v60 = vcombine.low %v3929_v22, %v3933_v35  ;;  %v19290_v29 = vld [vmem:[#allocation142_spill] sm:$0xff]  ;;  %v19298_v26 = vld [vmem:[#allocation149_spill] sm:$0xff] }
 0x57b   : > { %v3211_v61 = vpop.permute.xlu1 %3210  ;;  %v3931_v46 = vsel %vm3784_vm1, %v19291_v7, %v3185_v2  ;;  %v3534_v5 = vrot.slane %v19288_v40, %v12006_v36  ;;  %v14621_v22 = vrot.slane %v6625_v45, %v11945_v25 }
 0x57c   : > { %v3207_v50 = vpop.permute.xlu0 %3206  ;;  %v3936_v15 = vsel %vm3784_vm1, %v19290_v29, %v3211_v61  ;;  %v14624_v61 = vrot.slane %v6626_v62, %v11945_v25 }
 0x57d   : > { %v3935_v9 = vsel %vm3784_vm1, %v19292_v8, %v3207_v50  ;;  %v6641_v12 = vcombine.low %v3932_v51, %v3936_v15  ;;  %v6642_v27 = vcombine.high %v3932_v51, %v3936_v15  ;;  %3529 = vbcast.lane.b32.xlu1 %v3523_v11, 264  ;;  %19293 = vst [vmem:[#allocation137_spill] sm:$0xff] %v14621_v22 }
 0x57e   : > { %v6369_v31 = vcombine.low %v3931_v46, %v3935_v9  ;;  %v6370_v1 = vcombine.high %v3931_v46, %v3935_v9  ;;  %3525 = vbcast.lane.b32.xlu0 %v3523_v11, 256  ;;  %v14633_v51 = vrot.slane %v6353_v60, %v11945_v25  ;;  %v14636_v46 = vrot.slane %v6354_v55, %v11945_v25 }
 0x57f   : > { %v14627_v2 = vrot.slane %v6641_v12, %v11945_v25  ;;  %v14630_v50 = vrot.slane %v6642_v27, %v11945_v25  ;;  %v3222_v15 = vpop.permute.xlu1 %3221  ;;  %v3545_v11 = vrot.slane %v19288_v40, %v12025_v54  ;;  %v3556_v9 = vrot.slane %v19288_v40, %v12067_v20  ;;  %v19295_v12 = vld [vmem:[#allocation144_spill] sm:$0xff] }
 0x580   : > { %v14639_v35 = vrot.slane %v6369_v31, %v11945_v25  ;;  %v14642_v45 = vrot.slane %v6370_v1, %v11945_v25  ;;  %v3218_v62 = vpop.permute.xlu0 %3217  ;;  %v3938_v30 = vsel %vm3784_vm1, %v19295_v12, %v3222_v15  ;;  %v19296_v31 = vld [vmem:[#allocation148_spill] sm:$0xff]  ;;  %v19297_v1 = vld [vmem:[#allocation145_spill] sm:$0xff]  ;;  %v3578_v15 = vrot.slane %v19288_v40, %v12105_v57  ;;  %v19299_v12 = vld [vmem:[#allocation146_spill] sm:$0xff] }
 0x581   : > { %19294 = vst [vmem:[#allocation141_spill] sm:$0xff] %v14627_v2  ;;  %v6690_v7 = vcombine.high %v14621_v22, %v14627_v2  ;;  %3540 = vbcast.lane.b32.xlu1 %v3534_v5, 264 }
 0x582   : > { %v6418_v55 = vcombine.high %v14633_v51, %v14639_v35  ;;  %3536 = vbcast.lane.b32.xlu0 %v3534_v5, 256  ;;  %v3937_v5 = vsel %vm3784_vm1, %v19297_v1, %v3218_v62  ;;  %v19300_v1 = vld [vmem:[#allocation150_spill] sm:$0xff] }
 0x583   : > { %v3233_v8 = vpop.permute.xlu1 %3232 }
 0x584   : > { %v3229_v42 = vpop.permute.xlu0 %3228 }
 0x585   : > { %3551 = vbcast.lane.b32.xlu1 %v3545_v11, 264 }
 0x586   : > { %3547 = vbcast.lane.b32.xlu0 %v3545_v11, 256 }
 0x587   : > { %v3244_v29 = vpop.permute.xlu1 %3243 }
 0x588   : > { %v3240_v60 = vpop.permute.xlu0 %3239  ;;  %v3942_v27 = vsel %vm3784_vm1, %v19296_v31, %v3244_v29  ;;  %v3940_v31 = vsel %vm3784_vm1, %v19299_v12, %v3233_v8  ;;  %v6417_v8 = vcombine.low %v14633_v51, %v14639_v35 }
 0x589   : > { %v3941_v17 = vsel %vm3784_vm1, %v19298_v26, %v3240_v60  ;;  %v6658_v22 = vcombine.high %v3938_v30, %v3942_v27  ;;  %3562 = vbcast.lane.b32.xlu1 %v3556_v9, 264  ;;  %v6657_v2 = vcombine.low %v3938_v30, %v3942_v27  ;;  %v3589_v60 = vrot.slane %v19288_v40, %v12120_v23  ;;  %v19302_v27 = vld [vmem:[#allocation151_spill] sm:$0xff] }
 0x58a   : > { %v6386_v11 = vcombine.high %v3937_v5, %v3941_v17  ;;  %3558 = vbcast.lane.b32.xlu0 %v3556_v9, 256  ;;  %v6385_v29 = vcombine.low %v3937_v5, %v3941_v17  ;;  %v19301_v9 = vld [vmem:[#allocation147_spill] sm:$0xff] }
 0x58b   : > { %v3255_v37 = vpop.permute.xlu1 %3254  ;;  %v3939_v30 = vsel %vm3784_vm1, %v19301_v9, %v3229_v42  ;;  %v14687_v12 = vrot.slane %v6657_v2, %v11945_v25  ;;  %v6672_v42 = vrot.slane %v6658_v22, %v11945_v25  ;;  %v14699_v2 = vrot.slane %v6690_v7, %v11964_v63 }
 0x58c   : > { %v3251_v62 = vpop.permute.xlu0 %3250  ;;  %v3944_v26 = vsel %vm3784_vm1, %v19300_v1, %v3255_v37  ;;  %v3600_v37 = vrot.slane %v19288_v40, %v12137_v53  ;;  %v6400_v51 = vrot.slane %v6386_v11, %v11945_v25  ;;  %v14704_v11 = vrot.slane %v6417_v8, %v11964_v63 }
 0x58d   : > { %v3943_v56 = vsel %vm3784_vm1, %v19302_v27, %v3251_v62  ;;  %v6673_v52 = vcombine.low %v3940_v31, %v3944_v26  ;;  %v6674_v44 = vcombine.high %v3940_v31, %v3944_v26  ;;  %3573 = vbcast.lane.b32.xlu1 %v3567_v10, 264  ;;  %19303 = vst [vmem:[#allocation138_spill] sm:$0xff] %v14687_v12  ;;  %19305 = vst [vmem:[#allocation139_spill] sm:$0xff] %v14699_v2 }
 0x58e   : > { %v6401_v17 = vcombine.low %v3939_v30, %v3943_v56  ;;  %v6402_v5 = vcombine.high %v3939_v30, %v3943_v56  ;;  %3569 = vbcast.lane.b32.xlu0 %v3567_v10, 256  ;;  %v6393_v26 = vrot.slane %v6385_v29, %v11945_v25  ;;  %19306 = vst [vmem:[#allocation142_spill] sm:$0xff] %v14704_v11 }
 0x58f   : > { %v14691_v1 = vrot.slane %v6673_v52, %v11945_v25  ;;  %v6688_v31 = vrot.slane %v6674_v44, %v11945_v25  ;;  %v3266_v62 = vpop.permute.xlu1 %3265  ;;  %v14707_v27 = vrot.slane %v6418_v55, %v11964_v63  ;;  %v19308_v7 = vcombine.low %v14624_v61, %v14630_v50 }
 0x590   : > { %v6409_v56 = vrot.slane %v6401_v17, %v11945_v25  ;;  %v6416_v10 = vrot.slane %v6402_v5, %v11945_v25  ;;  %v3262_v40 = vpop.permute.xlu0 %3261 }
 0x591   : > { %19304 = vst [vmem:[#allocation25_spill] sm:$0xff] %v14691_v1  ;;  %v6722_v22 = vcombine.high %v14687_v12, %v14691_v1  ;;  %v6737_v52 = vcombine.low %v6672_v42, %v6688_v31  ;;  %v6738_v35 = vcombine.high %v6672_v42, %v6688_v31  ;;  %3584 = vbcast.lane.b32.xlu1 %v3578_v15, 264  ;;  %19307 = vst [vmem:[#allocation140_spill] sm:$0xff] %v14707_v27 }
 0x592   : > { %v6449_v44 = vcombine.low %v6393_v26, %v6409_v56  ;;  %v6450_v9 = vcombine.high %v6393_v26, %v6409_v56  ;;  %v6465_v30 = vcombine.low %v6400_v51, %v6416_v10  ;;  %v6466_v29 = vcombine.high %v6400_v51, %v6416_v10  ;;  %3580 = vbcast.lane.b32.xlu0 %v3578_v15, 256 }
 0x593   : > { %v14713_v17 = vrot.slane %v19308_v7, %v11964_v63  ;;  %v14716_v5 = vrot.slane %v6722_v22, %v11964_v63  ;;  %v3277_v42 = vpop.permute.xlu1 %3276  ;;  %v19315_v51 = vcombine.low %v14636_v46, %v14642_v45  ;;  %v19317_v10 = vcombine.high %v14636_v46, %v14642_v45  ;;  %v19324_v7 = vld [vmem:[#allocation156_spill] sm:$0xff] }
 0x594   : > { %v14719_v31 = vrot.slane %v6449_v44, %v11964_v63  ;;  %v14722_v15 = vrot.slane %v6450_v9, %v11964_v63  ;;  %v14725_v8 = vrot.slane %v6465_v30, %v11964_v63  ;;  %v14728_v55 = vrot.slane %v6466_v29, %v11964_v63  ;;  %v3273_v26 = vpop.permute.xlu0 %3272 }
 0x595   : > { %19309 = vst [vmem:[#allocation143_spill] sm:$0xff] %v14713_v17  ;;  %19310 = vst [vmem:[#allocation144_spill] sm:$0xff] %v14716_v5  ;;  %v14734_v56 = vrot.slane %v19315_v51, %v11964_v63  ;;  %v14740_v22 = vrot.slane %v19317_v10, %v11964_v63  ;;  %v19319_v44 = vcombine.high %v14624_v61, %v14630_v50  ;;  %3595 = vbcast.lane.b32.xlu1 %v3589_v60, 264  ;;  %v19323_v51 = vld [vmem:[#allocation152_spill] sm:$0xff] }
 0x596   : > { %19311 = vst [vmem:[#allocation148_spill] sm:$0xff] %v14719_v31  ;;  %19312 = vst [vmem:[#allocation145_spill] sm:$0xff] %v14722_v15  ;;  %v14749_v30 = vrot.slane %v6737_v52, %v11964_v63  ;;  %v14752_v29 = vrot.slane %v6738_v35, %v11964_v63  ;;  %3591 = vbcast.lane.b32.xlu0 %v3589_v60, 256  ;;  %v3946_v10 = vsel %vm3784_vm1, %v19323_v51, %v3266_v62  ;;  %v19325_v52 = vld [vmem:[#allocation153_spill] sm:$0xff] }
 0x597   : > { %19313 = vst [vmem:[#allocation149_spill] sm:$0xff] %v14725_v8  ;;  %19314 = vst [vmem:[#allocation146_spill] sm:$0xff] %v14728_v55  ;;  %v14746_v9 = vrot.slane %v19319_v44, %v11964_v63  ;;  %v3288_v61 = vpop.permute.xlu1 %3287  ;;  %v3945_v12 = vsel %vm3784_vm1, %v19325_v52, %v3262_v40  ;;  %v19326_v40 = vld [vmem:[#allocation20_spill] sm:$0xff] }
 0x598   : > { %19316 = vst [vmem:[#allocation150_spill] sm:$0xff] %v14734_v56  ;;  %19318 = vst [vmem:[#allocation147_spill] sm:$0xff] %v14740_v22  ;;  %v3284_v44 = vpop.permute.xlu0 %3283  ;;  %v3950_v45 = vsel %vm3784_vm1, %v19324_v7, %v3288_v61  ;;  %v3611_v52 = vrot.slane %v19326_v40, %v11987_v28  ;;  %v19329_v7 = vld [vmem:[#allocation155_spill] sm:$0xff]  ;;  %v19330_v61 = vld [vmem:[#allocation158_spill] sm:$0xff]  ;;  %v3655_v56 = vrot.slane %v19326_v40, %v12084_v41 }
 0x599   : > { %19320 = vst [vmem:[#allocation151_spill] sm:$0xff] %v14746_v9  ;;  %19321 = vst [vmem:[#allocation286_spill] sm:$0xff] %v14749_v30  ;;  %v3949_v35 = vsel %vm3784_vm1, %v12706_v32, %v3284_v44  ;;  %v7034_v60 = vcombine.high %v3946_v10, %v3950_v45  ;;  %3606 = vbcast.lane.b32.xlu1 %v3600_v37, 264  ;;  %v7033_v50 = vcombine.low %v3946_v10, %v3950_v45  ;;  %v19327_v44 = vld [vmem:[#allocation154_spill] sm:$0xff] }
 0x59a   : > { %19322 = vst [vmem:[#allocation287_spill] sm:$0xff] %v14752_v29  ;;  %v6762_v51 = vcombine.high %v3945_v12, %v3949_v35  ;;  %3602 = vbcast.lane.b32.xlu0 %v3600_v37, 256  ;;  %v3948_v5 = vsel %vm3784_vm1, %v19327_v44, %v3277_v42  ;;  %v6761_v62 = vcombine.low %v3945_v12, %v3949_v35  ;;  %v19328_v37 = vld [vmem:[#allocation157_spill] sm:$0xff]  ;;  %v19336_v29 = vld [vmem:[#allocation164_spill] sm:$0xff] }
 0x59b   : > { %v3299_v46 = vpop.permute.xlu1 %3298  ;;  %v3947_v30 = vsel %vm3784_vm1, %v19329_v7, %v3273_v26  ;;  %v3622_v42 = vrot.slane %v19326_v40, %v12006_v36  ;;  %v14801_v12 = vrot.slane %v7033_v50, %v11945_v25 }
 0x59c   : > { %v3295_v2 = vpop.permute.xlu0 %3294  ;;  %v3952_v1 = vsel %vm3784_vm1, %v19328_v37, %v3299_v46  ;;  %v14804_v46 = vrot.slane %v7034_v60, %v11945_v25 }
 0x59d   : > { %v3951_v45 = vsel %vm3784_vm1, %v19330_v61, %v3295_v2  ;;  %v7049_v10 = vcombine.low %v3948_v5, %v3952_v1  ;;  %v7050_v17 = vcombine.high %v3948_v5, %v3952_v1  ;;  %3617 = vbcast.lane.b32.xlu1 %v3611_v52, 264  ;;  %19331 = vst [vmem:[#allocation152_spill] sm:$0xff] %v14801_v12 }
 0x59e   : > { %v6777_v55 = vcombine.low %v3947_v30, %v3951_v45  ;;  %v6778_v22 = vcombine.high %v3947_v30, %v3951_v45  ;;  %3613 = vbcast.lane.b32.xlu0 %v3611_v52, 256  ;;  %v14813_v5 = vrot.slane %v6761_v62, %v11945_v25  ;;  %v14816_v30 = vrot.slane %v6762_v51, %v11945_v25 }
 0x59f   : > { %v14807_v26 = vrot.slane %v7049_v10, %v11945_v25  ;;  %v14810_v2 = vrot.slane %v7050_v17, %v11945_v25  ;;  %v3310_v1 = vpop.permute.xlu1 %3309  ;;  %v3633_v52 = vrot.slane %v19326_v40, %v12025_v54  ;;  %v3644_v45 = vrot.slane %v19326_v40, %v12067_v20  ;;  %v19333_v10 = vld [vmem:[#allocation159_spill] sm:$0xff] }
 0x5a0   : > { %v14819_v35 = vrot.slane %v6777_v55, %v11945_v25  ;;  %v14822_v50 = vrot.slane %v6778_v22, %v11945_v25  ;;  %v3306_v60 = vpop.permute.xlu0 %3305  ;;  %v3954_v32 = vsel %vm3784_vm1, %v19333_v10, %v3310_v1  ;;  %v19334_v55 = vld [vmem:[#allocation163_spill] sm:$0xff]  ;;  %v19335_v22 = vld [vmem:[#allocation160_spill] sm:$0xff]  ;;  %v3666_v1 = vrot.slane %v19326_v40, %v12105_v57  ;;  %v19337_v10 = vld [vmem:[#allocation161_spill] sm:$0xff] }
 0x5a1   : > { %19332 = vst [vmem:[#allocation156_spill] sm:$0xff] %v14807_v26  ;;  %v7098_v7 = vcombine.high %v14801_v12, %v14807_v26  ;;  %3628 = vbcast.lane.b32.xlu1 %v3622_v42, 264 }
 0x5a2   : > { %v6826_v51 = vcombine.high %v14813_v5, %v14819_v35  ;;  %3624 = vbcast.lane.b32.xlu0 %v3622_v42, 256  ;;  %v3953_v42 = vsel %vm3784_vm1, %v19335_v22, %v3306_v60  ;;  %v19338_v22 = vld [vmem:[#allocation165_spill] sm:$0xff] }
 0x5a3   : > { %v3321_v61 = vpop.permute.xlu1 %3320 }
 0x5a4   : > { %v3317_v44 = vpop.permute.xlu0 %3316 }
 0x5a5   : > { %3639 = vbcast.lane.b32.xlu1 %v3633_v52, 264 }
 0x5a6   : > { %3635 = vbcast.lane.b32.xlu0 %v3633_v52, 256 }
 0x5a7   : > { %v3332_v37 = vpop.permute.xlu1 %3331 }
 0x5a8   : > { %v3328_v62 = vpop.permute.xlu0 %3327  ;;  %v3958_v17 = vsel %vm3784_vm1, %v19334_v55, %v3332_v37  ;;  %v3956_v55 = vsel %vm3784_vm1, %v19337_v10, %v3321_v61  ;;  %v6825_v61 = vcombine.low %v14813_v5, %v14819_v35 }
 0x5a9   : > { %v3957_v9 = vsel %vm3784_vm1, %v19336_v29, %v3328_v62  ;;  %v7066_v12 = vcombine.high %v3954_v32, %v3958_v17  ;;  %3650 = vbcast.lane.b32.xlu1 %v3644_v45, 264  ;;  %v7065_v26 = vcombine.low %v3954_v32, %v3958_v17  ;;  %v3677_v62 = vrot.slane %v19326_v40, %v12120_v23  ;;  %v19340_v17 = vld [vmem:[#allocation166_spill] sm:$0xff] }
 0x5aa   : > { %v6794_v52 = vcombine.high %v3953_v42, %v3957_v9  ;;  %3646 = vbcast.lane.b32.xlu0 %v3644_v45, 256  ;;  %v6793_v37 = vcombine.low %v3953_v42, %v3957_v9  ;;  %v19339_v45 = vld [vmem:[#allocation162_spill] sm:$0xff] }
 0x5ab   : > { %v3343_v8 = vpop.permute.xlu1 %3342  ;;  %v3955_v32 = vsel %vm3784_vm1, %v19339_v45, %v3317_v44  ;;  %v14867_v10 = vrot.slane %v7065_v26, %v11945_v25  ;;  %v7080_v44 = vrot.slane %v7066_v12, %v11945_v25  ;;  %v14879_v26 = vrot.slane %v7098_v7, %v11964_v63 }
 0x5ac   : > { %v3339_v60 = vpop.permute.xlu0 %3338  ;;  %v3960_v29 = vsel %vm3784_vm1, %v19338_v22, %v3343_v8  ;;  %v3688_v8 = vrot.slane %v19326_v40, %v12137_v53  ;;  %v6808_v5 = vrot.slane %v6794_v52, %v11945_v25  ;;  %v14884_v52 = vrot.slane %v6825_v61, %v11964_v63 }
 0x5ad   : > { %v3959_v15 = vsel %vm3784_vm1, %v19340_v17, %v3339_v60  ;;  %v7081_v27 = vcombine.low %v3956_v55, %v3960_v29  ;;  %v7082_v47 = vcombine.high %v3956_v55, %v3960_v29  ;;  %3661 = vbcast.lane.b32.xlu1 %v3655_v56, 264  ;;  %19341 = vst [vmem:[#allocation153_spill] sm:$0xff] %v14867_v10  ;;  %19343 = vst [vmem:[#allocation154_spill] sm:$0xff] %v14879_v26 }
 0x5ae   : > { %v6809_v9 = vcombine.low %v3955_v32, %v3959_v15  ;;  %v6810_v42 = vcombine.high %v3955_v32, %v3959_v15  ;;  %3657 = vbcast.lane.b32.xlu0 %v3655_v56, 256  ;;  %v6801_v29 = vrot.slane %v6793_v37, %v11945_v25  ;;  %19344 = vst [vmem:[#allocation157_spill] sm:$0xff] %v14884_v52 }
 0x5af   : > { %v14871_v22 = vrot.slane %v7081_v27, %v11945_v25  ;;  %v7096_v55 = vrot.slane %v7082_v47, %v11945_v25  ;;  %v3354_v60 = vpop.permute.xlu1 %3353  ;;  %v14887_v17 = vrot.slane %v6826_v51, %v11964_v63  ;;  %v19345_v7 = vcombine.low %v14804_v46, %v14810_v2 }
 0x5b0   : > { %v6817_v15 = vrot.slane %v6809_v9, %v11945_v25  ;;  %v6824_v56 = vrot.slane %v6810_v42, %v11945_v25  ;;  %v3350_v40 = vpop.permute.xlu0 %3349 }
 0x5b1   : > { %19342 = vst [vmem:[#allocation20_spill] sm:$0xff] %v14871_v22  ;;  %v7130_v12 = vcombine.high %v14867_v10, %v14871_v22  ;;  %v7145_v27 = vcombine.low %v7080_v44, %v7096_v55  ;;  %v7146_v35 = vcombine.high %v7080_v44, %v7096_v55  ;;  %3672 = vbcast.lane.b32.xlu1 %v3666_v1, 264 }
 0x5b2   : > { %v6857_v47 = vcombine.low %v6801_v29, %v6817_v15  ;;  %v6858_v45 = vcombine.high %v6801_v29, %v6817_v15  ;;  %v6873_v32 = vcombine.low %v6808_v5, %v6824_v56  ;;  %v6874_v37 = vcombine.high %v6808_v5, %v6824_v56  ;;  %3668 = vbcast.lane.b32.xlu0 %v3666_v1, 256 }
 0x5b3   : > { %v14893_v9 = vrot.slane %v19345_v7, %v11964_v63  ;;  %v14896_v42 = vrot.slane %v7130_v12, %v11964_v63  ;;  %v3365_v44 = vpop.permute.xlu1 %3364  ;;  %v19351_v5 = vcombine.low %v14816_v30, %v14822_v50  ;;  %v19353_v56 = vcombine.high %v14816_v30, %v14822_v50  ;;  %v19360_v30 = vld [vmem:[#allocation171_spill] sm:$0xff] }
 0x5b4   : > { %v14899_v55 = vrot.slane %v6857_v47, %v11964_v63  ;;  %v14902_v1 = vrot.slane %v6858_v45, %v11964_v63  ;;  %v14905_v61 = vrot.slane %v6873_v32, %v11964_v63  ;;  %v14908_v51 = vrot.slane %v6874_v37, %v11964_v63  ;;  %v3361_v29 = vpop.permute.xlu0 %3360 }
 0x5b5   : > { %19346 = vst [vmem:[#allocation155_spill] sm:$0xff] %v14893_v9  ;;  %19347 = vst [vmem:[#allocation158_spill] sm:$0xff] %v14896_v42  ;;  %v14914_v15 = vrot.slane %v19351_v5, %v11964_v63  ;;  %v14920_v12 = vrot.slane %v19353_v56, %v11964_v63  ;;  %v19355_v47 = vcombine.high %v14804_v46, %v14810_v2  ;;  %3683 = vbcast.lane.b32.xlu1 %v3677_v62, 264  ;;  %v19359_v5 = vld [vmem:[#allocation167_spill] sm:$0xff] }
 0x5b6   : > { %19348 = vst [vmem:[#allocation159_spill] sm:$0xff] %v14899_v55  ;;  %19349 = vst [vmem:[#allocation163_spill] sm:$0xff] %v14905_v61  ;;  %v14929_v32 = vrot.slane %v7145_v27, %v11964_v63  ;;  %v14932_v37 = vrot.slane %v7146_v35, %v11964_v63  ;;  %3679 = vbcast.lane.b32.xlu0 %v3677_v62, 256  ;;  %v3962_v56 = vsel %vm3784_vm1, %v19359_v5, %v3354_v60  ;;  %v19361_v27 = vld [vmem:[#allocation168_spill] sm:$0xff] }
 0x5b7   : > { %19350 = vst [vmem:[#allocation160_spill] sm:$0xff] %v14908_v51  ;;  %19352 = vst [vmem:[#allocation164_spill] sm:$0xff] %v14914_v15  ;;  %v14926_v45 = vrot.slane %v19355_v47, %v11964_v63  ;;  %v3376_v46 = vpop.permute.xlu1 %3375  ;;  %v3961_v10 = vsel %vm3784_vm1, %v19361_v27, %v3350_v40  ;;  %v19362_v35 = vld [vmem:[#allocation172_spill] sm:$0xff]  ;;  %v19363_v40 = vld [vmem:[#allocation26_spill] sm:$0xff] }
 0x5b8   : > { %19354 = vst [vmem:[#allocation161_spill] sm:$0xff] %v14920_v12  ;;  %19357 = vst [vmem:[#allocation162_spill] sm:$0xff] %v14929_v32  ;;  %v3372_v47 = vpop.permute.xlu0 %3371  ;;  %v3966_v50 = vsel %vm3784_vm1, %v19360_v30, %v3376_v46  ;;  %v3699_v27 = vrot.slane %v19363_v40, %v11987_v28  ;;  %v19366_v30 = vld [vmem:[#allocation170_spill] sm:$0xff] }
 0x5b9   : > { %19356 = vst [vmem:[#allocation165_spill] sm:$0xff] %v14926_v45  ;;  %19358 = vst [vmem:[#allocation166_spill] sm:$0xff] %v14932_v37  ;;  %v3965_v22 = vsel %vm3784_vm1, %v19362_v35, %v3372_v47  ;;  %v7170_v62 = vcombine.high %v3962_v56, %v3966_v50  ;;  %3694 = vbcast.lane.b32.xlu1 %v3688_v8, 264  ;;  %v7169_v2 = vcombine.low %v3962_v56, %v3966_v50  ;;  %v19364_v47 = vld [vmem:[#allocation169_spill] sm:$0xff]  ;;  %v19367_v46 = vld [vmem:[#allocation174_spill] sm:$0xff] }
 0x5ba   : > { %v6898_v5 = vcombine.high %v3961_v10, %v3965_v22  ;;  %3690 = vbcast.lane.b32.xlu0 %v3688_v8, 256  ;;  %v3964_v42 = vsel %vm3784_vm1, %v19364_v47, %v3365_v44  ;;  %v6897_v60 = vcombine.low %v3961_v10, %v3965_v22  ;;  %v19365_v8 = vld [vmem:[#allocation173_spill] sm:$0xff]  ;;  %v3963_v32 = vsel %vm3784_vm1, %v19366_v30, %v3361_v29 }
 0x5bb   : > { %v3387_v7 = vpop.permute.xlu1 %3386  ;;  %v3710_v44 = vrot.slane %v19363_v40, %v12006_v36  ;;  %v14981_v10 = vrot.slane %v7169_v2, %v11945_v25  ;;  %v14984_v22 = vrot.slane %v7170_v62, %v11945_v25 }
 0x5bc   : > { %v3383_v26 = vpop.permute.xlu0 %3382  ;;  %v3968_v51 = vsel %vm3784_vm1, %v19365_v8, %v3387_v7  ;;  %v3732_v8 = vrot.slane %v19363_v40, %v12067_v20  ;;  %v3743_v20 = vrot.slane %v19363_v40, %v12084_v41 }
 0x5bd   : > { %v3967_v50 = vsel %vm3784_vm1, %v19367_v46, %v3383_v26  ;;  %v7185_v56 = vcombine.low %v3964_v42, %v3968_v51  ;;  %v7186_v9 = vcombine.high %v3964_v42, %v3968_v51  ;;  %3705 = vbcast.lane.b32.xlu1 %v3699_v27, 264  ;;  %19368 = vst [vmem:[#allocation167_spill] sm:$0xff] %v14981_v10 }
 0x5be   : > { %v6913_v28 = vcombine.low %v3963_v32, %v3967_v50  ;;  %v6914_v12 = vcombine.high %v3963_v32, %v3967_v50  ;;  %3701 = vbcast.lane.b32.xlu0 %v3699_v27, 256  ;;  %v14993_v51 = vrot.slane %v6897_v60, %v11945_v25  ;;  %v14996_v32 = vrot.slane %v6898_v5, %v11945_v25  ;;  %v19370_v50 = vld [vmem:[#allocation175_spill] sm:$0xff] }
 0x5bf   : > { %v14987_v29 = vrot.slane %v7185_v56, %v11945_v25  ;;  %v14990_v26 = vrot.slane %v7186_v9, %v11945_v25  ;;  %v3398_v42 = vpop.permute.xlu1 %3397  ;;  %v3721_v46 = vrot.slane %v19363_v40, %v12025_v54  ;;  %v19371_v60 = vld [vmem:[#allocation179_spill] sm:$0xff] }
 0x5c0   : > { %v14999_v36 = vrot.slane %v6913_v28, %v11945_v25  ;;  %v15002_v7 = vrot.slane %v6914_v12, %v11945_v25  ;;  %v3394_v2 = vpop.permute.xlu0 %3393  ;;  %v3970_v56 = vsel %vm3784_vm1, %v19370_v50, %v3398_v42  ;;  %v19372_v12 = vld [vmem:[#allocation176_spill] sm:$0xff]  ;;  %v19374_v42 = vld [vmem:[#allocation177_spill] sm:$0xff] }
 0x5c1   : > { %19369 = vst [vmem:[#allocation171_spill] sm:$0xff] %v14987_v29  ;;  %3716 = vbcast.lane.b32.xlu1 %v3710_v44, 264  ;;  %v19373_v28 = vld [vmem:[#allocation180_spill] sm:$0xff] }
 0x5c2   : > { %v6962_v5 = vcombine.high %v14993_v51, %v14999_v36  ;;  %3712 = vbcast.lane.b32.xlu0 %v3710_v44, 256  ;;  %v3969_v44 = vsel %vm3784_vm1, %v19372_v12, %v3394_v2  ;;  %v6961_v41 = vcombine.low %v14993_v51, %v14999_v36 }
 0x5c3   : > { %v3409_v30 = vpop.permute.xlu1 %3408 }
 0x5c4   : > { %v3405_v27 = vpop.permute.xlu0 %3404  ;;  %v3972_v50 = vsel %vm3784_vm1, %v19374_v42, %v3409_v30 }
 0x5c5   : > { %3727 = vbcast.lane.b32.xlu1 %v3721_v46, 264 }
 0x5c6   : > { %3723 = vbcast.lane.b32.xlu0 %v3721_v46, 256 }
 0x5c7   : > { %v3420_v47 = vpop.permute.xlu1 %3419 }
 0x5c8   : > { %v3416_v35 = vpop.permute.xlu0 %3415  ;;  %v3974_v9 = vsel %vm3784_vm1, %v19371_v60, %v3420_v47  ;;  %v19375_v47 = vld [vmem:[#allocation181_spill] sm:$0xff] }
 0x5c9   : > { %v3973_v54 = vsel %vm3784_vm1, %v19373_v28, %v3416_v35  ;;  %v7202_v62 = vcombine.high %v3970_v56, %v3974_v9  ;;  %3738 = vbcast.lane.b32.xlu1 %v3732_v8, 264  ;;  %v7201_v37 = vcombine.low %v3970_v56, %v3974_v9  ;;  %v3754_v35 = vrot.slane %v19363_v40, %v12105_v57  ;;  %v19376_v28 = vld [vmem:[#allocation178_spill] sm:$0xff] }
 0x5ca   : > { %v6930_v46 = vcombine.high %v3969_v44, %v3973_v54  ;;  %3734 = vbcast.lane.b32.xlu0 %v3732_v8, 256  ;;  %v6929_v61 = vcombine.low %v3969_v44, %v3973_v54  ;;  %v3971_v12 = vsel %vm3784_vm1, %v19376_v28, %v3405_v27  ;;  %v19377_v8 = vld [vmem:[#allocation182_spill] sm:$0xff] }
 0x5cb   : > { %v3431_v45 = vpop.permute.xlu1 %3430  ;;  %v15045_v57 = vrot.slane %v7201_v37, %v11945_v25  ;;  %v7216_v27 = vrot.slane %v7202_v62, %v11945_v25 }
 0x5cc   : > { %v3427_v60 = vpop.permute.xlu0 %3426  ;;  %v3976_v2 = vsel %vm3784_vm1, %v19375_v47, %v3431_v45  ;;  %v3765_v45 = vrot.slane %v19363_v40, %v12120_v23  ;;  %v6944_v51 = vrot.slane %v6930_v46, %v11945_v25  ;;  %v15061_v46 = vrot.slane %v6961_v41, %v11964_v63 }
 0x5cd   : > { %v3975_v9 = vsel %vm3784_vm1, %v19377_v8, %v3427_v60  ;;  %v7217_v56 = vcombine.low %v3972_v50, %v3976_v2  ;;  %v7218_v15 = vcombine.high %v3972_v50, %v3976_v2  ;;  %3749 = vbcast.lane.b32.xlu1 %v3743_v20, 264  ;;  %19378 = vst [vmem:[#allocation168_spill] sm:$0xff] %v15045_v57 }
 0x5ce   : > { %v6945_v30 = vcombine.low %v3971_v12, %v3975_v9  ;;  %v6946_v44 = vcombine.high %v3971_v12, %v3975_v9  ;;  %3745 = vbcast.lane.b32.xlu0 %v3743_v20, 256  ;;  %v6937_v60 = vrot.slane %v6929_v61, %v11945_v25  ;;  %v3776_v2 = vrot.slane %v19363_v40, %v12137_v53 }
 0x5cf   : > { %v15049_v54 = vrot.slane %v7217_v56, %v11945_v25  ;;  %v7232_v42 = vrot.slane %v7218_v15, %v11945_v25  ;;  %v3442_v50 = vpop.permute.xlu1 %3441  ;;  %19380 = vst [vmem:[#allocation26_spill] sm:$0xff] %v15061_v46  ;;  %v15064_v8 = vrot.slane %v6962_v5, %v11964_v63  ;;  %v19381_v9 = vcombine.high %v14981_v10, %v14987_v29 }
 0x5d0   : > { %v6953_v36 = vrot.slane %v6945_v30, %v11945_v25  ;;  %v6960_v20 = vrot.slane %v6946_v44, %v11945_v25  ;;  %v3438_v23 = vpop.permute.xlu0 %3437 }
 0x5d1   : > { %19379 = vst [vmem:[#allocation172_spill] sm:$0xff] %v15049_v54  ;;  %v7266_v37 = vcombine.high %v15045_v57, %v15049_v54  ;;  %v7281_v47 = vcombine.low %v7216_v27, %v7232_v42  ;;  %v7282_v62 = vcombine.high %v7216_v27, %v7232_v42  ;;  %3760 = vbcast.lane.b32.xlu1 %v3754_v35, 264  ;;  %v19470_v54 = vld [vmem:[#allocation228_spill] sm:$0xff] }
 0x5d2   : > { %v6993_v15 = vcombine.low %v6937_v60, %v6953_v36  ;;  %v6994_v28 = vcombine.high %v6937_v60, %v6953_v36  ;;  %v7009_v12 = vcombine.low %v6944_v51, %v6960_v20  ;;  %v7010_v61 = vcombine.high %v6944_v51, %v6960_v20  ;;  %3756 = vbcast.lane.b32.xlu0 %v3754_v35, 256 }
 0x5d3   : > { %v15070_v56 = vrot.slane %v19381_v9, %v11964_v63  ;;  %v15073_v30 = vrot.slane %v7266_v37, %v11964_v63  ;;  %v3453_v53 = vpop.permute.xlu1 %3452  ;;  %v19386_v27 = vcombine.low %v14996_v32, %v15002_v7  ;;  %v19387_v60 = vcombine.high %v14996_v32, %v15002_v7 }
 0x5d4   : > { %v15076_v40 = vrot.slane %v6993_v15, %v11964_v63  ;;  %v15079_v35 = vrot.slane %v6994_v28, %v11964_v63  ;;  %v15082_v41 = vrot.slane %v7009_v12, %v11964_v63  ;;  %v15085_v5 = vrot.slane %v7010_v61, %v11964_v63  ;;  %v3449_v44 = vpop.permute.xlu0 %3448  ;;  %v19396_v61 = vld [vmem:[#allocation187_spill] sm:$0xff] }
 0x5d5   : > { %19382 = vst [vmem:[#allocation169_spill] sm:$0xff] %v15070_v56  ;;  %19383 = vst [vmem:[#allocation173_spill] sm:$0xff] %v15073_v30  ;;  %v15091_v42 = vrot.slane %v19386_v27, %v11964_v63  ;;  %v15097_v51 = vrot.slane %v19387_v60, %v11964_v63  ;;  %v19389_v36 = vcombine.low %v14984_v22, %v14990_v26  ;;  %3771 = vbcast.lane.b32.xlu1 %v3765_v45, 264  ;;  %v19395_v60 = vld [vmem:[#allocation183_spill] sm:$0xff]  ;;  %v19443_v30 = vld [vmem:[#allocation210_spill] sm:$0xff] }
 0x5d6   : > { %19384 = vst [vmem:[#allocation170_spill] sm:$0xff] %v15076_v40  ;;  %19385 = vst [vmem:[#allocation174_spill] sm:$0xff] %v15085_v5  ;;  %v15106_v37 = vrot.slane %v7281_v47, %v11964_v63  ;;  %v15109_v15 = vrot.slane %v7282_v62, %v11964_v63  ;;  %3767 = vbcast.lane.b32.xlu0 %v3765_v45, 256  ;;  %v19393_v9 = vcombine.high %v14984_v22, %v14990_v26  ;;  %v19397_v62 = vld [vmem:[#allocation184_spill] sm:$0xff] }
 0x5d7   : > { %19388 = vst [vmem:[#allocation175_spill] sm:$0xff] %v15097_v51  ;;  %v15103_v20 = vrot.slane %v19389_v36, %v11964_v63  ;;  %v3464_v12 = vpop.permute.xlu1 %3463  ;;  %v3978_v36 = vsel %vm3784_vm1, %v19395_v60, %v3442_v50  ;;  %v3977_v32 = vsel %vm3784_vm1, %v19397_v62, %v3438_v23  ;;  %v19398_v45 = vld [vmem:[#allocation188_spill] sm:$0xff]  ;;  %v4306_v23 = vcombine.high %v13256_v34, %v13271_v49  ;;  %v19400_v50 = vld [vmem:[#allocation189_spill] sm:$0xff]  ;;  %v19402_v49 = vld [vmem:[#allocation190_spill] sm:$0xff] }
 0x5d8   : > { %19391 = vst [vmem:[#allocation176_spill] sm:$0xff] %v15106_v37  ;;  %19392 = vst [vmem:[#allocation180_spill] sm:$0xff] %v15109_v15  ;;  %v15129_v27 = vrot.slane %v19393_v9, %v11964_v63  ;;  %v3460_v28 = vpop.permute.xlu0 %3459  ;;  %v3982_v7 = vsel %vm3784_vm1, %v19396_v61, %v3464_v12  ;;  %v5938_v62 = vcombine.high %v14344_v43, %v14359_v4  ;;  %v19508_v51 = vld [vmem:[#allocation240_spill] sm:$0xff]  ;;  %v19514_v4 = vld [vmem:[#allocation245_spill] sm:$0xff] }
 0x5d9   : > { %19390 = vst [vmem:[#allocation179_spill] sm:$0xff] %v15103_v20  ;;  %v3981_v10 = vsel %vm3784_vm1, %v19398_v45, %v3460_v28  ;;  %v7578_v29 = vcombine.high %v3978_v36, %v3982_v7  ;;  %3782 = vbcast.lane.b32.xlu1 %v3776_v2, 264  ;;  %v7577_v61 = vcombine.low %v3978_v36, %v3982_v7  ;;  %v19399_v45 = vld [vmem:[#allocation185_spill] sm:$0xff]  ;;  %v19401_v36 = vld [vmem:[#allocation186_spill] sm:$0xff] }
 0x5da   : > { %19394 = vst [vmem:[#allocation177_spill] sm:$0xff] %v15129_v27  ;;  %v7306_v26 = vcombine.high %v3977_v32, %v3981_v10  ;;  %3778 = vbcast.lane.b32.xlu0 %v3776_v2, 256  ;;  %v3980_v2 = vsel %vm3784_vm1, %v19399_v45, %v3453_v53  ;;  %v7305_v60 = vcombine.low %v3977_v32, %v3981_v10  ;;  %v19406_v45 = vld [vmem:[#allocation195_spill] sm:$0xff]  ;;  %v19407_v27 = vld [vmem:[#allocation192_spill] sm:$0xff] }
 0x5db   : > { %v3475_v9 = vpop.permute.xlu1 %3474  ;;  %v4170_v7 = vcombine.high %v13076_v59, %v13091_v39  ;;  %v3979_v12 = vsel %vm3784_vm1, %v19401_v36, %v3449_v44  ;;  %v4714_v32 = vcombine.high %v13436_v19, %v13451_v3  ;;  %v15170_v44 = vrot.slane %v7577_v61, %v11945_v25  ;;  %v19440_v3 = vld [vmem:[#allocation212_spill] sm:$0xff] }
 0x5dc   : > { %v3471_v22 = vpop.permute.xlu0 %3470  ;;  %v3984_v47 = vsel %vm3784_vm1, %v19400_v50, %v3475_v9  ;;  %v4850_v50 = vcombine.high %v13620_v38, %v13635_v33  ;;  %v15182_v9 = vrot.slane %v7305_v60, %v11945_v25  ;;  %v5394_v36 = vcombine.high %v13984_v21, %v13999_v18 }
 0x5dd   : > { %v3983_v28 = vsel %vm3784_vm1, %v19402_v49, %v3471_v22  ;;  %v7593_v34 = vcombine.low %v3980_v2, %v3984_v47  ;;  %v7594_v37 = vcombine.high %v3980_v2, %v3984_v47  ;;  %8411 = vrot.lane.b32.xlu1 %v4306_v23, %s11675_s29  ;;  %19403 = vst [vmem:[#allocation181_spill] sm:$0xff] %v15170_v44  ;;  %v19405_v2 = vld [vmem:[#allocation191_spill] sm:$0xff] }
 0x5de   : > { %v7321_v53 = vcombine.low %v3979_v12, %v3983_v28  ;;  %v7322_v10 = vcombine.high %v3979_v12, %v3983_v28  ;;  %8409 = vrot.lane.b32.xlu0 %v4170_v7, %s11675_s29  ;;  %v15173_v49 = vrot.slane %v7578_v29, %v11945_v25  ;;  %v15185_v23 = vrot.slane %v7306_v26, %v11945_v25 }
 0x5df   : > { %v15176_v47 = vrot.slane %v7593_v34, %v11945_v25  ;;  %v15179_v22 = vrot.slane %v7594_v37, %v11945_v25  ;;  %v3486_v12 = vpop.permute.xlu1 %3485  ;;  %v5802_v15 = vcombine.high %v14164_v13, %v14179_v24 }
 0x5e0   : > { %v15188_v28 = vrot.slane %v7321_v53, %v11945_v25  ;;  %v15191_v61 = vrot.slane %v7322_v10, %v11945_v25  ;;  %v3482_v29 = vpop.permute.xlu0 %3481  ;;  %v5258_v10 = vcombine.high %v13804_v0, %v13819_v6  ;;  %v3986_v60 = vsel %vm3784_vm1, %v19405_v2, %v3486_v12 }
 0x5e1   : > { %19404 = vst [vmem:[#allocation178_spill] sm:$0xff] %v15176_v47  ;;  %v7642_v34 = vcombine.high %v15170_v44, %v15176_v47  ;;  %v7657_v37 = vcombine.low %v15173_v49, %v15179_v22  ;;  %8415 = vrot.lane.b32.xlu1 %v4850_v50, %s11675_s29  ;;  %v3985_v33 = vsel %vm3784_vm1, %v19407_v27, %v3482_v29  ;;  %v19409_v29 = vld [vmem:[#allocation193_spill] sm:$0xff] }
 0x5e2   : > { %8413 = vrot.lane.b32.xlu0 %v4714_v32, %s11675_s29  ;;  %v6890_v27 = vcombine.high %v14884_v52, %v14899_v55 }
 0x5e3   : > { %v3497_v7 = vpop.permute.xlu1 %3496 }
 0x5e4   : > { %v3493_v53 = vpop.permute.xlu0 %3492 }
 0x5e5   : > { %8419 = vrot.lane.b32.xlu1 %v5394_v36, %s11675_s29  ;;  %v19408_v36 = vld [vmem:[#allocation196_spill] sm:$0xff] }
 0x5e6   : > { %8417 = vrot.lane.b32.xlu0 %v5258_v10, %s11675_s29 }
 0x5e7   : > { %v3508_v50 = vpop.permute.xlu1 %3507 }
 0x5e8   : > { %v3504_v32 = vpop.permute.xlu0 %3503  ;;  %v3990_v26 = vsel %vm3784_vm1, %v19406_v45, %v3508_v50  ;;  %v6346_v45 = vcombine.high %v14524_v16, %v14539_v58  ;;  %v6482_v50 = vcombine.high %v14704_v11, %v14719_v31  ;;  %v19412_v58 = vld [vmem:[#allocation198_spill] sm:$0xff] }
 0x5e9   : > { %v3989_v10 = vsel %vm3784_vm1, %v19408_v36, %v3504_v32  ;;  %v7610_v38 = vcombine.high %v3986_v60, %v3990_v26  ;;  %8423 = vrot.lane.b32.xlu1 %v5938_v62, %s11675_s29  ;;  %v7609_v12 = vcombine.low %v3986_v60, %v3990_v26  ;;  %v3988_v32 = vsel %vm3784_vm1, %v19409_v29, %v3497_v7  ;;  %v19410_v62 = vld [vmem:[#allocation197_spill] sm:$0xff]  ;;  %v19411_v26 = vld [vmem:[#allocation194_spill] sm:$0xff] }
 0x5ea   : > { %v7338_v20 = vcombine.high %v3985_v33, %v3989_v10  ;;  %8421 = vrot.lane.b32.xlu0 %v5802_v15, %s11675_s29  ;;  %v7337_v36 = vcombine.low %v3985_v33, %v3989_v10  ;;  %v7026_v15 = vcombine.high %v15061_v46, %v15076_v40  ;;  %v3987_v60 = vsel %vm3784_vm1, %v19411_v26, %v3493_v53  ;;  %v19430_v40 = vld [vmem:[#allocation204_spill] sm:$0xff] }
 0x5eb   : > { %v3519_v2 = vpop.permute.xlu1 %3518  ;;  %v7369_v33 = vcombine.low %v15182_v9, %v15188_v28  ;;  %v15247_v7 = vrot.slane %v7642_v34, %v11964_v63  ;;  %v15251_v29 = vrot.slane %v7609_v12, %v11945_v25  ;;  %v7624_v53 = vrot.slane %v7610_v38, %v11945_v25 }
 0x5ec   : > { %v3515_v24 = vpop.permute.xlu0 %3514  ;;  %v3992_v13 = vsel %vm3784_vm1, %v19410_v62, %v3519_v2  ;;  %v7352_v34 = vrot.slane %v7338_v20, %v11945_v25  ;;  %v15263_v12 = vrot.slane %v7657_v37, %v11964_v63  ;;  %v19418_v37 = vcombine.high %v15182_v9, %v15188_v28 }
 0x5ed   : > { %v3991_v31 = vsel %vm3784_vm1, %v19412_v58, %v3515_v24  ;;  %v7625_v11 = vcombine.low %v3988_v32, %v3992_v13  ;;  %v7626_v16 = vcombine.high %v3988_v32, %v3992_v13  ;;  %8427 = vrot.lane.b32.xlu1 %v6482_v50, %s11675_s29  ;;  %19413 = vst [vmem:[#allocation182_spill] sm:$0xff] %v15247_v7  ;;  %19414 = vst [vmem:[#allocation183_spill] sm:$0xff] %v15251_v29 }
 0x5ee   : > { %v7353_v10 = vcombine.low %v3987_v60, %v3991_v31  ;;  %v7354_v2 = vcombine.high %v3987_v60, %v3991_v31  ;;  %8425 = vrot.lane.b32.xlu0 %v6346_v45, %s11675_s29  ;;  %v7345_v50 = vrot.slane %v7337_v36, %v11945_v25  ;;  %19416 = vst [vmem:[#allocation184_spill] sm:$0xff] %v15263_v12 }
 0x5ef   : > { %v15255_v24 = vrot.slane %v7625_v11, %v11945_v25  ;;  %v7640_v13 = vrot.slane %v7626_v16, %v11945_v25  ;;  %v3530_v58 = vpop.permute.xlu1 %3529  ;;  %v15270_v20 = vrot.slane %v7369_v33, %v11964_v63 }
 0x5f0   : > { %v7361_v32 = vrot.slane %v7353_v10, %v11945_v25  ;;  %v7368_v31 = vrot.slane %v7354_v2, %v11945_v25  ;;  %v3526_v45 = vpop.permute.xlu0 %3525  ;;  %v15276_v10 = vrot.slane %v19418_v37, %v11964_v63  ;;  %v19419_v2 = vcombine.high %v15173_v49, %v15179_v22 }
 0x5f1   : > { %19415 = vst [vmem:[#allocation187_spill] sm:$0xff] %v15255_v24  ;;  %v7674_v38 = vcombine.high %v15251_v29, %v15255_v24  ;;  %v7689_v11 = vcombine.low %v7624_v53, %v7640_v13  ;;  %v7690_v62 = vcombine.high %v7624_v53, %v7640_v13  ;;  %8431 = vrot.lane.b32.xlu1 %v7026_v15, %s11675_s29  ;;  %19417 = vst [vmem:[#allocation188_spill] sm:$0xff] %v15270_v20 }
 0x5f2   : > { %v7401_v16 = vcombine.low %v7345_v50, %v7361_v32  ;;  %v7402_v26 = vcombine.high %v7345_v50, %v7361_v32  ;;  %v7417_v36 = vcombine.low %v7352_v34, %v7368_v31  ;;  %v7418_v60 = vcombine.high %v7352_v34, %v7368_v31  ;;  %8429 = vrot.lane.b32.xlu0 %v6890_v27, %s11675_s29 }
 0x5f3   : > { %v15282_v15 = vrot.slane %v19419_v2, %v11964_v63  ;;  %v15285_v53 = vrot.slane %v7674_v38, %v11964_v63  ;;  %v3541_v13 = vpop.permute.xlu1 %3540  ;;  %v19423_v49 = vcombine.low %v15185_v23, %v15191_v61  ;;  %v19424_v34 = vcombine.high %v15185_v23, %v15191_v61  ;;  %v19427_v2 = vld [vmem:[#allocation199_spill] sm:$0xff] }
 0x5f4   : > { %v15288_v27 = vrot.slane %v7401_v16, %v11964_v63  ;;  %v15291_v33 = vrot.slane %v7402_v26, %v11964_v63  ;;  %v15294_v9 = vrot.slane %v7417_v36, %v11964_v63  ;;  %v15297_v28 = vrot.slane %v7418_v60, %v11964_v63  ;;  %v3537_v50 = vpop.permute.xlu0 %3536  ;;  %v19428_v36 = vld [vmem:[#allocation203_spill] sm:$0xff]  ;;  %v19429_v26 = vld [vmem:[#allocation200_spill] sm:$0xff] }
 0x5f5   : > { %19420 = vst [vmem:[#allocation185_spill] sm:$0xff] %v15282_v15  ;;  %19421 = vst [vmem:[#allocation189_spill] sm:$0xff] %v15285_v53  ;;  %v15303_v22 = vrot.slane %v19423_v49, %v11964_v63  ;;  %v15309_v32 = vrot.slane %v19424_v34, %v11964_v63  ;;  %v15312_v31 = vrot.slane %v7689_v11, %v11964_v63  ;;  %v19439_v15 = vld [vmem:[#allocation208_spill] sm:$0xff] }
 0x5f6   : > { %19422 = vst [vmem:[#allocation186_spill] sm:$0xff] %v15288_v27  ;;  %v15315_v38 = vrot.slane %v7690_v62, %v11964_v63  ;;  %v7434_v16 = vcombine.high %v15270_v20, %v15288_v27  ;;  %v3994_v49 = vsel %vm3784_vm1, %v19427_v2, %v3530_v58  ;;  %v3993_v60 = vsel %vm3784_vm1, %v19429_v26, %v3526_v45  ;;  %v19431_v45 = vld [vmem:[#allocation201_spill] sm:$0xff]  ;;  %v19433_v20 = vld [vmem:[#allocation202_spill] sm:$0xff]  ;;  %v19460_v53 = vld [vmem:[#allocation220_spill] sm:$0xff] }
 0x5f7   : > { %19425 = vst [vmem:[#allocation190_spill] sm:$0xff] %v15312_v31  ;;  %v3552_v61 = vpop.permute.xlu1 %3551  ;;  %v3996_v26 = vsel %vm3784_vm1, %v19431_v45, %v3541_v13  ;;  %v19432_v27 = vld [vmem:[#allocation205_spill] sm:$0xff]  ;;  %v3995_v55 = vsel %vm3784_vm1, %v19433_v20, %v3537_v50 }
 0x5f8   : > { %19426 = vst [vmem:[#allocation191_spill] sm:$0xff] %v15315_v38  ;;  %8433 = vrot.lane.b32.xlu0 %v7434_v16, %s11675_s29  ;;  %v3548_v34 = vpop.permute.xlu0 %3547  ;;  %v3998_v23 = vsel %vm3784_vm1, %v19428_v36, %v3552_v61  ;;  %v19434_v36 = vld [vmem:[#allocation206_spill] sm:$0xff]  ;;  %v19438_v38 = vld [vmem:[#allocation211_spill] sm:$0xff] }
 0x5f9   : > { %v3997_v37 = vsel %vm3784_vm1, %v19430_v40, %v3548_v34  ;;  %v7714_v46 = vcombine.high %v3994_v49, %v3998_v23  ;;  %v7713_v2 = vcombine.low %v3994_v49, %v3998_v23 }
 0x5fa   : > { %v7442_v16 = vcombine.high %v3993_v60, %v3997_v37  ;;  %v7441_v40 = vcombine.low %v3993_v60, %v3997_v37 }
 0x5fb   : > { %v3563_v11 = vpop.permute.xlu1 %3562  ;;  %v15363_v62 = vrot.slane %v7713_v2, %v11945_v25  ;;  %v7728_v13 = vrot.slane %v7714_v46, %v11945_v25 }
 0x5fc   : > { %v3559_v34 = vpop.permute.xlu0 %3558  ;;  %v4000_v58 = vsel %vm3784_vm1, %v19432_v27, %v3563_v11  ;;  %v7449_v20 = vrot.slane %v7441_v40, %v11945_v25  ;;  %v15372_v50 = vrot.slane %v7442_v16, %v11945_v25  ;;  %v19437_v16 = vld [vmem:[#allocation207_spill] sm:$0xff] }
 0x5fd   : > { %v3999_v52 = vsel %vm3784_vm1, %v19434_v36, %v3559_v34  ;;  %v7729_v61 = vcombine.low %v3996_v26, %v4000_v58  ;;  %v7730_v23 = vcombine.high %v3996_v26, %v4000_v58  ;;  %19435 = vst [vmem:[#allocation195_spill] sm:$0xff] %v15363_v62 }
 0x5fe   : > { %v7457_v49 = vcombine.low %v3995_v55, %v3999_v52  ;;  %v7458_v6 = vcombine.high %v3995_v55, %v3999_v52 }
 0x5ff   : > { %v15367_v60 = vrot.slane %v7729_v61, %v11945_v25  ;;  %v7744_v27 = vrot.slane %v7730_v23, %v11945_v25  ;;  %v3574_v11 = vpop.permute.xlu1 %3573 }
 0x600   : > { %v7465_v37 = vrot.slane %v7457_v49, %v11945_v25  ;;  %v7472_v52 = vrot.slane %v7458_v6, %v11945_v25  ;;  %v3570_v55 = vpop.permute.xlu0 %3569  ;;  %v4002_v23 = vsel %vm3784_vm1, %v19437_v16, %v3574_v11  ;;  %v19442_v11 = vld [vmem:[#allocation213_spill] sm:$0xff] }
 0x601   : > { %19436 = vst [vmem:[#allocation192_spill] sm:$0xff] %v15367_v60  ;;  %v7778_v58 = vcombine.high %v15363_v62, %v15367_v60  ;;  %v7793_v46 = vcombine.low %v7728_v13, %v7744_v27  ;;  %v7794_v36 = vcombine.high %v7728_v13, %v7744_v27  ;;  %v4001_v0 = vsel %vm3784_vm1, %v19439_v15, %v3570_v55  ;;  %v19464_v62 = vld [vmem:[#allocation222_spill] sm:$0xff]  ;;  %v19468_v60 = vld [vmem:[#allocation227_spill] sm:$0xff] }
 0x602   : > { %v7506_v61 = vcombine.high %v7449_v20, %v7465_v37  ;;  %v7521_v2 = vcombine.low %v15372_v50, %v7472_v52  ;;  %v7522_v45 = vcombine.high %v15372_v50, %v7472_v52  ;;  %v19441_v52 = vld [vmem:[#allocation209_spill] sm:$0xff] }
 0x603   : > { %v3585_v26 = vpop.permute.xlu1 %3584 }
 0x604   : > { %v3581_v40 = vpop.permute.xlu0 %3580  ;;  %v4004_v59 = vsel %vm3784_vm1, %v19441_v52, %v3585_v26 }
 0x607   : > { %v3596_v34 = vpop.permute.xlu1 %3595 }
 0x608   : > { %v3592_v49 = vpop.permute.xlu0 %3591  ;;  %v4006_v6 = vsel %vm3784_vm1, %v19438_v38, %v3596_v34  ;;  %v4003_v38 = vsel %vm3784_vm1, %v19443_v30, %v3581_v40  ;;  %v19444_v34 = vld [vmem:[#allocation214_spill] sm:$0xff] }
 0x609   : > { %v4005_v13 = vsel %vm3784_vm1, %v19440_v3, %v3592_v49  ;;  %v7746_v27 = vcombine.high %v4002_v23, %v4006_v6  ;;  %v7745_v39 = vcombine.low %v4002_v23, %v4006_v6  ;;  %v7505_v49 = vcombine.low %v7449_v20, %v7465_v37 }
 0x60a   : > { %v7474_v19 = vcombine.high %v4001_v0, %v4005_v13  ;;  %v7473_v31 = vcombine.low %v4001_v0, %v4005_v13  ;;  %v15397_v23 = vrot.slane %v7778_v58, %v11964_v63 }
 0x60b   : > { %v3607_v50 = vpop.permute.xlu1 %3606  ;;  %v15400_v0 = vrot.slane %v7745_v39, %v11945_v25  ;;  %v7760_v26 = vrot.slane %v7746_v27, %v11945_v25  ;;  %v15412_v39 = vrot.slane %v7793_v46, %v11964_v63 }
 0x60c   : > { %v3603_v12 = vpop.permute.xlu0 %3602  ;;  %v4008_v16 = vsel %vm3784_vm1, %v19442_v11, %v3607_v50  ;;  %19445 = vst [vmem:[#allocation196_spill] sm:$0xff] %v15397_v23 }
 0x60d   : > { %v4007_v15 = vsel %vm3784_vm1, %v19444_v34, %v3603_v12  ;;  %v7761_v55 = vcombine.low %v4004_v59, %v4008_v16  ;;  %v7762_v3 = vcombine.high %v4004_v59, %v4008_v16  ;;  %19446 = vst [vmem:[#allocation193_spill] sm:$0xff] %v15400_v0  ;;  %v7481_v12 = vrot.slane %v7473_v31, %v11945_v25 }
 0x60e   : > { %v7489_v6 = vcombine.low %v4003_v38, %v4007_v15  ;;  %v7490_v56 = vcombine.high %v4003_v38, %v4007_v15  ;;  %v7488_v59 = vrot.slane %v7474_v19, %v11945_v25  ;;  %19448 = vst [vmem:[#allocation194_spill] sm:$0xff] %v15412_v39  ;;  %v15417_v31 = vrot.slane %v7505_v49, %v11964_v63 }
 0x60f   : > { %v15404_v13 = vrot.slane %v7761_v55, %v11945_v25  ;;  %v7776_v30 = vrot.slane %v7762_v3, %v11945_v25  ;;  %v3618_v40 = vpop.permute.xlu1 %3617  ;;  %v15420_v19 = vrot.slane %v7506_v61, %v11964_v63 }
 0x610   : > { %v7497_v20 = vrot.slane %v7489_v6, %v11945_v25  ;;  %v7504_v37 = vrot.slane %v7490_v56, %v11945_v25  ;;  %v3614_v58 = vpop.permute.xlu0 %3613  ;;  %19449 = vst [vmem:[#allocation198_spill] sm:$0xff] %v15417_v31  ;;  %v15423_v56 = vrot.slane %v7794_v36, %v11964_v63  ;;  %v15441_v36 = vrot.slane %v7521_v2, %v11964_v63 }
 0x611   : > { %19447 = vst [vmem:[#allocation197_spill] sm:$0xff] %v15404_v13  ;;  %v7810_v27 = vcombine.high %v15400_v0, %v15404_v13  ;;  %v7825_v50 = vcombine.low %v7760_v26, %v7776_v30  ;;  %v7826_v52 = vcombine.high %v7760_v26, %v7776_v30  ;;  %v15444_v26 = vrot.slane %v7522_v45, %v11964_v63  ;;  %v19469_v13 = vld [vmem:[#allocation224_spill] sm:$0xff] }
 0x612   : > { %v7537_v11 = vcombine.low %v7481_v12, %v7497_v20  ;;  %v7538_v16 = vcombine.high %v7481_v12, %v7497_v20  ;;  %v7553_v38 = vcombine.low %v7488_v59, %v7504_v37  ;;  %v7554_v34 = vcombine.high %v7488_v59, %v7504_v37  ;;  %19450 = vst [vmem:[#allocation199_spill] sm:$0xff] %v15423_v56  ;;  %v19458_v37 = vld [vmem:[#allocation219_spill] sm:$0xff]  ;;  %v19459_v20 = vld [vmem:[#allocation216_spill] sm:$0xff] }
 0x613   : > { %v15426_v46 = vrot.slane %v7810_v27, %v11964_v63  ;;  %v3629_v15 = vpop.permute.xlu1 %3628  ;;  %19454 = vst [vmem:[#allocation201_spill] sm:$0xff] %v15444_v26  ;;  %v15447_v30 = vrot.slane %v7825_v50, %v11964_v63  ;;  %v15450_v12 = vrot.slane %v7826_v52, %v11964_v63  ;;  %v4009_v52 = vsel %vm3784_vm1, %v19459_v20, %v3614_v58  ;;  %v19461_v58 = vld [vmem:[#allocation217_spill] sm:$0xff] }
 0x614   : > { %v15429_v55 = vrot.slane %v7537_v11, %v11964_v63  ;;  %v15432_v3 = vrot.slane %v7538_v16, %v11964_v63  ;;  %v15435_v6 = vrot.slane %v7553_v38, %v11964_v63  ;;  %v15438_v49 = vrot.slane %v7554_v34, %v11964_v63  ;;  %v3625_v61 = vpop.permute.xlu0 %3624  ;;  %v19457_v16 = vld [vmem:[#allocation215_spill] sm:$0xff] }
 0x615   : > { %19451 = vst [vmem:[#allocation203_spill] sm:$0xff] %v15426_v46  ;;  %19455 = vst [vmem:[#allocation205_spill] sm:$0xff] %v15447_v30  ;;  %v4010_v38 = vsel %vm3784_vm1, %v19457_v16, %v3618_v40  ;;  %v4012_v20 = vsel %vm3784_vm1, %v19461_v58, %v3629_v15  ;;  %v19463_v40 = vld [vmem:[#allocation218_spill] sm:$0xff] }
 0x616   : > { %19452 = vst [vmem:[#allocation200_spill] sm:$0xff] %v15429_v55  ;;  %19453 = vst [vmem:[#allocation204_spill] sm:$0xff] %v15438_v49  ;;  %v7570_v59 = vcombine.high %v15417_v31, %v15429_v55  ;;  %v4011_v23 = vsel %vm3784_vm1, %v19463_v40, %v3625_v61  ;;  %v19505_v49 = vld [vmem:[#allocation71_spill] sm:$0xff] }
 0x617   : > { %19456 = vst [vmem:[#allocation202_spill] sm:$0xff] %v15450_v12  ;;  %v3640_v45 = vpop.permute.xlu1 %3639 }
 0x618   : > { %v3636_v34 = vpop.permute.xlu0 %3635  ;;  %8435 = vrot.lane.b32.xlu1 %v7570_v59, %s11675_s29  ;;  %v4014_v2 = vsel %vm3784_vm1, %v19458_v37, %v3640_v45 }
 0x619   : > { %v4013_v11 = vsel %vm3784_vm1, %v19460_v53, %v3636_v34  ;;  %v8122_v7 = vcombine.high %v4010_v38, %v4014_v2  ;;  %v8121_v16 = vcombine.low %v4010_v38, %v4014_v2  ;;  %v19462_v34 = vld [vmem:[#allocation221_spill] sm:$0xff] }
 0x61a   : > { %v7850_v59 = vcombine.high %v4009_v52, %v4013_v11  ;;  %v7849_v56 = vcombine.low %v4009_v52, %v4013_v11 }
 0x61b   : > { %v3651_v27 = vpop.permute.xlu1 %3650  ;;  %v15498_v38 = vrot.slane %v8121_v16, %v11945_v25  ;;  %v15501_v50 = vrot.slane %v8122_v7, %v11945_v25 }
 0x61c   : > { %v3647_v53 = vpop.permute.xlu0 %3646  ;;  %v4016_v46 = vsel %vm3784_vm1, %v19462_v34, %v3651_v27  ;;  %v7864_v61 = vrot.slane %v7850_v59, %v11945_v25  ;;  %v19467_v59 = vld [vmem:[#allocation223_spill] sm:$0xff]  ;;  %v15529_v11 = vrot.slane %v7849_v56, %v11945_v25 }
 0x61d   : > { %v4015_v37 = vsel %vm3784_vm1, %v19464_v62, %v3647_v53  ;;  %v8137_v30 = vcombine.low %v4012_v20, %v4016_v46  ;;  %v8138_v45 = vcombine.high %v4012_v20, %v4016_v46  ;;  %19465 = vst [vmem:[#allocation206_spill] sm:$0xff] %v15498_v38 }
 0x61e   : > { %v7866_v2 = vcombine.high %v4011_v23, %v4015_v37  ;;  %v7865_v34 = vcombine.low %v4011_v23, %v4015_v37 }
 0x61f   : > { %v15504_v15 = vrot.slane %v8137_v30, %v11945_v25  ;;  %v15507_v27 = vrot.slane %v8138_v45, %v11945_v25  ;;  %v3662_v58 = vpop.permute.xlu1 %3661 }
 0x620   : > { %v7880_v62 = vrot.slane %v7866_v2, %v11945_v25  ;;  %v3658_v40 = vpop.permute.xlu0 %3657  ;;  %v4018_v2 = vsel %vm3784_vm1, %v19467_v59, %v3662_v58  ;;  %v19471_v58 = vld [vmem:[#allocation225_spill] sm:$0xff] }
 0x621   : > { %19466 = vst [vmem:[#allocation207_spill] sm:$0xff] %v15504_v15  ;;  %v8186_v46 = vcombine.high %v15498_v38, %v15504_v15  ;;  %v8201_v16 = vcombine.low %v15501_v50, %v15507_v27  ;;  %v8202_v7 = vcombine.high %v15501_v50, %v15507_v27  ;;  %v4017_v57 = vsel %vm3784_vm1, %v19469_v13, %v3658_v40  ;;  %v19472_v59 = vld [vmem:[#allocation229_spill] sm:$0xff]  ;;  %v19473_v40 = vld [vmem:[#allocation226_spill] sm:$0xff] }
 0x622   : > { %v7929_v30 = vcombine.low %v7864_v61, %v7880_v62  ;;  %v7930_v20 = vcombine.high %v7864_v61, %v7880_v62  ;;  %v15526_v61 = vrot.slane %v7865_v34, %v11945_v25 }
 0x623   : > { %v3673_v53 = vpop.permute.xlu1 %3672 }
 0x624   : > { %v3669_v45 = vpop.permute.xlu0 %3668  ;;  %v4020_v62 = vsel %vm3784_vm1, %v19471_v58, %v3673_v53  ;;  %v7913_v56 = vcombine.low %v15529_v11, %v15526_v61 }
 0x627   : > { %v3684_v12 = vpop.permute.xlu1 %3683 }
 0x628   : > { %v3680_v39 = vpop.permute.xlu0 %3679  ;;  %v4022_v0 = vsel %vm3784_vm1, %v19468_v60, %v3684_v12 }
 0x629   : > { %v4021_v50 = vsel %vm3784_vm1, %v19470_v54, %v3680_v39  ;;  %v8154_v27 = vcombine.high %v4018_v2, %v4022_v0  ;;  %v8153_v37 = vcombine.low %v4018_v2, %v4022_v0  ;;  %v4019_v54 = vsel %vm3784_vm1, %v19473_v40, %v3669_v45  ;;  %v19474_v39 = vld [vmem:[#allocation230_spill] sm:$0xff] }
 0x62a   : > { %v7882_v23 = vcombine.high %v4017_v57, %v4021_v50  ;;  %v7881_v60 = vcombine.low %v4017_v57, %v4021_v50 }
 0x62b   : > { %v3695_v52 = vpop.permute.xlu1 %3694  ;;  %v15542_v53 = vrot.slane %v8153_v37, %v11945_v25  ;;  %v8168_v57 = vrot.slane %v8154_v27, %v11945_v25 }
 0x62c   : > { %v3691_v12 = vpop.permute.xlu0 %3690  ;;  %v4024_v13 = vsel %vm3784_vm1, %v19472_v59, %v3695_v52  ;;  %v15550_v58 = vrot.slane %v7881_v60, %v11945_v25  ;;  %v15562_v60 = vrot.slane %v7913_v56, %v11964_v63  ;;  %v15580_v56 = vrot.slane %v7930_v20, %v11964_v63  ;;  %v19487_v20 = vld [vmem:[#allocation235_spill] sm:$0xff] }
 0x62d   : > { %v4023_v34 = vsel %vm3784_vm1, %v19474_v39, %v3691_v12  ;;  %v8169_v38 = vcombine.low %v4020_v62, %v4024_v13  ;;  %v8170_v0 = vcombine.high %v4020_v62, %v4024_v13  ;;  %19475 = vst [vmem:[#allocation211_spill] sm:$0xff] %v15542_v53  ;;  %v7896_v62 = vrot.slane %v7882_v23, %v11945_v25 }
 0x62e   : > { %v7897_v2 = vcombine.low %v4019_v54, %v4023_v34  ;;  %v7898_v15 = vcombine.high %v4019_v54, %v4023_v34  ;;  %19477 = vst [vmem:[#allocation212_spill] sm:$0xff] %v15562_v60  ;;  %v15565_v23 = vrot.slane %v7929_v30, %v11964_v63  ;;  %v15583_v30 = vrot.slane %v8186_v46, %v11964_v63 }
 0x62f   : > { %v15546_v50 = vrot.slane %v8169_v38, %v11945_v25  ;;  %v8184_v45 = vrot.slane %v8170_v0, %v11945_v25  ;;  %v3706_v52 = vpop.permute.xlu1 %3705 }
 0x630   : > { %v15554_v12 = vrot.slane %v7897_v2, %v11945_v25  ;;  %v7912_v59 = vrot.slane %v7898_v15, %v11945_v25  ;;  %v3702_v37 = vpop.permute.xlu0 %3701  ;;  %19481 = vst [vmem:[#allocation214_spill] sm:$0xff] %v15583_v30 }
 0x631   : > { %19476 = vst [vmem:[#allocation208_spill] sm:$0xff] %v15546_v50  ;;  %v8218_v27 = vcombine.high %v15542_v53, %v15546_v50  ;;  %v8233_v13 = vcombine.low %v8168_v57, %v8184_v45  ;;  %v8234_v38 = vcombine.high %v8168_v57, %v8184_v45 }
 0x632   : > { %v7945_v40 = vcombine.low %v15550_v58, %v15554_v12  ;;  %v7961_v54 = vcombine.low %v7896_v62, %v7912_v59  ;;  %v7962_v39 = vcombine.high %v7896_v62, %v7912_v59  ;;  %v15586_v62 = vrot.slane %v8201_v16, %v11964_v63 }
 0x633   : > { %v3717_v34 = vpop.permute.xlu1 %3716  ;;  %v15577_v57 = vrot.slane %v8218_v27, %v11964_v63  ;;  %v15589_v59 = vrot.slane %v8233_v13, %v11964_v63 }
 0x634   : > { %v15568_v15 = vrot.slane %v7945_v40, %v11964_v63  ;;  %v15571_v0 = vrot.slane %v7961_v54, %v11964_v63  ;;  %v15574_v2 = vrot.slane %v7962_v39, %v11964_v63  ;;  %v3713_v45 = vpop.permute.xlu0 %3712  ;;  %19482 = vst [vmem:[#allocation215_spill] sm:$0xff] %v15586_v62  ;;  %v15592_v40 = vrot.slane %v8202_v7, %v11964_v63  ;;  %v19486_v39 = vld [vmem:[#allocation231_spill] sm:$0xff]  ;;  %v19500_v62 = vld [vmem:[#allocation46_spill] sm:$0xff] }
 0x635   : > { %19480 = vst [vmem:[#allocation210_spill] sm:$0xff] %v15577_v57  ;;  %19483 = vst [vmem:[#allocation219_spill] sm:$0xff] %v15589_v59  ;;  %v15595_v54 = vrot.slane %v8234_v38, %v11964_v63  ;;  %v4026_v53 = vsel %vm3784_vm1, %v19486_v39, %v3706_v52  ;;  %v19492_v52 = vld [vmem:[#allocation237_spill] sm:$0xff]  ;;  %v19493_v59 = vld [vmem:[#allocation234_spill] sm:$0xff] }
 0x636   : > { %19478 = vst [vmem:[#allocation209_spill] sm:$0xff] %v15568_v15  ;;  %19479 = vst [vmem:[#allocation213_spill] sm:$0xff] %v15574_v2  ;;  %v7978_v27 = vcombine.high %v15562_v60, %v15568_v15  ;;  %v19488_v15 = vld [vmem:[#allocation232_spill] sm:$0xff]  ;;  %v19515_v2 = vld [vmem:[#allocation242_spill] sm:$0xff] }
 0x637   : > { %19484 = vst [vmem:[#allocation216_spill] sm:$0xff] %v15592_v40  ;;  %19485 = vst [vmem:[#allocation220_spill] sm:$0xff] %v15595_v54  ;;  %v3728_v46 = vpop.permute.xlu1 %3727  ;;  %v4025_v7 = vsel %vm3784_vm1, %v19488_v15, %v3702_v37  ;;  %v19489_v60 = vld [vmem:[#allocation236_spill] sm:$0xff]  ;;  %v19490_v37 = vld [vmem:[#allocation233_spill] sm:$0xff] }
 0x638   : > { %8437 = vrot.lane.b32.xlu0 %v7978_v27, %s11675_s29  ;;  %v3724_v50 = vpop.permute.xlu0 %3723  ;;  %v4030_v44 = vsel %vm3784_vm1, %v19487_v20, %v3728_v46  ;;  %v4028_v15 = vsel %vm3784_vm1, %v19490_v37, %v3717_v34 }
 0x639   : > { %v4029_v38 = vsel %vm3784_vm1, %v19489_v60, %v3724_v50  ;;  %v8258_v47 = vcombine.high %v4026_v53, %v4030_v44  ;;  %v8257_v39 = vcombine.low %v4026_v53, %v4030_v44  ;;  %v19491_v50 = vcombine.low %v13079_v14, %v13094_v48  ;;  %v19494_v53 = vld [vmem:[#allocation238_spill] sm:$0xff] }
 0x63a   : > { %v7986_v27 = vcombine.high %v4025_v7, %v4029_v38  ;;  %v4027_v44 = vsel %vm3784_vm1, %v19493_v59, %v3713_v45  ;;  %v7985_v29 = vcombine.low %v4025_v7, %v4029_v38 }
 0x63b   : > { %v3739_v16 = vpop.permute.xlu1 %3738  ;;  %v15643_v34 = vrot.slane %v8257_v39, %v11945_v25  ;;  %v15646_v37 = vrot.slane %v8258_v47, %v11945_v25  ;;  %v19498_v39 = vld [vmem:[#allocation39_spill] sm:$0xff] }
 0x63c   : > { %8473 = vrot.lane.b32.xlu0 %v19491_v50, %s11676_s11  ;;  %v3735_v60 = vpop.permute.xlu0 %3734  ;;  %v4032_v20 = vsel %vm3784_vm1, %v19492_v52, %v3739_v16  ;;  %v15655_v45 = vrot.slane %v7986_v27, %v11945_v25  ;;  %v15696_v31 = vrot.slane %v7985_v29, %v11945_v25 }
 0x63d   : > { %v4031_v46 = vsel %vm3784_vm1, %v19494_v53, %v3735_v60  ;;  %v8273_v13 = vcombine.low %v4028_v15, %v4032_v20  ;;  %v8274_v54 = vcombine.high %v4028_v15, %v4032_v20  ;;  %19495 = vst [vmem:[#allocation217_spill] sm:$0xff] %v15643_v34  ;;  %v19497_v20 = vld [vmem:[#allocation33_spill] sm:$0xff] }
 0x63e   : > { %v8002_v40 = vcombine.high %v4027_v44, %v4031_v46  ;;  %v19499_v15 = vcombine.low %v19497_v20, %v19498_v39  ;;  %v19504_v60 = vld [vmem:[#allocation65_spill] sm:$0xff] }
 0x63f   : > { %v15649_v50 = vrot.slane %v8273_v13, %v11945_v25  ;;  %v15652_v16 = vrot.slane %v8274_v54, %v11945_v25  ;;  %v3750_v52 = vpop.permute.xlu1 %3749  ;;  %v19503_v54 = vld [vmem:[#allocation239_spill] sm:$0xff]  ;;  %v19506_v26 = vcombine.low %v19504_v60, %v19505_v49 }
 0x640   : > { %v15658_v59 = vrot.slane %v8002_v40, %v11945_v25  ;;  %8477 = vrot.lane.b32.xlu0 %v19499_v15, %s11676_s11  ;;  %v3746_v47 = vpop.permute.xlu0 %3745  ;;  %v19501_v15 = vld [vmem:[#allocation52_spill] sm:$0xff]  ;;  %v4034_v24 = vsel %vm3784_vm1, %v19503_v54, %v3750_v52  ;;  %v7946_v52 = vcombine.high %v15550_v58, %v15554_v12  ;;  %v19516_v58 = vld [vmem:[#allocation246_spill] sm:$0xff] }
 0x641   : > { %19496 = vst [vmem:[#allocation221_spill] sm:$0xff] %v15649_v50  ;;  %v8322_v13 = vcombine.high %v15643_v34, %v15649_v50  ;;  %v19502_v57 = vcombine.low %v19500_v62, %v19501_v15  ;;  %v8001_v34 = vcombine.low %v4027_v44, %v4031_v46  ;;  %v4033_v55 = vsel %vm3784_vm1, %v19508_v51, %v3746_v47  ;;  %v19511_v47 = vld [vmem:[#allocation81_spill] sm:$0xff] }
 0x642   : > { %v8065_v27 = vcombine.low %v15655_v45, %v15658_v59  ;;  %v8066_v40 = vcombine.high %v15655_v45, %v15658_v59  ;;  %v19507_v45 = vld [vmem:[#allocation243_spill] sm:$0xff] }
 0x643   : > { %v3761_v53 = vpop.permute.xlu1 %3760  ;;  %v15691_v7 = vrot.slane %v8001_v34, %v11945_v25 }
 0x644   : > { %8481 = vrot.lane.b32.xlu0 %v19502_v57, %s11676_s11  ;;  %v3757_v30 = vpop.permute.xlu0 %3756  ;;  %v19509_v57 = vld [vmem:[#allocation244_spill] sm:$0xff] }
 0x647   : > { %v3772_v50 = vpop.permute.xlu1 %3771 }
 0x648   : > { %8485 = vrot.lane.b32.xlu0 %v19506_v26, %s11676_s11  ;;  %v3768_v5 = vpop.permute.xlu0 %3767  ;;  %v4038_v59 = vsel %vm3784_vm1, %v19507_v45, %v3772_v50  ;;  %v19510_v50 = vld [vmem:[#allocation241_spill] sm:$0xff] }
 0x649   : > { %v4037_v46 = vsel %vm3784_vm1, %v19509_v57, %v3768_v5  ;;  %v8290_v44 = vcombine.high %v4034_v24, %v4038_v59  ;;  %v8289_v54 = vcombine.low %v4034_v24, %v4038_v59  ;;  %v4036_v45 = vsel %vm3784_vm1, %v19510_v50, %v3761_v53  ;;  %v19512_v5 = vld [vmem:[#allocation87_spill] sm:$0xff] }
 0x64a   : > { %v8018_v38 = vcombine.high %v4033_v55, %v4037_v46  ;;  %v8017_v51 = vcombine.low %v4033_v55, %v4037_v46  ;;  %v19513_v57 = vcombine.low %v19511_v47, %v19512_v5  ;;  %v4035_v24 = vsel %vm3784_vm1, %v19515_v2, %v3757_v30 }
 0x64b   : > { %v3783_v26 = vpop.permute.xlu1 %3782  ;;  %v7914_v55 = vcombine.high %v15529_v11, %v15526_v61  ;;  %v8049_v53 = vcombine.low %v15696_v31, %v15691_v7 }
 0x64c   : > { %8489 = vrot.lane.b32.xlu0 %v19513_v57, %s11676_s11  ;;  %v3779_v34 = vpop.permute.xlu0 %3778  ;;  %v4040_v43 = vsel %vm3784_vm1, %v19514_v4, %v3783_v26  ;;  %v15715_v57 = vrot.slane %v8289_v54, %v11945_v25  ;;  %v8304_v4 = vrot.slane %v8290_v44, %v11945_v25  ;;  %v8032_v26 = vrot.slane %v8018_v38, %v11945_v25 }
 0x64d   : > { %v4039_v29 = vsel %vm3784_vm1, %v19516_v58, %v3779_v34  ;;  %v8305_v12 = vcombine.low %v4036_v45, %v4040_v43  ;;  %v8306_v59 = vcombine.high %v4036_v45, %v4040_v43  ;;  %v8025_v43 = vrot.slane %v8017_v51, %v11945_v25 }
 0x64e   : > { %v8033_v46 = vcombine.low %v4035_v24, %v4039_v29  ;;  %v8034_v50 = vcombine.high %v4035_v24, %v4039_v29  ;;  %v19517_v54 = vcombine.low %v14887_v17, %v14902_v1  ;;  %v7960_v44 = vrot.slane %v7946_v52, %v11964_v63 }
 0x64f   : > { %v15719_v2 = vrot.slane %v8305_v12, %v11945_v25  ;;  %v8320_v30 = vrot.slane %v8306_v59, %v11945_v25  ;;  %v7928_v38 = vrot.slane %v7914_v55, %v11964_v63  ;;  %v15735_v12 = vrot.slane %v8049_v53, %v11964_v63 }
 0x650   : > { %v8041_v61 = vrot.slane %v8033_v46, %v11945_v25  ;;  %v8048_v11 = vrot.slane %v8034_v50, %v11945_v25  ;;  %8493 = vrot.lane.b32.xlu0 %v19517_v54, %s11676_s11  ;;  %v15738_v59 = vrot.slane %v8065_v27, %v11964_v63  ;;  %v19518_v55 = vcombine.low %v15276_v10, %v15291_v33 }
 0x651   : > { %v8354_v45 = vcombine.high %v15715_v57, %v15719_v2  ;;  %v8369_v34 = vcombine.low %v8304_v4, %v8320_v30  ;;  %v8370_v24 = vcombine.high %v8304_v4, %v8320_v30  ;;  %v15757_v27 = vrot.slane %v8066_v40, %v11964_v63 }
 0x652   : > { %v8081_v58 = vcombine.low %v8025_v43, %v8041_v61  ;;  %v8097_v51 = vcombine.low %v8032_v26, %v8048_v11  ;;  %v8098_v29 = vcombine.high %v8032_v26, %v8048_v11  ;;  %v15760_v53 = vrot.slane %v8322_v13, %v11964_v63 }
 0x653   : > { %v15750_v4 = vrot.slane %v8354_v45, %v11964_v63  ;;  %v15763_v30 = vrot.slane %v8369_v34, %v11964_v63  ;;  %v7979_v26 = vcombine.low %v7928_v38, %v7960_v44  ;;  %v19520_v11 = vcombine.low %v15646_v37, %v15652_v16 }
 0x654   : > { %v15741_v46 = vrot.slane %v8081_v58, %v11964_v63  ;;  %v15744_v52 = vrot.slane %v8097_v51, %v11964_v63  ;;  %v15747_v50 = vrot.slane %v8098_v29, %v11964_v63  ;;  %8497 = vrot.lane.b32.xlu0 %v19518_v55, %s11676_s11  ;;  %v15772_v45 = vrot.slane %v8370_v24, %v11964_v63  ;;  %v19531_v51 = vld [vmem:[#allocation104_spill] sm:$0xff] }
 0x655   : > { %19519 = vst [vmem:[#allocation218_spill] sm:$0xff] %v15763_v30  ;;  %v15769_v54 = vrot.slane %v19520_v11, %v11964_v63  ;;  %v19523_v24 = vcombine.high %v15646_v37, %v15652_v16  ;;  %v19529_v29 = vcombine.high %v19497_v20, %v19498_v39  ;;  %v19530_v37 = vld [vmem:[#allocation98_spill] sm:$0xff]  ;;  %v19537_v20 = vcombine.high %v19504_v60, %v19505_v49  ;;  %v19538_v39 = vld [vmem:[#allocation125_spill] sm:$0xff]  ;;  %v19704_v30 = vld [vmem:[#allocation60_spill] sm:$0xff] }
 0x656   : > { %19522 = vst [vmem:[#allocation223_spill] sm:$0xff] %v15772_v45  ;;  %v8114_v40 = vcombine.high %v15735_v12, %v15741_v46  ;;  %v8117_v13 = vcombine.low %v15738_v59, %v15744_v52  ;;  %v19532_v16 = vcombine.low %v19530_v37, %v19531_v51  ;;  %v8050_v49 = vcombine.high %v15696_v31, %v15691_v7  ;;  %v19549_v7 = vld [vmem:[#allocation258_spill] sm:$0xff] }
 0x657   : > { %19521 = vst [vmem:[#allocation222_spill] sm:$0xff] %v15769_v54  ;;  %v15790_v55 = vrot.slane %v19523_v24, %v11964_v63  ;;  %v19527_v24 = vld [vmem:[#allocation271_spill] sm:$0xff]  ;;  %v19545_v60 = vcombine.high %v14887_v17, %v14902_v1  ;;  %v19548_v31 = vcombine.low %v15420_v19, %v15432_v3  ;;  %v7980_v17 = vcombine.high %v7928_v38, %v7960_v44 }
 0x658   : > { %8501 = vrot.lane.b32.xlu0 %v7979_v26, %s11676_s11  ;;  %8439 = vrot.lane.b32.xlu1 %v8114_v40, %s11675_s29  ;;  %v19525_v26 = vcombine.high %v13079_v14, %v13094_v48  ;;  %v19526_v40 = vld [vmem:[#allocation267_spill] sm:$0xff]  ;;  %v19533_v14 = vcombine.high %v19500_v62, %v19501_v15  ;;  %v19534_v48 = vld [vmem:[#allocation110_spill] sm:$0xff]  ;;  %v19541_v62 = vcombine.high %v19511_v47, %v19512_v5  ;;  %v19542_v15 = vld [vmem:[#allocation140_spill] sm:$0xff]  ;;  %vm11208_vm1 = vcmask 261120   ;;  %s11369_s29 = sshll.u32 %s11649_s15, 11  ;;  %s11226_s15 = scalar_lea.sflag [#allocation4], %s11897_s9 }
 0x659   : > { %19524 = vst [vmem:[#allocation227_spill] sm:$0xff] %v15790_v55  ;;  %v19528_v34 = vcombine.low %v19526_v40, %v19527_v24  ;;  %v8064_v5 = vrot.slane %v8050_v49, %v11964_v63  ;;  %v19556_v38 = vcombine.high %v19530_v37, %v19531_v51  ;;  %v19558_v49 = vld [vmem:[#allocation56_spill] sm:$0xff]  ;;  %v19628_v55 = vld [vmem:[#allocation89_spill] sm:$0xff]  ;;  %v19708_v54 = vld [vmem:[#allocation59_spill] sm:$0xff] }
 0x65c   : > { %8537 = vrot.lane.b32.xlu0 %v19525_v26, %s11677_s30  ;;  %8475 = vrot.lane.b32.xlu1 %v19528_v34, %s11676_s11  ;;  %v19535_v26 = vld [vmem:[#allocation118_spill] sm:$0xff] }
 0x65d   : > { %v19536_v11 = vcombine.low %v19534_v48, %v19535_v26  ;;  %v19539_v34 = vld [vmem:[#allocation130_spill] sm:$0xff] }
 0x65e   : > { %v19564_v51 = vcombine.high %v19538_v39, %v19539_v34 }
 0x660   : > { %8541 = vrot.lane.b32.xlu0 %v19529_v29, %s11677_s30  ;;  %8479 = vrot.lane.b32.xlu1 %v19532_v16, %s11676_s11  ;;  %v19540_v29 = vcombine.low %v19538_v39, %v19539_v34  ;;  %v19543_v16 = vld [vmem:[#allocation145_spill] sm:$0xff]  ;;  %v19572_v39 = vcombine.high %v15064_v8, %v15079_v35  ;;  %v19573_v34 = vcombine.low %v15303_v22, %v15294_v9 }
 0x664   : > { %8545 = vrot.lane.b32.xlu0 %v19533_v14, %s11677_s30  ;;  %8483 = vrot.lane.b32.xlu1 %v19536_v11, %s11676_s11  ;;  %v19544_v14 = vcombine.low %v19542_v15, %v19543_v16  ;;  %v8082_v11 = vcombine.high %v8025_v43, %v8041_v61  ;;  %v19547_v43 = vcombine.high %v15276_v10, %v15291_v33  ;;  %v19550_v61 = vld [vmem:[#allocation256_spill] sm:$0xff]  ;;  %v19553_v33 = vld [vmem:[#allocation37_spill] sm:$0xff] }
 0x665   : > { %v19552_v10 = vcombine.high %v19526_v40, %v19527_v24  ;;  %v19560_v40 = vcombine.high %v19534_v48, %v19535_v26  ;;  %v19561_v24 = vld [vmem:[#allocation69_spill] sm:$0xff]  ;;  %v19568_v48 = vcombine.high %v19542_v15, %v19543_v16  ;;  %v19574_v15 = vcombine.high %v15420_v19, %v15432_v3  ;;  %v19578_v19 = vld [vmem:[#allocation274_spill] sm:$0xff]  ;;  %v19579_v3 = vld [vmem:[#allocation272_spill] sm:$0xff] }
 0x666   : > { %v8096_v47 = vrot.slane %v8082_v11, %v11964_v63  ;;  %v19557_v11 = vld [vmem:[#allocation23_spill] sm:$0xff] }
 0x668   : > { %8549 = vrot.lane.b32.xlu0 %v19537_v20, %s11677_s30  ;;  %8487 = vrot.lane.b32.xlu1 %v19540_v29, %s11676_s11  ;;  %v19546_v20 = vcombine.low %v15064_v8, %v15079_v35  ;;  %v8115_v1 = vcombine.low %v8064_v5, %v8096_v47  ;;  %v19551_v29 = vcombine.low %v19549_v7, %v19550_v61 }
 0x669   : > { %v19577_v35 = vcombine.high %v19549_v7, %v19550_v61  ;;  %v19587_v7 = vcombine.high %v19557_v11, %v19558_v49  ;;  %v19588_v61 = vld [vmem:[#allocation116_spill] sm:$0xff] }
 0x66c   : > { %8553 = vrot.lane.b32.xlu0 %v19541_v62, %s11677_s30  ;;  %8491 = vrot.lane.b32.xlu1 %v19544_v14, %s11676_s11  ;;  %v19554_v62 = vld [vmem:[#allocation36_spill] sm:$0xff]  ;;  %v15884_v14 = vpop.permute.xlu0 %8409 }
 0x66d   : > { %v19555_v44 = vcombine.low %v19553_v33, %v19554_v62 }
 0x670   : > { %8557 = vrot.lane.b32.xlu0 %v19545_v60, %s11677_s30  ;;  %8495 = vrot.lane.b32.xlu1 %v19546_v20, %s11676_s11  ;;  %v19559_v60 = vcombine.low %v19557_v11, %v19558_v49  ;;  %v19562_v20 = vld [vmem:[#allocation68_spill] sm:$0xff]  ;;  %v15902_v37 = vpop.permute.xlu0 %8413 }
 0x674   : > { %8561 = vrot.lane.b32.xlu0 %v19547_v43, %s11677_s30  ;;  %8499 = vrot.lane.b32.xlu1 %v19548_v31, %s11676_s11  ;;  %v19563_v43 = vcombine.low %v19561_v24, %v19562_v20  ;;  %v19565_v31 = vld [vmem:[#allocation85_spill] sm:$0xff]  ;;  %v15912_v26 = vpop.permute.xlu0 %8417 }
 0x678   : > { %8565 = vrot.lane.b32.xlu0 %v7980_v17, %s11677_s30  ;;  %8503 = vrot.lane.b32.xlu1 %v8115_v1, %s11676_s11  ;;  %v19566_v17 = vld [vmem:[#allocation84_spill] sm:$0xff]  ;;  %v15930_v16 = vpop.permute.xlu0 %8421 }
 0x679   : > { %v19567_v1 = vcombine.low %v19565_v31, %v19566_v17  ;;  %v19597_v49 = vcombine.high %v19565_v31, %v19566_v17  ;;  %v19603_v17 = vcombine.high %v15303_v22, %v15294_v9 }
 0x67c   : > { %8601 = vrot.lane.b32.xlu0 %v19551_v29, %s11678_s4  ;;  %8539 = vrot.lane.b32.xlu1 %v19552_v10, %s11677_s30  ;;  %v19569_v29 = vld [vmem:[#allocation164_spill] sm:$0xff]  ;;  %v19570_v10 = vld [vmem:[#allocation163_spill] sm:$0xff]  ;;  %v15937_v8 = vpop.permute.xlu0 %8425 }
 0x67d   : > { %19576 = vst [vmem:[#allocation224_spill] sm:$0xff] %v15937_v8 }
 0x680   : > { %8605 = vrot.lane.b32.xlu0 %v19555_v44, %s11678_s4  ;;  %8543 = vrot.lane.b32.xlu1 %v19556_v38, %s11677_s30  ;;  %v19571_v44 = vcombine.low %v19569_v29, %v19570_v10  ;;  %v8116_v38 = vcombine.high %v8064_v5, %v8096_v47  ;;  %v19581_v47 = vcombine.high %v19553_v33, %v19554_v62  ;;  %v19582_v5 = vld [vmem:[#allocation101_spill] sm:$0xff] }
 0x681   : > { %v19592_v62 = vcombine.high %v19561_v24, %v19562_v20 }
 0x684   : > { %8609 = vrot.lane.b32.xlu0 %v19559_v60, %s11678_s4  ;;  %8547 = vrot.lane.b32.xlu1 %v19560_v40, %s11677_s30  ;;  %v19575_v60 = vcombine.low %v15565_v23, %v15571_v0  ;;  %v19580_v40 = vcombine.low %v19578_v19, %v19579_v3 }
 0x688   : > { %8613 = vrot.lane.b32.xlu0 %v19563_v43, %s11678_s4  ;;  %8551 = vrot.lane.b32.xlu1 %v19564_v51, %s11677_s30  ;;  %v19583_v43 = vld [vmem:[#allocation16_spill] sm:$0xff] }
 0x689   : > { %v19584_v51 = vcombine.low %v19582_v5, %v19583_v43 }
 0x68c   : > { %8617 = vrot.lane.b32.xlu0 %v19567_v1, %s11678_s4  ;;  %8555 = vrot.lane.b32.xlu1 %v19568_v48, %s11677_s30  ;;  %v15955_v1 = vpop.permute.xlu0 %8429  ;;  %v15957_v48 = vpop.permute.xlu1 %8411 }
 0x68d   : > { %19585 = vst [vmem:[#allocation228_spill] sm:$0xff] %v15955_v1  ;;  %19586 = vst [vmem:[#allocation225_spill] sm:$0xff] %v15957_v48 }
 0x690   : > { %8621 = vrot.lane.b32.xlu0 %v19571_v44, %s11678_s4  ;;  %8559 = vrot.lane.b32.xlu1 %v19572_v39, %s11677_s30  ;;  %v19589_v44 = vld [vmem:[#allocation115_spill] sm:$0xff]  ;;  %v15967_v33 = vpop.permute.xlu0 %8433 }
 0x691   : > { %v19590_v39 = vcombine.low %v19588_v61, %v19589_v44  ;;  %19591 = vst [vmem:[#allocation229_spill] sm:$0xff] %v15967_v33 }
 0x694   : > { %8625 = vrot.lane.b32.xlu0 %v19573_v34, %s11678_s4  ;;  %8563 = vrot.lane.b32.xlu1 %v19574_v15, %s11677_s30  ;;  %v19593_v34 = vld [vmem:[#allocation135_spill] sm:$0xff]  ;;  %v19594_v15 = vld [vmem:[#allocation134_spill] sm:$0xff] }
 0x695   : > { %v19627_v25 = vcombine.high %v19593_v34, %v19594_v15 }
 0x698   : > { %8629 = vrot.lane.b32.xlu0 %v19575_v60, %s11678_s4  ;;  %8567 = vrot.lane.b32.xlu1 %v8116_v38, %s11677_s30  ;;  %v19595_v38 = vcombine.low %v19593_v34, %v19594_v15  ;;  %v15977_v60 = vpop.permute.xlu1 %8415  ;;  %v19633_v34 = vld [vmem:[#allocation161_spill] sm:$0xff] }
 0x699   : > { %19596 = vst [vmem:[#allocation226_spill] sm:$0xff] %v15977_v60 }
 0x69c   : > { %8665 = vrot.lane.b32.xlu0 %v19577_v35, %s11679_s5  ;;  %8603 = vrot.lane.b32.xlu1 %v19580_v40, %s11678_s4  ;;  %v19598_v35 = vld [vmem:[#allocation150_spill] sm:$0xff]  ;;  %v19599_v40 = vld [vmem:[#allocation149_spill] sm:$0xff]  ;;  %v8420_v20 = vpop.permute.xlu1 %8419 }
 0x6a0   : > { %8669 = vrot.lane.b32.xlu0 %v19581_v47, %s11679_s5  ;;  %8607 = vrot.lane.b32.xlu1 %v19584_v51, %s11678_s4  ;;  %v19600_v47 = vcombine.low %v19598_v35, %v19599_v40  ;;  %v19601_v51 = vcombine.high %v19569_v29, %v19570_v10  ;;  %v19605_v10 = vcombine.high %v15565_v23, %v15571_v0 }
 0x6a1   : > { %v19611_v23 = vcombine.high %v19578_v19, %v19579_v3  ;;  %v19620_v19 = vld [vmem:[#allocation22_spill] sm:$0xff] }
 0x6a4   : > { %8673 = vrot.lane.b32.xlu0 %v19587_v7, %s11679_s5  ;;  %8611 = vrot.lane.b32.xlu1 %v19590_v39, %s11678_s4  ;;  %v19602_v7 = vcombine.low %v15091_v42, %v15082_v41  ;;  %v19604_v39 = vcombine.low %v15441_v36, %v15435_v6 }
 0x6a8   : > { %8677 = vrot.lane.b32.xlu0 %v19592_v62, %s11679_s5  ;;  %8615 = vrot.lane.b32.xlu1 %v19595_v38, %s11678_s4  ;;  %v8424_v62 = vpop.permute.xlu1 %8423  ;;  %v19608_v38 = vld [vmem:[#allocation259_spill] sm:$0xff] }
 0x6aa   : > { %v15979_v11 = vpop.permute.xlu0 %8437 }
 0x6ac   : > { %8681 = vrot.lane.b32.xlu0 %v19597_v49, %s11679_s5  ;;  %8619 = vrot.lane.b32.xlu1 %v19600_v47, %s11678_s4  ;;  %v16021_v22 = vpop.permute.xlu1 %8427  ;;  %v19609_v49 = vld [vmem:[#allocation257_spill] sm:$0xff] }
 0x6ad   : > { %19607 = vst [vmem:[#allocation231_spill] sm:$0xff] %v16021_v22  ;;  %v19610_v47 = vcombine.low %v19608_v38, %v19609_v49  ;;  %v19636_v22 = vcombine.high %v15091_v42, %v15082_v41 }
 0x6ae   : > { %v15989_v24 = vpop.permute.xlu0 %8473 }
 0x6b0   : > { %8685 = vrot.lane.b32.xlu0 %v19601_v51, %s11679_s5  ;;  %8623 = vrot.lane.b32.xlu1 %v19602_v7, %s11678_s4  ;;  %v19613_v51 = vld [vmem:[#allocation41_spill] sm:$0xff] }
 0x6b2   : > { %v15999_v31 = vpop.permute.xlu0 %8477 }
 0x6b4   : > { %8689 = vrot.lane.b32.xlu0 %v19603_v17, %s11679_s5  ;;  %8627 = vrot.lane.b32.xlu1 %v19604_v39, %s11678_s4  ;;  %v19616_v17 = vcombine.high %v19582_v5, %v19583_v43  ;;  %v16041_v39 = vpop.permute.xlu1 %8431  ;;  %v19624_v5 = vld [vmem:[#allocation73_spill] sm:$0xff]  ;;  %v19625_v43 = vld [vmem:[#allocation72_spill] sm:$0xff] }
 0x6b5   : > { %19617 = vst [vmem:[#allocation232_spill] sm:$0xff] %v16041_v39 }
 0x6b6   : > { %v16009_v29 = vpop.permute.xlu0 %8481 }
 0x6b8   : > { %8693 = vrot.lane.b32.xlu0 %v19605_v10, %s11679_s5  ;;  %8631 = vrot.lane.b32.xlu1 %v8117_v13, %s11678_s4  ;;  %v19614_v13 = vld [vmem:[#allocation40_spill] sm:$0xff] }
 0x6b9   : > { %v19615_v7 = vcombine.low %v19613_v51, %v19614_v13 }
 0x6ba   : > { %v16019_v9 = vpop.permute.xlu0 %8485 }
 0x6bb   : > { %19606 = vst [vmem:[#allocation230_spill] sm:$0xff] %v16019_v9 }
 0x6bc   : > { %8729 = vrot.lane.b32.xlu0 %v19610_v47, %s11680_s21  ;;  %8667 = vrot.lane.b32.xlu1 %v19611_v23, %s11679_s5  ;;  %v19619_v47 = vld [vmem:[#allocation53_spill] sm:$0xff]  ;;  %v19622_v23 = vcombine.high %v19588_v61, %v19589_v44  ;;  %v19629_v61 = vld [vmem:[#allocation88_spill] sm:$0xff] }
 0x6bd   : > { %v19621_v3 = vcombine.low %v19619_v47, %v19620_v19  ;;  %v19630_v44 = vcombine.low %v19628_v55, %v19629_v61 }
 0x6be   : > { %v16031_v0 = vpop.permute.xlu0 %8489 }
 0x6bf   : > { %19612 = vst [vmem:[#allocation235_spill] sm:$0xff] %v16031_v0 }
 0x6c0   : > { %8733 = vrot.lane.b32.xlu0 %v19615_v7, %s11680_s21  ;;  %8671 = vrot.lane.b32.xlu1 %v19616_v17, %s11679_s5  ;;  %v8436_v7 = vpop.permute.xlu1 %8435  ;;  %v19626_v17 = vcombine.low %v19624_v5, %v19625_v43 }
 0x6c2   : > { %v16043_v10 = vpop.permute.xlu0 %8493 }
 0x6c3   : > { %19618 = vst [vmem:[#allocation236_spill] sm:$0xff] %v16043_v10 }
 0x6c4   : > { %8737 = vrot.lane.b32.xlu0 %v19621_v3, %s11680_s21  ;;  %8675 = vrot.lane.b32.xlu1 %v19622_v23, %s11679_s5  ;;  %v19631_v23 = vcombine.high %v19598_v35, %v19599_v40  ;;  %v19638_v35 = vcombine.low %v15309_v32, %v15297_v28  ;;  %v19639_v40 = vcombine.high %v15441_v36, %v15435_v6  ;;  %v19644_v36 = vld [vmem:[#allocation127_spill] sm:$0xff] }
 0x6c5   : > { %v19643_v6 = vcombine.high %v15738_v59, %v15744_v52  ;;  %v19650_v59 = vld [vmem:[#allocation273_spill] sm:$0xff] }
 0x6c6   : > { %v16053_v58 = vpop.permute.xlu0 %8497 }
 0x6c7   : > { %19623 = vst [vmem:[#allocation233_spill] sm:$0xff] %v16053_v58  ;;  %v19686_v58 = vld [vmem:[#allocation247_spill] sm:$0xff] }
 0x6c8   : > { %8741 = vrot.lane.b32.xlu0 %v19626_v17, %s11680_s21  ;;  %8679 = vrot.lane.b32.xlu1 %v19627_v25, %s11679_s5  ;;  %v19634_v25 = vld [vmem:[#allocation160_spill] sm:$0xff] }
 0x6c9   : > { %v19635_v15 = vcombine.low %v19633_v34, %v19634_v25 }
 0x6ca   : > { %v16063_v45 = vpop.permute.xlu0 %8501  ;;  %v8440_v3 = vpop.permute.xlu1 %8439 }
 0x6cc   : > { %8745 = vrot.lane.b32.xlu0 %v19630_v44, %s11680_s21  ;;  %8683 = vrot.lane.b32.xlu1 %v19631_v23, %s11679_s5  ;;  %v19640_v23 = vcombine.low %v13984_v21, %v13999_v18  ;;  %v19645_v21 = vld [vmem:[#allocation133_spill] sm:$0xff] }
 0x6cd   : > { %v19646_v18 = vcombine.low %v19644_v36, %v19645_v21  ;;  %v19655_v21 = vld [vmem:[#allocation105_spill] sm:$0xff] }
 0x6ce   : > { %v16073_v39 = vpop.permute.xlu0 %8537  ;;  %v16075_v17 = vpop.permute.xlu1 %8475  ;;  %v9359_v41 = vsel %vm9353_vm2, %v19640_v23, %v8420_v20 }
 0x6cf   : > { %19632 = vst [vmem:[#allocation237_spill] sm:$0xff] %v16075_v17  ;;  %v9361_v20 = vsel %vm9353_vm2, %v19646_v18, %v8424_v62  ;;  %v19654_v62 = vcombine.high %v19613_v51, %v19614_v13  ;;  %v19656_v18 = vld [vmem:[#allocation17_spill] sm:$0xff]  ;;  %v19664_v51 = vld [vmem:[#allocation198_spill] sm:$0xff]  ;;  %v19665_v13 = vld [vmem:[#allocation200_spill] sm:$0xff] }
 0x6d0   : > { %8749 = vrot.lane.b32.xlu0 %v19635_v15, %s11680_s21  ;;  %8687 = vrot.lane.b32.xlu1 %v19636_v22, %s11679_s5 }
 0x6d2   : > { %v16085_v44 = vpop.permute.xlu0 %8541  ;;  %v16087_v60 = vpop.permute.xlu1 %8479 }
 0x6d3   : > { %19637 = vst [vmem:[#allocation234_spill] sm:$0xff] %v16087_v60 }
 0x6d4   : > { %8753 = vrot.lane.b32.xlu0 %v19638_v35, %s11680_s21  ;;  %8691 = vrot.lane.b32.xlu1 %v19639_v40, %s11679_s5  ;;  %v19641_v35 = vld [vmem:[#allocation213_spill] sm:$0xff] }
 0x6d5   : > { %v19642_v60 = vcombine.low %v15580_v56, %v19641_v35 }
 0x6d6   : > { %v16101_v42 = vpop.permute.xlu0 %8545  ;;  %v8484_v22 = vpop.permute.xlu1 %8483 }
 0x6d7   : > { %v9376_v15 = vsel %vm9370_vm3, %v9359_v41, %v8484_v22  ;;  %v19649_v22 = vld [vmem:[#allocation275_spill] sm:$0xff] }
 0x6d8   : > { %8757 = vrot.lane.b32.xlu0 %v19642_v60, %s11680_s21  ;;  %8695 = vrot.lane.b32.xlu1 %v19643_v6, %s11679_s5  ;;  %v19648_v60 = vcombine.high %v19608_v38, %v19609_v49  ;;  %v19651_v52 = vcombine.low %v19649_v22, %v19650_v59 }
 0x6da   : > { %v16116_v40 = vpop.permute.xlu0 %8549  ;;  %v8488_v23 = vpop.permute.xlu1 %8487 }
 0x6db   : > { %19647 = vst [vmem:[#allocation238_spill] sm:$0xff] %v16116_v40  ;;  %v9378_v41 = vsel %vm9370_vm3, %v9361_v20, %v8488_v23  ;;  %v19657_v20 = vcombine.low %v19655_v21, %v19656_v18  ;;  %v19660_v23 = vcombine.high %v19619_v47, %v19620_v19  ;;  %v19668_v47 = vcombine.high %v19624_v5, %v19625_v43  ;;  %v19669_v19 = vld [vmem:[#allocation132_spill] sm:$0xff]  ;;  %v19674_v43 = vld [vmem:[#allocation147_spill] sm:$0xff] }
 0x6dc   : > { %8793 = vrot.lane.b32.xlu0 %v19648_v60, %s11681_s10  ;;  %8731 = vrot.lane.b32.xlu1 %v19651_v52, %s11680_s21  ;;  %v19661_v60 = vld [vmem:[#allocation120_spill] sm:$0xff]  ;;  %v19662_v52 = vld [vmem:[#allocation119_spill] sm:$0xff]  ;;  %v19673_v5 = vcombine.high %v19628_v55, %v19629_v61  ;;  %v19682_v55 = vld [vmem:[#allocation250_spill] sm:$0xff] }
 0x6dd   : > { %v19683_v61 = vld [vmem:[#allocation249_spill] sm:$0xff] }
 0x6de   : > { %v16127_v6 = vpop.permute.xlu0 %8553  ;;  %v16129_v36 = vpop.permute.xlu1 %8491 }
 0x6df   : > { %19652 = vst [vmem:[#allocation33_spill] sm:$0xff] %v16127_v6  ;;  %19653 = vst [vmem:[#allocation39_spill] sm:$0xff] %v16129_v36  ;;  %v19663_v36 = vcombine.low %v19661_v60, %v19662_v52  ;;  %v19732_v6 = vld [vmem:[#allocation206_spill] sm:$0xff] }
 0x6e0   : > { %8797 = vrot.lane.b32.xlu0 %v19654_v62, %s11681_s10  ;;  %8735 = vrot.lane.b32.xlu1 %v19657_v20, %s11680_s21  ;;  %v19666_v62 = vcombine.low %v19664_v51, %v19665_v13  ;;  %v19672_v51 = vcombine.low %v15735_v12, %v15741_v46  ;;  %v19678_v46 = vcombine.high %v19633_v34, %v19634_v25  ;;  %v19688_v25 = vld [vmem:[#allocation201_spill] sm:$0xff] }
 0x6e1   : > { %v19687_v34 = vcombine.high %v15309_v32, %v15297_v28  ;;  %v19693_v32 = vld [vmem:[#allocation31_spill] sm:$0xff] }
 0x6e2   : > { %v16139_v38 = vpop.permute.xlu0 %8557  ;;  %v16141_v49 = vpop.permute.xlu1 %8495  ;;  %v9367_v17 = vsel %vm9353_vm2, %v19666_v62, %v8436_v7  ;;  %v9369_v7 = vsel %vm9353_vm2, %v19672_v51, %v8440_v3  ;;  %v19679_v3 = vld [vmem:[#allocation175_spill] sm:$0xff]  ;;  %v19680_v51 = vld [vmem:[#allocation174_spill] sm:$0xff] }
 0x6e3   : > { %19658 = vst [vmem:[#allocation46_spill] sm:$0xff] %v16139_v38  ;;  %19659 = vst [vmem:[#allocation52_spill] sm:$0xff] %v16141_v49 }
 0x6e4   : > { %8801 = vrot.lane.b32.xlu0 %v19660_v23, %s11681_s10  ;;  %8739 = vrot.lane.b32.xlu1 %v19663_v36, %s11680_s21  ;;  %v19670_v23 = vld [vmem:[#allocation131_spill] sm:$0xff] }
 0x6e5   : > { %v19671_v36 = vcombine.low %v19669_v19, %v19670_v23 }
 0x6e6   : > { %v16155_v20 = vpop.permute.xlu0 %8561  ;;  %v8500_v48 = vpop.permute.xlu1 %8499 }
 0x6e7   : > { %19667 = vst [vmem:[#allocation239_spill] sm:$0xff] %v16155_v20  ;;  %v16158_v49 = vsel %vm9370_vm3, %v9367_v17, %v8500_v48  ;;  %v19675_v17 = vld [vmem:[#allocation146_spill] sm:$0xff]  ;;  %v19685_v20 = vld [vmem:[#allocation248_spill] sm:$0xff] }
 0x6e8   : > { %8805 = vrot.lane.b32.xlu0 %v19668_v47, %s11681_s10  ;;  %8743 = vrot.lane.b32.xlu1 %v19671_v36, %s11680_s21  ;;  %v19676_v47 = vcombine.low %v19674_v43, %v19675_v17 }
 0x6ea   : > { %v16172_v13 = vpop.permute.xlu0 %8565  ;;  %v8504_v62 = vpop.permute.xlu1 %8503 }
 0x6eb   : > { %v16175_v48 = vsel %vm9370_vm3, %v9369_v7, %v8504_v62  ;;  %v19681_v7 = vcombine.low %v19679_v3, %v19680_v51  ;;  %v4409_v62 = vcombine.low %v19683_v61, %v19682_v55  ;;  %v19691_v55 = vld [vmem:[#allocation32_spill] sm:$0xff] }
 0x6ec   : > { %8809 = vrot.lane.b32.xlu0 %v19673_v5, %s11681_s10  ;;  %8747 = vrot.lane.b32.xlu1 %v19676_v47, %s11680_s21  ;;  %v19692_v61 = vld [vmem:[#allocation28_spill] sm:$0xff] }
 0x6ed   : > { %v4953_v38 = vcombine.low %v19692_v61, %v19691_v55  ;;  %v19698_v61 = vld [vmem:[#allocation44_spill] sm:$0xff] }
 0x6ee   : > { %v16185_v36 = vpop.permute.xlu0 %8601  ;;  %v16187_v12 = vpop.permute.xlu1 %8539 }
 0x6ef   : > { %19677 = vst [vmem:[#allocation65_spill] sm:$0xff] %v16187_v12  ;;  %v4377_v12 = vcombine.low %v19686_v58, %v19685_v20  ;;  %v16237_v55 = vrot.slane %v4953_v38, %v11964_v63  ;;  %v19702_v38 = vcombine.high %v19649_v22, %v19650_v59  ;;  %v19709_v59 = vcombine.high %v19655_v21, %v19656_v18 }
 0x6f0   : > { %8813 = vrot.lane.b32.xlu0 %v19678_v46, %s11681_s10  ;;  %8751 = vrot.lane.b32.xlu1 %v19681_v7, %s11680_s21  ;;  %v19689_v46 = vld [vmem:[#allocation204_spill] sm:$0xff]  ;;  %v16214_v7 = vrot.slane %v4409_v62, %v11964_v63  ;;  %v19696_v62 = vcombine.low %v15757_v27, %v15747_v50  ;;  %v19716_v18 = vcombine.high %v19661_v60, %v19662_v52 }
 0x6f1   : > { %v19690_v33 = vcombine.low %v19688_v25, %v19689_v46  ;;  %v16224_v28 = vrot.slane %v4377_v12, %v11964_v63  ;;  %v19720_v60 = vld [vmem:[#allocation156_spill] sm:$0xff] }
 0x6f2   : > { %v16199_v5 = vpop.permute.xlu0 %8605  ;;  %v16201_v47 = vpop.permute.xlu1 %8543  ;;  %v19721_v52 = vld [vmem:[#allocation152_spill] sm:$0xff] }
 0x6f3   : > { %19684 = vst [vmem:[#allocation71_spill] sm:$0xff] %v16201_v47 }
 0x6f4   : > { %8817 = vrot.lane.b32.xlu0 %v19687_v34, %s11681_s10  ;;  %8755 = vrot.lane.b32.xlu1 %v19690_v33, %s11680_s21  ;;  %v19694_v34 = vld [vmem:[#allocation27_spill] sm:$0xff]  ;;  %v19695_v33 = vcombine.high %v15580_v56, %v19641_v35 }
 0x6f5   : > { %v4921_v10 = vcombine.low %v19694_v34, %v19693_v32  ;;  %v4441_v32 = vcombine.low %v16224_v28, %v16214_v7  ;;  %v19700_v34 = vld [vmem:[#allocation47_spill] sm:$0xff] }
 0x6f6   : > { %v16218_v47 = vpop.permute.xlu0 %8609  ;;  %v8548_v58 = vpop.permute.xlu1 %8547 }
 0x6f7   : > { %v16221_v20 = vsel %vm9387_vm4, %v9376_v15, %v8548_v58  ;;  %v19697_v15 = vld [vmem:[#allocation48_spill] sm:$0xff]  ;;  %v16249_v35 = vrot.slane %v4921_v10, %v11964_v63 }
 0x6f8   : > { %8821 = vrot.lane.b32.xlu0 %v19695_v33, %s11681_s10  ;;  %8759 = vrot.lane.b32.xlu1 %v19696_v62, %s11680_s21  ;;  %v5497_v12 = vcombine.low %v19698_v61, %v19697_v15  ;;  %v19701_v33 = vld [vmem:[#allocation43_spill] sm:$0xff]  ;;  %v19703_v61 = vld [vmem:[#allocation64_spill] sm:$0xff]  ;;  %s18234_s21 = scalar_lea.hbm %s18293_s3, %s11369_s29 }
 0x6f9   : > { %v5465_v62 = vcombine.low %v19701_v33, %v19700_v34  ;;  %v4985_v34 = vcombine.low %v16249_v35, %v16237_v55  ;;  %v19707_v33 = vld [vmem:[#allocation63_spill] sm:$0xff] }
 0x6fa   : > { %v16241_v58 = vpop.permute.xlu0 %8613  ;;  %v8552_v1 = vpop.permute.xlu1 %8551  ;;  %v16259_v15 = vrot.slane %v5497_v12, %v11964_v63  ;;  %v6009_v22 = vcombine.low %v19708_v54, %v19707_v33  ;;  %v19710_v12 = vld [vmem:[#allocation80_spill] sm:$0xff]  ;;  %v19714_v33 = vld [vmem:[#allocation79_spill] sm:$0xff] }
 0x6fb   : > { %19699 = vst [vmem:[#allocation243_spill] sm:$0xff] %v16241_v58  ;;  %v16246_v56 = vsel %vm9387_vm4, %v9378_v41, %v8552_v1  ;;  %v6041_v1 = vcombine.low %v19704_v30, %v19703_v61 }
 0x6fc   : > { %8857 = vrot.lane.b32.xlu0 %v4441_v32, %s11672_s26  ;;  %8795 = vrot.lane.b32.xlu1 %v19702_v38, %s11681_s10  ;;  %v16270_v32 = vrot.slane %v5465_v62, %v11964_v63  ;;  %v19711_v38 = vld [vmem:[#allocation76_spill] sm:$0xff] }
 0x6fd   : > { %v16280_v30 = vrot.slane %v6041_v1, %v11964_v63  ;;  %v6585_v61 = vcombine.low %v19711_v38, %v19710_v12  ;;  %v19718_v12 = vld [vmem:[#allocation153_spill] sm:$0xff] }
 0x6fe   : > { %v16263_v41 = vpop.permute.xlu0 %8617  ;;  %v16265_v10 = vpop.permute.xlu1 %8555  ;;  %v5529_v54 = vcombine.low %v16270_v32, %v16259_v15 }
 0x6ff   : > { %19705 = vst [vmem:[#allocation240_spill] sm:$0xff] %v16263_v41  ;;  %19706 = vst [vmem:[#allocation244_spill] sm:$0xff] %v16265_v10  ;;  %v19715_v41 = vld [vmem:[#allocation75_spill] sm:$0xff]  ;;  %v16301_v1 = vrot.slane %v6585_v61, %v11964_v63  ;;  %v7097_v61 = vcombine.low %v19721_v52, %v19720_v60  ;;  %v19727_v52 = vcombine.high %v19674_v43, %v19675_v17 }
 0x700   : > { %8861 = vrot.lane.b32.xlu0 %v4985_v34, %s11672_s26  ;;  %8799 = vrot.lane.b32.xlu1 %v19709_v59, %s11681_s10  ;;  %v16291_v34 = vrot.slane %v6009_v22, %v11964_v63  ;;  %v6553_v21 = vcombine.low %v19715_v41, %v19714_v33  ;;  %v19717_v59 = vld [vmem:[#allocation20_spill] sm:$0xff]  ;;  %v19722_v33 = vcombine.high %v19669_v19, %v19670_v23  ;;  %v19725_v19 = vld [vmem:[#allocation178_spill] sm:$0xff]  ;;  %v19726_v23 = vld [vmem:[#allocation181_spill] sm:$0xff] }
 0x701   : > { %v7129_v38 = vcombine.low %v19718_v12, %v19717_v59  ;;  %v19723_v59 = vld [vmem:[#allocation187_spill] sm:$0xff]  ;;  %v16337_v60 = vrot.slane %v7097_v61, %v11964_v63  ;;  %v19733_v17 = vcombine.high %v19679_v3, %v19680_v51  ;;  %v19739_v3 = vcombine.high %v19688_v25, %v19689_v46 }
 0x702   : > { %v16284_v10 = vpop.permute.xlu0 %8621  ;;  %v16286_v62 = vpop.permute.xlu1 %8559  ;;  %v19724_v12 = vld [vmem:[#allocation183_spill] sm:$0xff]  ;;  %v19744_v46 = vcombine.high %v15757_v27, %v15747_v50 }
 0x703   : > { %19712 = vst [vmem:[#allocation241_spill] sm:$0xff] %v16284_v10  ;;  %19713 = vst [vmem:[#allocation81_spill] sm:$0xff] %v16286_v62  ;;  %v6073_v10 = vcombine.low %v16291_v34, %v16280_v30  ;;  %v19748_v50 = vld [vmem:[#allocation111_spill] sm:$0xff] }
 0x704   : > { %8865 = vrot.lane.b32.xlu0 %v5529_v54, %s11672_s26  ;;  %8803 = vrot.lane.b32.xlu1 %v19716_v18, %s11681_s10  ;;  %v16314_v54 = vrot.slane %v6553_v21, %v11964_v63  ;;  %v16324_v18 = vrot.slane %v7129_v38, %v11964_v63  ;;  %v7641_v38 = vcombine.low %v19726_v23, %v19725_v19  ;;  %v19731_v23 = vld [vmem:[#allocation207_spill] sm:$0xff] }
 0x705   : > { %v8185_v43 = vcombine.low %v19732_v6, %v19731_v23  ;;  %v19737_v23 = vld [vmem:[#allocation264_spill] sm:$0xff]  ;;  %v19749_v27 = vld [vmem:[#allocation107_spill] sm:$0xff] }
 0x706   : > { %v16305_v62 = vpop.permute.xlu0 %8625  ;;  %v8564_v22 = vpop.permute.xlu1 %8563  ;;  %v7161_v19 = vcombine.low %v16337_v60, %v16324_v18 }
 0x707   : > { %19719 = vst [vmem:[#allocation87_spill] sm:$0xff] %v16305_v62  ;;  %v16311_v41 = vsel %vm9387_vm4, %v16158_v49, %v8564_v22  ;;  %v7673_v49 = vcombine.low %v19724_v12, %v19723_v59  ;;  %v6617_v62 = vcombine.low %v16314_v54, %v16301_v1  ;;  %v19728_v59 = vld [vmem:[#allocation208_spill] sm:$0xff]  ;;  %v19729_v12 = vld [vmem:[#allocation211_spill] sm:$0xff]  ;;  %v16381_v8 = vrot.slane %v8185_v43, %v11964_v63 }
 0x708   : > { %8869 = vrot.lane.b32.xlu0 %v6073_v10, %s11672_s26  ;;  %8807 = vrot.lane.b32.xlu1 %v19722_v33, %s11681_s10 }
 0x709   : > { %v16347_v33 = vrot.slane %v7673_v49, %v11964_v63  ;;  %v19734_v49 = vld [vmem:[#allocation92_spill] sm:$0xff] }
 0x70a   : > { %v16328_v22 = vpop.permute.xlu0 %8629  ;;  %v8568_v21 = vpop.permute.xlu1 %8567 }
 0x70b   : > { %v16334_v10 = vsel %vm9387_vm4, %v16175_v48, %v8568_v21  ;;  %v8217_v48 = vcombine.low %v19729_v12, %v19728_v59 }
 0x70c   : > { %8873 = vrot.lane.b32.xlu0 %v6617_v62, %s11672_s26  ;;  %8811 = vrot.lane.b32.xlu1 %v19727_v52, %s11681_s10  ;;  %v16358_v62 = vrot.slane %v7641_v38, %v11964_v63  ;;  %v19735_v52 = vld [vmem:[#allocation91_spill] sm:$0xff] }
 0x70d   : > { %v4545_v59 = vcombine.low %v19735_v52, %v19734_v49  ;;  %v16370_v12 = vrot.slane %v8217_v48, %v11964_v63  ;;  %v19740_v48 = vld [vmem:[#allocation95_spill] sm:$0xff] }
 0x70e   : > { %v16351_v21 = vpop.permute.xlu0 %8665  ;;  %v16353_v61 = vpop.permute.xlu1 %8603  ;;  %v7705_v6 = vcombine.low %v16358_v62, %v16347_v33 }
 0x70f   : > { %19730 = vst [vmem:[#allocation245_spill] sm:$0xff] %v16353_v61  ;;  %v16389_v51 = vrot.slane %v4545_v59, %v11964_v63  ;;  %v8249_v43 = vcombine.low %v16381_v8, %v16370_v12 }
 0x710   : > { %8877 = vrot.lane.b32.xlu0 %v7161_v19, %s11672_s26  ;;  %8815 = vrot.lane.b32.xlu1 %v19733_v17, %s11681_s10  ;;  %v19738_v19 = vld [vmem:[#allocation263_spill] sm:$0xff]  ;;  %v19741_v17 = vld [vmem:[#allocation21_spill] sm:$0xff] }
 0x711   : > { %v4513_v0 = vcombine.low %v19738_v19, %v19737_v23  ;;  %v5089_v49 = vcombine.low %v19741_v17, %v19740_v48  ;;  %v19742_v23 = vld [vmem:[#allocation94_spill] sm:$0xff]  ;;  %v19743_v19 = vld [vmem:[#allocation93_spill] sm:$0xff]  ;;  %v19746_v48 = vld [vmem:[#allocation108_spill] sm:$0xff] }
 0x712   : > { %v16372_v61 = vpop.permute.xlu0 %8669  ;;  %v16374_v38 = vpop.permute.xlu1 %8607  ;;  %v5057_v25 = vcombine.low %v19743_v19, %v19742_v23  ;;  %v4442_v23 = vcombine.high %v16224_v28, %v16214_v7 }
 0x713   : > { %19736 = vst [vmem:[#allocation242_spill] sm:$0xff] %v16374_v38  ;;  %v16410_v59 = vrot.slane %v5089_v49, %v11964_v63  ;;  %v5601_v49 = vcombine.low %v19749_v27, %v19748_v50  ;;  %v19755_v27 = vld [vmem:[#allocation122_spill] sm:$0xff] }
 0x714   : > { %8881 = vrot.lane.b32.xlu0 %v7705_v6, %s11672_s26  ;;  %8819 = vrot.lane.b32.xlu1 %v19739_v3, %s11681_s10  ;;  %v16400_v6 = vrot.slane %v4513_v0, %v11964_v63  ;;  %v19745_v3 = vld [vmem:[#allocation109_spill] sm:$0xff]  ;;  %v16423_v19 = vrot.slane %v5057_v25, %v11964_v63  ;;  %v4986_v25 = vcombine.high %v16249_v35, %v16237_v55 }
 0x715   : > { %v5633_v17 = vcombine.low %v19746_v48, %v19745_v3  ;;  %v19750_v3 = vld [vmem:[#allocation24_spill] sm:$0xff]  ;;  %v19751_v48 = vld [vmem:[#allocation123_spill] sm:$0xff] }
 0x716   : > { %v16393_v52 = vpop.permute.xlu0 %8673  ;;  %v16395_v38 = vpop.permute.xlu1 %8611  ;;  %v6177_v7 = vcombine.low %v19751_v48, %v19750_v3  ;;  %v5121_v50 = vcombine.low %v16423_v19, %v16410_v59  ;;  %v19756_v48 = vld [vmem:[#allocation25_spill] sm:$0xff] }
 0x718   : > { %8885 = vrot.lane.b32.xlu0 %v8249_v43, %s11672_s26  ;;  %8823 = vrot.lane.b32.xlu1 %v19744_v46, %s11681_s10  ;;  %v4577_v43 = vcombine.low %v16400_v6, %v16389_v51  ;;  %v16430_v46 = vrot.slane %v5633_v17, %v11964_v63  ;;  %v16450_v3 = vrot.slane %v6177_v7, %v11964_v63 }
 0x71a   : > { %v16414_v58 = vpop.permute.xlu0 %8677  ;;  %v16416_v0 = vpop.permute.xlu1 %8615 }
 0x71b   : > { %19747 = vst [vmem:[#allocation246_spill] sm:$0xff] %v16414_v58 }
 0x71c   : > { %8921 = vrot.lane.b32.xlu0 %v4442_v23, %s11682_s25  ;;  %8859 = vrot.lane.b32.xlu1 %v4577_v43, %s11672_s26  ;;  %v16443_v23 = vrot.slane %v5601_v49, %v11964_v63  ;;  %v19754_v43 = vld [vmem:[#allocation126_spill] sm:$0xff]  ;;  %v5530_v49 = vcombine.high %v16270_v32, %v16259_v15 }
 0x71d   : > { %v6145_v17 = vcombine.low %v19755_v27, %v19754_v43  ;;  %v19761_v27 = vld [vmem:[#allocation137_spill] sm:$0xff] }
 0x71e   : > { %v16434_v28 = vpop.permute.xlu0 %8681  ;;  %v16436_v58 = vpop.permute.xlu1 %8619  ;;  %v5665_v43 = vcombine.low %v16443_v23, %v16430_v46 }
 0x71f   : > { %19752 = vst [vmem:[#allocation267_spill] sm:$0xff] %v16434_v28  ;;  %19753 = vst [vmem:[#allocation271_spill] sm:$0xff] %v16436_v58  ;;  %v19757_v58 = vld [vmem:[#allocation138_spill] sm:$0xff] }
 0x720   : > { %8925 = vrot.lane.b32.xlu0 %v4986_v25, %s11682_s25  ;;  %8863 = vrot.lane.b32.xlu1 %v5121_v50, %s11672_s26  ;;  %v6721_v28 = vcombine.low %v19757_v58, %v19756_v48  ;;  %v16463_v25 = vrot.slane %v6145_v17, %v11964_v63  ;;  %v19760_v50 = vld [vmem:[#allocation141_spill] sm:$0xff]  ;;  %v19762_v48 = vld [vmem:[#allocation172_spill] sm:$0xff]  ;;  %v6074_v17 = vcombine.high %v16291_v34, %v16280_v30 }
 0x721   : > { %v6689_v7 = vcombine.low %v19761_v27, %v19760_v50  ;;  %v19766_v27 = vld [vmem:[#allocation167_spill] sm:$0xff] }
 0x722   : > { %v16454_v55 = vpop.permute.xlu0 %8685  ;;  %v16456_v35 = vpop.permute.xlu1 %8623  ;;  %v16470_v58 = vrot.slane %v6721_v28, %v11964_v63  ;;  %v6209_v50 = vcombine.low %v16463_v25, %v16450_v3 }
 0x723   : > { %19758 = vst [vmem:[#allocation98_spill] sm:$0xff] %v16454_v55  ;;  %19759 = vst [vmem:[#allocation104_spill] sm:$0xff] %v16456_v35  ;;  %v19763_v35 = vld [vmem:[#allocation168_spill] sm:$0xff] }
 0x724   : > { %8929 = vrot.lane.b32.xlu0 %v5530_v49, %s11682_s25  ;;  %8867 = vrot.lane.b32.xlu1 %v5665_v43, %s11672_s26  ;;  %v7265_v55 = vcombine.low %v19763_v35, %v19762_v48  ;;  %v16483_v49 = vrot.slane %v6689_v7, %v11964_v63  ;;  %v19765_v43 = vld [vmem:[#allocation171_spill] sm:$0xff]  ;;  %v19767_v48 = vld [vmem:[#allocation197_spill] sm:$0xff]  ;;  %v6618_v7 = vcombine.high %v16314_v54, %v16301_v1 }
 0x725   : > { %v7233_v28 = vcombine.low %v19766_v27, %v19765_v43 }
 0x726   : > { %v16474_v15 = vpop.permute.xlu0 %8689  ;;  %v16476_v32 = vpop.permute.xlu1 %8627  ;;  %v16490_v35 = vrot.slane %v7265_v55, %v11964_v63  ;;  %v6753_v9 = vcombine.low %v16483_v49, %v16470_v58 }
 0x727   : > { %19764 = vst [vmem:[#allocation110_spill] sm:$0xff] %v16474_v15  ;;  %v19768_v15 = vld [vmem:[#allocation193_spill] sm:$0xff]  ;;  %v16501_v43 = vrot.slane %v7233_v28, %v11964_v63  ;;  %v7162_v28 = vcombine.high %v16337_v60, %v16324_v18  ;;  %v7706_v18 = vcombine.high %v16358_v62, %v16347_v33 }
 0x728   : > { %8933 = vrot.lane.b32.xlu0 %v6074_v17, %s11682_s25  ;;  %8871 = vrot.lane.b32.xlu1 %v6209_v50, %s11672_s26  ;;  %v7809_v40 = vcombine.low %v19768_v15, %v19767_v48  ;;  %v19769_v17 = vld [vmem:[#allocation192_spill] sm:$0xff]  ;;  %v19770_v50 = vld [vmem:[#allocation195_spill] sm:$0xff]  ;;  %v8353_v15 = vcombine.low %v15715_v57, %v15719_v2 }
 0x729   : > { %v7777_v27 = vcombine.low %v19770_v50, %v19769_v17  ;;  %v7297_v48 = vcombine.low %v16501_v43, %v16490_v35  ;;  %v19772_v17 = vld [vmem:[#allocation221_spill] sm:$0xff] }
 0x72a   : > { %v16494_v30 = vpop.permute.xlu0 %8693  ;;  %v8632_v34 = vpop.permute.xlu1 %8631  ;;  %v16508_v55 = vrot.slane %v7809_v40, %v11964_v63  ;;  %v16526_v57 = vrot.slane %v8353_v15, %v11964_v63  ;;  %v9409_v15 = vsel %vm252_vm0, %v16221_v20, %v16395_v38  ;;  %v4578_v38 = vcombine.high %v16400_v6, %v16389_v51  ;;  %v19782_v51 = vld [vmem:[#allocation34_spill] sm:$0xff] }
 0x72c   : > { %8937 = vrot.lane.b32.xlu0 %v6618_v7, %s11682_s25  ;;  %8875 = vrot.lane.b32.xlu1 %v6753_v9, %s11672_s26  ;;  %v7785_v7 = vrot.slane %v7777_v27, %v11964_v63  ;;  %v19773_v9 = vld [vmem:[#allocation217_spill] sm:$0xff] }
 0x72d   : > { %v8321_v50 = vcombine.low %v19773_v9, %v19772_v17  ;;  %v8250_v17 = vcombine.high %v16381_v8, %v16370_v12  ;;  %v19776_v12 = vld [vmem:[#allocation251_spill] sm:$0xff] }
 0x72e   : > { %v16512_v1 = vpop.permute.xlu0 %8729  ;;  %v16514_v54 = vpop.permute.xlu1 %8667  ;;  %v7841_v60 = vcombine.low %v7785_v7, %v16508_v55 }
 0x72f   : > { %19771 = vst [vmem:[#allocation118_spill] sm:$0xff] %v16514_v54  ;;  %v8329_v27 = vrot.slane %v8321_v50, %v11964_v63  ;;  %v9411_v63 = vsel %vm252_vm0, %v16246_v56, %v16416_v0  ;;  %v19777_v50 = vld [vmem:[#allocation254_spill] sm:$0xff]  ;;  %v5122_v56 = vcombine.high %v16423_v19, %v16410_v59  ;;  %v19781_v0 = vld [vmem:[#allocation15_spill] sm:$0xff]  ;;  %v9417_v59 = vsel %vm252_vm0, %v16311_v41, %v16476_v32 }
 0x730   : > { %8941 = vrot.lane.b32.xlu0 %v7162_v28, %s11682_s25  ;;  %8879 = vrot.lane.b32.xlu1 %v7297_v48, %s11672_s26  ;;  %v19783_v6 = vcombine.low %v19781_v0, %v19782_v51  ;;  %v6754_v32 = vcombine.high %v16483_v49, %v16470_v58 }
 0x731   : > { %v8385_v33 = vcombine.low %v8329_v27, %v16526_v57 }
 0x732   : > { %v16528_v2 = vpop.permute.xlu0 %8733  ;;  %v16530_v40 = vpop.permute.xlu1 %8671 }
 0x733   : > { %19774 = vst [vmem:[#allocation125_spill] sm:$0xff] %v16530_v40 }
 0x734   : > { %8945 = vrot.lane.b32.xlu0 %v7706_v18, %s11682_s25  ;;  %8883 = vrot.lane.b32.xlu1 %v7841_v60, %s11672_s26  ;;  %v19778_v18 = vcombine.low %v19776_v12, %v19777_v50 }
 0x736   : > { %v16541_v28 = vpop.permute.xlu0 %8737  ;;  %v8676_v48 = vpop.permute.xlu1 %8675 }
 0x737   : > { %v9426_v62 = vsel %vm9420_vm5, %v9409_v15, %v8676_v48 }
 0x738   : > { %8949 = vrot.lane.b32.xlu0 %v8250_v17, %s11682_s25  ;;  %8887 = vrot.lane.b32.xlu1 %v8385_v33, %s11672_s26  ;;  %v5666_v33 = vcombine.high %v16443_v23, %v16430_v46  ;;  %v19790_v46 = vld [vmem:[#allocation18_spill] sm:$0xff]  ;;  %s17784_s26 = scalar_lea.vmem [#allocation8], %s11360_s8 }
 0x739   : > { %v19791_v23 = vld [vmem:[#allocation66_spill] sm:$0xff]  ;;  %s11241_s11 = sshll.u32 %s17784_s26, 4  ;;  %s18236_s11 = int_to_ptr.vmem [resolvable:$true] %s11241_s11 }
 0x73a   : > { %v16552_v9 = vpop.permute.xlu0 %8741  ;;  %v8680_v20 = vpop.permute.xlu1 %8679  ;;  %s11571_s10 = scalar_lea.vmem %s18236_s11, 2048 }
 0x73b   : > { %19775 = vst [vmem:[#allocation130_spill] sm:$0xff] %v16552_v9  ;;  %v9428_v8 = vsel %vm9420_vm5, %v9411_v63, %v8680_v20  ;;  %v19786_v63 = vld [vmem:[#allocation45_spill] sm:$0xff]  ;;  %v19787_v20 = vld [vmem:[#allocation51_spill] sm:$0xff]  ;;  %p11572_p8 = scmp.ne.s32.totalorder %s18236_s11, %s11571_s10 }
 0x73c   : > { %8985 = vrot.lane.b32.xlu0 %v19778_v18, %s11683_s28  ;;  %8923 = vrot.lane.b32.xlu1 %v4578_v38, %s11682_s25  ;;  %v19788_v38 = vcombine.low %v19786_v63, %v19787_v20 }
 0x73d   : > { %p11573_p1 = pnand %p11572_p8, %p20133_p2 }
 0x73e   : > { %v16562_v60 = vpop.permute.xlu0 %8745  ;;  %v16564_v15 = vpop.permute.xlu1 %8683 }
 0x73f   : > { %19779 = vst [vmem:[#allocation140_spill] sm:$0xff] %v16562_v60  ;;  %19780 = vst [vmem:[#allocation145_spill] sm:$0xff] %v16564_v15  ;;  %v19798_v15 = vld [vmem:[#allocation158_spill] sm:$0xff]  ;;  %p11574_p10 = pneg %p11573_p1 }
 0x740   : > { %8989 = vrot.lane.b32.xlu0 %v19783_v6, %s11683_s28  ;;  %8927 = vrot.lane.b32.xlu1 %v5122_v56, %s11682_s25  ;;  %v6210_v56 = vcombine.high %v16463_v25, %v16450_v3  ;;  %v19793_v25 = vld [vmem:[#allocation19_spill] sm:$0xff] }
 0x742   : > { %v16573_v48 = vpop.permute.xlu0 %8749  ;;  %v16575_v17 = vpop.permute.xlu1 %8687 }
 0x743   : > { %19784 = vst [vmem:[#allocation258_spill] sm:$0xff] %v16573_v48  ;;  %19785 = vst [vmem:[#allocation256_spill] sm:$0xff] %v16575_v17  ;;  %v19792_v17 = vcombine.low %v19790_v46, %v19791_v23 }
 0x744   : > { %8993 = vrot.lane.b32.xlu0 %v19788_v38, %s11683_s28  ;;  %8931 = vrot.lane.b32.xlu1 %v5666_v33, %s11682_s25  ;;  %v9419_v33 = vsel %vm252_vm0, %v16334_v10, %v8632_v34  ;;  %v7298_v10 = vcombine.high %v16501_v43, %v16490_v35  ;;  %v19797_v34 = vld [vmem:[#allocation154_spill] sm:$0xff] }
 0x745   : > { %v19799_v58 = vcombine.low %v19797_v34, %v19798_v15 }
 0x746   : > { %v16587_v19 = vpop.permute.xlu0 %8753  ;;  %v8692_v18 = vpop.permute.xlu1 %8691 }
 0x747   : > { %19789 = vst [vmem:[#allocation37_spill] sm:$0xff] %v16587_v19  ;;  %v9434_v6 = vsel %vm9420_vm5, %v9417_v59, %v8692_v18  ;;  %v19794_v59 = vld [vmem:[#allocation82_spill] sm:$0xff] }
 0x748   : > { %8997 = vrot.lane.b32.xlu0 %v19792_v17, %s11683_s28  ;;  %8935 = vrot.lane.b32.xlu1 %v6210_v56, %s11682_s25  ;;  %v19795_v18 = vcombine.low %v19793_v25, %v19794_v59 }
 0x74a   : > { %v16599_v38 = vpop.permute.xlu0 %8757  ;;  %v8696_v41 = vpop.permute.xlu1 %8695 }
 0x74b   : > { %v9436_v3 = vsel %vm9420_vm5, %v9419_v33, %v8696_v41  ;;  %v7842_v41 = vcombine.high %v7785_v7, %v16508_v55 }
 0x74c   : > { %9001 = vrot.lane.b32.xlu0 %v19795_v18, %s11683_s28  ;;  %8939 = vrot.lane.b32.xlu1 %v6754_v32, %s11682_s25  ;;  %v19801_v32 = vld [vmem:[#allocation182_spill] sm:$0xff]  ;;  %v19802_v18 = vld [vmem:[#allocation189_spill] sm:$0xff] }
 0x74d   : > { %v19803_v40 = vcombine.low %v19801_v32, %v19802_v18 }
 0x74e   : > { %v16609_v17 = vpop.permute.xlu0 %8793  ;;  %v16611_v56 = vpop.permute.xlu1 %8731 }
 0x74f   : > { %19796 = vst [vmem:[#allocation36_spill] sm:$0xff] %v16611_v56  ;;  %v19804_v56 = vld [vmem:[#allocation214_spill] sm:$0xff] }
 0x750   : > { %9005 = vrot.lane.b32.xlu0 %v19799_v58, %s11683_s28  ;;  %8943 = vrot.lane.b32.xlu1 %v7298_v10, %s11682_s25  ;;  %v8386_v58 = vcombine.high %v8329_v27, %v16526_v57  ;;  %v19809_v57 = vld [vmem:[#allocation265_spill] sm:$0xff] }
 0x751   : > { %v19810_v27 = vld [vmem:[#allocation269_spill] sm:$0xff] }
 0x752   : > { %v16620_v49 = vpop.permute.xlu0 %8797  ;;  %v16622_v33 = vpop.permute.xlu1 %8735 }
 0x753   : > { %19800 = vst [vmem:[#allocation23_spill] sm:$0xff] %v16622_v33  ;;  %v19805_v33 = vld [vmem:[#allocation210_spill] sm:$0xff] }
 0x754   : > { %9009 = vrot.lane.b32.xlu0 %v19803_v40, %s11683_s28  ;;  %8947 = vrot.lane.b32.xlu1 %v7842_v41, %s11682_s25  ;;  %v19806_v54 = vcombine.low %v19804_v56, %v19805_v33  ;;  %v19808_v41 = vcombine.high %v19776_v12, %v19777_v50 }
 0x756   : > { %v16630_v35 = vpop.permute.xlu0 %8801  ;;  %v8740_v43 = vpop.permute.xlu1 %8739 }
 0x757   : > { %v9443_v10 = vsel %vm9437_vm6, %v9426_v62, %v8740_v43  ;;  %v19811_v62 = vcombine.low %v19809_v57, %v19810_v27 }
 0x758   : > { %9013 = vrot.lane.b32.xlu0 %v19806_v54, %s11683_s28  ;;  %8951 = vrot.lane.b32.xlu1 %v8386_v58, %s11682_s25  ;;  %v19814_v58 = vcombine.high %v19781_v0, %v19782_v51  ;;  %s11690_s25 = smov [#allocation8]  }
 0x75a   : > { %v16639_v55 = vpop.permute.xlu0 %8805  ;;  %v8744_v7 = vpop.permute.xlu1 %8743 }
 0x75b   : > { %19807 = vst [vmem:[#allocation56_spill] sm:$0xff] %v16639_v55  ;;  %v9445_v40 = vsel %vm9437_vm6, %v9428_v8, %v8744_v7  ;;  %v19815_v8 = vld [vmem:[#allocation97_spill] sm:$0xff]  ;;  %v19816_v7 = vld [vmem:[#allocation103_spill] sm:$0xff] }
 0x75c   : > { %9049 = vrot.lane.b32.xlu0 %v19808_v41, %s11684_s20  ;;  %8987 = vrot.lane.b32.xlu1 %v19811_v62, %s11683_s28  ;;  %v19817_v19 = vcombine.low %v19815_v8, %v19816_v7  ;;  %v19820_v41 = vcombine.high %v19786_v63, %v19787_v20  ;;  %v19821_v62 = vld [vmem:[#allocation112_spill] sm:$0xff]  ;;  %v19848_v55 = vld [vmem:[#allocation261_spill] sm:$0xff] }
 0x75e   : > { %v16650_v43 = vpop.permute.xlu0 %8809  ;;  %v16652_v54 = vpop.permute.xlu1 %8747 }
 0x75f   : > { %19812 = vst [vmem:[#allocation69_spill] sm:$0xff] %v16650_v43  ;;  %19813 = vst [vmem:[#allocation68_spill] sm:$0xff] %v16652_v54  ;;  %v19822_v54 = vld [vmem:[#allocation114_spill] sm:$0xff] }
 0x760   : > { %9053 = vrot.lane.b32.xlu0 %v19814_v58, %s11684_s20  ;;  %8991 = vrot.lane.b32.xlu1 %v19817_v19, %s11683_s28  ;;  %v19823_v48 = vcombine.low %v19821_v62, %v19822_v54  ;;  %v19825_v19 = vcombine.high %v19790_v46, %v19791_v23 }
 0x762   : > { %v16662_v12 = vpop.permute.xlu0 %8813  ;;  %v16664_v50 = vpop.permute.xlu1 %8751 }
 0x763   : > { %19818 = vst [vmem:[#allocation85_spill] sm:$0xff] %v16662_v12  ;;  %19819 = vst [vmem:[#allocation84_spill] sm:$0xff] %v16664_v50  ;;  %v19826_v50 = vld [vmem:[#allocation124_spill] sm:$0xff]  ;;  %v19827_v12 = vld [vmem:[#allocation129_spill] sm:$0xff] }
 0x764   : > { %9057 = vrot.lane.b32.xlu0 %v19820_v41, %s11684_s20  ;;  %8995 = vrot.lane.b32.xlu1 %v19823_v48, %s11683_s28  ;;  %v19828_v63 = vcombine.low %v19826_v50, %v19827_v12 }
 0x766   : > { %v16674_v0 = vpop.permute.xlu0 %8817  ;;  %v8756_v51 = vpop.permute.xlu1 %8755 }
 0x767   : > { %19824 = vst [vmem:[#allocation164_spill] sm:$0xff] %v16674_v0  ;;  %v9451_v58 = vsel %vm9437_vm6, %v9434_v6, %v8756_v51  ;;  %v19829_v0 = vcombine.high %v19793_v25, %v19794_v59  ;;  %v19830_v6 = vld [vmem:[#allocation139_spill] sm:$0xff]  ;;  %v19831_v51 = vld [vmem:[#allocation144_spill] sm:$0xff] }
 0x768   : > { %9061 = vrot.lane.b32.xlu0 %v19825_v19, %s11684_s20  ;;  %8999 = vrot.lane.b32.xlu1 %v19828_v63, %s11683_s28  ;;  %v19832_v46 = vcombine.low %v19830_v6, %v19831_v51  ;;  %v19834_v63 = vcombine.high %v19797_v34, %v19798_v15 }
 0x76a   : > { %v16685_v20 = vpop.permute.xlu0 %8821  ;;  %v8760_v41 = vpop.permute.xlu1 %8759 }
 0x76b   : > { %v9453_v48 = vsel %vm9437_vm6, %v9436_v3, %v8760_v41  ;;  %v19835_v3 = vld [vmem:[#allocation169_spill] sm:$0xff] }
 0x76c   : > { %9065 = vrot.lane.b32.xlu0 %v19829_v0, %s11684_s20  ;;  %9003 = vrot.lane.b32.xlu1 %v19832_v46, %s11683_s28  ;;  %v19836_v41 = vld [vmem:[#allocation173_spill] sm:$0xff]  ;;  %v19839_v0 = vcombine.high %v19801_v32, %v19802_v18  ;;  %v19840_v46 = vld [vmem:[#allocation196_spill] sm:$0xff]  ;;  %v19845_v32 = vcombine.low %v15760_v53, %v15750_v4 }
 0x76d   : > { %v19837_v43 = vcombine.low %v19835_v3, %v19836_v41 }
 0x76e   : > { %v16696_v23 = vpop.permute.xlu0 %8857  ;;  %v16698_v19 = vpop.permute.xlu1 %8795 }
 0x76f   : > { %19833 = vst [vmem:[#allocation163_spill] sm:$0xff] %v16698_v19  ;;  %v19841_v19 = vld [vmem:[#allocation203_spill] sm:$0xff] }
 0x770   : > { %9069 = vrot.lane.b32.xlu0 %v19834_v63, %s11684_s20  ;;  %9007 = vrot.lane.b32.xlu1 %v19837_v43, %s11683_s28  ;;  %v19842_v60 = vcombine.low %v19840_v46, %v19841_v19  ;;  %v19844_v63 = vcombine.high %v19804_v56, %v19805_v33  ;;  %v19850_v56 = vcombine.high %v19809_v57, %v19810_v27  ;;  %v19859_v57 = vld [vmem:[#allocation50_spill] sm:$0xff] }
 0x771   : > { %v19860_v27 = vld [vmem:[#allocation54_spill] sm:$0xff] }
 0x772   : > { %v16708_v25 = vpop.permute.xlu0 %8861  ;;  %v16710_v59 = vpop.permute.xlu1 %8799 }
 0x773   : > { %19838 = vst [vmem:[#allocation274_spill] sm:$0xff] %v16710_v59  ;;  %v19847_v59 = vld [vmem:[#allocation253_spill] sm:$0xff] }
 0x774   : > { %9073 = vrot.lane.b32.xlu0 %v19839_v0, %s11684_s20  ;;  %9011 = vrot.lane.b32.xlu1 %v19842_v60, %s11683_s28 }
 0x776   : > { %v16720_v15 = vpop.permute.xlu0 %8865  ;;  %v8804_v34 = vpop.permute.xlu1 %8803 }
 0x777   : > { %19843 = vst [vmem:[#allocation272_spill] sm:$0xff] %v16720_v15  ;;  %v9460_v43 = vsel %vm9454_vm7, %v9443_v10, %v8804_v34  ;;  %v19849_v10 = vcombine.low %v19847_v59, %v19848_v55 }
 0x778   : > { %9077 = vrot.lane.b32.xlu0 %v19844_v63, %s11684_s20  ;;  %9015 = vrot.lane.b32.xlu1 %v19845_v32, %s11683_s28  ;;  %v19853_v63 = vld [vmem:[#allocation30_spill] sm:$0xff]  ;;  %s11575_s28 = sshll.u32 %s11690_s25, 4  ;;  %s11576_s28 = int_to_ptr.vmem [resolvable:$false] %s11575_s28 }
 0x779   : > { %v19854_v32 = vld [vmem:[#allocation42_spill] sm:$0xff]  ;;  %p11578_p3 = scmp.lt.s32.totalorder %s18236_s11, %s11576_s28 }
 0x77a   : > { %v16731_v18 = vpop.permute.xlu0 %8869  ;;  %v8808_v0 = vpop.permute.xlu1 %8807 }
 0x77b   : > { %19846 = vst [vmem:[#allocation101_spill] sm:$0xff] %v16731_v18  ;;  %v9462_v60 = vsel %vm9454_vm7, %v9445_v40, %v8808_v0  ;;  %v19855_v18 = vcombine.low %v19853_v63, %v19854_v32  ;;  %v19856_v40 = vcombine.high %v19815_v8, %v19816_v7  ;;  %v19864_v7 = vld [vmem:[#allocation62_spill] sm:$0xff] }
 0x77c   : > { %9113 = vrot.lane.b32.xlu0 %v19849_v10, %s11685_s22  ;;  %9051 = vrot.lane.b32.xlu1 %v19850_v56, %s11684_s20  ;;  %v19861_v56 = vcombine.low %v19859_v57, %v19860_v27 }
 0x77e   : > { %v16742_v33 = vpop.permute.xlu0 %8873  ;;  %v16744_v34 = vpop.permute.xlu1 %8811 }
 0x77f   : > { %19851 = vst [vmem:[#allocation16_spill] sm:$0xff] %v16742_v33  ;;  %19852 = vst [vmem:[#allocation116_spill] sm:$0xff] %v16744_v34  ;;  %v19862_v34 = vcombine.high %v19821_v62, %v19822_v54  ;;  %v19868_v62 = vld [vmem:[#allocation78_spill] sm:$0xff] }
 0x780   : > { %9117 = vrot.lane.b32.xlu0 %v19855_v18, %s11685_s22  ;;  %9055 = vrot.lane.b32.xlu1 %v19856_v40, %s11684_s20  ;;  %v19865_v40 = vld [vmem:[#allocation74_spill] sm:$0xff] }
 0x782   : > { %v16754_v0 = vpop.permute.xlu0 %8877  ;;  %v16756_v10 = vpop.permute.xlu1 %8815 }
 0x783   : > { %19857 = vst [vmem:[#allocation115_spill] sm:$0xff] %v16754_v0  ;;  %19858 = vst [vmem:[#allocation135_spill] sm:$0xff] %v16756_v10  ;;  %v19866_v0 = vcombine.low %v19864_v7, %v19865_v40  ;;  %v19867_v10 = vcombine.high %v19826_v50, %v19827_v12  ;;  %v19873_v12 = vld [vmem:[#allocation155_spill] sm:$0xff]  ;;  %v19874_v50 = vld [vmem:[#allocation162_spill] sm:$0xff] }
 0x784   : > { %9121 = vrot.lane.b32.xlu0 %v19861_v56, %s11685_s22  ;;  %9059 = vrot.lane.b32.xlu1 %v19862_v34, %s11684_s20  ;;  %v19869_v34 = vld [vmem:[#allocation90_spill] sm:$0xff] }
 0x786   : > { %v16766_v18 = vpop.permute.xlu0 %8881  ;;  %v8820_v33 = vpop.permute.xlu1 %8819 }
 0x787   : > { %19863 = vst [vmem:[#allocation134_spill] sm:$0xff] %v16766_v18  ;;  %v9468_v8 = vsel %vm9454_vm7, %v9451_v58, %v8820_v33  ;;  %v19870_v18 = vcombine.low %v19868_v62, %v19869_v34  ;;  %v19871_v58 = vcombine.high %v19830_v6, %v19831_v51  ;;  %v19878_v6 = vld [vmem:[#allocation184_spill] sm:$0xff]  ;;  %v19879_v51 = vld [vmem:[#allocation190_spill] sm:$0xff] }
 0x788   : > { %9125 = vrot.lane.b32.xlu0 %v19866_v0, %s11685_s22  ;;  %9063 = vrot.lane.b32.xlu1 %v19867_v10, %s11684_s20  ;;  %v19875_v10 = vcombine.low %v19873_v12, %v19874_v50 }
 0x78a   : > { %v8886_v56 = vpop.permute.xlu0 %8885  ;;  %v8824_v9 = vpop.permute.xlu1 %8823 }
 0x78b   : > { %v9470_v54 = vsel %vm9454_vm7, %v9453_v48, %v8824_v9  ;;  %v19876_v9 = vcombine.high %v19835_v3, %v19836_v41  ;;  %v19882_v41 = vld [vmem:[#allocation215_spill] sm:$0xff] }
 0x78c   : > { %9129 = vrot.lane.b32.xlu0 %v19870_v18, %s11685_s22  ;;  %9067 = vrot.lane.b32.xlu1 %v19871_v58, %s11684_s20  ;;  %v19880_v58 = vcombine.low %v19878_v6, %v19879_v51 }
 0x78e   : > { %v16786_v33 = vpop.permute.xlu0 %8921  ;;  %v16788_v0 = vpop.permute.xlu1 %8859 }
 0x78f   : > { %19872 = vst [vmem:[#allocation150_spill] sm:$0xff] %v16788_v0  ;;  %v19881_v0 = vcombine.high %v19840_v46, %v19841_v19 }
 0x790   : > { %9133 = vrot.lane.b32.xlu0 %v19875_v10, %s11685_s22  ;;  %9071 = vrot.lane.b32.xlu1 %v19876_v9, %s11684_s20  ;;  %v19883_v9 = vld [vmem:[#allocation219_spill] sm:$0xff] }
 0x792   : > { %v16798_v48 = vpop.permute.xlu0 %8925  ;;  %v16800_v18 = vpop.permute.xlu1 %8863 }
 0x793   : > { %19877 = vst [vmem:[#allocation149_spill] sm:$0xff] %v16800_v18  ;;  %v19884_v18 = vcombine.low %v19882_v41, %v19883_v9 }
 0x794   : > { %9137 = vrot.lane.b32.xlu0 %v19880_v58, %s11685_s22  ;;  %9075 = vrot.lane.b32.xlu1 %v19881_v0, %s11684_s20  ;;  %v19885_v58 = vcombine.high %v15760_v53, %v15750_v4  ;;  %v19888_v0 = vld [vmem:[#allocation277_spill] sm:$0xff]  ;;  %v19892_v53 = vcombine.high %v19853_v63, %v19854_v32  ;;  %v19900_v63 = vcombine.high %v19859_v57, %v19860_v27 }
 0x795   : > { %v19901_v32 = vld [vmem:[#allocation113_spill] sm:$0xff] }
 0x796   : > { %v16810_v10 = vpop.permute.xlu0 %8929  ;;  %v8868_v15 = vpop.permute.xlu1 %8867 }
 0x797   : > { %v16813_v3 = vsel %vm9471_vm8, %v9460_v43, %v8868_v15  ;;  %v19886_v15 = vcombine.high %v19847_v59, %v19848_v55  ;;  %v19887_v43 = vld [vmem:[#allocation268_spill] sm:$0xff] }
 0x798   : > { %9141 = vrot.lane.b32.xlu0 %v19884_v18, %s11685_s22  ;;  %9079 = vrot.lane.b32.xlu1 %v19885_v58, %s11684_s20  ;;  %v19889_v18 = vcombine.low %v19887_v43, %v19888_v0  ;;  %v19894_v58 = vld [vmem:[#allocation106_spill] sm:$0xff]  ;;  %s11577_s20 = scalar_lea.vmem %s11576_s28, 4096 }
 0x799   : > { %p11579_p5 = scmp.lt.s32.totalorder %s11577_s20, %s11571_s10 }
 0x79a   : > { %v16823_v51 = vpop.permute.xlu0 %8933  ;;  %v8872_v19 = vpop.permute.xlu1 %8871 }
 0x79b   : > { %v16826_v46 = vsel %vm9471_vm8, %v9462_v60, %v8872_v19  ;;  %v19893_v60 = vld [vmem:[#allocation99_spill] sm:$0xff]  ;;  %p11580_p9 = por %p11579_p5, %p11578_p3 }
 0x79c   : > { %9177 = vrot.lane.b32.xlu0 %v19886_v15, %s11686_s24  ;;  %9115 = vrot.lane.b32.xlu1 %v19889_v18, %s11685_s22  ;;  %v19895_v19 = vcombine.low %v19893_v60, %v19894_v58  ;;  %v19897_v15 = vld [vmem:[#allocation212_spill] sm:$0xff]  ;;  %v19898_v18 = vld [vmem:[#allocation209_spill] sm:$0xff] }
 0x79d   : > { %p11581_p11 = pnand %p11580_p9, %p11574_p10 }
 0x79e   : > { %v16836_v9 = vpop.permute.xlu0 %8937  ;;  %v16838_v4 = vpop.permute.xlu1 %8875 }
 0x79f   : > { %19890 = vst [vmem:[#allocation259_spill] sm:$0xff] %v16836_v9  ;;  %19891 = vst [vmem:[#allocation257_spill] sm:$0xff] %v16838_v4  ;;  %v19899_v9 = vcombine.low %v19897_v15, %v19898_v18  ;;  %v19904_v15 = vld [vmem:[#allocation252_spill] sm:$0xff]  ;;  %v19905_v18 = vld [vmem:[#allocation255_spill] sm:$0xff] }
 0x7a0   : > { %9181 = vrot.lane.b32.xlu0 %v19892_v53, %s11686_s24  ;;  %9119 = vrot.lane.b32.xlu1 %v19895_v19, %s11685_s22  ;;  %v19902_v53 = vld [vmem:[#allocation121_spill] sm:$0xff] }
 0x7a1   : > { %v9368_v4 = vsel %vm9353_vm2, %v19899_v9, %v15979_v11  ;;  %v19903_v19 = vcombine.low %v19901_v32, %v19902_v53  ;;  %v19906_v11 = vcombine.low %v19904_v15, %v19905_v18  ;;  %v19912_v15 = vld [vmem:[#allocation35_spill] sm:$0xff] }
 0x7a2   : > { %v16848_v55 = vpop.permute.xlu0 %8941  ;;  %v16850_v59 = vpop.permute.xlu1 %8879  ;;  %v9385_v0 = vsel %vm9370_vm3, %v9368_v4, %v16063_v45 }
 0x7a3   : > { %19896 = vst [vmem:[#allocation41_spill] sm:$0xff] %v16850_v59  ;;  %v9402_v59 = vsel %vm9387_vm4, %v9385_v0, %v16172_v13  ;;  %v9354_v9 = vsel %vm9353_vm2, %v19906_v11, %v15884_v14 }
 0x7a4   : > { %9185 = vrot.lane.b32.xlu0 %v19900_v63, %s11686_s24  ;;  %9123 = vrot.lane.b32.xlu1 %v19903_v19, %s11685_s22  ;;  %v9418_v45 = vsel %vm252_vm0, %v9402_v59, %v16328_v22  ;;  %v9371_v27 = vsel %vm9370_vm3, %v9354_v9, %v15989_v24  ;;  %v19907_v22 = vcombine.high %v19864_v7, %v19865_v40  ;;  %v19908_v59 = vld [vmem:[#allocation128_spill] sm:$0xff]  ;;  %v19909_v24 = vld [vmem:[#allocation283_spill] sm:$0xff] }
 0x7a5   : > { %v9435_v63 = vsel %vm9420_vm5, %v9418_v45, %v16494_v30  ;;  %v9388_v0 = vsel %vm9387_vm4, %v9371_v27, %v16073_v39  ;;  %v19910_v19 = vcombine.low %v19908_v59, %v19909_v24  ;;  %v19911_v39 = vld [vmem:[#allocation29_spill] sm:$0xff] }
 0x7a6   : > { %v16876_v4 = vpop.permute.xlu0 %8945  ;;  %v8884_v57 = vpop.permute.xlu1 %8883  ;;  %v9452_v14 = vsel %vm9437_vm6, %v9435_v63, %v16599_v38  ;;  %v9404_v30 = vsel %vm252_vm0, %v9388_v0, %v16185_v36  ;;  %v19913_v38 = vcombine.low %v19911_v39, %v19912_v15  ;;  %v19918_v63 = vld [vmem:[#allocation49_spill] sm:$0xff] }
 0x7a7   : > { %v16883_v13 = vsel %vm9471_vm8, %v9468_v8, %v8884_v57  ;;  %v9469_v8 = vsel %vm9454_vm7, %v9452_v14, %v16685_v20  ;;  %v9421_v7 = vsel %vm9420_vm5, %v9404_v30, %v16351_v21 }
 0x7a8   : > { %9189 = vrot.lane.b32.xlu0 %v19907_v22, %s11686_s24  ;;  %9127 = vrot.lane.b32.xlu1 %v19910_v19, %s11685_s22  ;;  %v9356_v18 = vsel %vm9353_vm2, %v19913_v38, %v15902_v37  ;;  %v9486_v40 = vsel %vm9471_vm8, %v9469_v8, %v8886_v56  ;;  %v9438_v20 = vsel %vm9437_vm6, %v9421_v7, %v16512_v1  ;;  %v19916_v1 = vld [vmem:[#allocation286_spill] sm:$0xff]  ;;  %v19922_v8 = vld [vmem:[#allocation179_spill] sm:$0xff] }
 0x7a9   : > { %v9373_v36 = vsel %vm9370_vm3, %v9356_v18, %v15999_v31  ;;  %v9455_v21 = vsel %vm9454_vm7, %v9438_v20, %v16609_v17  ;;  %v19914_v56 = vcombine.high %v19868_v62, %v19869_v34  ;;  %v19915_v31 = vld [vmem:[#allocation143_spill] sm:$0xff] }
 0x7aa   : > { %v8950_v11 = vpop.permute.xlu0 %8949  ;;  %v8888_v9 = vpop.permute.xlu1 %8887  ;;  %v9390_v37 = vsel %vm9387_vm4, %v9373_v36, %v16085_v44  ;;  %v19917_v27 = vcombine.low %v19915_v31, %v19916_v1  ;;  %v9472_v44 = vsel %vm9471_vm8, %v9455_v21, %v16696_v23  ;;  %v19919_v17 = vld [vmem:[#allocation55_spill] sm:$0xff]  ;;  %v19929_v36 = vld [vmem:[#allocation238_spill] sm:$0xff]  ;;  %v19933_v21 = vld [vmem:[#allocation205_spill] sm:$0xff] }
 0x7ab   : > { %v16914_v45 = vsel %vm9488_vm9, %v9486_v40, %v8950_v11  ;;  %v16917_v57 = vsel %vm9471_vm8, %v9470_v54, %v8888_v9  ;;  %v9406_v54 = vsel %vm252_vm0, %v9390_v37, %v16199_v5  ;;  %v19920_v0 = vcombine.low %v19918_v63, %v19919_v17  ;;  %v19926_v38 = vld [vmem:[#allocation67_spill] sm:$0xff]  ;;  %v19928_v11 = vld [vmem:[#allocation230_spill] sm:$0xff]  ;;  %v19937_v63 = vld [vmem:[#allocation224_spill] sm:$0xff] }
 0x7ac   : > { %9193 = vrot.lane.b32.xlu0 %v19914_v56, %s11686_s24  ;;  %9131 = vrot.lane.b32.xlu1 %v19917_v27, %s11685_s22  ;;  %v9423_v62 = vsel %vm9420_vm5, %v9406_v54, %v16372_v61  ;;  %v9489_v34 = vsel %vm9488_vm9, %v9472_v44, %v16786_v33  ;;  %v19921_v33 = vcombine.high %v19873_v12, %v19874_v50  ;;  %v19932_v37 = vld [vmem:[#allocation194_spill] sm:$0xff]  ;;  %v19936_v54 = vld [vmem:[#allocation272_spill] sm:$0xff]  ;;  %v19938_v17 = vld [vmem:[#allocation77_spill] sm:$0xff] }
 0x7ad   : > { %v9358_v14 = vsel %vm9353_vm2, %v19920_v0, %v15912_v26  ;;  %v9440_v23 = vsel %vm9437_vm6, %v9423_v62, %v16528_v2  ;;  %v19934_v56 = vcombine.low %v19932_v37, %v19933_v21  ;;  %v19939_v0 = vld [vmem:[#allocation83_spill] sm:$0xff]  ;;  %v19941_v62 = vld [vmem:[#allocation246_spill] sm:$0xff] }
 0x7ae   : > { %v8986_v22 = vpop.permute.xlu0 %8985  ;;  %v16944_v19 = vpop.permute.xlu1 %8923  ;;  %v9375_v5 = vsel %vm9370_vm3, %v9358_v14, %v16009_v29  ;;  %v9457_v61 = vsel %vm9454_vm7, %v9440_v23, %v16620_v49  ;;  %v19923_v29 = vld [vmem:[#allocation176_spill] sm:$0xff]  ;;  %v19942_v23 = vld [vmem:[#allocation235_spill] sm:$0xff] }
 0x7af   : > { %v16951_v30 = vsel %vm9505_vm10, %v9489_v34, %v8986_v22  ;;  %v9392_v26 = vsel %vm9387_vm4, %v9375_v5, %v16101_v42  ;;  %v19924_v39 = vcombine.low %v19922_v8, %v19923_v29  ;;  %v9474_v15 = vsel %vm9471_vm8, %v9457_v61, %v16708_v25  ;;  %v19925_v42 = vld [vmem:[#allocation61_spill] sm:$0xff]  ;;  %v19943_v61 = vld [vmem:[#allocation130_spill] sm:$0xff] }
 0x7b0   : > { %9197 = vrot.lane.b32.xlu0 %v19921_v33, %s11686_s24  ;;  %v9408_v2 = vsel %vm252_vm0, %v9392_v26, %v16218_v47  ;;  %v19927_v49 = vcombine.low %v19925_v42, %v19926_v38  ;;  %v9491_v50 = vsel %vm9488_vm9, %v9474_v15, %v16798_v48  ;;  %v19930_v48 = vld [vmem:[#allocation190_spill] sm:$0xff]  ;;  %v19944_v15 = vld [vmem:[#allocation33_spill] sm:$0xff]  ;;  %v19945_v38 = vld [vmem:[#allocation56_spill] sm:$0xff] }
 0x7b1   : > { %9135 = vrot.lane.b32.xlu1 %v19924_v39, %s11685_s22  ;;  %v9425_v12 = vsel %vm9420_vm5, %v9408_v2, %v16393_v52  ;;  %v19931_v20 = vcombine.high %v19878_v6, %v19930_v48 }
 0x7b2   : > { %v9360_v18 = vsel %vm9353_vm2, %v19927_v49, %v15930_v16  ;;  %v8990_v7 = vpop.permute.xlu0 %8989  ;;  %v16978_v40 = vpop.permute.xlu1 %8927  ;;  %v9442_v25 = vsel %vm9437_vm6, %v9425_v12, %v16541_v28  ;;  %v19935_v28 = vld [vmem:[#allocation243_spill] sm:$0xff]  ;;  %v19948_v12 = vld [vmem:[#allocation222_spill] sm:$0xff] }
 0x7b3   : > { %v9377_v47 = vsel %vm9370_vm3, %v9360_v18, %v19928_v11  ;;  %v16985_v9 = vsel %vm9505_vm10, %v9491_v50, %v8990_v7  ;;  %v9459_v52 = vsel %vm9454_vm7, %v9442_v25, %v16630_v35  ;;  %v19940_v35 = vcombine.low %v19938_v17, %v19939_v0  ;;  %v19946_v49 = vld [vmem:[#allocation219_spill] sm:$0xff]  ;;  %v19949_v50 = vld [vmem:[#allocation218_spill] sm:$0xff]  ;;  %v19951_v11 = vld [vmem:[#allocation240_spill] sm:$0xff] }
 0x7b4   : > { %v9394_v16 = vsel %vm9387_vm4, %v9377_v47, %v19929_v36  ;;  %9201 = vrot.lane.b32.xlu0 %v19931_v20, %s11686_s24  ;;  %v9476_v44 = vsel %vm9471_vm8, %v9459_v52, %v19936_v54  ;;  %v19947_v18 = vcombine.high %v19882_v41, %v19946_v49  ;;  %v19950_v7 = vcombine.low %v19948_v12, %v19949_v50  ;;  %v19952_v47 = vld [vmem:[#allocation101_spill] sm:$0xff]  ;;  %v19953_v36 = vld [vmem:[#allocation228_spill] sm:$0xff]  ;;  %v19955_v52 = vld [vmem:[#allocation159_spill] sm:$0xff] }
 0x7b5   : > { %9139 = vrot.lane.b32.xlu1 %v19934_v56, %s11685_s22  ;;  %v9410_v27 = vsel %vm252_vm0, %v9394_v16, %v19935_v28  ;;  %v9362_v14 = vsel %vm9353_vm2, %v19940_v35, %v19937_v63  ;;  %v9493_v34 = vsel %vm9488_vm9, %v9476_v44, %v16810_v10  ;;  %v19954_v16 = vld [vmem:[#allocation157_spill] sm:$0xff]  ;;  %v19957_v56 = vld [vmem:[#allocation267_spill] sm:$0xff]  ;;  %v19958_v44 = vld [vmem:[#allocation236_spill] sm:$0xff] }
 0x7b6   : > { %v9427_v6 = vsel %vm9420_vm5, %v9410_v27, %v19941_v62  ;;  %v8994_v22 = vpop.permute.xlu0 %8993  ;;  %v8932_v5 = vpop.permute.xlu1 %8931  ;;  %v9379_v26 = vsel %vm9370_vm3, %v9362_v14, %v19942_v23  ;;  %v19956_v48 = vcombine.low %v19954_v16, %v19955_v52  ;;  %v19959_v17 = vld [vmem:[#allocation140_spill] sm:$0xff]  ;;  %v19960_v62 = vld [vmem:[#allocation46_spill] sm:$0xff]  ;;  %v19975_v16 = vld [vmem:[#allocation233_spill] sm:$0xff] }
 0x7b7   : > { %v9444_v33 = vsel %vm9437_vm6, %v9427_v6, %v19943_v61  ;;  %v17017_v39 = vsel %vm9505_vm10, %v9493_v34, %v8994_v22  ;;  %v17021_v2 = vsel %vm9488_vm9, %v16813_v3, %v8932_v5  ;;  %v9396_v42 = vsel %vm9387_vm4, %v9379_v26, %v19944_v15  ;;  %v19961_v34 = vld [vmem:[#allocation69_spill] sm:$0xff]  ;;  %v19962_v22 = vld [vmem:[#allocation86_spill] sm:$0xff]  ;;  %v19968_v15 = vld [vmem:[#allocation16_spill] sm:$0xff] }
 0x7b8   : > { %v9461_v10 = vsel %vm9454_vm7, %v9444_v33, %v19945_v38  ;;  %9205 = vrot.lane.b32.xlu0 %v19947_v18, %s11686_s24  ;;  %v9412_v3 = vsel %vm252_vm0, %v9396_v42, %v19951_v11  ;;  %v9364_v20 = vsel %vm9353_vm2, %v19956_v48, %v19953_v36  ;;  %v19963_v5 = vld [vmem:[#allocation285_spill] sm:$0xff]  ;;  %v19971_v49 = vld [vmem:[#allocation186_spill] sm:$0xff] }
 0x7b9   : > { %9143 = vrot.lane.b32.xlu1 %v19950_v7, %s11685_s22  ;;  %v9478_v25 = vsel %vm9471_vm8, %v9461_v10, %v19952_v47  ;;  %v9429_v41 = vsel %vm9420_vm5, %v9412_v3, %v19957_v56  ;;  %v9381_v63 = vsel %vm9370_vm3, %v9364_v20, %v19958_v44  ;;  %v19964_v23 = vcombine.low %v19962_v22, %v19963_v5  ;;  %v19965_v26 = vld [vmem:[#allocation277_spill] sm:$0xff]  ;;  %v19970_v10 = vld [vmem:[#allocation188_spill] sm:$0xff]  ;;  %v19973_v11 = vld [vmem:[#allocation98_spill] sm:$0xff] }
 0x7ba   : > { %v9495_v28 = vsel %vm9488_vm9, %v9478_v25, %v16823_v51  ;;  %v8998_v27 = vpop.permute.xlu0 %8997  ;;  %v8936_v54 = vpop.permute.xlu1 %8935  ;;  %v9446_v0 = vsel %vm9437_vm6, %v9429_v41, %v19959_v17  ;;  %v9398_v6 = vsel %vm9387_vm4, %v9381_v63, %v19960_v62  ;;  %v19966_v61 = vcombine.high %v19887_v43, %v19965_v26  ;;  %v19967_v33 = vld [vmem:[#allocation241_spill] sm:$0xff]  ;;  %v19974_v47 = vld [vmem:[#allocation259_spill] sm:$0xff]  ;;  %v19976_v48 = vld [vmem:[#allocation258_spill] sm:$0xff] }
 0x7bb   : > { %v17053_v35 = vsel %vm9505_vm10, %v9495_v28, %v8998_v27  ;;  %v17057_v14 = vsel %vm9488_vm9, %v16826_v46, %v8936_v54  ;;  %v9463_v51 = vsel %vm9454_vm7, %v9446_v0, %v19961_v34  ;;  %v9414_v46 = vsel %vm252_vm0, %v9398_v6, %v19967_v33  ;;  %v19969_v38 = vld [vmem:[#allocation229_spill] sm:$0xff]  ;;  %v19977_v41 = vld [vmem:[#allocation239_spill] sm:$0xff]  ;;  %v19980_v63 = vld [vmem:[#allocation166_spill] sm:$0xff] }
 0x7bc   : > { %9257 = vrot.lane.b32.xlu0 %v19964_v23, %s11687_s6  ;;  %v9480_v42 = vsel %vm9471_vm8, %v9463_v51, %v19968_v15  ;;  %v19972_v18 = vcombine.low %v19970_v10, %v19971_v49  ;;  %v9431_v3 = vsel %vm9420_vm5, %v9414_v46, %v19973_v11  ;;  %v19978_v27 = vld [vmem:[#allocation85_spill] sm:$0xff]  ;;  %v19982_v0 = vcombine.high %v19893_v60, %v19894_v58  ;;  %v19983_v62 = vld [vmem:[#allocation87_spill] sm:$0xff]  ;;  %v19985_v23 = vld [vmem:[#allocation110_spill] sm:$0xff] }
 0x7bd   : > { %9179 = vrot.lane.b32.xlu1 %v19966_v61, %s11686_s24  ;;  %v9497_v25 = vsel %vm9488_vm9, %v9480_v42, %v19974_v47  ;;  %v9448_v20 = vsel %vm9437_vm6, %v9431_v3, %v19976_v48  ;;  %v19979_v44 = vld [vmem:[#allocation165_spill] sm:$0xff]  ;;  %v19984_v34 = vld [vmem:[#allocation115_spill] sm:$0xff]  ;;  %v19987_v58 = vld [vmem:[#allocation164_spill] sm:$0xff] }
 0x7be   : > { %v9366_v7 = vsel %vm9353_vm2, %v19972_v18, %v19969_v38  ;;  %v9002_v43 = vpop.permute.xlu0 %9001  ;;  %v17084_v36 = vpop.permute.xlu1 %8939  ;;  %v9465_v54 = vsel %vm9454_vm7, %v9448_v20, %v19978_v27  ;;  %v19981_v17 = vcombine.low %v19979_v44, %v19980_v63  ;;  %v19986_v15 = vld [vmem:[#allocation37_spill] sm:$0xff]  ;;  %v19989_v49 = vld [vmem:[#allocation191_spill] sm:$0xff]  ;;  %v19994_v47 = vld [vmem:[#allocation266_spill] sm:$0xff] }
 0x7bf   : > { %v9383_v52 = vsel %vm9370_vm3, %v9366_v7, %v19975_v16  ;;  %v17091_v56 = vsel %vm9505_vm10, %v9497_v25, %v9002_v43  ;;  %v9482_v51 = vsel %vm9471_vm8, %v9465_v54, %v19984_v34  ;;  %v19988_v10 = vld [vmem:[#allocation185_spill] sm:$0xff]  ;;  %v19992_v7 = vld [vmem:[#allocation134_spill] sm:$0xff] }
 0x7c0   : > { %v9400_v28 = vsel %vm9387_vm4, %v9383_v52, %v19977_v41  ;;  %9261 = vrot.lane.b32.xlu0 %v19981_v17, %s11687_s6  ;;  %v9499_v61 = vsel %vm9488_vm9, %v9482_v51, %v16848_v55  ;;  %v19990_v18 = vcombine.low %v19988_v10, %v19989_v49  ;;  %v19991_v55 = vcombine.high %v19901_v32, %v19902_v53  ;;  %v19993_v3 = vld [vmem:[#allocation225_spill] sm:$0xff]  ;;  %v19995_v25 = vld [vmem:[#allocation270_spill] sm:$0xff]  ;;  %v19999_v17 = vld [vmem:[#allocation216_spill] sm:$0xff] }
 0x7c1   : > { %9183 = vrot.lane.b32.xlu1 %v19982_v0, %s11686_s24  ;;  %v9416_v6 = vsel %vm252_vm0, %v9400_v28, %v19983_v62  ;;  %v19996_v43 = vcombine.low %v19994_v47, %v19995_v25  ;;  %v19997_v41 = vld [vmem:[#allocation237_spill] sm:$0xff]  ;;  %v20000_v0 = vld [vmem:[#allocation220_spill] sm:$0xff]  ;;  %v20004_v51 = vld [vmem:[#allocation226_spill] sm:$0xff] }
 0x7c2   : > { %v9433_v26 = vsel %vm9420_vm5, %v9416_v6, %v19985_v23  ;;  %v9006_v33 = vpop.permute.xlu0 %9005  ;;  %v17113_v46 = vpop.permute.xlu1 %8943  ;;  %v19998_v27 = vld [vmem:[#allocation65_spill] sm:$0xff]  ;;  %v20001_v62 = vcombine.low %v19999_v17, %v20000_v0  ;;  %v20005_v23 = vld [vmem:[#allocation96_spill] sm:$0xff]  ;;  %v20012_v47 = vld [vmem:[#allocation163_spill] sm:$0xff] }
 0x7c3   : > { %v9450_v42 = vsel %vm9437_vm6, %v9433_v26, %v19986_v15  ;;  %v17118_v60 = vsel %vm9505_vm10, %v9499_v61, %v9006_v33  ;;  %v9355_v16 = vsel %vm9353_vm2, %v19996_v43, %v19993_v3  ;;  %v20003_v6 = vld [vmem:[#allocation245_spill] sm:$0xff]  ;;  %v20008_v33 = vld [vmem:[#allocation118_spill] sm:$0xff]  ;;  %v20013_v43 = vcombine.high %v19962_v22, %v19963_v5 }
 0x7c4   : > { %v9467_v38 = vsel %vm9454_vm7, %v9450_v42, %v19987_v58  ;;  %9265 = vrot.lane.b32.xlu0 %v19990_v18, %s11687_s6  ;;  %v9372_v28 = vsel %vm9370_vm3, %v9355_v16, %v19997_v41 }
 0x7c5   : > { %9187 = vrot.lane.b32.xlu1 %v19991_v55, %s11686_s24  ;;  %v9484_v11 = vsel %vm9471_vm8, %v9467_v38, %v19992_v7  ;;  %v9389_v54 = vsel %vm9387_vm4, %v9372_v28, %v19998_v27  ;;  %v20009_v38 = vld [vmem:[#allocation234_spill] sm:$0xff]  ;;  %v20010_v55 = vld [vmem:[#allocation36_spill] sm:$0xff]  ;;  %v20018_v27 = vld [vmem:[#allocation23_spill] sm:$0xff] }
 0x7c6   : > { %v9501_v52 = vsel %vm9488_vm9, %v9484_v11, %v16876_v4  ;;  %v9010_v48 = vpop.permute.xlu0 %9009  ;;  %v8948_v20 = vpop.permute.xlu1 %8947  ;;  %v20002_v4 = vcombine.high %v19908_v59, %v19909_v24  ;;  %v9405_v34 = vsel %vm252_vm0, %v9389_v54, %v20003_v6  ;;  %v20011_v11 = vld [vmem:[#allocation71_spill] sm:$0xff]  ;;  %v20020_v6 = vcombine.high %v19979_v44, %v19980_v63  ;;  %v20026_v63 = vld [vmem:[#allocation142_spill] sm:$0xff] }
 0x7c7   : > { %v17142_v32 = vsel %vm9505_vm10, %v9501_v52, %v9010_v48  ;;  %v17146_v53 = vsel %vm9488_vm9, %v16883_v13, %v8948_v20  ;;  %v20006_v13 = vld [vmem:[#allocation100_spill] sm:$0xff]  ;;  %v9422_v15 = vsel %vm9420_vm5, %v9405_v34, %v20008_v33  ;;  %v20016_v52 = vld [vmem:[#allocation150_spill] sm:$0xff]  ;;  %v20017_v20 = vld [vmem:[#allocation125_spill] sm:$0xff] }
 0x7c8   : > { %9269 = vrot.lane.b32.xlu0 %v20001_v62, %s11687_s6  ;;  %v20007_v26 = vcombine.low %v20005_v23, %v20006_v13  ;;  %v9439_v59 = vsel %vm9437_vm6, %v9422_v15, %v20010_v55  ;;  %v20019_v62 = vld [vmem:[#allocation274_spill] sm:$0xff]  ;;  %v20022_v34 = vld [vmem:[#allocation149_spill] sm:$0xff]  ;;  %v20032_v55 = vcombine.high %v19948_v12, %v19949_v50 }
 0x7c9   : > { %9191 = vrot.lane.b32.xlu1 %v20002_v4, %s11686_s24  ;;  %v9456_v25 = vsel %vm9454_vm7, %v9439_v59, %v20012_v47  ;;  %v20033_v59 = vld [vmem:[#allocation271_spill] sm:$0xff] }
 0x7ca   : > { %v9357_v61 = vsel %vm9353_vm2, %v20007_v26, %v20004_v51  ;;  %v9014_v42 = vpop.permute.xlu0 %9013  ;;  %v8952_v58 = vpop.permute.xlu1 %8951  ;;  %v9473_v48 = vsel %vm9471_vm8, %v9456_v25, %v20016_v52  ;;  %v20040_v52 = vld [vmem:[#allocation68_spill] sm:$0xff] }
 0x7cb   : > { %v9374_v18 = vsel %vm9370_vm3, %v9357_v61, %v20009_v38  ;;  %v17173_v24 = vsel %vm9505_vm10, %v16914_v45, %v9014_v42  ;;  %v17177_v7 = vsel %vm9488_vm9, %v16917_v57, %v8952_v58  ;;  %v20014_v45 = vcombine.high %v19915_v31, %v19916_v1  ;;  %v20015_v57 = vld [vmem:[#allocation242_spill] sm:$0xff]  ;;  %v20027_v61 = vld [vmem:[#allocation148_spill] sm:$0xff]  ;;  %v20029_v58 = vld [vmem:[#allocation39_spill] sm:$0xff] }
 0x7cc   : > { %v9391_v3 = vsel %vm9387_vm4, %v9374_v18, %v20011_v11  ;;  %9321 = vrot.lane.b32.xlu0 %v20013_v43, %s11688_s7  ;;  %v9490_v28 = vsel %vm9488_vm9, %v9473_v48, %v16944_v19  ;;  %v20021_v19 = vcombine.high %v19922_v8, %v19923_v29  ;;  %v20023_v8 = vcombine.high %v19988_v10, %v19989_v49  ;;  %v20034_v11 = vld [vmem:[#allocation232_spill] sm:$0xff]  ;;  %v20038_v43 = vld [vmem:[#allocation145_spill] sm:$0xff] }
 0x7cd   : > { %9195 = vrot.lane.b32.xlu1 %v20014_v45, %s11686_s24  ;;  %v9407_v16 = vsel %vm252_vm0, %v9391_v3, %v20015_v57  ;;  %v20024_v29 = vcombine.high %v19932_v37, %v19933_v21  ;;  %v20028_v33 = vcombine.low %v20026_v63, %v20027_v61  ;;  %v20030_v37 = vld [vmem:[#allocation244_spill] sm:$0xff]  ;;  %v20031_v18 = vcombine.high %v19999_v17, %v20000_v0  ;;  %v20035_v3 = vld [vmem:[#allocation26_spill] sm:$0xff] }
 0x7ce   : > { %v9424_v41 = vsel %vm9420_vm5, %v9407_v16, %v20017_v20  ;;  %v9050_v22 = vpop.permute.xlu0 %9049  ;;  %v8988_v5 = vpop.permute.xlu1 %8987  ;;  %v20039_v0 = vld [vmem:[#allocation52_spill] sm:$0xff]  ;;  %v20041_v20 = vld [vmem:[#allocation81_spill] sm:$0xff] }
 0x7cf   : > { %v9441_v54 = vsel %vm9437_vm6, %v9424_v41, %v20018_v27  ;;  %v17203_v31 = vsel %vm9522_vm11, %v16951_v30, %v9050_v22  ;;  %v17206_v1 = vsel %vm9505_vm10, %v9490_v28, %v8988_v5  ;;  %v20042_v28 = vld [vmem:[#allocation116_spill] sm:$0xff]  ;;  %v20044_v27 = vld [vmem:[#allocation262_spill] sm:$0xff] }
 0x7d0   : > { %v9458_v4 = vsel %vm9454_vm7, %v9441_v54, %v20019_v62  ;;  %9325 = vrot.lane.b32.xlu0 %v20020_v6, %s11688_s7  ;;  %v20043_v5 = vld [vmem:[#allocation260_spill] sm:$0xff]  ;;  %v20046_v62 = vld [vmem:[#allocation151_spill] sm:$0xff] }
 0x7d1   : > { %9199 = vrot.lane.b32.xlu1 %v20021_v19, %s11686_s24  ;;  %v9475_v30 = vsel %vm9471_vm8, %v9458_v4, %v20022_v34  ;;  %v20045_v54 = vcombine.low %v20043_v5, %v20044_v27  ;;  %v20047_v4 = vld [vmem:[#allocation287_spill] sm:$0xff] }
 0x7d2   : > { %v9492_v51 = vsel %vm9488_vm9, %v9475_v30, %v16978_v40  ;;  %v9054_v23 = vpop.permute.xlu0 %9053  ;;  %v8992_v13 = vpop.permute.xlu1 %8991  ;;  %v20025_v40 = vld [vmem:[#allocation231_spill] sm:$0xff]  ;;  %v20048_v6 = vcombine.low %v20046_v62, %v20047_v4  ;;  %v20051_v30 = vld [vmem:[#allocation256_spill] sm:$0xff] }
 0x7d3   : > { %v17224_v26 = vsel %vm9522_vm11, %v16985_v9, %v9054_v23  ;;  %v17227_v44 = vsel %vm9505_vm10, %v9492_v51, %v8992_v13  ;;  %v9363_v9 = vsel %vm9353_vm2, %v20028_v33, %v20025_v40  ;;  %v20053_v33 = vld [vmem:[#allocation135_spill] sm:$0xff] }
 0x7d4   : > { %9329 = vrot.lane.b32.xlu0 %v20023_v8, %s11688_s7  ;;  %v9380_v38 = vsel %vm9370_vm3, %v9363_v9, %v20029_v58 }
 0x7d5   : > { %9203 = vrot.lane.b32.xlu1 %v20024_v29, %s11686_s24  ;;  %v9397_v21 = vsel %vm9387_vm4, %v9380_v38, %v20030_v37  ;;  %v20052_v29 = vld [vmem:[#allocation84_spill] sm:$0xff] }
 0x7d6   : > { %v9058_v15 = vpop.permute.xlu0 %9057  ;;  %v8996_v42 = vpop.permute.xlu1 %8995  ;;  %v20058_v38 = vld [vmem:[#allocation180_spill] sm:$0xff] }
 0x7d7   : > { %v17246_v10 = vsel %vm9522_vm11, %v17017_v39, %v9058_v15  ;;  %v17250_v49 = vsel %vm9505_vm10, %v17021_v2, %v8996_v42  ;;  %v9413_v39 = vsel %vm252_vm0, %v9397_v21, %v20033_v59  ;;  %v20036_v2 = vld [vmem:[#allocation170_spill] sm:$0xff]  ;;  %v20055_v42 = vld [vmem:[#allocation279_spill] sm:$0xff]  ;;  %v20060_v21 = vld [vmem:[#allocation41_spill] sm:$0xff] }
 0x7d8   : > { %9333 = vrot.lane.b32.xlu0 %v20031_v18, %s11688_s7  ;;  %v20037_v47 = vcombine.low %v20035_v3, %v20036_v2  ;;  %v9430_v45 = vsel %vm9420_vm5, %v9413_v39, %v20038_v43  ;;  %v20054_v15 = vld [vmem:[#allocation38_spill] sm:$0xff]  ;;  %v20061_v3 = vld [vmem:[#allocation57_spill] sm:$0xff] }
 0x7d9   : > { %9207 = vrot.lane.b32.xlu1 %v20032_v55, %s11686_s24  ;;  %v9447_v12 = vsel %vm9437_vm6, %v9430_v45, %v20040_v52  ;;  %v20056_v58 = vcombine.low %v20054_v15, %v20055_v42  ;;  %v20062_v2 = vld [vmem:[#allocation58_spill] sm:$0xff] }
 0x7da   : > { %v9365_v25 = vsel %vm9353_vm2, %v20037_v47, %v20034_v11  ;;  %v9062_v57 = vpop.permute.xlu0 %9061  ;;  %v9000_v17 = vpop.permute.xlu1 %8999  ;;  %v9464_v22 = vsel %vm9454_vm7, %v9447_v12, %v20042_v28  ;;  %v20063_v47 = vcombine.low %v20061_v3, %v20062_v2  ;;  %v20065_v43 = vld [vmem:[#allocation202_spill] sm:$0xff]  ;;  %v20070_v12 = vld [vmem:[#allocation227_spill] sm:$0xff] }
 0x7db   : > { %v9382_v16 = vsel %vm9370_vm3, %v9365_v25, %v20039_v0  ;;  %v9529_v50 = vsel %vm9522_vm11, %v17053_v35, %v9062_v57  ;;  %v9513_v48 = vsel %vm9505_vm10, %v17057_v14, %v9000_v17  ;;  %v20049_v35 = vld [vmem:[#allocation104_spill] sm:$0xff]  ;;  %v20050_v14 = vld [vmem:[#allocation257_spill] sm:$0xff]  ;;  %v20064_v25 = vld [vmem:[#allocation199_spill] sm:$0xff] }
 0x7dc   : > { %v9399_v41 = vsel %vm9387_vm4, %v9382_v16, %v20041_v20  ;;  %9241 = vrot.lane.b32.xlu0 %v20045_v54, %s11687_s6  ;;  %v9481_v34 = vsel %vm9471_vm8, %v9464_v22, %v20050_v14  ;;  %v20066_v45 = vcombine.low %v20064_v25, %v20065_v43  ;;  %v20067_v0 = vld [vmem:[#allocation70_spill] sm:$0xff]  ;;  %v20071_v20 = vld [vmem:[#allocation223_spill] sm:$0xff] }
 0x7dd   : > { %9259 = vrot.lane.b32.xlu1 %v20048_v6, %s11687_s6  ;;  %v9415_v19 = vsel %vm252_vm0, %v9399_v41, %v20049_v35  ;;  %v9498_v23 = vsel %vm9488_vm9, %v9481_v34, %v17084_v36  ;;  %v20057_v36 = vld [vmem:[#allocation177_spill] sm:$0xff]  ;;  %v20068_v16 = vld [vmem:[#allocation282_spill] sm:$0xff]  ;;  %v20072_v41 = vcombine.low %v20070_v12, %v20071_v20  ;;  %v20074_v6 = vcombine.high %v20046_v62, %v20047_v4 }
 0x7de   : > { %v9432_v51 = vsel %vm9420_vm5, %v9415_v19, %v20051_v30  ;;  %v9066_v13 = vpop.permute.xlu0 %9065  ;;  %v9004_v8 = vpop.permute.xlu1 %9003  ;;  %v20059_v37 = vcombine.low %v20057_v36, %v20058_v38  ;;  %v20069_v52 = vcombine.low %v20067_v0, %v20068_v16  ;;  %v20078_v34 = vcombine.high %v20064_v25, %v20065_v43  ;;  %v20090_v25 = vld [vmem:[#allocation136_spill] sm:$0xff] }
 0x7df   : > { %v9449_v40 = vsel %vm9437_vm6, %v9432_v51, %v20052_v29  ;;  %v9531_v63 = vsel %vm9522_vm11, %v17091_v56, %v9066_v13  ;;  %v9515_v61 = vsel %vm9505_vm10, %v9498_v23, %v9004_v8  ;;  %v20080_v13 = vcombine.high %v20070_v12, %v20071_v20  ;;  %v20091_v43 = vld [vmem:[#allocation284_spill] sm:$0xff] }
 0x7e0   : > { %v9466_v9 = vsel %vm9454_vm7, %v9449_v40, %v20053_v33  ;;  %9245 = vrot.lane.b32.xlu0 %v20056_v58, %s11687_s6  ;;  %vm10791_vm0 = vcmask 1040384  }
 0x7e1   : > { %9263 = vrot.lane.b32.xlu1 %v20059_v37, %s11687_s6  ;;  %v9483_v18 = vsel %vm9471_vm8, %v9466_v9, %v20060_v21  ;;  %v20082_v9 = vld [vmem:[#allocation278_spill] sm:$0xff]  ;;  %v20085_v37 = vld [vmem:[#allocation280_spill] sm:$0xff] }
 0x7e2   : > { %v9500_v56 = vsel %vm9488_vm9, %v9483_v18, %v17113_v46  ;;  %v9070_v55 = vpop.permute.xlu0 %9069  ;;  %v9008_v59 = vpop.permute.xlu1 %9007 }
 0x7e3   : > { %v9533_v39 = vsel %vm9522_vm11, %v17118_v60, %v9070_v55  ;;  %v9517_v11 = vsel %vm9505_vm10, %v9500_v56, %v9008_v59  ;;  %v20087_v55 = vld [vmem:[#allocation117_spill] sm:$0xff] }
 0x7e4   : > { %9249 = vrot.lane.b32.xlu0 %v20063_v47, %s11687_s6  ;;  %v20088_v59 = vld [vmem:[#allocation281_spill] sm:$0xff] }
 0x7e5   : > { %9267 = vrot.lane.b32.xlu1 %v20066_v45, %s11687_s6  ;;  %v20092_v45 = vcombine.low %v20090_v25, %v20091_v43 }
 0x7e6   : > { %v9074_v57 = vpop.permute.xlu0 %9073  ;;  %v9012_v17 = vpop.permute.xlu1 %9011 }
 0x7e7   : > { %v9535_v46 = vsel %vm9522_vm11, %v17142_v32, %v9074_v57  ;;  %v9519_v60 = vsel %vm9505_vm10, %v17146_v53, %v9012_v17  ;;  %v20073_v53 = vcombine.high %v20043_v5, %v20044_v27  ;;  %v20076_v5 = vcombine.high %v20057_v36, %v20058_v38  ;;  %v20084_v38 = vld [vmem:[#allocation102_spill] sm:$0xff] }
 0x7e8   : > { %9253 = vrot.lane.b32.xlu0 %v20069_v52, %s11687_s6  ;;  %v20086_v21 = vcombine.low %v20084_v38, %v20085_v37  ;;  %v20094_v12 = vcombine.high %v20084_v38, %v20085_v37 }
 0x7e9   : > { %9271 = vrot.lane.b32.xlu1 %v20072_v41, %s11687_s6 }
 0x7ea   : > { %v9078_v28 = vpop.permute.xlu0 %9077  ;;  %v9016_v22 = vpop.permute.xlu1 %9015 }
 0x7eb   : > { %v9537_v54 = vsel %vm9522_vm11, %v17173_v24, %v9078_v28  ;;  %v9521_v32 = vsel %vm9505_vm10, %v17177_v7, %v9016_v22  ;;  %v20075_v7 = vcombine.high %v20054_v15, %v20055_v42 }
 0x7ec   : > { %9305 = vrot.lane.b32.xlu0 %v20073_v53, %s11688_s7 }
 0x7ed   : > { %9323 = vrot.lane.b32.xlu1 %v20074_v6, %s11688_s7 }
 0x7ee   : > { %v9114_v35 = vpop.permute.xlu0 %9113  ;;  %v9052_v19 = vpop.permute.xlu1 %9051 }
 0x7ef   : > { %v9540_v14 = vsel %vm9539_vm12, %v17203_v31, %v9114_v35  ;;  %v9524_v24 = vsel %vm9522_vm11, %v17206_v1, %v9052_v19  ;;  %v20077_v1 = vcombine.high %v20061_v3, %v20062_v2  ;;  %v20089_v3 = vcombine.low %v20087_v55, %v20088_v59 }
 0x7f0   : > { %9309 = vrot.lane.b32.xlu0 %v20075_v7, %s11688_s7  ;;  %v20096_v19 = vcombine.high %v20090_v25, %v20091_v43 }
 0x7f1   : > { %9327 = vrot.lane.b32.xlu1 %v20076_v5, %s11688_s7 }
 0x7f2   : > { %v9118_v27 = vpop.permute.xlu0 %9117  ;;  %v9056_v62 = vpop.permute.xlu1 %9055 }
 0x7f3   : > { %v9542_v4 = vsel %vm9539_vm12, %v17224_v26, %v9118_v27  ;;  %v9526_v31 = vsel %vm9522_vm11, %v17227_v44, %v9056_v62  ;;  %v20079_v44 = vcombine.high %v20067_v0, %v20068_v16 }
 0x7f4   : > { %9313 = vrot.lane.b32.xlu0 %v20077_v1, %s11688_s7 }
 0x7f5   : > { %9331 = vrot.lane.b32.xlu1 %v20078_v34, %s11688_s7 }
 0x7f6   : > { %v9122_v30 = vpop.permute.xlu0 %9121  ;;  %v9060_v51 = vpop.permute.xlu1 %9059 }
 0x7f7   : > { %v9544_v23 = vsel %vm9539_vm12, %v17246_v10, %v9122_v30  ;;  %v9528_v26 = vsel %vm9522_vm11, %v17250_v49, %v9060_v51  ;;  %v20081_v10 = vld [vmem:[#allocation276_spill] sm:$0xff] }
 0x7f8   : > { %9317 = vrot.lane.b32.xlu0 %v20079_v44, %s11688_s7  ;;  %v20083_v49 = vcombine.low %v20081_v10, %v20082_v9  ;;  %v20093_v0 = vcombine.high %v20081_v10, %v20082_v9 }
 0x7f9   : > { %9335 = vrot.lane.b32.xlu1 %v20080_v13, %s11688_s7 }
 0x7fa   : > { %v9126_v8 = vpop.permute.xlu0 %9125  ;;  %v9064_v29 = vpop.permute.xlu1 %9063 }
 0x7fb   : > { %v9546_v40 = vsel %vm9539_vm12, %v9529_v50, %v9126_v8  ;;  %v9530_v33 = vsel %vm9522_vm11, %v9513_v48, %v9064_v29 }
 0x7fd   : > { %9243 = vrot.lane.b32.xlu1 %v20083_v49, %s11687_s6 }
 0x7fe   : > { %v9130_v15 = vpop.permute.xlu0 %9129  ;;  %v9068_v42 = vpop.permute.xlu1 %9067 }
 0x7ff   : > { %v17396_v58 = vsel %vm9539_vm12, %v9531_v63, %v9130_v15  ;;  %v9532_v36 = vsel %vm9522_vm11, %v9515_v61, %v9068_v42 }
 0x801   : > { %9247 = vrot.lane.b32.xlu1 %v20086_v21, %s11687_s6  ;;  %v11689_v21 = vmov 1966171168  }
 0x802   : > { %v9134_v50 = vpop.permute.xlu0 %9133  ;;  %v9072_v18 = vpop.permute.xlu1 %9071 }
 0x803   : > { %v9550_v48 = vsel %vm9539_vm12, %v9533_v39, %v9134_v50  ;;  %v9534_v56 = vsel %vm9522_vm11, %v9517_v11, %v9072_v18  ;;  %v9617_v50 = vunpack.c.l.s4 %v11689_v21 }
 0x805   : > { %9251 = vrot.lane.b32.xlu1 %v20089_v3, %s11687_s6 }
 0x806   : > { %v9138_v63 = vpop.permute.xlu0 %9137  ;;  %v9076_v2 = vpop.permute.xlu1 %9075 }
 0x807   : > { %v9552_v61 = vsel %vm9539_vm12, %v9535_v46, %v9138_v63  ;;  %v9536_v47 = vsel %vm9522_vm11, %v9519_v60, %v9076_v2 }
 0x809   : > { %9255 = vrot.lane.b32.xlu1 %v20092_v45, %s11687_s6 }
 0x80a   : > { %v9142_v57 = vpop.permute.xlu0 %9141  ;;  %v9080_v39 = vpop.permute.xlu1 %9079 }
 0x80b   : > { %v9554_v11 = vsel %vm9539_vm12, %v9537_v54, %v9142_v57  ;;  %v9538_v17 = vsel %vm9522_vm11, %v9521_v32, %v9080_v39  ;;  %v20095_v54 = vcombine.high %v20087_v55, %v20088_v59  ;;  %v9618_v59 = vunpack.c.0.s8 %v9617_v50 }
 0x80d   : > { %9307 = vrot.lane.b32.xlu1 %v20093_v0, %s11688_s7 }
 0x80e   : > { %v9178_v46 = vpop.permute.xlu0 %9177  ;;  %v9116_v16 = vpop.permute.xlu1 %9115 }
 0x80f   : > { %v17422_v60 = vsel %vm9556_vm13, %v9540_v14, %v9178_v46  ;;  %v9541_v52 = vsel %vm9539_vm12, %v9524_v24, %v9116_v16 }
 0x811   : > { %9311 = vrot.lane.b32.xlu1 %v20094_v12, %s11688_s7 }
 0x812   : > { %v9182_v20 = vpop.permute.xlu0 %9181  ;;  %v9120_v41 = vpop.permute.xlu1 %9119 }
 0x813   : > { %v17430_v28 = vsel %vm9556_vm13, %v9542_v4, %v9182_v20  ;;  %v9543_v22 = vsel %vm9539_vm12, %v9526_v31, %v9120_v41 }
 0x815   : > { %9315 = vrot.lane.b32.xlu1 %v20095_v54, %s11688_s7 }
 0x816   : > { %v9186_v32 = vpop.permute.xlu0 %9185  ;;  %v9124_v53 = vpop.permute.xlu1 %9123 }
 0x817   : > { %v17438_v6 = vsel %vm9556_vm13, %v9544_v23, %v9186_v32  ;;  %v9545_v35 = vsel %vm9539_vm12, %v9528_v26, %v9124_v53 }
 0x819   : > { %9319 = vrot.lane.b32.xlu1 %v20096_v19, %s11688_s7 }
 0x81a   : > { %v9190_v14 = vpop.permute.xlu0 %9189  ;;  %v9128_v24 = vpop.permute.xlu1 %9127 }
 0x81b   : > { %v17446_v7 = vsel %vm9556_vm13, %v9546_v40, %v9190_v14  ;;  %v9547_v5 = vsel %vm9539_vm12, %v9530_v33, %v9128_v24 }
 0x81e   : > { %v9194_v27 = vpop.permute.xlu0 %9193  ;;  %v9132_v62 = vpop.permute.xlu1 %9131 }
 0x81f   : > { %v17450_v4 = vsel %vm9539_vm12, %v9532_v36, %v9132_v62  ;;  %v9565_v3 = vsel %vm9556_vm13, %v17396_v58, %v9194_v27 }
 0x822   : > { %v9198_v31 = vpop.permute.xlu0 %9197 }
 0x823   : > { %v9136_v1 = vpop.permute.xlu1 %9135  ;;  %v9567_v34 = vsel %vm9556_vm13, %v9550_v48, %v9198_v31 }
 0x824   : > { %v9551_v30 = vsel %vm9539_vm12, %v9534_v56, %v9136_v1 }
 0x826   : > { %v9202_v51 = vpop.permute.xlu0 %9201 }
 0x827   : > { %v9140_v23 = vpop.permute.xlu1 %9139  ;;  %v9569_v26 = vsel %vm9556_vm13, %v9552_v61, %v9202_v51 }
 0x828   : > { %v9553_v44 = vsel %vm9539_vm12, %v9536_v47, %v9140_v23  ;;  %v20100_v47 = vld [vmem:[#allocation12_spill] sm:$0xff] }
 0x829   : > { %v17477_v25 = vsub.s32 %v9618_v59, %v20100_v47 }
 0x82a   : > { %v9206_v13 = vpop.permute.xlu0 %9205 }
 0x82b   : > { %v9144_v8 = vpop.permute.xlu1 %9143  ;;  %v9571_v29 = vsel %vm9556_vm13, %v9554_v11, %v9206_v13 }
 0x82c   : > { %v17458_v40 = vsel %vm9539_vm12, %v9538_v17, %v9144_v8 }
 0x82e   : > { %v9258_v33 = vpop.permute.xlu0 %9257 }
 0x82f   : > { %v9180_v10 = vpop.permute.xlu1 %9179  ;;  %v9582_v63 = vsel %vm9573_vm14, %v9565_v3, %v9258_v33 }
 0x830   : > { %v17461_v9 = vsel %vm9556_vm13, %v9541_v52, %v9180_v10 }
 0x832   : > { %v9262_v49 = vpop.permute.xlu0 %9261 }
 0x833   : > { %v9184_v15 = vpop.permute.xlu1 %9183  ;;  %v9584_v57 = vsel %vm9573_vm14, %v9567_v34, %v9262_v49 }
 0x834   : > { %v17464_v42 = vsel %vm9556_vm13, %v9543_v22, %v9184_v15  ;;  %v20101_v15 = vld [vmem:[#allocation14_spill] sm:$0xff] }
 0x835   : > { %20097 = vst [vmem:[#allocation40_spill] sm:$0xff] %v17464_v42 }
 0x836   : > { %v9266_v36 = vpop.permute.xlu0 %9265 }
 0x837   : > { %v9188_v38 = vpop.permute.xlu1 %9187  ;;  %v9586_v41 = vsel %vm9573_vm14, %v9569_v26, %v9266_v36 }
 0x838   : > { %v17467_v37 = vsel %vm9556_vm13, %v9545_v35, %v9188_v38 }
 0x839   : > { %20098 = vst [vmem:[#allocation53_spill] sm:$0xff] %v17467_v37 }
 0x83a   : > { %v9270_v18 = vpop.permute.xlu0 %9269 }
 0x83b   : > { %v9192_v48 = vpop.permute.xlu1 %9191  ;;  %v9588_v56 = vsel %vm9573_vm14, %v9571_v29, %v9270_v18 }
 0x83c   : > { %v17471_v55 = vsel %vm9556_vm13, %v9547_v5, %v9192_v48 }
 0x83d   : > { %20099 = vst [vmem:[#allocation22_spill] sm:$0xff] %v17471_v55 }
 0x83e   : > { %v9322_v2 = vpop.permute.xlu0 %9321 }
 0x83f   : > { %v9196_v61 = vpop.permute.xlu1 %9195  ;;  %v9599_v43 = vsel %vm9590_vm15, %v9582_v63, %v9322_v2 }
 0x840   : > { %v10079_v45 = vcombine.high %v9599_v43, %v9599_v43  ;;  %v10086_v17 = vrot.slane %v9599_v43, %v17477_v25  ;;  %v17507_v34 = vsel %vm9556_vm13, %v17450_v4, %v9196_v61 }
 0x842   : > { %v9326_v39 = vpop.permute.xlu0 %9325  ;;  %v10093_v58 = vrot.slane %v10079_v45, %v17477_v25  ;;  %v10094_v12 = vcombine.high %v10086_v17, %v10086_v17  ;;  %v17487_v54 = vrot.slane %v10086_v17, %v17477_v25 }
 0x843   : > { %v9200_v11 = vpop.permute.xlu1 %9199  ;;  %v9601_v0 = vsel %vm9590_vm15, %v9584_v57, %v9326_v39 }
 0x844   : > { %v10177_v46 = vcombine.high %v9601_v0, %v9601_v0  ;;  %v10184_v20 = vrot.slane %v9601_v0, %v17477_v25  ;;  %v10095_v22 = vcombine.high %v10093_v58, %v10093_v58  ;;  %v17495_v24 = vrot.slane %v10094_v12, %v17477_v25 }
 0x845   : > { %v17498_v5 = vrot.slane %v10093_v58, %v17477_v25  ;;  %v10124_v1 = vcombine.high %v17487_v54, %v17487_v54  ;;  %v17510_v51 = vsel %vm9556_vm13, %v9551_v30, %v9200_v11 }
 0x846   : > { %v9330_v16 = vpop.permute.xlu0 %9329  ;;  %v10191_v32 = vrot.slane %v10177_v46, %v17477_v25  ;;  %v10192_v27 = vcombine.high %v10184_v20, %v10184_v20  ;;  %v17501_v31 = vrot.slane %v10095_v22, %v17477_v25  ;;  %v10126_v33 = vcombine.high %v17495_v24, %v17495_v24 }
 0x847   : > { %v9204_v52 = vpop.permute.xlu1 %9203  ;;  %v9603_v53 = vsel %vm9590_vm15, %v9586_v41, %v9330_v16  ;;  %v17520_v10 = vrot.slane %v10184_v20, %v17477_v25  ;;  %v10125_v49 = vcombine.high %v17498_v5, %v17498_v5  ;;  %v17540_v59 = vrot.slane %v10124_v1, %v20101_v15 }
 0x848   : > { %v17492_v35 = vsel %vm9556_vm13, %v9553_v44, %v9204_v52  ;;  %v10275_v62 = vcombine.high %v9603_v53, %v9603_v53  ;;  %v10193_v23 = vcombine.high %v10191_v32, %v10191_v32  ;;  %v10282_v26 = vrot.slane %v9603_v53, %v17477_v25 }
 0x849   : > { %v17531_v38 = vrot.slane %v10192_v27, %v17477_v25  ;;  %v17543_v3 = vrot.slane %v10191_v32, %v17477_v25  ;;  %v17553_v47 = vrot.slane %v10126_v33, %v20101_v15  ;;  %v10222_v57 = vcombine.high %v17520_v10, %v17520_v10 }
 0x84a   : > { %v9334_v19 = vpop.permute.xlu0 %9333  ;;  %v10289_v44 = vrot.slane %v10275_v62, %v17477_v25  ;;  %v10290_v21 = vcombine.high %v10282_v26, %v10282_v26  ;;  %v17546_v63 = vrot.slane %v10193_v23, %v17477_v25  ;;  %v17564_v11 = vrot.slane %v10282_v26, %v17477_v25 }
 0x84b   : > { %v9208_v14 = vpop.permute.xlu1 %9207  ;;  %v9605_v13 = vsel %vm9590_vm15, %v9588_v56, %v9334_v19  ;;  %v10224_v39 = vcombine.high %v17531_v38, %v17531_v38  ;;  %v17573_v58 = vrot.slane %v10125_v49, %v20101_v15  ;;  %v10223_v20 = vcombine.high %v17543_v3, %v17543_v3 }
 0x84c   : > { %v10373_v4 = vcombine.high %v9605_v13, %v9605_v13  ;;  %v17524_v30 = vsel %vm9556_vm13, %v17458_v40, %v9208_v14  ;;  %v10291_v18 = vcombine.high %v10289_v44, %v10289_v44  ;;  %v10380_v48 = vrot.slane %v9605_v13, %v17477_v25 }
 0x84d   : > { %v10127_v40 = vcombine.high %v17501_v31, %v17501_v31  ;;  %v17567_v17 = vrot.slane %v10289_v44, %v17477_v25  ;;  %v17570_v0 = vrot.slane %v10290_v21, %v17477_v25  ;;  %v10225_v41 = vcombine.high %v17546_v63, %v17546_v63 }
 0x84e   : > { %v9242_v8 = vpop.permute.xlu0 %9241  ;;  %v10387_v56 = vrot.slane %v10373_v4, %v17477_v25  ;;  %v17576_v46 = vrot.slane %v10291_v18, %v17477_v25  ;;  %v10388_v16 = vcombine.high %v10380_v48, %v10380_v48  ;;  %v17586_v22 = vrot.slane %v10380_v48, %v17477_v25 }
 0x84f   : > { %v17515_v29 = vpop.permute.xlu1 %9259  ;;  %v17579_v12 = vrot.slane %v10127_v40, %v20101_v15  ;;  %v17595_v27 = vrot.slane %v10222_v57, %v20101_v15  ;;  %v17600_v1 = vrot.slane %v10224_v39, %v20101_v15  ;;  %v10320_v23 = vcombine.high %v17564_v11, %v17564_v11 }
 0x850   : > { %v10389_v52 = vcombine.high %v10387_v56, %v10387_v56  ;;  %v10321_v26 = vcombine.high %v17567_v17, %v17567_v17  ;;  %v10322_v44 = vcombine.high %v17570_v0, %v17570_v0  ;;  %v10323_v13 = vcombine.high %v17576_v46, %v17576_v46 }
 0x851   : > { %v17611_v33 = vrot.slane %v10387_v56, %v17477_v25  ;;  %v17614_v4 = vrot.slane %v10388_v16, %v17477_v25  ;;  %v17622_v18 = vrot.slane %v10223_v20, %v20101_v15  ;;  %v17625_v48 = vrot.slane %v10225_v41, %v20101_v15 }
 0x852   : > { %v17548_v2 = vpop.permute.xlu0 %9245  ;;  %v17617_v49 = vrot.slane %v10389_v52, %v17477_v25  ;;  %v10418_v40 = vcombine.high %v17586_v22, %v17586_v22  ;;  %v9574_v20 = vsel %vm9573_vm14, %v17422_v60, %v9242_v8  ;;  %v17642_v41 = vrot.slane %v10320_v23, %v20101_v15 }
 0x853   : > { %v17550_v61 = vpop.permute.xlu1 %9263  ;;  %v17645_v21 = vrot.slane %v10322_v44, %v20101_v15  ;;  %v17650_v39 = vrot.slane %v10321_v26, %v20101_v15  ;;  %v17653_v16 = vrot.slane %v10323_v13, %v20101_v15  ;;  %v10419_v52 = vcombine.high %v17611_v33, %v17611_v33 }
 0x854   : > { %v10420_v60 = vcombine.high %v17614_v4, %v17614_v4  ;;  %v10421_v8 = vcombine.high %v17617_v49, %v17617_v49  ;;  %v17666_v26 = vrot.slane %v10418_v40, %v20101_v15  ;;  %v9583_v13 = vsel %vm9573_vm14, %v17507_v34, %v17515_v29 }
 0x855   : > { %v17683_v29 = vrot.slane %v10419_v52, %v20101_v15  ;;  %v9585_v52 = vsel %vm9573_vm14, %v17510_v51, %v17550_v61 }
 0x856   : > { %v9250_v32 = vpop.permute.xlu0 %9249  ;;  %v17680_v34 = vrot.slane %v10420_v60, %v20101_v15  ;;  %v17686_v19 = vrot.slane %v10421_v8, %v20101_v15 }
 0x857   : > { %v17588_v53 = vpop.permute.xlu1 %9267  ;;  %v17699_v60 = vsel %vm9573_vm14, %v17438_v6, %v9250_v32 }
 0x858   : > { %20102 = vst [vmem:[#allocation73_spill] sm:$0xff] %v17686_v19 }
 0x85a   : > { %v17629_v56 = vpop.permute.xlu0 %9253 }
 0x85b   : > { %v17631_v57 = vpop.permute.xlu1 %9271 }
 0x85e   : > { %v9306_v62 = vpop.permute.xlu0 %9305 }
 0x85f   : > { %v9324_v14 = vpop.permute.xlu1 %9323  ;;  %v9591_v23 = vsel %vm9590_vm15, %v9574_v20, %v9306_v62  ;;  %v9576_v62 = vsel %vm9573_vm14, %v17430_v28, %v17548_v2 }
 0x860   : > { %v9600_v43 = vsel %vm9590_vm15, %v9583_v13, %v9324_v14  ;;  %v9615_v44 = vcombine.high %v9591_v23, %v9591_v23  ;;  %v9622_v40 = vrot.slane %v9591_v23, %v17477_v25 }
 0x861   : > { %v10128_v50 = vcombine.high %v9600_v43, %v9600_v43  ;;  %v10135_v36 = vrot.slane %v9600_v43, %v17477_v25 }
 0x862   : > { %v9629_v14 = vrot.slane %v9615_v44, %v17477_v25  ;;  %v9630_v20 = vcombine.high %v9622_v40, %v9622_v40  ;;  %v9638_v23 = vrot.slane %v9622_v40, %v17477_v25  ;;  %v20103_v40 = vrot.slane %v17487_v54, %v20101_v15  ;;  %v9310_v42 = vpop.permute.xlu0 %9309 }
 0x863   : > { %v10142_v43 = vrot.slane %v10128_v50, %v17477_v25  ;;  %v9328_v13 = vpop.permute.xlu1 %9327  ;;  %v10143_v8 = vcombine.high %v10135_v36, %v10135_v36  ;;  %v17702_v45 = vrot.slane %v10135_v36, %v17477_v25 }
 0x864   : > { %v9631_v28 = vcombine.high %v9629_v14, %v9629_v14  ;;  %v9645_v2 = vrot.slane %v9629_v14, %v17477_v25  ;;  %v9652_v44 = vrot.slane %v9630_v20, %v17477_v25  ;;  %v9660_v50 = vcombine.high %v9638_v23, %v9638_v23 }
 0x865   : > { %v10792_v51 = vsel %vm10791_vm0, %v9638_v23, %v20103_v40  ;;  %v10144_v61 = vcombine.high %v10142_v43, %v10142_v43  ;;  %v17711_v6 = vrot.slane %v10142_v43, %v17477_v25  ;;  %v17714_v32 = vrot.slane %v10143_v8, %v17477_v25 }
 0x866   : > { %v9659_v36 = vrot.slane %v9631_v28, %v17477_v25  ;;  %v9661_v55 = vcombine.high %v9645_v2, %v9645_v2  ;;  %v9662_v14 = vcombine.high %v9652_v44, %v9652_v44  ;;  %v20104_v20 = vrot.slane %v17495_v24, %v20101_v15 }
 0x867   : > { %v17721_v54 = vpop.permute.xlu1 %9331  ;;  %v10794_v23 = vsel %vm10791_vm0, %v9660_v50, %v17540_v59  ;;  %v20105_v43 = vrot.slane %v17498_v5, %v20101_v15  ;;  %v17730_v28 = vrot.slane %v10144_v61, %v17477_v25  ;;  %v17748_v5 = vsel %vm9573_vm14, %v17446_v7, %v17629_v56 }
 0x868   : > { %v10793_v37 = vsel %vm10791_vm0, %v9652_v44, %v20104_v20  ;;  %v9663_v19 = vcombine.high %v9659_v36, %v9659_v36  ;;  %v10795_v24 = vsel %vm10791_vm0, %v9662_v14, %v17553_v47  ;;  %v20106_v44 = vrot.slane %v17501_v31, %v20101_v15 }
 0x869   : > { %v10796_v8 = vsel %vm10791_vm0, %v9645_v2, %v20105_v43  ;;  %v10920_v40 = vcombine.low %v10792_v51, %v10793_v37  ;;  %v10798_v59 = vsel %vm10791_vm0, %v9661_v55, %v17573_v58  ;;  %v17743_v37 = vsel %vm9573_vm14, %v17492_v35, %v17588_v53  ;;  %v20107_v53 = vld [vmem:[#allocation13_spill] sm:$0xff] }
 0x86a   : > { %v10797_v20 = vsel %vm10791_vm0, %v9659_v36, %v20106_v44  ;;  %v10921_v47 = vcombine.low %v10794_v23, %v10795_v24  ;;  %v10799_v31 = vsel %vm10791_vm0, %v9663_v19, %v17579_v12  ;;  %v10173_v50 = vcombine.high %v17702_v45, %v17702_v45 }
 0x86b   : > { %v10937_v2 = vcombine.low %v10796_v8, %v10797_v20  ;;  %v9593_v55 = vsel %vm9590_vm15, %v9576_v62, %v9310_v42  ;;  %v9602_v58 = vsel %vm9590_vm15, %v9585_v52, %v9328_v13  ;;  %v17757_v35 = vpop.permute.xlu1 %9335  ;;  %v10928_v51 = vrot.slane %v10920_v40, %v20107_v53  ;;  %v9314_v8 = vpop.permute.xlu0 %9313 }
 0x86c   : > { %v10935_v7 = vrot.slane %v10921_v47, %v20107_v53  ;;  %v10938_v56 = vcombine.low %v10798_v59, %v10799_v31  ;;  %v10175_v61 = vcombine.high %v17714_v32, %v17714_v32  ;;  %v17766_v12 = vsel %vm9573_vm14, %v17524_v30, %v17631_v57 }
 0x86d   : > { %v10945_v19 = vrot.slane %v10937_v2, %v20107_v53  ;;  %v10174_v42 = vcombine.high %v17711_v6, %v17711_v6  ;;  %v10176_v62 = vcombine.high %v17730_v28, %v17730_v28  ;;  %v10506_v36 = vrot.slane %v17702_v45, %v20101_v15 }
 0x86e   : > { %v10936_v13 = vcombine.low %v10928_v51, %v10935_v7  ;;  %v10952_v52 = vrot.slane %v10938_v56, %v20107_v53  ;;  %v10510_v14 = vrot.slane %v17714_v32, %v20101_v15  ;;  %v17779_v30 = vrot.slane %v10173_v50, %v20101_v15 }
 0x86f   : > { %v9713_v57 = vcombine.high %v9593_v55, %v9593_v55  ;;  %v9720_v23 = vrot.slane %v9593_v55, %v17477_v25  ;;  %v10226_v43 = vcombine.high %v9602_v58, %v9602_v58  ;;  %v17782_v40 = vpop.permute.xlu1 %9243  ;;  %v17789_v44 = vrot.slane %v10175_v61, %v20101_v15 }
 0x870   : > { %v10953_v24 = vcombine.low %v10945_v19, %v10952_v52  ;;  %11209 = vst.msk [vmem:[%s17784_s26] sm:$0xff] %vm11208_vm1, %v10936_v13  ;;  %v10233_v59 = vrot.slane %v9602_v58, %v17477_v25  ;;  %v9595_v56 = vsel %vm9590_vm15, %v17699_v60, %v9314_v8  ;;  %v20124_v45 = vrot.slane %v17711_v6, %v20101_v15 }
 0x871   : > { %v9727_v47 = vrot.slane %v9713_v57, %v17477_v25  ;;  %v9728_v2 = vcombine.high %v9720_v23, %v9720_v23  ;;  %v9736_v31 = vrot.slane %v9720_v23, %v17477_v25  ;;  %v10240_v50 = vrot.slane %v10226_v43, %v17477_v25 }
 0x872   : > { %11210 = vst.msk [vmem:[%s17784_s26 + $0x8] sm:$0xff] %vm11208_vm1, %v10953_v24  ;;  %v10241_v51 = vcombine.high %v10233_v59, %v10233_v59  ;;  %v17802_v7 = vrot.slane %v10233_v59, %v17477_v25  ;;  %v20108_v57 = vrot.slane %v17520_v10, %v20101_v15  ;;  %v20125_v32 = vrot.slane %v17730_v28, %v20101_v15 }
 0x873   : > { %v9729_v58 = vcombine.high %v9727_v47, %v9727_v47  ;;  %v9743_v61 = vrot.slane %v9727_v47, %v17477_v25  ;;  %v9750_v19 = vrot.slane %v9728_v2, %v17477_v25  ;;  %v9758_v13 = vcombine.high %v9736_v31, %v9736_v31  ;;  %v17808_v52 = vpop.permute.xlu1 %9247 }
 0x874   : > { %v10808_v23 = vsel %vm10791_vm0, %v9736_v31, %v20108_v57  ;;  %v10242_v43 = vcombine.high %v10240_v50, %v10240_v50  ;;  %v17815_v24 = vrot.slane %v10240_v50, %v17477_v25  ;;  %v17818_v59 = vrot.slane %v10241_v51, %v17477_v25 }
 0x875   : > { %v9757_v60 = vrot.slane %v9729_v58, %v17477_v25  ;;  %v9759_v8 = vcombine.high %v9743_v61, %v9743_v61  ;;  %v9760_v47 = vcombine.high %v9750_v19, %v9750_v19  ;;  %v20109_v2 = vrot.slane %v17531_v38, %v20101_v15 }
 0x876   : > { %v10810_v10 = vsel %vm10791_vm0, %v9758_v13, %v17595_v27  ;;  %v20110_v31 = vrot.slane %v17543_v3, %v20101_v15  ;;  %v17832_v51 = vrot.slane %v10242_v43, %v17477_v25  ;;  %v20111_v38 = vrot.slane %v17546_v63, %v20101_v15 }
 0x877   : > { %v10809_v55 = vsel %vm10791_vm0, %v9750_v19, %v20109_v2  ;;  %v9761_v58 = vcombine.high %v9757_v60, %v9757_v60  ;;  %v10811_v20 = vsel %vm10791_vm0, %v9760_v47, %v17600_v1  ;;  %v10814_v27 = vsel %vm10791_vm0, %v9759_v8, %v17622_v18 }
 0x878   : > { %v10812_v50 = vsel %vm10791_vm0, %v9743_v61, %v20110_v31  ;;  %v10988_v57 = vcombine.low %v10808_v23, %v10809_v55  ;;  %v10813_v19 = vsel %vm10791_vm0, %v9757_v60, %v20111_v38  ;;  %v17843_v3 = vrot.slane %v10174_v42, %v20101_v15  ;;  %v17853_v60 = vpop.permute.xlu1 %9251 }
 0x879   : > { %v17846_v55 = vrot.slane %v10176_v62, %v20101_v15  ;;  %v10989_v61 = vcombine.low %v10810_v10, %v10811_v20  ;;  %v11005_v13 = vcombine.low %v10812_v50, %v10813_v19  ;;  %v10815_v23 = vsel %vm10791_vm0, %v9761_v58, %v17625_v48 }
 0x87a   : > { %v10271_v1 = vcombine.high %v17802_v7, %v17802_v7  ;;  %v9811_v63 = vcombine.high %v9595_v56, %v9595_v56  ;;  %v9818_v43 = vrot.slane %v9595_v56, %v17477_v25  ;;  %v10996_v18 = vrot.slane %v10988_v57, %v20107_v53 }
 0x87b   : > { %v11003_v42 = vrot.slane %v10989_v61, %v20107_v53  ;;  %v11006_v62 = vcombine.low %v10814_v27, %v10815_v23  ;;  %v10273_v20 = vcombine.high %v17818_v59, %v17818_v59  ;;  %v11013_v8 = vrot.slane %v11005_v13, %v20107_v53 }
 0x87c   : > { %v10272_v48 = vcombine.high %v17815_v24, %v17815_v24  ;;  %v10274_v47 = vcombine.high %v17832_v51, %v17832_v51  ;;  %v9604_v56 = vsel %vm9590_vm15, %v17743_v37, %v17721_v54  ;;  %v10570_v31 = vrot.slane %v17802_v7, %v20101_v15 }
 0x87d   : > { %v11004_v2 = vcombine.low %v10996_v18, %v11003_v42  ;;  %v11020_v10 = vrot.slane %v11006_v62, %v20107_v53  ;;  %v17873_v57 = vrot.slane %v10271_v1, %v20101_v15  ;;  %v9825_v58 = vrot.slane %v9811_v63, %v17477_v25  ;;  %v17885_v42 = vpop.permute.xlu1 %9255 }
 0x87e   : > { %v9826_v38 = vcombine.high %v9818_v43, %v9818_v43  ;;  %v9834_v19 = vrot.slane %v9818_v43, %v17477_v25  ;;  %v17880_v54 = vrot.slane %v10273_v20, %v20101_v15  ;;  %v10324_v37 = vcombine.high %v9604_v56, %v9604_v56 }
 0x87f   : > { %v11021_v27 = vcombine.low %v11013_v8, %v11020_v10  ;;  %11213 = vst.msk [vmem:[%s17784_s26 + $0x20] sm:$0xff] %vm11208_vm1, %v11004_v2  ;;  %v10331_v61 = vrot.slane %v9604_v56, %v17477_v25  ;;  %v9827_v13 = vcombine.high %v9825_v58, %v9825_v58  ;;  %v9841_v23 = vrot.slane %v9825_v58, %v17477_v25 }
 0x880   : > { %v9848_v1 = vrot.slane %v9826_v38, %v17477_v25  ;;  %v9856_v18 = vcombine.high %v9834_v19, %v9834_v19  ;;  %v20112_v63 = vrot.slane %v17564_v11, %v20101_v15  ;;  %v10338_v62 = vrot.slane %v10324_v37, %v17477_v25 }
 0x881   : > { %11214 = vst.msk [vmem:[%s17784_s26 + $0x28] sm:$0xff] %vm11208_vm1, %v11021_v27  ;;  %v10339_v20 = vcombine.high %v10331_v61, %v10331_v61  ;;  %v17895_v8 = vrot.slane %v10331_v61, %v17477_v25  ;;  %v9855_v56 = vrot.slane %v9827_v13, %v17477_v25  ;;  %v9857_v2 = vcombine.high %v9841_v23, %v9841_v23 }
 0x882   : > { %v10824_v43 = vsel %vm10791_vm0, %v9834_v19, %v20112_v63  ;;  %v9858_v10 = vcombine.high %v9848_v1, %v9848_v1  ;;  %v20113_v58 = vrot.slane %v17570_v0, %v20101_v15  ;;  %v10826_v11 = vsel %vm10791_vm0, %v9856_v18, %v17642_v41 }
 0x883   : > { %v20114_v19 = vrot.slane %v17567_v17, %v20101_v15  ;;  %v10340_v61 = vcombine.high %v10338_v62, %v10338_v62  ;;  %v9859_v63 = vcombine.high %v9855_v56, %v9855_v56  ;;  %v20115_v50 = vrot.slane %v17576_v46, %v20101_v15 }
 0x884   : > { %v10825_v38 = vsel %vm10791_vm0, %v9848_v1, %v20113_v58  ;;  %v10827_v13 = vsel %vm10791_vm0, %v9858_v10, %v17645_v21  ;;  %v10830_v1 = vsel %vm10791_vm0, %v9857_v2, %v17650_v39  ;;  %v17924_v10 = vrot.slane %v10339_v20, %v17477_v25 }
 0x885   : > { %v10828_v27 = vsel %vm10791_vm0, %v9841_v23, %v20114_v19  ;;  %v11056_v37 = vcombine.low %v10824_v43, %v10825_v38  ;;  %v10829_v0 = vsel %vm10791_vm0, %v9855_v56, %v20115_v50  ;;  %v11057_v17 = vcombine.low %v10826_v11, %v10827_v13  ;;  %v9318_v43 = vpop.permute.xlu0 %9317  ;;  %v17931_v50 = vpop.permute.xlu1 %9307 }
 0x886   : > { %v11073_v18 = vcombine.low %v10828_v27, %v10829_v0  ;;  %v17919_v23 = vrot.slane %v10338_v62, %v17477_v25  ;;  %v10831_v21 = vsel %vm10791_vm0, %v9859_v63, %v17653_v16  ;;  %v17927_v46 = vrot.slane %v10340_v61, %v17477_v25 }
 0x887   : > { %v10369_v39 = vcombine.high %v17895_v8, %v17895_v8  ;;  %v11064_v62 = vrot.slane %v11056_v37, %v20107_v53  ;;  %v11071_v2 = vrot.slane %v11057_v17, %v20107_v53  ;;  %v11074_v16 = vcombine.low %v10830_v1, %v10831_v21 }
 0x888   : > { %v17938_v20 = vrot.slane %v10272_v48, %v20101_v15  ;;  %v17941_v58 = vrot.slane %v10274_v47, %v20101_v15  ;;  %v10371_v38 = vcombine.high %v17924_v10, %v17924_v10  ;;  %v9597_v11 = vsel %vm9590_vm15, %v17748_v5, %v9318_v43 }
 0x889   : > { %v11072_v19 = vcombine.low %v11064_v62, %v11071_v2  ;;  %v11081_v27 = vrot.slane %v11073_v18, %v20107_v53  ;;  %v11088_v37 = vrot.slane %v11074_v16, %v20107_v53  ;;  %v10370_v61 = vcombine.high %v17919_v23, %v17919_v23  ;;  %v9312_v62 = vpop.permute.xlu1 %9311 }
 0x88a   : > { %v10372_v48 = vcombine.high %v17927_v46, %v17927_v46  ;;  %v17958_v5 = vrot.slane %v10369_v39, %v20101_v15  ;;  %v9909_v0 = vcombine.high %v9597_v11, %v9597_v11  ;;  %v9916_v1 = vrot.slane %v9597_v11, %v17477_v25 }
 0x88b   : > { %v11089_v13 = vcombine.low %v11081_v27, %v11088_v37  ;;  %11217 = vst.msk [vmem:[%s17784_s26 + $0x40] sm:$0xff] %vm11208_vm1, %v11072_v19  ;;  %v9606_v17 = vsel %vm9590_vm15, %v17766_v12, %v17757_v35  ;;  %v17967_v18 = vrot.slane %v10371_v38, %v20101_v15  ;;  %v17979_v12 = vrot.slane %v10370_v61, %v20101_v15 }
 0x88c   : > { %v10422_v21 = vcombine.high %v9606_v17, %v9606_v17  ;;  %v10429_v39 = vrot.slane %v9606_v17, %v17477_v25  ;;  %v9923_v16 = vrot.slane %v9909_v0, %v17477_v25  ;;  %v9924_v11 = vcombine.high %v9916_v1, %v9916_v1 }
 0x88d   : > { %11218 = vst.msk [vmem:[%s17784_s26 + $0x48] sm:$0xff] %vm11208_vm1, %v11089_v13  ;;  %v9932_v35 = vrot.slane %v9916_v1, %v17477_v25  ;;  %v20116_v0 = vrot.slane %v17586_v22, %v20101_v15 }
 0x88e   : > { %v10436_v38 = vrot.slane %v10422_v21, %v17477_v25  ;;  %v10437_v19 = vcombine.high %v10429_v39, %v10429_v39  ;;  %v17983_v27 = vrot.slane %v10429_v39, %v17477_v25  ;;  %v9925_v37 = vcombine.high %v9923_v16, %v9923_v16 }
 0x88f   : > { %v9939_v13 = vrot.slane %v9923_v16, %v17477_v25  ;;  %v9946_v17 = vrot.slane %v9924_v11, %v17477_v25  ;;  %v9954_v2 = vcombine.high %v9932_v35, %v9932_v35  ;;  %v10840_v1 = vsel %vm10791_vm0, %v9932_v35, %v20116_v0 }
 0x890   : > { %v10438_v63 = vcombine.high %v10436_v38, %v10436_v38  ;;  %v17992_v61 = vrot.slane %v10436_v38, %v17477_v25  ;;  %v17995_v21 = vrot.slane %v10437_v19, %v17477_v25  ;;  %v9953_v39 = vrot.slane %v9925_v37, %v17477_v25  ;;  %v9316_v37 = vpop.permute.xlu1 %9315 }
 0x891   : > { %v9955_v43 = vcombine.high %v9939_v13, %v9939_v13  ;;  %v9956_v47 = vcombine.high %v9946_v17, %v9946_v17  ;;  %v20117_v16 = vrot.slane %v17614_v4, %v20101_v15  ;;  %v10842_v22 = vsel %vm10791_vm0, %v9954_v2, %v17666_v26 }
 0x892   : > { %v20118_v35 = vrot.slane %v17611_v33, %v20101_v15  ;;  %v18009_v19 = vrot.slane %v10438_v63, %v17477_v25  ;;  %v9957_v56 = vcombine.high %v9953_v39, %v9953_v39  ;;  %v20119_v4 = vrot.slane %v17617_v49, %v20101_v15 }
 0x893   : > { %v10841_v11 = vsel %vm10791_vm0, %v9946_v17, %v20117_v16  ;;  %v10843_v41 = vsel %vm10791_vm0, %v9956_v47, %v17680_v34  ;;  %v10846_v26 = vsel %vm10791_vm0, %v9955_v43, %v17683_v29  ;;  %v18020_v33 = vrot.slane %v10372_v48, %v20101_v15  ;;  %v20121_v47 = vld [vmem:[#allocation40_spill] sm:$0xff]  ;;  %v20122_v29 = vld [vmem:[#allocation53_spill] sm:$0xff] }
 0x894   : > { %v10844_v38 = vsel %vm10791_vm0, %v9939_v13, %v20118_v35  ;;  %v11124_v0 = vcombine.low %v10840_v1, %v10841_v11  ;;  %v10845_v17 = vsel %vm10791_vm0, %v9953_v39, %v20119_v4  ;;  %v11125_v2 = vcombine.low %v10842_v22, %v10843_v41  ;;  %v20120_v1 = vld [vmem:[#allocation73_spill] sm:$0xff] }
 0x895   : > { %v11141_v13 = vcombine.low %v10844_v38, %v10845_v17  ;;  %v9575_v63 = vsel %vm9573_vm14, %v17461_v9, %v17782_v40  ;;  %v10847_v34 = vsel %vm10791_vm0, %v9957_v56, %v20120_v1  ;;  %v10467_v49 = vcombine.high %v17983_v27, %v17983_v27  ;;  %v20123_v9 = vld [vmem:[#allocation22_spill] sm:$0xff] }
 0x896   : > { %v9577_v39 = vsel %vm9573_vm14, %v20121_v47, %v17808_v52  ;;  %v9579_v48 = vsel %vm9573_vm14, %v20122_v29, %v17853_v60  ;;  %v11132_v41 = vrot.slane %v11124_v0, %v20107_v53  ;;  %v11139_v43 = vrot.slane %v11125_v2, %v20107_v53  ;;  %v9320_v0 = vpop.permute.xlu1 %9319 }
 0x897   : > { %v11142_v16 = vcombine.low %v10846_v26, %v10847_v34  ;;  %v9581_v40 = vsel %vm9573_vm14, %v20123_v9, %v17885_v42  ;;  %v11149_v56 = vrot.slane %v11141_v13, %v20107_v53  ;;  %v10468_v11 = vcombine.high %v17992_v61, %v17992_v61 }
 0x898   : > { %v10469_v52 = vcombine.high %v17995_v21, %v17995_v21  ;;  %v10470_v60 = vcombine.high %v18009_v19, %v18009_v19  ;;  %v11140_v22 = vcombine.low %v11132_v41, %v11139_v43  ;;  %v10698_v38 = vrot.slane %v17983_v27, %v20101_v15 }
 0x899   : > { %v11156_v35 = vrot.slane %v11142_v16, %v20107_v53  ;;  %v10702_v42 = vrot.slane %v17995_v21, %v20101_v15  ;;  %v18053_v4 = vrot.slane %v10467_v49, %v20101_v15  ;;  %v9592_v17 = vsel %vm9590_vm15, %v9575_v63, %v17931_v50 }
 0x89a   : > { %v9594_v26 = vsel %vm9590_vm15, %v9577_v39, %v9312_v62  ;;  %v9596_v2 = vsel %vm9590_vm15, %v9579_v48, %v9316_v37  ;;  %11221 = vst.msk [vmem:[%s17784_s26 + $0x60] sm:$0xff] %vm11208_vm1, %v11140_v22  ;;  %v9664_v1 = vcombine.high %v9592_v17, %v9592_v17  ;;  %v9671_v34 = vrot.slane %v9592_v17, %v17477_v25 }
 0x89b   : > { %v11157_v13 = vcombine.low %v11149_v56, %v11156_v35  ;;  %v9762_v47 = vcombine.high %v9594_v26, %v9594_v26  ;;  %v9769_v29 = vrot.slane %v9594_v26, %v17477_v25  ;;  %v9860_v41 = vcombine.high %v9596_v2, %v9596_v2 }
 0x89c   : > { %v18064_v49 = vrot.slane %v9596_v2, %v17477_v25  ;;  %v18067_v43 = vsel %vm9590_vm15, %v9581_v40, %v9320_v0  ;;  %v9678_v50 = vrot.slane %v9664_v1, %v17477_v25  ;;  %v9679_v62 = vcombine.high %v9671_v34, %v9671_v34 }
 0x89d   : > { %11222 = vst.msk [vmem:[%s17784_s26 + $0x68] sm:$0xff] %vm11208_vm1, %v11157_v13  ;;  %v9687_v37 = vrot.slane %v9671_v34, %v17477_v25  ;;  %v9776_v63 = vrot.slane %v9762_v47, %v17477_v25  ;;  %v9777_v39 = vcombine.high %v9769_v29, %v9769_v29  ;;  %v9785_v48 = vrot.slane %v9769_v29, %v17477_v25 }
 0x89e   : > { %v9874_v16 = vrot.slane %v9860_v41, %v17477_v25  ;;  %v9875_v9 = vcombine.high %v18064_v49, %v18064_v49  ;;  %v9680_v56 = vcombine.high %v9678_v50, %v9678_v50  ;;  %v9694_v40 = vrot.slane %v9678_v50, %v17477_v25 }
 0x89f   : > { %v9701_v22 = vrot.slane %v9679_v62, %v17477_v25  ;;  %v9709_v35 = vcombine.high %v9687_v37, %v9687_v37  ;;  %v10800_v0 = vsel %vm10791_vm0, %v9687_v37, %v10506_v36  ;;  %v9778_v17 = vcombine.high %v9776_v63, %v9776_v63 }
 0x8a0   : > { %v9792_v26 = vrot.slane %v9776_v63, %v17477_v25  ;;  %v9799_v2 = vrot.slane %v9777_v39, %v17477_v25  ;;  %v9708_v13 = vrot.slane %v9680_v56, %v17477_v25  ;;  %v9710_v1 = vcombine.high %v9694_v40, %v9694_v40 }
 0x8a1   : > { %v9711_v34 = vcombine.high %v9701_v22, %v9701_v22  ;;  %v10801_v47 = vsel %vm10791_vm0, %v9701_v22, %v10510_v14  ;;  %v10802_v29 = vsel %vm10791_vm0, %v9709_v35, %v17779_v30  ;;  %v10804_v36 = vsel %vm10791_vm0, %v9694_v40, %v20124_v45 }
 0x8a2   : > { %v10954_v41 = vcombine.low %v10800_v0, %v10801_v47  ;;  %v9806_v50 = vrot.slane %v9778_v17, %v17477_v25  ;;  %v9712_v62 = vcombine.high %v9708_v13, %v9708_v13  ;;  %v10805_v14 = vsel %vm10791_vm0, %v9708_v13, %v20125_v32 }
 0x8a3   : > { %v10803_v37 = vsel %vm10791_vm0, %v9711_v34, %v17789_v44  ;;  %v10806_v30 = vsel %vm10791_vm0, %v9710_v1, %v17843_v3  ;;  %v10971_v39 = vcombine.low %v10804_v36, %v10805_v14  ;;  %v9807_v56 = vcombine.high %v9785_v48, %v9785_v48 }
 0x8a4   : > { %v10955_v63 = vcombine.low %v10802_v29, %v10803_v37  ;;  %v10962_v6 = vrot.slane %v10954_v41, %v20107_v53  ;;  %v10807_v40 = vsel %vm10791_vm0, %v9712_v62, %v17846_v55  ;;  %v9808_v22 = vcombine.high %v9792_v26, %v9792_v26 }
 0x8a5   : > { %v9809_v35 = vcombine.high %v9799_v2, %v9799_v2  ;;  %v9810_v0 = vcombine.high %v9806_v50, %v9806_v50  ;;  %v10972_v17 = vcombine.low %v10806_v30, %v10807_v40  ;;  %v10979_v28 = vrot.slane %v10971_v39, %v20107_v53 }
 0x8a6   : > { %v10969_v44 = vrot.slane %v10955_v63, %v20107_v53  ;;  %v10816_v3 = vsel %vm10791_vm0, %v9785_v48, %v10570_v31  ;;  %v20126_v13 = vrot.slane %v17818_v59, %v20101_v15  ;;  %v10818_v55 = vsel %vm10791_vm0, %v9807_v56, %v17873_v57 }
 0x8a7   : > { %v10819_v34 = vsel %vm10791_vm0, %v9809_v35, %v17880_v54  ;;  %v20127_v47 = vrot.slane %v17815_v24, %v20101_v15  ;;  %v10986_v7 = vrot.slane %v10972_v17, %v20107_v53  ;;  %v20128_v31 = vrot.slane %v17832_v51, %v20101_v15 }
 0x8a8   : > { %v10817_v1 = vsel %vm10791_vm0, %v9799_v2, %v20126_v13  ;;  %v10970_v45 = vcombine.low %v10962_v6, %v10969_v44  ;;  %v10822_v57 = vsel %vm10791_vm0, %v9808_v22, %v17938_v20  ;;  %v10823_v54 = vsel %vm10791_vm0, %v9810_v0, %v17941_v58 }
 0x8a9   : > { %v10820_v29 = vsel %vm10791_vm0, %v9792_v26, %v20127_v47  ;;  %v10821_v59 = vsel %vm10791_vm0, %v9806_v50, %v20128_v31  ;;  %v11022_v48 = vcombine.low %v10816_v3, %v10817_v1  ;;  %v11023_v2 = vcombine.low %v10818_v55, %v10819_v34 }
 0x8aa   : > { %v11039_v24 = vcombine.low %v10820_v29, %v10821_v59  ;;  %v10987_v36 = vcombine.low %v10979_v28, %v10986_v7  ;;  %11211 = vst.msk [vmem:[%s17784_s26 + $0x10] sm:$0xff] %vm11208_vm1, %v10970_v45  ;;  %v11040_v26 = vcombine.low %v10822_v57, %v10823_v54  ;;  %v9876_v41 = vcombine.high %v9874_v16, %v9874_v16 }
 0x8ab   : > { %v9883_v51 = vrot.slane %v18064_v49, %v17477_v25  ;;  %v11030_v62 = vrot.slane %v11022_v48, %v20107_v53  ;;  %v11037_v50 = vrot.slane %v11023_v2, %v20107_v53  ;;  %v9890_v58 = vrot.slane %v9874_v16, %v17477_v25 }
 0x8ac   : > { %v11047_v20 = vrot.slane %v11039_v24, %v20107_v53  ;;  %11212 = vst.msk [vmem:[%s17784_s26 + $0x18] sm:$0xff] %vm11208_vm1, %v10987_v36  ;;  %v11054_v37 = vrot.slane %v11040_v26, %v20107_v53  ;;  %v9897_v32 = vrot.slane %v9875_v9, %v17477_v25  ;;  %v9904_v14 = vrot.slane %v9876_v41, %v17477_v25 }
 0x8ad   : > { %v9905_v30 = vcombine.high %v9883_v51, %v9883_v51  ;;  %v11038_v49 = vcombine.low %v11030_v62, %v11037_v50  ;;  %v9906_v63 = vcombine.high %v9890_v58, %v9890_v58  ;;  %v20129_v6 = vrot.slane %v17895_v8, %v20101_v15 }
 0x8ae   : > { %v20130_v16 = vrot.slane %v17919_v23, %v20101_v15  ;;  %v11055_v40 = vcombine.low %v11047_v20, %v11054_v37  ;;  %v9907_v22 = vcombine.high %v9897_v32, %v9897_v32  ;;  %v9908_v35 = vcombine.high %v9904_v14, %v9904_v14 }
 0x8af   : > { %v10832_v39 = vsel %vm10791_vm0, %v9883_v51, %v20129_v6  ;;  %v20131_v9 = vrot.slane %v17924_v10, %v20101_v15  ;;  %11215 = vst.msk [vmem:[%s17784_s26 + $0x30] sm:$0xff] %vm11208_vm1, %v11038_v49  ;;  %v10834_v8 = vsel %vm10791_vm0, %v9905_v30, %v17958_v5  ;;  %v20132_v44 = vrot.slane %v17927_v46, %v20101_v15 }
 0x8b0   : > { %v10836_v56 = vsel %vm10791_vm0, %v9890_v58, %v20130_v16  ;;  %v10838_v17 = vsel %vm10791_vm0, %v9906_v63, %v17979_v12  ;;  %11216 = vst.msk [vmem:[%s17784_s26 + $0x38] sm:$0xff] %vm11208_vm1, %v11055_v40  ;;  %v10835_v10 = vsel %vm10791_vm0, %v9907_v22, %v17967_v18  ;;  %v10839_v3 = vsel %vm10791_vm0, %v9908_v35, %v18020_v33 }
 0x8b1   : > { %v10833_v0 = vsel %vm10791_vm0, %v9897_v32, %v20131_v9  ;;  %v10837_v23 = vsel %vm10791_vm0, %v9904_v14, %v20132_v44  ;;  %v9958_v5 = vcombine.high %v18067_v43, %v18067_v43  ;;  %v10710_v46 = vrot.slane %v10469_v52, %v20101_v15 }
 0x8b2   : > { %v11090_v28 = vcombine.low %v10832_v39, %v10833_v0  ;;  %v11107_v13 = vcombine.low %v10836_v56, %v10837_v23  ;;  %v11091_v1 = vcombine.low %v10834_v8, %v10835_v10  ;;  %v11108_v12 = vcombine.low %v10838_v17, %v10839_v3 }
 0x8b3   : > { %v9965_v55 = vrot.slane %v18067_v43, %v17477_v25  ;;  %v10714_v18 = vrot.slane %v17992_v61, %v20101_v15  ;;  %v9972_v47 = vrot.slane %v9958_v5, %v17477_v25  ;;  %v10718_v43 = vrot.slane %v18009_v19, %v20101_v15 }
 0x8b4   : > { %v11098_v34 = vrot.slane %v11090_v28, %v20107_v53  ;;  %v11115_v33 = vrot.slane %v11107_v13, %v20107_v53  ;;  %v11105_v29 = vrot.slane %v11091_v1, %v20107_v53  ;;  %v11122_v45 = vrot.slane %v11108_v12, %v20107_v53 }
 0x8b5   : > { %v9973_v52 = vcombine.high %v9965_v55, %v9965_v55  ;;  %v9981_v7 = vrot.slane %v9965_v55, %v17477_v25  ;;  %v10722_v31 = vrot.slane %v10468_v11, %v20101_v15  ;;  %v9974_v59 = vcombine.high %v9972_v47, %v9972_v47 }
 0x8b6   : > { %v9988_v57 = vrot.slane %v9972_v47, %v17477_v25  ;;  %v11106_v54 = vcombine.low %v11098_v34, %v11105_v29  ;;  %v11123_v48 = vcombine.low %v11115_v33, %v11122_v45  ;;  %v10726_v61 = vrot.slane %v10470_v60, %v20101_v15 }
 0x8b7   : > { %v9995_v2 = vrot.slane %v9973_v52, %v17477_v25  ;;  %v10003_v24 = vcombine.high %v9981_v7, %v9981_v7  ;;  %v10002_v36 = vrot.slane %v9974_v59, %v17477_v25  ;;  %v10848_v41 = vsel %vm10791_vm0, %v9981_v7, %v10698_v38 }
 0x8b8   : > { %v10004_v26 = vcombine.high %v9988_v57, %v9988_v57  ;;  %v10852_v51 = vsel %vm10791_vm0, %v9988_v57, %v10714_v18  ;;  %11219 = vst.msk [vmem:[%s17784_s26 + $0x50] sm:$0xff] %vm11208_vm1, %v11106_v54  ;;  %11220 = vst.msk [vmem:[%s17784_s26 + $0x58] sm:$0xff] %vm11208_vm1, %v11123_v48 }
 0x8b9   : > { %v10005_v25 = vcombine.high %v9995_v2, %v9995_v2  ;;  %v10849_v27 = vsel %vm10791_vm0, %v9995_v2, %v10702_v42  ;;  %v10850_v11 = vsel %vm10791_vm0, %v10003_v24, %v18053_v4  ;;  %v10006_v38 = vcombine.high %v10002_v36, %v10002_v36 }
 0x8ba   : > { %v10853_v62 = vsel %vm10791_vm0, %v10002_v36, %v10718_v43  ;;  %v10854_v19 = vsel %vm10791_vm0, %v10004_v26, %v10722_v31  ;;  %v11158_v60 = vcombine.low %v10848_v41, %v10849_v27 }
 0x8bb   : > { %v10851_v50 = vsel %vm10791_vm0, %v10005_v25, %v10710_v46  ;;  %v11175_v20 = vcombine.low %v10852_v51, %v10853_v62  ;;  %v10855_v58 = vsel %vm10791_vm0, %v10006_v38, %v10726_v61 }
 0x8bc   : > { %v11159_v15 = vcombine.low %v10850_v11, %v10851_v50  ;;  %v11176_v21 = vcombine.low %v10854_v19, %v10855_v58  ;;  %v11166_v42 = vrot.slane %v11158_v60, %v20107_v53 }
 0x8bd   : > { %v11183_v37 = vrot.slane %v11175_v20, %v20107_v53 }
 0x8be   : > { %v11173_v4 = vrot.slane %v11159_v15, %v20107_v53  ;;  %v11190_v32 = vrot.slane %v11176_v21, %v20107_v53 }
 0x8c0   : > { %v11174_v14 = vcombine.low %v11166_v42, %v11173_v4  ;;  %v11191_v30 = vcombine.low %v11183_v37, %v11190_v32 }
 0x8c2   : > { %11223 = vst.msk [vmem:[%s17784_s26 + $0x70] sm:$0xff] %vm11208_vm1, %v11174_v14  ;;  %11224 = vst.msk [vmem:[%s17784_s26 + $0x78] sm:$0xff] %vm11208_vm1, %v11191_v30 }
 0x8c3   : > { %11584 = shalt.err (!%p11581_p11)
}
 0x8c4   : > { %s11585_s22 = scalar_lea.hbm %s18234_s21, 2048  ;;  %s11589_s7 = scalar_lea.hbm %s18293_s3, 4096 }
 0x8c5   : > { %p11586_p0 = scmp.ne.s32.totalorder %s18234_s21, %s11585_s22  ;;  %p11590_p6 = scmp.lt.u32.totalorder %s18234_s21, %s18293_s3 }
 0x8c6   : > { %p11591_p7 = scmp.lt.u32.totalorder %s11589_s7, %s11585_s22  ;;  %p11593_p8 = scmp.lt.u32.totalorder %s11585_s22, %s18234_s21 }
 0x8c7   : > { %p11587_p4 = pnand %p11586_p0, %p20133_p2 }
 0x8c8   : > { %p11592_p12 = por %p11591_p7, %p11590_p6 }
 0x8c9   : > { %p11588_p13 = pneg %p11587_p4 }
 0x8ca   : > { %p11594_p1 = por %p11593_p8, %p11592_p12 }
 0x8cc   : > { %p11595_p10 = pnand %p11594_p1, %p11588_p13 }
 0x8ce   : > { %11598 = shalt.err (!%p11595_p10)
}
 0x8cf   : > { %s11691_s29 = smov 128  }
 0x8d0   : > { %11382 = dma.vmem_to_hbm [thread:$0]  (%p20133_p2), %s18236_s11, 2048, %s18234_s21, %s11226_s15, %s11691_s29, %s11691_s29, %s11678_s4  }
 0x8d1 PF: > { %s11256_s30 = sand.u32 1, %s11637_s12   ;;  %p20134_p3 = scmp.ne.s32.totalorder %s18730_s23, 0 }
 0x8d2   : > { %p20135_p5 = scmp.ge.s32.totalorder %s11657_s17, 2  ;;  %s11257_s5 = scalar_lea.sflag [#allocation4], %s11256_s30 }
 0x8d4   : > { %p11396_p9 = pnand %p20135_p5, %p20134_p3 }
 0x8d6   : > { %11632 = dma.done.wait (!%p11396_p9), %s11257_s5, 2048  }
 0x8d7   : > { %11634 = vsyncadd (!%p11396_p9), %s11257_s5, 4294965248  ;;  %s20_s17 = sadd.s32 1, %s11657_s17   ;;  %s20136_s12 = smov %s11641_s13 }
 0x8d8   : > { %p17_p11 = scmp.ge.s32.totalorder %s20_s17, 4   ;;  %s20137_s13 = smov %s11645_s14 }
 0x8d9   : > { %s20138_s14 = smov %s11854_s18  ;;  %s20139_s15 = smov %s11653_s16 }
 0x8da   : > { %s20140_s16 = smov %s20142_s19  ;;  %19 = sbr.rel (!%p17_p11) target bundleno = 7 (0x7), region = 85 }
 0x8e1   :  { %11262 = vsyncpa [#allocation3], 1 }
 0x8e2   :  { %11264 = vsyncpa [#allocation3 + $0x1], 1 }
 0x8e3   :  { %11265 = vsyncpa [#allocation6], 1 }
 0x8e4   :  { %11266 = vsyncpa [#allocation4], 1 }
 0x8e5   :  { %11268 = vsyncpa [#allocation4 + $0x1], 1 }

// kernel: tpu_custom_call.1
= control target key start
LH: loop header
LB: loop body
LE: loop exit
PB: predicated region body
PF: predicated region fallthrough
CT: control target
= control target key end

     0   :  { %8 = vsyncpa [#allocation3], 0  ;;  %s1034_s0 = inlined_call_operand.hbm [shape: f32[2,8,256], index: 0, kind: input, shape index: {}]   ;;  %s1035_s1 = inlined_call_operand.hbm [shape: f32[16,8], index: 1, kind: input, shape index: {}]   ;;  %s1036_s2 = inlined_call_operand.hbm [shape: f32[16,1], index: 2, kind: input, shape index: {}]   ;;  %s1037_s3 = inlined_call_operand.hbm [shape: f32[2,16,256], index: 3, kind: output, shape index: {}]  }
   0x1   :  { %10 = vsyncpa [#allocation3 + $0x1], 0 }
   0x2   :  { %11 = vsyncpa [#allocation6], 0 }
   0x3   :  { %12 = vsyncpa [#allocation4], 0 }
   0x4   :  { %14 = vsyncpa [#allocation4 + $0x1], 0  ;;  %s781_s12 = smov 0   ;;  %s783_s13 = smov 0  }
   0x5   :  { %s785_s14 = smov 0   ;;  %s787_s15 = smov 0  }
   0x6   :  { %s789_s16 = smov 0   ;;  %s791_s17 = smov 0  }
   0x7 LB: > { %s462_s18 = sadd.s32 4294967295, %s749_s17   ;;  %s463_s19 = sadd.s32 4294967294, %s749_s17   ;;  %s749_s17 = sphi %s791_s17, %s20_s17   ;;  %s745_s16 = sphi %s789_s16, %s1059_s16   ;;  %s741_s15 = sphi %s787_s15, %s1058_s15   ;;  %s737_s14 = sphi %s785_s14, %s1057_s14   ;;  %s733_s13 = sphi %s783_s13, %s1056_s13   ;;  %s729_s12 = sphi %s781_s12, %s1055_s12  }
   0x8   : > { %p54_p0 = scmp.ne.s32.totalorder %s733_s13, %s729_s12  ;;  %p815_p1 = scmp.eq.s32.totalorder %s462_s18, 0 }
   0x9   : > { %p819_p2 = scmp.eq.s32.totalorder %s462_s18, 1  ;;  %p128_p3 = scmp.eq.s32.totalorder %s463_s19, 1 }
   0xa   : > { %s1042_s20 = scalar_select %p815_p1, 1, 0 }
   0xb   : > { %p825_p4 = por %p815_p1, %p54_p0  ;;  %p464_p5 = scmp.ge.s32.totalorder %s749_s17, 1 }
   0xc   : > { %p830_p6 = por %p128_p3, %p54_p0  ;;  %p135_p7 = scmp.lt.s32.totalorder %s749_s17, 3 }
   0xd   : > { %s1044_s22 = scalar_select %p825_p4, 1, 0 }
   0xe   : > { %s1045_s23 = scalar_select %p830_p6, 1, 0 }
   0xf   : > { %p835_p8 = pnand %p464_p5, %p135_p7  ;;  %s751_s25 = smov [#allocation5]  }
  0x10   : > { %s147_s26 = sshll.u32 %s751_s25, 4  ;;  %s752_s28 = smov [#allocation7]   ;;  %s839_s26 = int_to_ptr.vmem [resolvable:$true] %s147_s26 }
  0x11   : > { %p499_p9 = pneg %p835_p8  ;;  %s160_s29 = sshll.u32 %s752_s28, 4  ;;  %s850_s29 = int_to_ptr.vmem [resolvable:$true] %s160_s29 }
  0x12   : > { %s577_s5 = scalar_lea.hbm %s1035_s1, 256 }
  0x13   : > { %p846_p11 = pnand %p499_p9, %p815_p1  ;;  %p578_p12 = scmp.ne.s32.totalorder %s1035_s1, %s577_s5 }
  0x14   : > { %p584_p5 = scmp.lt.u32.totalorder %s577_s5, %s1035_s1 }
  0x15   : > { %p579_p13 = pneg %p846_p11 }
  0x17   : > { %p580_p0 = pnand %p579_p13, %p578_p12 }
  0x19   : > { %p581_p3 = pneg %p580_p0 }
  0x1b   : > { %p586_p7 = pnand %p584_p5, %p581_p3 }
  0x1d   : > { %589 = shalt.err (!%p586_p7)
}
  0x1e   : > { %s590_s10 = scalar_lea.vmem %s839_s26, 256  ;;  %p598_p1 = scmp.lt.s32.totalorder %s839_s26, %s839_s26 }
  0x1f   : > { %p591_p9 = scmp.ne.s32.totalorder %s839_s26, %s590_s10  ;;  %p599_p12 = scmp.lt.s32.totalorder %s590_s10, %s590_s10 }
  0x21   : > { %p593_p10 = pnand %p591_p9, %p579_p13  ;;  %p600_p0 = por %p599_p12, %p598_p1 }
  0x23   : > { %p594_p6 = pneg %p593_p10 }
  0x25   : > { %p601_p4 = pnand %p600_p0, %p594_p6 }
  0x27   : > { %604 = shalt.err (!%p601_p4)
}
  0x28   : > { %s753_s11 = smov 128   ;;  %s754_s18 = smov 8  }
  0x29   : > { %502 = dma.hbm_to_vmem [thread:$0]  (!%p846_p11), %s1035_s1, 256, %s839_s26, [#allocation6], %s753_s11, %s753_s11, %s754_s18  }
  0x2a   : > { %s605_s4 = scalar_lea.hbm %s1036_s2, 256 }
  0x2b   : > { %p606_p1 = scmp.ne.s32.totalorder %s1036_s2, %s605_s4  ;;  %p612_p10 = scmp.lt.u32.totalorder %s605_s4, %s1036_s2 }
  0x2d   : > { %p608_p4 = pnand %p606_p1, %p579_p13 }
  0x2f   : > { %p609_p6 = pneg %p608_p4 }
  0x31   : > { %p614_p3 = pnand %p612_p10, %p609_p6 }
  0x33   : > { %617 = shalt.err (!%p614_p3)
}
  0x34   : > { %s618_s26 = scalar_lea.vmem %s850_s29, 256  ;;  %p626_p12 = scmp.lt.s32.totalorder %s850_s29, %s850_s29 }
  0x35   : > { %p619_p5 = scmp.ne.s32.totalorder %s850_s29, %s618_s26  ;;  %p627_p0 = scmp.lt.s32.totalorder %s618_s26, %s618_s26 }
  0x37   : > { %p621_p7 = pnand %p619_p5, %p579_p13  ;;  %p628_p1 = por %p627_p0, %p626_p12 }
  0x39   : > { %p622_p9 = pneg %p621_p7 }
  0x3b   : > { %p629_p4 = pnand %p628_p1, %p622_p9 }
  0x3d   : > { %632 = shalt.err (!%p629_p4)
}
  0x3e   : > { %505 = dma.hbm_to_vmem [thread:$0]  (!%p846_p11), %s1036_s2, 256, %s850_s29, [#allocation6], %s753_s11, %s753_s11, %s754_s18  }
  0x3f   : > { %s32_s19 = sadd.s32 1, %s745_s16  ;;  %s41_s25 = sadd.s32 1, %s737_s14 }
  0x40   : > { %p34_p13 = scmp.ge.s32.totalorder %s32_s19, 2  ;;  %p48_p6 = scmp.ne.s32.totalorder %s737_s14, %s733_s13 }
  0x41   : > { %p49_p10 = scmp.eq.s32.totalorder %s749_s17, 0  ;;  %p516_p3 = scmp.lt.s32.totalorder %s749_s17, 2 }
  0x42   : > { %s1061_s19 = smov (%p34_p13, %s32_s19), 0  ;;  %p914_p7 = por %p819_p2, %p48_p6 }
  0x43   : > { %p50_p5 = por %p49_p10, %p48_p6  ;;  %s36_s28 = ssub.s32 %s745_s16, %s1061_s19 }
  0x44   : > { %s1048_s27 = scalar_select %p914_p7, 1, 0 }
  0x45   : > { %s174_s30 = sand.u32 1, %s737_s14   ;;  %p39_p9 = scmp.eq.s32.totalorder %s36_s28, 0 }
  0x46   : > { %s468_s29 = sshll.u32 %s174_s30, 4  ;;  %s483_s11 = sshll.u32 %s745_s16, 8 }
  0x47   : > { %s923_s18 = scalar_select %p39_p9, %s737_s14, %s41_s25  }
  0x48   : > { %s928_s6 = scalar_lea.hbm %s1034_s0, %s483_s11  ;;  %s178_s21 = scalar_lea.vmem [#allocation2], %s468_s29 }
  0x49   : > { %s188_s7 = sshll.u32 %s178_s21, 4  ;;  %p932_p2 = pnand %p516_p3, %p50_p5  ;;  %s936_s7 = int_to_ptr.vmem [resolvable:$true] %s188_s7 }
  0x4a   : > { %s175_s26 = scalar_lea.sflag [#allocation3], %s174_s30  ;;  %s633_s9 = scalar_lea.hbm %s928_s6, 256 }
  0x4b   : > { %p634_p11 = scmp.ne.s32.totalorder %s928_s6, %s633_s9  ;;  %p635_p12 = pneg %p932_p2 }
  0x4c   : > { %s638_s28 = scalar_lea.hbm %s1034_s0, 512  ;;  %p639_p4 = scmp.lt.u32.totalorder %s928_s6, %s1034_s0 }
  0x4d   : > { %p636_p0 = pnand %p635_p12, %p634_p11  ;;  %p640_p13 = scmp.lt.u32.totalorder %s638_s28, %s633_s9 }
  0x4e   : > { %p642_p10 = scmp.lt.u32.totalorder %s633_s9, %s928_s6 }
  0x4f   : > { %p637_p1 = pneg %p636_p0  ;;  %p641_p6 = por %p640_p13, %p639_p4 }
  0x51   : > { %p643_p3 = por %p642_p10, %p641_p6 }
  0x53   : > { %p644_p5 = pnand %p643_p3, %p637_p1 }
  0x55   : > { %647 = shalt.err (!%p644_p5)
}
  0x56   : > { %s648_s30 = scalar_lea.vmem %s936_s7, 256  ;;  %s755_s4 = smov [#allocation2]  }
  0x57   : > { %p649_p9 = scmp.ne.s32.totalorder %s936_s7, %s648_s30  ;;  %s653_s5 = sshll.u32 %s755_s4, 4  ;;  %s654_s5 = int_to_ptr.vmem [resolvable:$false] %s653_s5 }
  0x58   : > { %s655_s21 = scalar_lea.vmem %s654_s5, 512  ;;  %p656_p7 = scmp.lt.s32.totalorder %s936_s7, %s654_s5 }
  0x59   : > { %p651_p11 = pnand %p649_p9, %p635_p12  ;;  %p657_p4 = scmp.lt.s32.totalorder %s655_s21, %s648_s30 }
  0x5b   : > { %p652_p0 = pneg %p651_p11  ;;  %p658_p13 = por %p657_p4, %p656_p7 }
  0x5d   : > { %p659_p6 = pnand %p658_p13, %p652_p0 }
  0x5f   : > { %662 = shalt.err (!%p659_p6)
}
  0x60   : > { %509 = dma.hbm_to_vmem [thread:$0]  (!%p932_p2), %s928_s6, 256, %s936_s7, %s175_s26  }
  0x61   : > { %197 = sbr.rel (%p835_p8) target bundleno = 343 (0x157), region = 32  ;;  %s966_s9 = sand.u32 (!%p835_p8), 1, %s733_s13  }
  0x62   : > { %s472_s10 = sshll.u32 (!%p835_p8), %s966_s9, 4  ;;  %s200_s25 = scalar_lea.sflag (!%p835_p8), [#allocation3], %s966_s9 }
  0x63   : > { %s203_s28 = scalar_lea.vmem (!%p835_p8), [#allocation2], %s472_s10  ;;  %p1050_p7 = scmp.ne.s32.totalorder (!%p835_p8), %s1044_s22, 0 }
  0x68   : > { %716 = dma.done.wait (%p1050_p7), %s200_s25, 256  }
  0x69   : > { %718 = vsyncadd (%p1050_p7), %s200_s25, 4294967040  ;;  %p1051_p12 = scmp.ne.s32.totalorder %s1042_s20, 0 }
  0x6b   : > { %720 = dma.done.wait (%p1051_p12), [#allocation6], 512  }
  0x6c   : > { %722 = vsyncadd (%p1051_p12), [#allocation6], 4294966784  ;;  %v756_v0 = vmov 0.0   ;;  %v757_v1 = vmov 0   ;;  %v239_v2 = vld [vmem:[%s203_s28 + $0x8] sm:$0xff]  ;;  %v238_v3 = vld [vmem:[%s203_s28] sm:$0xff] }
  0x6d   : > { %323 = vmatprep.mubr.f32.mxu0 %v756_v0  ;;  %329 = vmatprep.mubr.f32.mxu1 %v756_v0  ;;  %v236_v4 = vld [vmem:[#allocation5] sm:$0xff]  ;;  %vm252_vm0 = vcmask 64512   ;;  %v237_v5 = vld [vmem:[#allocation5 + $0x8] sm:$0xff]  ;;  %v240_v6 = vld [vmem:[#allocation7] sm:$0xff]  ;;  %s475_s20 = sshll.u32 %s966_s9, 5  ;;  %s484_s6 = sshll.u32 %s741_s15, 9 }
  0x6e   : > { %576 = vset.pattern.permute.xlu0 %v757_v1  ;;  %259 = vmatprep.subr.mxu0 %v239_v2  ;;  %v241_v7 = vld [vmem:[#allocation7 + $0x8] sm:$0xff]  ;;  %s233_s22 = scalar_lea.vmem [#allocation8], %s475_s20  ;;  %s985_s26 = scalar_lea.hbm %s1037_s3, %s484_s6 }
  0x6f   : > { %485 = vmatprep.subr.mxu1 %v239_v2  ;;  %260 = vmatpush1.msra.mxu0 %v238_v3  ;;  %s356_s24 = sshll.u32 %s233_s22, 4  ;;  %s341_s15 = scalar_lea.sflag [#allocation4], %s966_s9  ;;  %s980_s24 = int_to_ptr.vmem [resolvable:$true] %s356_s24 }
  0x70   : > { %486 = vmatpush1.msra.mxu1 %v238_v3  ;;  %476 = vmatmul.mubr.msk.f32.vlgmr.msra.gmra.mrb[0].mxu0 %vm252_vm0, %v236_v4  ;;  %s663_s29 = scalar_lea.vmem %s980_s24, 512  ;;  %p1052_p2 = scmp.ne.s32.totalorder %s1048_s27, 0 }
  0x71   : > { %477 = vmatmul.mubr.msk.f32.vlgmr.msra.gmra.mrb[0].mxu1 %vm252_vm0, %v237_v5  ;;  %244 = vperm.xlu0 %576, %v240_v6   ;;  %p664_p8 = scmp.ne.s32.totalorder %s980_s24, %s663_s29  ;;  %s758_s11 = smov [#allocation8]  }
  0x72   : > { %s667_s30 = sshll.u32 %s758_s11, 4  ;;  %s668_s30 = int_to_ptr.vmem [resolvable:$false] %s667_s30 }
  0x73   : > { %p665_p1 = pnand %p664_p8, %p1052_p2  ;;  %s669_s4 = scalar_lea.vmem %s668_s30, 1024 }
  0x74   : > { %p670_p3 = scmp.lt.s32.totalorder %s980_s24, %s668_s30  ;;  %p671_p5 = scmp.lt.s32.totalorder %s669_s4, %s663_s29 }
  0x75   : > { %249 = vperm.xlu0 %576, %v241_v7   ;;  %p666_p10 = pneg %p665_p1 }
  0x76   : > { %p672_p9 = por %p671_p5, %p670_p3 }
  0x78   : > { %p673_p11 = pnand %p672_p9, %p666_p10 }
  0xf0   : > { %v245_v8 = vpop.permute.xlu0 %244 }
  0xf4   : > { %v250_v9 = vpop.permute.xlu0 %249 }
 0x143   : > { %v325_v10 = vpop.f32.mrb[0].mxu0 }
 0x144   : > { %v331_v11 = vpop.f32.mrb[0].mxu1  ;;  %v326_v12 = vadd.f32 %v325_v10, %v245_v8  ;;  %v327_v14 = vpop.f32.mrb[1].mxu0 }
 0x145   : > { %v332_v13 = vadd.f32 %v331_v11, %v250_v9  ;;  %v333_v15 = vpop.f32.mrb[1].mxu1  ;;  %v328_v16 = vadd.f32 %v327_v14, %v245_v8 }
 0x146   : > { %v334_v17 = vadd.f32 %v333_v15, %v250_v9  ;;  %336 = vst [vmem:[%s233_s22] sm:$0xff] %v326_v12 }
 0x147   : > { %338 = vst [vmem:[%s233_s22 + $0x10] sm:$0xff] %v332_v13  ;;  %337 = vst [vmem:[%s233_s22 + $0x8] sm:$0xff] %v328_v16 }
 0x148   : > { %339 = vst [vmem:[%s233_s22 + $0x18] sm:$0xff] %v334_v17 }
 0x149   : > { %676 = shalt.err (!%p673_p11)
}
 0x14a   : > { %s677_s5 = scalar_lea.hbm %s985_s26, 512  ;;  %s681_s25 = scalar_lea.hbm %s1037_s3, 1024 }
 0x14b   : > { %p678_p0 = scmp.ne.s32.totalorder %s985_s26, %s677_s5  ;;  %p682_p6 = scmp.lt.u32.totalorder %s985_s26, %s1037_s3 }
 0x14c   : > { %p683_p7 = scmp.lt.u32.totalorder %s681_s25, %s677_s5  ;;  %p685_p8 = scmp.lt.u32.totalorder %s677_s5, %s985_s26 }
 0x14d   : > { %p679_p4 = pnand %p678_p0, %p1052_p2 }
 0x14e   : > { %p684_p12 = por %p683_p7, %p682_p6 }
 0x14f   : > { %p680_p13 = pneg %p679_p4 }
 0x150   : > { %p686_p1 = por %p685_p8, %p684_p12 }
 0x152   : > { %p687_p10 = pnand %p686_p1, %p680_p13 }
 0x154   : > { %690 = shalt.err (!%p687_p10)
}
 0x155   : > { %s759_s22 = smov 256   ;;  %s760_s6 = smov 16  }
 0x156   : > { %497 = dma.vmem_to_hbm [thread:$0]  (%p1052_p2), %s980_s24, 512, %s985_s26, %s341_s15, %s759_s22, %s759_s22, %s760_s6  }
 0x157 PF: > { %s371_s7 = sand.u32 1, %s729_s12   ;;  %p1053_p3 = scmp.ne.s32.totalorder %s1045_s23, 0 }
 0x158   : > { %p1054_p5 = scmp.ge.s32.totalorder %s749_s17, 2  ;;  %s372_s8 = scalar_lea.sflag [#allocation4], %s371_s7 }
 0x15a   : > { %p511_p9 = pnand %p1054_p5, %p1053_p3 }
 0x15c   : > { %724 = dma.done.wait (!%p511_p9), %s372_s8, 512  }
 0x15d   : > { %726 = vsyncadd (!%p511_p9), %s372_s8, 4294966784  ;;  %s20_s17 = sadd.s32 1, %s749_s17   ;;  %s1055_s12 = smov %s733_s13 }
 0x15e   : > { %p17_p11 = scmp.ge.s32.totalorder %s20_s17, 4   ;;  %s1056_s13 = smov %s737_s14 }
 0x15f   : > { %s1057_s14 = smov %s923_s18  ;;  %s1058_s15 = smov %s745_s16 }
 0x160   : > { %s1059_s16 = smov %s1061_s19  ;;  %19 = sbr.rel (!%p17_p11) target bundleno = 7 (0x7), region = 85 }
 0x167   :  { %377 = vsyncpa [#allocation3], 1 }
 0x168   :  { %379 = vsyncpa [#allocation3 + $0x1], 1 }
 0x169   :  { %380 = vsyncpa [#allocation6], 1 }
 0x16a   :  { %381 = vsyncpa [#allocation4], 1 }
 0x16b   :  { %383 = vsyncpa [#allocation4 + $0x1], 1 }

</bundles_post_ra>
